<compile_context>
chip_gen: v6e
topology: v6e:2x2x1
jax: 0.10.0
libtpu: 0.0.40
codegen_flags: <defaults>
</compile_context>

<pallas_src>
import numpy as np

import jax
import jax.numpy as jnp
from jax import lax
from jax.experimental import pallas as pl
from jax.experimental.pallas import tpu as pltpu

MXU_DTYPE = jnp.bfloat16  # matmul-operand dtype


# ------------------------------ Pallas kernel -------------------------------

def _lenet5_kernel(x_ref, w1_ref, b1_ref, p1_ref, w2_ref, b2_ref, p2_ref,
                   wfc1_ref, bfc1_ref, wfc2_ref, bfc2_ref, wfc3_ref, bfc3_ref,
                   o_ref, acc1_ref, x1_ref):
    f32 = jnp.float32

    # ---- conv1 (5x5, 1->6) + bias + ReLU, "wide" layout (24 rows x 28 cols) --
    # Width taps are pre-packed into the 8 input lanes, so only the 5 kernel-row
    # taps remain: acc1[m, co] with m = oh*28 + ow_wide (ow_wide < 24 is valid;
    # the pooling matmul below never selects invalid columns).
    for ki in range(5):
        off = ki * 28
        xs = x_ref[0, off:off + 672, :].astype(MXU_DTYPE)          # (672, 8)
        contrib = jnp.dot(xs, w1_ref[ki], preferred_element_type=f32)
        if ki == 0:
            acc1_ref[...] = contrib
        else:
            acc1_ref[...] += contrib
    relu1 = jnp.maximum(acc1_ref[...] + b1_ref[...], 0.0).astype(MXU_DTYPE)

    # ---- pool1: 2x2 avg as constant matmul; output rows 144..159 are the zero
    #      padding needed by conv2's shifted slices ----
    x1_ref[...] = jnp.dot(p1_ref[...], relu1, preferred_element_type=f32)  # (160,128) f32

    # ---- conv2 (5x5, 6->16) + bias + ReLU, wide layout (8 rows x 12 cols) ----
    acc2 = None
    for tap in range(25):
        ki, kj = divmod(tap, 5)
        off = ki * 12 + kj
        xs = x1_ref[off:off + 96, :].astype(MXU_DTYPE)              # (96, 128)
        contrib = jnp.dot(xs, w2_ref[tap], preferred_element_type=f32)
        acc2 = contrib if acc2 is None else acc2 + contrib
    relu2 = jnp.maximum(acc2 + b2_ref[...], 0.0).astype(MXU_DTYPE)  # (96, 128)

    # ---- pool2: 2x2 avg as constant matmul -> (16, 128), rows = spatial s ----
    pooled2 = jnp.dot(p2_ref[...], relu2,
                      preferred_element_type=f32).astype(MXU_DTYPE)  # (16, 128)

    # ---- fc1: PyTorch's C*H*W flatten is folded into per-spatial weight
    #      slabs wfc1[s, c, j] = fc1_w[j, c*16 + s]; accumulate row s of
    #      pooled2 @ wfc1[s] over the 16 spatial positions (no transpose). ----
    h1 = bfc1_ref[...]                                              # (1, 128) f32
    for s in range(16):
        g = jnp.dot(pooled2, wfc1_ref[s], preferred_element_type=f32)  # (16,128)
        h1 = h1 + g[s:s + 1, :]
    h1 = jnp.maximum(h1, 0.0)

    # ---- fc2 / fc3 (broadcast to 8 sublanes -> native MXU row tile) ----
    h1b = jnp.broadcast_to(h1, (8, 128)).astype(MXU_DTYPE)
    h2 = jnp.maximum(
        jnp.dot(h1b, wfc2_ref[...], preferred_element_type=f32) + bfc2_ref[...],
        0.0)
    h3 = (jnp.dot(h2.astype(MXU_DTYPE), wfc3_ref[...], preferred_element_type=f32)
          + bfc3_ref[...])                                          # (8, 128) f32
    o_ref[...] = h3.reshape(1, 8, 128)


# --------------------------- host-side preparation ---------------------------

def _pool_matrix(out_hw, in_w, rows_pad, cols):
    """Constant 2x2-average matrix: row ph*out_hw+pw selects the four wide-layout
    positions (2ph+dh)*in_w + (2pw+dw) with weight 0.25; extra rows stay zero."""
    m = np.zeros((rows_pad, cols), np.float32)
    for ph in range(out_hw):
        for pw in range(out_hw):
            r = ph * out_hw + pw
            for dh in range(2):
                for dw in range(2):
                    m[r, (2 * ph + dh) * in_w + (2 * pw + dw)] = 0.25
    return jnp.asarray(m)


def prepare_params(p):
    """One-time repack: lane-pad all widths to 128, pre-transpose weights,
    rearrange fc1 for the folded flatten, build pooling matrices."""
    f32 = jnp.float32

    def pad_bias(b):
        return jnp.zeros((1, 128), f32).at[0, :b.shape[0]].set(b.astype(f32))

    # conv1: width taps folded into the K(lane) dim of one per-kernel-row slab:
    #   w1[ki, kj, co] = conv1_w[co, 0, ki, kj]  -> (5, 8, 128) bf16.
    w1 = jnp.zeros((5, 8, 128), f32).at[:, :5, :6].set(
        p["conv1_w"].reshape(6, 5, 5).transpose(1, 2, 0).astype(f32)
    ).astype(MXU_DTYPE)
    # conv2: (16,6,5,5) -> per-tap (128, 128) bf16.
    w2 = jnp.zeros((25, 128, 128), f32).at[:, :6, :16].set(
        p["conv2_w"].reshape(16, 6, 25).transpose(2, 1, 0).astype(f32)
    ).astype(MXU_DTYPE)
    # fc1: (120, 256) -> (16 spatial, 128, 128): wfc1[s, c, j] = fc1_w[j, c*16+s].
    wfc1 = jnp.zeros((16, 128, 128), f32).at[:, :16, :120].set(
        p["fc1_w"].reshape(120, 16, 16).transpose(2, 1, 0).astype(f32)
    ).astype(MXU_DTYPE)
    wfc2 = jnp.zeros((128, 128), f32).at[:120, :84].set(
        p["fc2_w"].T.astype(f32)).astype(MXU_DTYPE)
    wfc3 = jnp.zeros((128, 128), f32).at[:84, :10].set(
        p["fc3_w"].T.astype(f32)).astype(MXU_DTYPE)

    return {
        "w1": w1, "b1": pad_bias(p["conv1_b"]),
        "p1": _pool_matrix(12, 28, 160, 672).astype(MXU_DTYPE),
        "w2": w2, "b2": pad_bias(p["conv2_b"]),
        "p2": _pool_matrix(4, 12, 16, 96).astype(MXU_DTYPE),
        "wfc1": wfc1, "bfc1": pad_bias(p["fc1_b"]),
        "wfc2": wfc2, "bfc2": pad_bias(p["fc2_b"]),
        "wfc3": wfc3, "bfc3": pad_bias(p["fc3_b"]),
    }


def lenet5_forward(x, pp):
    """x: (N, 1, 28, 28) NCHW float32 -> logits (N, 10) float32."""
    N = x.shape[0]
    # Host-side prep only: flatten spatial row-major and pack the 5 kernel-width
    # shifts into the 8 channel lanes that were previously zero padding (same
    # HBM bytes per image as before: 800 x 8 floats).
    xf = x.astype(jnp.float32).reshape(N, 784)
    shifts = [jnp.pad(xf[:, kj:], ((0, 0), (0, kj))) for kj in range(5)]
    xw = jnp.stack(shifts, axis=-1)                    # (N, 784, 5)
    xw = jnp.pad(xw, ((0, 0), (0, 16), (0, 3)))        # (N, 800, 8)

    const2 = lambda i: (0, 0)
    const3 = lambda i: (0, 0, 0)

    out_pad = pl.pallas_call(
        _lenet5_kernel,
        out_shape=jax.ShapeDtypeStruct((N, 8, 128), jnp.float32),
        grid_spec=pltpu.PrefetchScalarGridSpec(
            num_scalar_prefetch=0,
            grid=(N,),
            in_specs=[
                pl.BlockSpec((1, 800, 8), lambda i: (i, 0, 0)),   # input image
                pl.BlockSpec((5, 8, 128), const3),                # w1 (row taps)
                pl.BlockSpec((1, 128), const2),                   # b1
                pl.BlockSpec((160, 672), const2),                 # pool1 matrix
                pl.BlockSpec((25, 128, 128), const3),             # w2
                pl.BlockSpec((1, 128), const2),                   # b2
                pl.BlockSpec((16, 96), const2),                   # pool2 matrix
                pl.BlockSpec((16, 128, 128), const3),             # fc1 (rearranged)
                pl.BlockSpec((1, 128), const2),                   # b_fc1
                pl.BlockSpec((128, 128), const2),                 # fc2
                pl.BlockSpec((1, 128), const2),                   # b_fc2
                pl.BlockSpec((128, 128), const2),                 # fc3
                pl.BlockSpec((1, 128), const2),                   # b_fc3
            ],
            out_specs=pl.BlockSpec((1, 8, 128), lambda i: (i, 0, 0)),
            scratch_shapes=[
                pltpu.VMEM((672, 128), jnp.float32),   # conv1 wide accumulator
                pltpu.VMEM((160, 128), jnp.float32),   # pool1 output (row-padded)
            ],
        ),
        compiler_params=pltpu.CompilerParams(
            dimension_semantics=("parallel",),
        ),
    )(xw, pp["w1"], pp["b1"], pp["p1"], pp["w2"], pp["b2"], pp["p2"],
      pp["wfc1"], pp["bfc1"], pp["wfc2"], pp["bfc2"], pp["wfc3"], pp["bfc3"])

    return out_pad[:, 0, :10]


# ------------------------------ reference & init -----------------------------

def init_params(key):
    ks = jax.random.split(key, 10)
    f32 = jnp.float32
    s = 0.1
    return {
        "conv1_w": s * jax.random.normal(ks[0], (6, 1, 5, 5), f32),
        "conv1_b": s * jax.random.normal(ks[1], (6,), f32),
        "conv2_w": s * jax.random.normal(ks[2], (16, 6, 5, 5), f32),
        "conv2_b": s * jax.random.normal(ks[3], (16,), f32),
        "fc1_w": s * jax.random.normal(ks[4], (120, 256), f32),
        "fc1_b": s * jax.random.normal(ks[5], (120,), f32),
        "fc2_w": s * jax.random.normal(ks[6], (84, 120), f32),
        "fc2_b": s * jax.random.normal(ks[7], (84,), f32),
        "fc3_w": s * jax.random.normal(ks[8], (10, 84), f32),
        "fc3_b": s * jax.random.normal(ks[9], (10,), f32),
    }


def reference_forward(x, p):
    """Pure-JAX f32 reference matching the PyTorch module."""
    dn = ("NCHW", "OIHW", "NCHW")

    def avgpool(y):
        n, c, h, w = y.shape
        return y.reshape(n, c, h // 2, 2, w // 2, 2).mean(axis=(3, 5))

    y = lax.conv_general_dilated(x, p["conv1_w"], (1, 1), "VALID",
                                 dimension_numbers=dn)
    y = avgpool(jax.nn.relu(y + p["conv1_b"][None, :, None, None]))
    y = lax.conv_general_dilated(y, p["conv2_w"], (1, 1), "VALID",
                                 dimension_numbers=dn)
    y = avgpool(jax.nn.relu(y + p["conv2_b"][None, :, None, None]))
    y = y.reshape(y.shape[0], 16 * 4 * 4)
    y = jax.nn.relu(y @ p["fc1_w"].T + p["fc1_b"])
    y = jax.nn.relu(y @ p["fc2_w"].T + p["fc2_b"])
    return y @ p["fc3_w"].T + p["fc3_b"]


if __name__ == "__main__":
    # Input spatial size is fixed to 28x28 by fc1 (16*4*4 features); batch=2.
    key = jax.random.PRNGKey(0)
    x = jax.random.normal(key, (2, 1, 28, 28), dtype=jnp.float32)
    params = init_params(jax.random.PRNGKey(42))
    prepped = prepare_params(params)

    out = jax.jit(lenet5_forward)(x, prepped)
    out = jax.block_until_ready(out)
    assert out.shape == (2, 10) and out.dtype == jnp.float32

    ref = reference_forward(x, params)
    err = float(jnp.max(jnp.abs(out - ref)))
    assert err < 5e-2, f"max abs err vs f32 reference: {err}"
    print("KERNEL_OK")
</pallas_src>

<mosaic_0001>
module attributes {stable_mosaic.version = 11 : i64} {
  func.func @_lenet5_kernel(%arg0: i32, %arg1: memref<1x800x8xf32, #tpu.memory_space<vmem>>, %arg2: memref<5x8x128xbf16, #tpu.memory_space<vmem>>, %arg3: memref<1x128xf32, #tpu.memory_space<vmem>>, %arg4: memref<160x672xbf16, #tpu.memory_space<vmem>>, %arg5: memref<25x128x128xbf16, #tpu.memory_space<vmem>>, %arg6: memref<1x128xf32, #tpu.memory_space<vmem>>, %arg7: memref<16x96xbf16, #tpu.memory_space<vmem>>, %arg8: memref<16x128x128xbf16, #tpu.memory_space<vmem>>, %arg9: memref<1x128xf32, #tpu.memory_space<vmem>>, %arg10: memref<128x128xbf16, #tpu.memory_space<vmem>>, %arg11: memref<1x128xf32, #tpu.memory_space<vmem>>, %arg12: memref<128x128xbf16, #tpu.memory_space<vmem>>, %arg13: memref<1x128xf32, #tpu.memory_space<vmem>>, %arg14: memref<1x8x128xf32, #tpu.memory_space<vmem>>, %arg15: memref<672x128xf32, #tpu.memory_space<vmem>>, %arg16: memref<160x128xf32, #tpu.memory_space<vmem>>) attributes {dimension_semantics = [#tpu.dimension_semantics<parallel>], iteration_bounds = array<i64: 2>, scalar_prefetch = 0 : i64, scratch_operands = 2 : i64, tpu.core_type = #tpu.core_type<tc>, window_params = [{transform_indices = @transform_0, window_bounds = array<i64: 1, 800, 8>}, {pipeline_mode = #tpu.pipeline_mode<synchronous>, transform_indices = @transform_1, window_bounds = array<i64: 5, 8, 128>}, {pipeline_mode = #tpu.pipeline_mode<synchronous>, transform_indices = @transform_2, window_bounds = array<i64: 1, 128>}, {pipeline_mode = #tpu.pipeline_mode<synchronous>, transform_indices = @transform_3, window_bounds = array<i64: 160, 672>}, {pipeline_mode = #tpu.pipeline_mode<synchronous>, transform_indices = @transform_4, window_bounds = array<i64: 25, 128, 128>}, {pipeline_mode = #tpu.pipeline_mode<synchronous>, transform_indices = @transform_5, window_bounds = array<i64: 1, 128>}, {pipeline_mode = #tpu.pipeline_mode<synchronous>, transform_indices = @transform_6, window_bounds = array<i64: 16, 96>}, {pipeline_mode = #tpu.pipeline_mode<synchronous>, transform_indices = @transform_7, window_bounds = array<i64: 16, 128, 128>}, {pipeline_mode = #tpu.pipeline_mode<synchronous>, transform_indices = @transform_8, window_bounds = array<i64: 1, 128>}, {pipeline_mode = #tpu.pipeline_mode<synchronous>, transform_indices = @transform_9, window_bounds = array<i64: 128, 128>}, {pipeline_mode = #tpu.pipeline_mode<synchronous>, transform_indices = @transform_10, window_bounds = array<i64: 1, 128>}, {pipeline_mode = #tpu.pipeline_mode<synchronous>, transform_indices = @transform_11, window_bounds = array<i64: 128, 128>}, {pipeline_mode = #tpu.pipeline_mode<synchronous>, transform_indices = @transform_12, window_bounds = array<i64: 1, 128>}, {transform_indices = @transform_13, window_bounds = array<i64: 1, 8, 128>}]} {
    %c0 = arith.constant 0 : index
    %c0_0 = arith.constant 0 : index
    %c0_1 = arith.constant 0 : index
    %0 = vector.load %arg1[%c0, %c0_0, %c0_1] : memref<1x800x8xf32, #tpu.memory_space<vmem>>, vector<1x672x8xf32>
    %1 = vector.shape_cast %0 : vector<1x672x8xf32> to vector<672x8xf32>
    %2 = arith.truncf %1 : vector<672x8xf32> to vector<672x8xbf16>
    %c0_2 = arith.constant 0 : index
    %c0_3 = arith.constant 0 : index
    %c0_4 = arith.constant 0 : index
    %3 = vector.load %arg2[%c0_2, %c0_3, %c0_4] : memref<5x8x128xbf16, #tpu.memory_space<vmem>>, vector<1x8x128xbf16>
    %4 = vector.shape_cast %3 : vector<1x8x128xbf16> to vector<8x128xbf16>
    %cst = arith.constant dense<0.000000e+00> : vector<672x128xf32>
    %5 = tpu.matmul %2, %4, %cst {dimension_numbers = #tpu.dot_dimension_numbers<[1], [0], [0], [1], [0, 0, 1, 1], [], []>} : vector<672x8xbf16>, vector<8x128xbf16>, vector<672x128xf32> -> vector<672x128xf32>
    %c0_5 = arith.constant 0 : index
    %c0_6 = arith.constant 0 : index
    %6 = vector.load %arg15[%c0_5, %c0_6] : memref<672x128xf32, #tpu.memory_space<vmem>>, vector<672x128xf32>
    tpu.vector_store %arg15[%c0_5, %c0_6], %5 {strides = array<i32>} : memref<672x128xf32, #tpu.memory_space<vmem>>, vector<672x128xf32>,
    %c0_7 = arith.constant 0 : index
    %c28 = arith.constant 28 : index
    %c0_8 = arith.constant 0 : index
    %7 = vector.load %arg1[%c0_7, %c28, %c0_8] : memref<1x800x8xf32, #tpu.memory_space<vmem>>, vector<1x672x8xf32>
    %8 = vector.shape_cast %7 : vector<1x672x8xf32> to vector<672x8xf32>
    %9 = arith.truncf %8 : vector<672x8xf32> to vector<672x8xbf16>
    %c1 = arith.constant 1 : index
    %c0_9 = arith.constant 0 : index
    %c0_10 = arith.constant 0 : index
    %10 = vector.load %arg2[%c1, %c0_9, %c0_10] : memref<5x8x128xbf16, #tpu.memory_space<vmem>>, vector<1x8x128xbf16>
    %11 = vector.shape_cast %10 : vector<1x8x128xbf16> to vector<8x128xbf16>
    %cst_11 = arith.constant dense<0.000000e+00> : vector<672x128xf32>
    %12 = tpu.matmul %9, %11, %cst_11 {dimension_numbers = #tpu.dot_dimension_numbers<[1], [0], [0], [1], [0, 0, 1, 1], [], []>} : vector<672x8xbf16>, vector<8x128xbf16>, vector<672x128xf32> -> vector<672x128xf32>
    %c0_12 = arith.constant 0 : index
    %c0_13 = arith.constant 0 : index
    %13 = vector.load %arg15[%c0_12, %c0_13] : memref<672x128xf32, #tpu.memory_space<vmem>>, vector<672x128xf32>
    %14 = arith.addf %13, %12 : vector<672x128xf32>
    %c0_14 = arith.constant 0 : index
    %c0_15 = arith.constant 0 : index
    %15 = vector.load %arg15[%c0_14, %c0_15] : memref<672x128xf32, #tpu.memory_space<vmem>>, vector<672x128xf32>
    tpu.vector_store %arg15[%c0_14, %c0_15], %14 {strides = array<i32>} : memref<672x128xf32, #tpu.memory_space<vmem>>, vector<672x128xf32>,
    %c0_16 = arith.constant 0 : index
    %c56 = arith.constant 56 : index
    %c0_17 = arith.constant 0 : index
    %16 = vector.load %arg1[%c0_16, %c56, %c0_17] : memref<1x800x8xf32, #tpu.memory_space<vmem>>, vector<1x672x8xf32>
    %17 = vector.shape_cast %16 : vector<1x672x8xf32> to vector<672x8xf32>
    %18 = arith.truncf %17 : vector<672x8xf32> to vector<672x8xbf16>
    %c2 = arith.constant 2 : index
    %c0_18 = arith.constant 0 : index
    %c0_19 = arith.constant 0 : index
    %19 = vector.load %arg2[%c2, %c0_18, %c0_19] : memref<5x8x128xbf16, #tpu.memory_space<vmem>>, vector<1x8x128xbf16>
    %20 = vector.shape_cast %19 : vector<1x8x128xbf16> to vector<8x128xbf16>
    %cst_20 = arith.constant dense<0.000000e+00> : vector<672x128xf32>
    %21 = tpu.matmul %18, %20, %cst_20 {dimension_numbers = #tpu.dot_dimension_numbers<[1], [0], [0], [1], [0, 0, 1, 1], [], []>} : vector<672x8xbf16>, vector<8x128xbf16>, vector<672x128xf32> -> vector<672x128xf32>
    %c0_21 = arith.constant 0 : index
    %c0_22 = arith.constant 0 : index
    %22 = vector.load %arg15[%c0_21, %c0_22] : memref<672x128xf32, #tpu.memory_space<vmem>>, vector<672x128xf32>
    %23 = arith.addf %22, %21 : vector<672x128xf32>
    %c0_23 = arith.constant 0 : index
    %c0_24 = arith.constant 0 : index
    %24 = vector.load %arg15[%c0_23, %c0_24] : memref<672x128xf32, #tpu.memory_space<vmem>>, vector<672x128xf32>
    tpu.vector_store %arg15[%c0_23, %c0_24], %23 {strides = array<i32>} : memref<672x128xf32, #tpu.memory_space<vmem>>, vector<672x128xf32>,
    %c0_25 = arith.constant 0 : index
    %c84 = arith.constant 84 : index
    %c0_26 = arith.constant 0 : index
    %25 = vector.load %arg1[%c0_25, %c84, %c0_26] : memref<1x800x8xf32, #tpu.memory_space<vmem>>, vector<1x672x8xf32>
    %26 = vector.shape_cast %25 : vector<1x672x8xf32> to vector<672x8xf32>
    %27 = arith.truncf %26 : vector<672x8xf32> to vector<672x8xbf16>
    %c3 = arith.constant 3 : index
    %c0_27 = arith.constant 0 : index
    %c0_28 = arith.constant 0 : index
    %28 = vector.load %arg2[%c3, %c0_27, %c0_28] : memref<5x8x128xbf16, #tpu.memory_space<vmem>>, vector<1x8x128xbf16>
    %29 = vector.shape_cast %28 : vector<1x8x128xbf16> to vector<8x128xbf16>
    %cst_29 = arith.constant dense<0.000000e+00> : vector<672x128xf32>
    %30 = tpu.matmul %27, %29, %cst_29 {dimension_numbers = #tpu.dot_dimension_numbers<[1], [0], [0], [1], [0, 0, 1, 1], [], []>} : vector<672x8xbf16>, vector<8x128xbf16>, vector<672x128xf32> -> vector<672x128xf32>
    %c0_30 = arith.constant 0 : index
    %c0_31 = arith.constant 0 : index
    %31 = vector.load %arg15[%c0_30, %c0_31] : memref<672x128xf32, #tpu.memory_space<vmem>>, vector<672x128xf32>
    %32 = arith.addf %31, %30 : vector<672x128xf32>
    %c0_32 = arith.constant 0 : index
    %c0_33 = arith.constant 0 : index
    %33 = vector.load %arg15[%c0_32, %c0_33] : memref<672x128xf32, #tpu.memory_space<vmem>>, vector<672x128xf32>
    tpu.vector_store %arg15[%c0_32, %c0_33], %32 {strides = array<i32>} : memref<672x128xf32, #tpu.memory_space<vmem>>, vector<672x128xf32>,
    %c0_34 = arith.constant 0 : index
    %c112 = arith.constant 112 : index
    %c0_35 = arith.constant 0 : index
    %34 = vector.load %arg1[%c0_34, %c112, %c0_35] : memref<1x800x8xf32, #tpu.memory_space<vmem>>, vector<1x672x8xf32>
    %35 = vector.shape_cast %34 : vector<1x672x8xf32> to vector<672x8xf32>
    %36 = arith.truncf %35 : vector<672x8xf32> to vector<672x8xbf16>
    %c4 = arith.constant 4 : index
    %c0_36 = arith.constant 0 : index
    %c0_37 = arith.constant 0 : index
    %37 = vector.load %arg2[%c4, %c0_36, %c0_37] : memref<5x8x128xbf16, #tpu.memory_space<vmem>>, vector<1x8x128xbf16>
    %38 = vector.shape_cast %37 : vector<1x8x128xbf16> to vector<8x128xbf16>
    %cst_38 = arith.constant dense<0.000000e+00> : vector<672x128xf32>
    %39 = tpu.matmul %36, %38, %cst_38 {dimension_numbers = #tpu.dot_dimension_numbers<[1], [0], [0], [1], [0, 0, 1, 1], [], []>} : vector<672x8xbf16>, vector<8x128xbf16>, vector<672x128xf32> -> vector<672x128xf32>
    %c0_39 = arith.constant 0 : index
    %c0_40 = arith.constant 0 : index
    %40 = vector.load %arg15[%c0_39, %c0_40] : memref<672x128xf32, #tpu.memory_space<vmem>>, vector<672x128xf32>
    %41 = arith.addf %40, %39 : vector<672x128xf32>
    %c0_41 = arith.constant 0 : index
    %c0_42 = arith.constant 0 : index
    %42 = vector.load %arg15[%c0_41, %c0_42] : memref<672x128xf32, #tpu.memory_space<vmem>>, vector<672x128xf32>
    tpu.vector_store %arg15[%c0_41, %c0_42], %41 {strides = array<i32>} : memref<672x128xf32, #tpu.memory_space<vmem>>, vector<672x128xf32>,
    %c0_43 = arith.constant 0 : index
    %c0_44 = arith.constant 0 : index
    %43 = vector.load %arg15[%c0_43, %c0_44] : memref<672x128xf32, #tpu.memory_space<vmem>>, vector<672x128xf32>
    %c0_45 = arith.constant 0 : index
    %c0_46 = arith.constant 0 : index
    %44 = vector.load %arg3[%c0_45, %c0_46] : memref<1x128xf32, #tpu.memory_space<vmem>>, vector<1x128xf32>
    %45 = vector.broadcast %44 : vector<1x128xf32> to vector<672x128xf32>
    %46 = arith.addf %43, %45 : vector<672x128xf32>
    %cst_47 = arith.constant 0.000000e+00 : f32
    %47 = vector.broadcast %cst_47 : f32 to vector<672x128xf32>
    %48 = arith.maximumf %46, %47 : vector<672x128xf32>
    %49 = arith.truncf %48 : vector<672x128xf32> to vector<672x128xbf16>
    %c0_48 = arith.constant 0 : index
    %c0_49 = arith.constant 0 : index
    %50 = vector.load %arg4[%c0_48, %c0_49] : memref<160x672xbf16, #tpu.memory_space<vmem>>, vector<160x672xbf16>
    %cst_50 = arith.constant dense<0.000000e+00> : vector<160x128xf32>
    %51 = tpu.matmul %50, %49, %cst_50 {dimension_numbers = #tpu.dot_dimension_numbers<[1], [0], [0], [1], [0, 0, 1, 1], [], []>} : vector<160x672xbf16>, vector<672x128xbf16>, vector<160x128xf32> -> vector<160x128xf32>
    %c0_51 = arith.constant 0 : index
    %c0_52 = arith.constant 0 : index
    %52 = vector.load %arg16[%c0_51, %c0_52] : memref<160x128xf32, #tpu.memory_space<vmem>>, vector<160x128xf32>
    tpu.vector_store %arg16[%c0_51, %c0_52], %51 {strides = array<i32>} : memref<160x128xf32, #tpu.memory_space<vmem>>, vector<160x128xf32>,
    %c0_53 = arith.constant 0 : index
    %c0_54 = arith.constant 0 : index
    %53 = vector.load %arg16[%c0_53, %c0_54] : memref<160x128xf32, #tpu.memory_space<vmem>>, vector<96x128xf32>
    %54 = arith.truncf %53 : vector<96x128xf32> to vector<96x128xbf16>
    %c0_55 = arith.constant 0 : index
    %c0_56 = arith.constant 0 : index
    %c0_57 = arith.constant 0 : index
    %55 = vector.load %arg5[%c0_55, %c0_56, %c0_57] : memref<25x128x128xbf16, #tpu.memory_space<vmem>>, vector<1x128x128xbf16>
    %56 = vector.shape_cast %55 : vector<1x128x128xbf16> to vector<128x128xbf16>
    %cst_58 = arith.constant dense<0.000000e+00> : vector<96x128xf32>
    %57 = tpu.matmul %54, %56, %cst_58 {dimension_numbers = #tpu.dot_dimension_numbers<[1], [0], [0], [1], [0, 0, 1, 1], [], []>} : vector<96x128xbf16>, vector<128x128xbf16>, vector<96x128xf32> -> vector<96x128xf32>
    %c1_59 = arith.constant 1 : index
    %c0_60 = arith.constant 0 : index
    %58 = vector.load %arg16[%c1_59, %c0_60] : memref<160x128xf32, #tpu.memory_space<vmem>>, vector<96x128xf32>
    %59 = arith.truncf %58 : vector<96x128xf32> to vector<96x128xbf16>
    %c1_61 = arith.constant 1 : index
    %c0_62 = arith.constant 0 : index
    %c0_63 = arith.constant 0 : index
    %60 = vector.load %arg5[%c1_61, %c0_62, %c0_63] : memref<25x128x128xbf16, #tpu.memory_space<vmem>>, vector<1x128x128xbf16>
    %61 = vector.shape_cast %60 : vector<1x128x128xbf16> to vector<128x128xbf16>
    %cst_64 = arith.constant dense<0.000000e+00> : vector<96x128xf32>
    %62 = tpu.matmul %59, %61, %cst_64 {dimension_numbers = #tpu.dot_dimension_numbers<[1], [0], [0], [1], [0, 0, 1, 1], [], []>} : vector<96x128xbf16>, vector<128x128xbf16>, vector<96x128xf32> -> vector<96x128xf32>
    %63 = arith.addf %57, %62 : vector<96x128xf32>
    %c2_65 = arith.constant 2 : index
    %c0_66 = arith.constant 0 : index
    %64 = vector.load %arg16[%c2_65, %c0_66] : memref<160x128xf32, #tpu.memory_space<vmem>>, vector<96x128xf32>
    %65 = arith.truncf %64 : vector<96x128xf32> to vector<96x128xbf16>
    %c2_67 = arith.constant 2 : index
    %c0_68 = arith.constant 0 : index
    %c0_69 = arith.constant 0 : index
    %66 = vector.load %arg5[%c2_67, %c0_68, %c0_69] : memref<25x128x128xbf16, #tpu.memory_space<vmem>>, vector<1x128x128xbf16>
    %67 = vector.shape_cast %66 : vector<1x128x128xbf16> to vector<128x128xbf16>
    %cst_70 = arith.constant dense<0.000000e+00> : vector<96x128xf32>
    %68 = tpu.matmul %65, %67, %cst_70 {dimension_numbers = #tpu.dot_dimension_numbers<[1], [0], [0], [1], [0, 0, 1, 1], [], []>} : vector<96x128xbf16>, vector<128x128xbf16>, vector<96x128xf32> -> vector<96x128xf32>
    %69 = arith.addf %63, %68 : vector<96x128xf32>
    %c3_71 = arith.constant 3 : index
    %c0_72 = arith.constant 0 : index
    %70 = vector.load %arg16[%c3_71, %c0_72] : memref<160x128xf32, #tpu.memory_space<vmem>>, vector<96x128xf32>
    %71 = arith.truncf %70 : vector<96x128xf32> to vector<96x128xbf16>
    %c3_73 = arith.constant 3 : index
    %c0_74 = arith.constant 0 : index
    %c0_75 = arith.constant 0 : index
    %72 = vector.load %arg5[%c3_73, %c0_74, %c0_75] : memref<25x128x128xbf16, #tpu.memory_space<vmem>>, vector<1x128x128xbf16>
    %73 = vector.shape_cast %72 : vector<1x128x128xbf16> to vector<128x128xbf16>
    %cst_76 = arith.constant dense<0.000000e+00> : vector<96x128xf32>
    %74 = tpu.matmul %71, %73, %cst_76 {dimension_numbers = #tpu.dot_dimension_numbers<[1], [0], [0], [1], [0, 0, 1, 1], [], []>} : vector<96x128xbf16>, vector<128x128xbf16>, vector<96x128xf32> -> vector<96x128xf32>
    %75 = arith.addf %69, %74 : vector<96x128xf32>
    %c4_77 = arith.constant 4 : index
    %c0_78 = arith.constant 0 : index
    %76 = vector.load %arg16[%c4_77, %c0_78] : memref<160x128xf32, #tpu.memory_space<vmem>>, vector<96x128xf32>
    %77 = arith.truncf %76 : vector<96x128xf32> to vector<96x128xbf16>
    %c4_79 = arith.constant 4 : index
    %c0_80 = arith.constant 0 : index
    %c0_81 = arith.constant 0 : index
    %78 = vector.load %arg5[%c4_79, %c0_80, %c0_81] : memref<25x128x128xbf16, #tpu.memory_space<vmem>>, vector<1x128x128xbf16>
    %79 = vector.shape_cast %78 : vector<1x128x128xbf16> to vector<128x128xbf16>
    %cst_82 = arith.constant dense<0.000000e+00> : vector<96x128xf32>
    %80 = tpu.matmul %77, %79, %cst_82 {dimension_numbers = #tpu.dot_dimension_numbers<[1], [0], [0], [1], [0, 0, 1, 1], [], []>} : vector<96x128xbf16>, vector<128x128xbf16>, vector<96x128xf32> -> vector<96x128xf32>
    %81 = arith.addf %75, %80 : vector<96x128xf32>
    %c12 = arith.constant 12 : index
    %c0_83 = arith.constant 0 : index
    %82 = vector.load %arg16[%c12, %c0_83] : memref<160x128xf32, #tpu.memory_space<vmem>>, vector<96x128xf32>
    %83 = arith.truncf %82 : vector<96x128xf32> to vector<96x128xbf16>
    %c5 = arith.constant 5 : index
    %c0_84 = arith.constant 0 : index
    %c0_85 = arith.constant 0 : index
    %84 = vector.load %arg5[%c5, %c0_84, %c0_85] : memref<25x128x128xbf16, #tpu.memory_space<vmem>>, vector<1x128x128xbf16>
    %85 = vector.shape_cast %84 : vector<1x128x128xbf16> to vector<128x128xbf16>
    %cst_86 = arith.constant dense<0.000000e+00> : vector<96x128xf32>
    %86 = tpu.matmul %83, %85, %cst_86 {dimension_numbers = #tpu.dot_dimension_numbers<[1], [0], [0], [1], [0, 0, 1, 1], [], []>} : vector<96x128xbf16>, vector<128x128xbf16>, vector<96x128xf32> -> vector<96x128xf32>
    %87 = arith.addf %81, %86 : vector<96x128xf32>
    %c13 = arith.constant 13 : index
    %c0_87 = arith.constant 0 : index
    %88 = vector.load %arg16[%c13, %c0_87] : memref<160x128xf32, #tpu.memory_space<vmem>>, vector<96x128xf32>
    %89 = arith.truncf %88 : vector<96x128xf32> to vector<96x128xbf16>
    %c6 = arith.constant 6 : index
    %c0_88 = arith.constant 0 : index
    %c0_89 = arith.constant 0 : index
    %90 = vector.load %arg5[%c6, %c0_88, %c0_89] : memref<25x128x128xbf16, #tpu.memory_space<vmem>>, vector<1x128x128xbf16>
    %91 = vector.shape_cast %90 : vector<1x128x128xbf16> to vector<128x128xbf16>
    %cst_90 = arith.constant dense<0.000000e+00> : vector<96x128xf32>
    %92 = tpu.matmul %89, %91, %cst_90 {dimension_numbers = #tpu.dot_dimension_numbers<[1], [0], [0], [1], [0, 0, 1, 1], [], []>} : vector<96x128xbf16>, vector<128x128xbf16>, vector<96x128xf32> -> vector<96x128xf32>
    %93 = arith.addf %87, %92 : vector<96x128xf32>
    %c14 = arith.constant 14 : index
    %c0_91 = arith.constant 0 : index
    %94 = vector.load %arg16[%c14, %c0_91] : memref<160x128xf32, #tpu.memory_space<vmem>>, vector<96x128xf32>
    %95 = arith.truncf %94 : vector<96x128xf32> to vector<96x128xbf16>
    %c7 = arith.constant 7 : index
    %c0_92 = arith.constant 0 : index
    %c0_93 = arith.constant 0 : index
    %96 = vector.load %arg5[%c7, %c0_92, %c0_93] : memref<25x128x128xbf16, #tpu.memory_space<vmem>>, vector<1x128x128xbf16>
    %97 = vector.shape_cast %96 : vector<1x128x128xbf16> to vector<128x128xbf16>
    %cst_94 = arith.constant dense<0.000000e+00> : vector<96x128xf32>
    %98 = tpu.matmul %95, %97, %cst_94 {dimension_numbers = #tpu.dot_dimension_numbers<[1], [0], [0], [1], [0, 0, 1, 1], [], []>} : vector<96x128xbf16>, vector<128x128xbf16>, vector<96x128xf32> -> vector<96x128xf32>
    %99 = arith.addf %93, %98 : vector<96x128xf32>
    %c15 = arith.constant 15 : index
    %c0_95 = arith.constant 0 : index
    %100 = vector.load %arg16[%c15, %c0_95] : memref<160x128xf32, #tpu.memory_space<vmem>>, vector<96x128xf32>
    %101 = arith.truncf %100 : vector<96x128xf32> to vector<96x128xbf16>
    %c8 = arith.constant 8 : index
    %c0_96 = arith.constant 0 : index
    %c0_97 = arith.constant 0 : index
    %102 = vector.load %arg5[%c8, %c0_96, %c0_97] : memref<25x128x128xbf16, #tpu.memory_space<vmem>>, vector<1x128x128xbf16>
    %103 = vector.shape_cast %102 : vector<1x128x128xbf16> to vector<128x128xbf16>
    %cst_98 = arith.constant dense<0.000000e+00> : vector<96x128xf32>
    %104 = tpu.matmul %101, %103, %cst_98 {dimension_numbers = #tpu.dot_dimension_numbers<[1], [0], [0], [1], [0, 0, 1, 1], [], []>} : vector<96x128xbf16>, vector<128x128xbf16>, vector<96x128xf32> -> vector<96x128xf32>
    %105 = arith.addf %99, %104 : vector<96x128xf32>
    %c16 = arith.constant 16 : index
    %c0_99 = arith.constant 0 : index
    %106 = vector.load %arg16[%c16, %c0_99] : memref<160x128xf32, #tpu.memory_space<vmem>>, vector<96x128xf32>
    %107 = arith.truncf %106 : vector<96x128xf32> to vector<96x128xbf16>
    %c9 = arith.constant 9 : index
    %c0_100 = arith.constant 0 : index
    %c0_101 = arith.constant 0 : index
    %108 = vector.load %arg5[%c9, %c0_100, %c0_101] : memref<25x128x128xbf16, #tpu.memory_space<vmem>>, vector<1x128x128xbf16>
    %109 = vector.shape_cast %108 : vector<1x128x128xbf16> to vector<128x128xbf16>
    %cst_102 = arith.constant dense<0.000000e+00> : vector<96x128xf32>
    %110 = tpu.matmul %107, %109, %cst_102 {dimension_numbers = #tpu.dot_dimension_numbers<[1], [0], [0], [1], [0, 0, 1, 1], [], []>} : vector<96x128xbf16>, vector<128x128xbf16>, vector<96x128xf32> -> vector<96x128xf32>
    %111 = arith.addf %105, %110 : vector<96x128xf32>
    %c24 = arith.constant 24 : index
    %c0_103 = arith.constant 0 : index
    %112 = vector.load %arg16[%c24, %c0_103] : memref<160x128xf32, #tpu.memory_space<vmem>>, vector<96x128xf32>
    %113 = arith.truncf %112 : vector<96x128xf32> to vector<96x128xbf16>
    %c10 = arith.constant 10 : index
    %c0_104 = arith.constant 0 : index
    %c0_105 = arith.constant 0 : index
    %114 = vector.load %arg5[%c10, %c0_104, %c0_105] : memref<25x128x128xbf16, #tpu.memory_space<vmem>>, vector<1x128x128xbf16>
    %115 = vector.shape_cast %114 : vector<1x128x128xbf16> to vector<128x128xbf16>
    %cst_106 = arith.constant dense<0.000000e+00> : vector<96x128xf32>
    %116 = tpu.matmul %113, %115, %cst_106 {dimension_numbers = #tpu.dot_dimension_numbers<[1], [0], [0], [1], [0, 0, 1, 1], [], []>} : vector<96x128xbf16>, vector<128x128xbf16>, vector<96x128xf32> -> vector<96x128xf32>
    %117 = arith.addf %111, %116 : vector<96x128xf32>
    %c25 = arith.constant 25 : index
    %c0_107 = arith.constant 0 : index
    %118 = vector.load %arg16[%c25, %c0_107] : memref<160x128xf32, #tpu.memory_space<vmem>>, vector<96x128xf32>
    %119 = arith.truncf %118 : vector<96x128xf32> to vector<96x128xbf16>
    %c11 = arith.constant 11 : index
    %c0_108 = arith.constant 0 : index
    %c0_109 = arith.constant 0 : index
    %120 = vector.load %arg5[%c11, %c0_108, %c0_109] : memref<25x128x128xbf16, #tpu.memory_space<vmem>>, vector<1x128x128xbf16>
    %121 = vector.shape_cast %120 : vector<1x128x128xbf16> to vector<128x128xbf16>
    %cst_110 = arith.constant dense<0.000000e+00> : vector<96x128xf32>
    %122 = tpu.matmul %119, %121, %cst_110 {dimension_numbers = #tpu.dot_dimension_numbers<[1], [0], [0], [1], [0, 0, 1, 1], [], []>} : vector<96x128xbf16>, vector<128x128xbf16>, vector<96x128xf32> -> vector<96x128xf32>
    %123 = arith.addf %117, %122 : vector<96x128xf32>
    %c26 = arith.constant 26 : index
    %c0_111 = arith.constant 0 : index
    %124 = vector.load %arg16[%c26, %c0_111] : memref<160x128xf32, #tpu.memory_space<vmem>>, vector<96x128xf32>
    %125 = arith.truncf %124 : vector<96x128xf32> to vector<96x128xbf16>
    %c12_112 = arith.constant 12 : index
    %c0_113 = arith.constant 0 : index
    %c0_114 = arith.constant 0 : index
    %126 = vector.load %arg5[%c12_112, %c0_113, %c0_114] : memref<25x128x128xbf16, #tpu.memory_space<vmem>>, vector<1x128x128xbf16>
    %127 = vector.shape_cast %126 : vector<1x128x128xbf16> to vector<128x128xbf16>
    %cst_115 = arith.constant dense<0.000000e+00> : vector<96x128xf32>
    %128 = tpu.matmul %125, %127, %cst_115 {dimension_numbers = #tpu.dot_dimension_numbers<[1], [0], [0], [1], [0, 0, 1, 1], [], []>} : vector<96x128xbf16>, vector<128x128xbf16>, vector<96x128xf32> -> vector<96x128xf32>
    %129 = arith.addf %123, %128 : vector<96x128xf32>
    %c27 = arith.constant 27 : index
    %c0_116 = arith.constant 0 : index
    %130 = vector.load %arg16[%c27, %c0_116] : memref<160x128xf32, #tpu.memory_space<vmem>>, vector<96x128xf32>
    %131 = arith.truncf %130 : vector<96x128xf32> to vector<96x128xbf16>
    %c13_117 = arith.constant 13 : index
    %c0_118 = arith.constant 0 : index
    %c0_119 = arith.constant 0 : index
    %132 = vector.load %arg5[%c13_117, %c0_118, %c0_119] : memref<25x128x128xbf16, #tpu.memory_space<vmem>>, vector<1x128x128xbf16>
    %133 = vector.shape_cast %132 : vector<1x128x128xbf16> to vector<128x128xbf16>
    %cst_120 = arith.constant dense<0.000000e+00> : vector<96x128xf32>
    %134 = tpu.matmul %131, %133, %cst_120 {dimension_numbers = #tpu.dot_dimension_numbers<[1], [0], [0], [1], [0, 0, 1, 1], [], []>} : vector<96x128xbf16>, vector<128x128xbf16>, vector<96x128xf32> -> vector<96x128xf32>
    %135 = arith.addf %129, %134 : vector<96x128xf32>
    %c28_121 = arith.constant 28 : index
    %c0_122 = arith.constant 0 : index
    %136 = vector.load %arg16[%c28_121, %c0_122] : memref<160x128xf32, #tpu.memory_space<vmem>>, vector<96x128xf32>
    %137 = arith.truncf %136 : vector<96x128xf32> to vector<96x128xbf16>
    %c14_123 = arith.constant 14 : index
    %c0_124 = arith.constant 0 : index
    %c0_125 = arith.constant 0 : index
    %138 = vector.load %arg5[%c14_123, %c0_124, %c0_125] : memref<25x128x128xbf16, #tpu.memory_space<vmem>>, vector<1x128x128xbf16>
    %139 = vector.shape_cast %138 : vector<1x128x128xbf16> to vector<128x128xbf16>
    %cst_126 = arith.constant dense<0.000000e+00> : vector<96x128xf32>
    %140 = tpu.matmul %137, %139, %cst_126 {dimension_numbers = #tpu.dot_dimension_numbers<[1], [0], [0], [1], [0, 0, 1, 1], [], []>} : vector<96x128xbf16>, vector<128x128xbf16>, vector<96x128xf32> -> vector<96x128xf32>
    %141 = arith.addf %135, %140 : vector<96x128xf32>
    %c36 = arith.constant 36 : index
    %c0_127 = arith.constant 0 : index
    %142 = vector.load %arg16[%c36, %c0_127] : memref<160x128xf32, #tpu.memory_space<vmem>>, vector<96x128xf32>
    %143 = arith.truncf %142 : vector<96x128xf32> to vector<96x128xbf16>
    %c15_128 = arith.constant 15 : index
    %c0_129 = arith.constant 0 : index
    %c0_130 = arith.constant 0 : index
    %144 = vector.load %arg5[%c15_128, %c0_129, %c0_130] : memref<25x128x128xbf16, #tpu.memory_space<vmem>>, vector<1x128x128xbf16>
    %145 = vector.shape_cast %144 : vector<1x128x128xbf16> to vector<128x128xbf16>
    %cst_131 = arith.constant dense<0.000000e+00> : vector<96x128xf32>
    %146 = tpu.matmul %143, %145, %cst_131 {dimension_numbers = #tpu.dot_dimension_numbers<[1], [0], [0], [1], [0, 0, 1, 1], [], []>} : vector<96x128xbf16>, vector<128x128xbf16>, vector<96x128xf32> -> vector<96x128xf32>
    %147 = arith.addf %141, %146 : vector<96x128xf32>
    %c37 = arith.constant 37 : index
    %c0_132 = arith.constant 0 : index
    %148 = vector.load %arg16[%c37, %c0_132] : memref<160x128xf32, #tpu.memory_space<vmem>>, vector<96x128xf32>
    %149 = arith.truncf %148 : vector<96x128xf32> to vector<96x128xbf16>
    %c16_133 = arith.constant 16 : index
    %c0_134 = arith.constant 0 : index
    %c0_135 = arith.constant 0 : index
    %150 = vector.load %arg5[%c16_133, %c0_134, %c0_135] : memref<25x128x128xbf16, #tpu.memory_space<vmem>>, vector<1x128x128xbf16>
    %151 = vector.shape_cast %150 : vector<1x128x128xbf16> to vector<128x128xbf16>
    %cst_136 = arith.constant dense<0.000000e+00> : vector<96x128xf32>
    %152 = tpu.matmul %149, %151, %cst_136 {dimension_numbers = #tpu.dot_dimension_numbers<[1], [0], [0], [1], [0, 0, 1, 1], [], []>} : vector<96x128xbf16>, vector<128x128xbf16>, vector<96x128xf32> -> vector<96x128xf32>
    %153 = arith.addf %147, %152 : vector<96x128xf32>
    %c38 = arith.constant 38 : index
    %c0_137 = arith.constant 0 : index
    %154 = vector.load %arg16[%c38, %c0_137] : memref<160x128xf32, #tpu.memory_space<vmem>>, vector<96x128xf32>
    %155 = arith.truncf %154 : vector<96x128xf32> to vector<96x128xbf16>
    %c17 = arith.constant 17 : index
    %c0_138 = arith.constant 0 : index
    %c0_139 = arith.constant 0 : index
    %156 = vector.load %arg5[%c17, %c0_138, %c0_139] : memref<25x128x128xbf16, #tpu.memory_space<vmem>>, vector<1x128x128xbf16>
    %157 = vector.shape_cast %156 : vector<1x128x128xbf16> to vector<128x128xbf16>
    %cst_140 = arith.constant dense<0.000000e+00> : vector<96x128xf32>
    %158 = tpu.matmul %155, %157, %cst_140 {dimension_numbers = #tpu.dot_dimension_numbers<[1], [0], [0], [1], [0, 0, 1, 1], [], []>} : vector<96x128xbf16>, vector<128x128xbf16>, vector<96x128xf32> -> vector<96x128xf32>
    %159 = arith.addf %153, %158 : vector<96x128xf32>
    %c39 = arith.constant 39 : index
    %c0_141 = arith.constant 0 : index
    %160 = vector.load %arg16[%c39, %c0_141] : memref<160x128xf32, #tpu.memory_space<vmem>>, vector<96x128xf32>
    %161 = arith.truncf %160 : vector<96x128xf32> to vector<96x128xbf16>
    %c18 = arith.constant 18 : index
    %c0_142 = arith.constant 0 : index
    %c0_143 = arith.constant 0 : index
    %162 = vector.load %arg5[%c18, %c0_142, %c0_143] : memref<25x128x128xbf16, #tpu.memory_space<vmem>>, vector<1x128x128xbf16>
    %163 = vector.shape_cast %162 : vector<1x128x128xbf16> to vector<128x128xbf16>
    %cst_144 = arith.constant dense<0.000000e+00> : vector<96x128xf32>
    %164 = tpu.matmul %161, %163, %cst_144 {dimension_numbers = #tpu.dot_dimension_numbers<[1], [0], [0], [1], [0, 0, 1, 1], [], []>} : vector<96x128xbf16>, vector<128x128xbf16>, vector<96x128xf32> -> vector<96x128xf32>
    %165 = arith.addf %159, %164 : vector<96x128xf32>
    %c40 = arith.constant 40 : index
    %c0_145 = arith.constant 0 : index
    %166 = vector.load %arg16[%c40, %c0_145] : memref<160x128xf32, #tpu.memory_space<vmem>>, vector<96x128xf32>
    %167 = arith.truncf %166 : vector<96x128xf32> to vector<96x128xbf16>
    %c19 = arith.constant 19 : index
    %c0_146 = arith.constant 0 : index
    %c0_147 = arith.constant 0 : index
    %168 = vector.load %arg5[%c19, %c0_146, %c0_147] : memref<25x128x128xbf16, #tpu.memory_space<vmem>>, vector<1x128x128xbf16>
    %169 = vector.shape_cast %168 : vector<1x128x128xbf16> to vector<128x128xbf16>
    %cst_148 = arith.constant dense<0.000000e+00> : vector<96x128xf32>
    %170 = tpu.matmul %167, %169, %cst_148 {dimension_numbers = #tpu.dot_dimension_numbers<[1], [0], [0], [1], [0, 0, 1, 1], [], []>} : vector<96x128xbf16>, vector<128x128xbf16>, vector<96x128xf32> -> vector<96x128xf32>
    %171 = arith.addf %165, %170 : vector<96x128xf32>
    %c48 = arith.constant 48 : index
    %c0_149 = arith.constant 0 : index
    %172 = vector.load %arg16[%c48, %c0_149] : memref<160x128xf32, #tpu.memory_space<vmem>>, vector<96x128xf32>
    %173 = arith.truncf %172 : vector<96x128xf32> to vector<96x128xbf16>
    %c20 = arith.constant 20 : index
    %c0_150 = arith.constant 0 : index
    %c0_151 = arith.constant 0 : index
    %174 = vector.load %arg5[%c20, %c0_150, %c0_151] : memref<25x128x128xbf16, #tpu.memory_space<vmem>>, vector<1x128x128xbf16>
    %175 = vector.shape_cast %174 : vector<1x128x128xbf16> to vector<128x128xbf16>
    %cst_152 = arith.constant dense<0.000000e+00> : vector<96x128xf32>
    %176 = tpu.matmul %173, %175, %cst_152 {dimension_numbers = #tpu.dot_dimension_numbers<[1], [0], [0], [1], [0, 0, 1, 1], [], []>} : vector<96x128xbf16>, vector<128x128xbf16>, vector<96x128xf32> -> vector<96x128xf32>
    %177 = arith.addf %171, %176 : vector<96x128xf32>
    %c49 = arith.constant 49 : index
    %c0_153 = arith.constant 0 : index
    %178 = vector.load %arg16[%c49, %c0_153] : memref<160x128xf32, #tpu.memory_space<vmem>>, vector<96x128xf32>
    %179 = arith.truncf %178 : vector<96x128xf32> to vector<96x128xbf16>
    %c21 = arith.constant 21 : index
    %c0_154 = arith.constant 0 : index
    %c0_155 = arith.constant 0 : index
    %180 = vector.load %arg5[%c21, %c0_154, %c0_155] : memref<25x128x128xbf16, #tpu.memory_space<vmem>>, vector<1x128x128xbf16>
    %181 = vector.shape_cast %180 : vector<1x128x128xbf16> to vector<128x128xbf16>
    %cst_156 = arith.constant dense<0.000000e+00> : vector<96x128xf32>
    %182 = tpu.matmul %179, %181, %cst_156 {dimension_numbers = #tpu.dot_dimension_numbers<[1], [0], [0], [1], [0, 0, 1, 1], [], []>} : vector<96x128xbf16>, vector<128x128xbf16>, vector<96x128xf32> -> vector<96x128xf32>
    %183 = arith.addf %177, %182 : vector<96x128xf32>
    %c50 = arith.constant 50 : index
    %c0_157 = arith.constant 0 : index
    %184 = vector.load %arg16[%c50, %c0_157] : memref<160x128xf32, #tpu.memory_space<vmem>>, vector<96x128xf32>
    %185 = arith.truncf %184 : vector<96x128xf32> to vector<96x128xbf16>
    %c22 = arith.constant 22 : index
    %c0_158 = arith.constant 0 : index
    %c0_159 = arith.constant 0 : index
    %186 = vector.load %arg5[%c22, %c0_158, %c0_159] : memref<25x128x128xbf16, #tpu.memory_space<vmem>>, vector<1x128x128xbf16>
    %187 = vector.shape_cast %186 : vector<1x128x128xbf16> to vector<128x128xbf16>
    %cst_160 = arith.constant dense<0.000000e+00> : vector<96x128xf32>
    %188 = tpu.matmul %185, %187, %cst_160 {dimension_numbers = #tpu.dot_dimension_numbers<[1], [0], [0], [1], [0, 0, 1, 1], [], []>} : vector<96x128xbf16>, vector<128x128xbf16>, vector<96x128xf32> -> vector<96x128xf32>
    %189 = arith.addf %183, %188 : vector<96x128xf32>
    %c51 = arith.constant 51 : index
    %c0_161 = arith.constant 0 : index
    %190 = vector.load %arg16[%c51, %c0_161] : memref<160x128xf32, #tpu.memory_space<vmem>>, vector<96x128xf32>
    %191 = arith.truncf %190 : vector<96x128xf32> to vector<96x128xbf16>
    %c23 = arith.constant 23 : index
    %c0_162 = arith.constant 0 : index
    %c0_163 = arith.constant 0 : index
    %192 = vector.load %arg5[%c23, %c0_162, %c0_163] : memref<25x128x128xbf16, #tpu.memory_space<vmem>>, vector<1x128x128xbf16>
    %193 = vector.shape_cast %192 : vector<1x128x128xbf16> to vector<128x128xbf16>
    %cst_164 = arith.constant dense<0.000000e+00> : vector<96x128xf32>
    %194 = tpu.matmul %191, %193, %cst_164 {dimension_numbers = #tpu.dot_dimension_numbers<[1], [0], [0], [1], [0, 0, 1, 1], [], []>} : vector<96x128xbf16>, vector<128x128xbf16>, vector<96x128xf32> -> vector<96x128xf32>
    %195 = arith.addf %189, %194 : vector<96x128xf32>
    %c52 = arith.constant 52 : index
    %c0_165 = arith.constant 0 : index
    %196 = vector.load %arg16[%c52, %c0_165] : memref<160x128xf32, #tpu.memory_space<vmem>>, vector<96x128xf32>
    %197 = arith.truncf %196 : vector<96x128xf32> to vector<96x128xbf16>
    %c24_166 = arith.constant 24 : index
    %c0_167 = arith.constant 0 : index
    %c0_168 = arith.constant 0 : index
    %198 = vector.load %arg5[%c24_166, %c0_167, %c0_168] : memref<25x128x128xbf16, #tpu.memory_space<vmem>>, vector<1x128x128xbf16>
    %199 = vector.shape_cast %198 : vector<1x128x128xbf16> to vector<128x128xbf16>
    %cst_169 = arith.constant dense<0.000000e+00> : vector<96x128xf32>
    %200 = tpu.matmul %197, %199, %cst_169 {dimension_numbers = #tpu.dot_dimension_numbers<[1], [0], [0], [1], [0, 0, 1, 1], [], []>} : vector<96x128xbf16>, vector<128x128xbf16>, vector<96x128xf32> -> vector<96x128xf32>
    %201 = arith.addf %195, %200 : vector<96x128xf32>
    %c0_170 = arith.constant 0 : index
    %c0_171 = arith.constant 0 : index
    %202 = vector.load %arg6[%c0_170, %c0_171] : memref<1x128xf32, #tpu.memory_space<vmem>>, vector<1x128xf32>
    %203 = vector.broadcast %202 : vector<1x128xf32> to vector<96x128xf32>
    %204 = arith.addf %201, %203 : vector<96x128xf32>
    %cst_172 = arith.constant 0.000000e+00 : f32
    %205 = vector.broadcast %cst_172 : f32 to vector<96x128xf32>
    %206 = arith.maximumf %204, %205 : vector<96x128xf32>
    %207 = arith.truncf %206 : vector<96x128xf32> to vector<96x128xbf16>
    %c0_173 = arith.constant 0 : index
    %c0_174 = arith.constant 0 : index
    %208 = vector.load %arg7[%c0_173, %c0_174] : memref<16x96xbf16, #tpu.memory_space<vmem>>, vector<16x96xbf16>
    %cst_175 = arith.constant dense<0.000000e+00> : vector<16x128xf32>
    %209 = tpu.matmul %208, %207, %cst_175 {dimension_numbers = #tpu.dot_dimension_numbers<[1], [0], [0], [1], [0, 0, 1, 1], [], []>} : vector<16x96xbf16>, vector<96x128xbf16>, vector<16x128xf32> -> vector<16x128xf32>
    %210 = arith.truncf %209 : vector<16x128xf32> to vector<16x128xbf16>
    %c0_176 = arith.constant 0 : index
    %c0_177 = arith.constant 0 : index
    %211 = vector.load %arg9[%c0_176, %c0_177] : memref<1x128xf32, #tpu.memory_space<vmem>>, vector<1x128xf32>
    %c0_178 = arith.constant 0 : index
    %c0_179 = arith.constant 0 : index
    %c0_180 = arith.constant 0 : index
    %212 = vector.load %arg8[%c0_178, %c0_179, %c0_180] : memref<16x128x128xbf16, #tpu.memory_space<vmem>>, vector<1x128x128xbf16>
    %213 = vector.shape_cast %212 : vector<1x128x128xbf16> to vector<128x128xbf16>
    %cst_181 = arith.constant dense<0.000000e+00> : vector<16x128xf32>
    %214 = tpu.matmul %210, %213, %cst_181 {dimension_numbers = #tpu.dot_dimension_numbers<[1], [0], [0], [1], [0, 0, 1, 1], [], []>} : vector<16x128xbf16>, vector<128x128xbf16>, vector<16x128xf32> -> vector<16x128xf32>
    %215 = vector.extract_strided_slice %214 {offsets = [0, 0], sizes = [1, 128], strides = [1, 1]} : vector<16x128xf32> to vector<1x128xf32>
    %216 = arith.addf %211, %215 : vector<1x128xf32>
    %c1_182 = arith.constant 1 : index
    %c0_183 = arith.constant 0 : index
    %c0_184 = arith.constant 0 : index
    %217 = vector.load %arg8[%c1_182, %c0_183, %c0_184] : memref<16x128x128xbf16, #tpu.memory_space<vmem>>, vector<1x128x128xbf16>
    %218 = vector.shape_cast %217 : vector<1x128x128xbf16> to vector<128x128xbf16>
    %cst_185 = arith.constant dense<0.000000e+00> : vector<16x128xf32>
    %219 = tpu.matmul %210, %218, %cst_185 {dimension_numbers = #tpu.dot_dimension_numbers<[1], [0], [0], [1], [0, 0, 1, 1], [], []>} : vector<16x128xbf16>, vector<128x128xbf16>, vector<16x128xf32> -> vector<16x128xf32>
    %220 = vector.extract_strided_slice %219 {offsets = [1, 0], sizes = [1, 128], strides = [1, 1]} : vector<16x128xf32> to vector<1x128xf32>
    %221 = arith.addf %216, %220 : vector<1x128xf32>
    %c2_186 = arith.constant 2 : index
    %c0_187 = arith.constant 0 : index
    %c0_188 = arith.constant 0 : index
    %222 = vector.load %arg8[%c2_186, %c0_187, %c0_188] : memref<16x128x128xbf16, #tpu.memory_space<vmem>>, vector<1x128x128xbf16>
    %223 = vector.shape_cast %222 : vector<1x128x128xbf16> to vector<128x128xbf16>
    %cst_189 = arith.constant dense<0.000000e+00> : vector<16x128xf32>
    %224 = tpu.matmul %210, %223, %cst_189 {dimension_numbers = #tpu.dot_dimension_numbers<[1], [0], [0], [1], [0, 0, 1, 1], [], []>} : vector<16x128xbf16>, vector<128x128xbf16>, vector<16x128xf32> -> vector<16x128xf32>
    %225 = vector.extract_strided_slice %224 {offsets = [2, 0], sizes = [1, 128], strides = [1, 1]} : vector<16x128xf32> to vector<1x128xf32>
    %226 = arith.addf %221, %225 : vector<1x128xf32>
    %c3_190 = arith.constant 3 : index
    %c0_191 = arith.constant 0 : index
    %c0_192 = arith.constant 0 : index
    %227 = vector.load %arg8[%c3_190, %c0_191, %c0_192] : memref<16x128x128xbf16, #tpu.memory_space<vmem>>, vector<1x128x128xbf16>
    %228 = vector.shape_cast %227 : vector<1x128x128xbf16> to vector<128x128xbf16>
    %cst_193 = arith.constant dense<0.000000e+00> : vector<16x128xf32>
    %229 = tpu.matmul %210, %228, %cst_193 {dimension_numbers = #tpu.dot_dimension_numbers<[1], [0], [0], [1], [0, 0, 1, 1], [], []>} : vector<16x128xbf16>, vector<128x128xbf16>, vector<16x128xf32> -> vector<16x128xf32>
    %230 = vector.extract_strided_slice %229 {offsets = [3, 0], sizes = [1, 128], strides = [1, 1]} : vector<16x128xf32> to vector<1x128xf32>
    %231 = arith.addf %226, %230 : vector<1x128xf32>
    %c4_194 = arith.constant 4 : index
    %c0_195 = arith.constant 0 : index
    %c0_196 = arith.constant 0 : index
    %232 = vector.load %arg8[%c4_194, %c0_195, %c0_196] : memref<16x128x128xbf16, #tpu.memory_space<vmem>>, vector<1x128x128xbf16>
    %233 = vector.shape_cast %232 : vector<1x128x128xbf16> to vector<128x128xbf16>
    %cst_197 = arith.constant dense<0.000000e+00> : vector<16x128xf32>
    %234 = tpu.matmul %210, %233, %cst_197 {dimension_numbers = #tpu.dot_dimension_numbers<[1], [0], [0], [1], [0, 0, 1, 1], [], []>} : vector<16x128xbf16>, vector<128x128xbf16>, vector<16x128xf32> -> vector<16x128xf32>
    %235 = vector.extract_strided_slice %234 {offsets = [4, 0], sizes = [1, 128], strides = [1, 1]} : vector<16x128xf32> to vector<1x128xf32>
    %236 = arith.addf %231, %235 : vector<1x128xf32>
    %c5_198 = arith.constant 5 : index
    %c0_199 = arith.constant 0 : index
    %c0_200 = arith.constant 0 : index
    %237 = vector.load %arg8[%c5_198, %c0_199, %c0_200] : memref<16x128x128xbf16, #tpu.memory_space<vmem>>, vector<1x128x128xbf16>
    %238 = vector.shape_cast %237 : vector<1x128x128xbf16> to vector<128x128xbf16>
    %cst_201 = arith.constant dense<0.000000e+00> : vector<16x128xf32>
    %239 = tpu.matmul %210, %238, %cst_201 {dimension_numbers = #tpu.dot_dimension_numbers<[1], [0], [0], [1], [0, 0, 1, 1], [], []>} : vector<16x128xbf16>, vector<128x128xbf16>, vector<16x128xf32> -> vector<16x128xf32>
    %240 = vector.extract_strided_slice %239 {offsets = [5, 0], sizes = [1, 128], strides = [1, 1]} : vector<16x128xf32> to vector<1x128xf32>
    %241 = arith.addf %236, %240 : vector<1x128xf32>
    %c6_202 = arith.constant 6 : index
    %c0_203 = arith.constant 0 : index
    %c0_204 = arith.constant 0 : index
    %242 = vector.load %arg8[%c6_202, %c0_203, %c0_204] : memref<16x128x128xbf16, #tpu.memory_space<vmem>>, vector<1x128x128xbf16>
    %243 = vector.shape_cast %242 : vector<1x128x128xbf16> to vector<128x128xbf16>
    %cst_205 = arith.constant dense<0.000000e+00> : vector<16x128xf32>
    %244 = tpu.matmul %210, %243, %cst_205 {dimension_numbers = #tpu.dot_dimension_numbers<[1], [0], [0], [1], [0, 0, 1, 1], [], []>} : vector<16x128xbf16>, vector<128x128xbf16>, vector<16x128xf32> -> vector<16x128xf32>
    %245 = vector.extract_strided_slice %244 {offsets = [6, 0], sizes = [1, 128], strides = [1, 1]} : vector<16x128xf32> to vector<1x128xf32>
    %246 = arith.addf %241, %245 : vector<1x128xf32>
    %c7_206 = arith.constant 7 : index
    %c0_207 = arith.constant 0 : index
    %c0_208 = arith.constant 0 : index
    %247 = vector.load %arg8[%c7_206, %c0_207, %c0_208] : memref<16x128x128xbf16, #tpu.memory_space<vmem>>, vector<1x128x128xbf16>
    %248 = vector.shape_cast %247 : vector<1x128x128xbf16> to vector<128x128xbf16>
    %cst_209 = arith.constant dense<0.000000e+00> : vector<16x128xf32>
    %249 = tpu.matmul %210, %248, %cst_209 {dimension_numbers = #tpu.dot_dimension_numbers<[1], [0], [0], [1], [0, 0, 1, 1], [], []>} : vector<16x128xbf16>, vector<128x128xbf16>, vector<16x128xf32> -> vector<16x128xf32>
    %250 = vector.extract_strided_slice %249 {offsets = [7, 0], sizes = [1, 128], strides = [1, 1]} : vector<16x128xf32> to vector<1x128xf32>
    %251 = arith.addf %246, %250 : vector<1x128xf32>
    %c8_210 = arith.constant 8 : index
    %c0_211 = arith.constant 0 : index
    %c0_212 = arith.constant 0 : index
    %252 = vector.load %arg8[%c8_210, %c0_211, %c0_212] : memref<16x128x128xbf16, #tpu.memory_space<vmem>>, vector<1x128x128xbf16>
    %253 = vector.shape_cast %252 : vector<1x128x128xbf16> to vector<128x128xbf16>
    %cst_213 = arith.constant dense<0.000000e+00> : vector<16x128xf32>
    %254 = tpu.matmul %210, %253, %cst_213 {dimension_numbers = #tpu.dot_dimension_numbers<[1], [0], [0], [1], [0, 0, 1, 1], [], []>} : vector<16x128xbf16>, vector<128x128xbf16>, vector<16x128xf32> -> vector<16x128xf32>
    %255 = vector.extract_strided_slice %254 {offsets = [8, 0], sizes = [1, 128], strides = [1, 1]} : vector<16x128xf32> to vector<1x128xf32>
    %256 = arith.addf %251, %255 : vector<1x128xf32>
    %c9_214 = arith.constant 9 : index
    %c0_215 = arith.constant 0 : index
    %c0_216 = arith.constant 0 : index
    %257 = vector.load %arg8[%c9_214, %c0_215, %c0_216] : memref<16x128x128xbf16, #tpu.memory_space<vmem>>, vector<1x128x128xbf16>
    %258 = vector.shape_cast %257 : vector<1x128x128xbf16> to vector<128x128xbf16>
    %cst_217 = arith.constant dense<0.000000e+00> : vector<16x128xf32>
    %259 = tpu.matmul %210, %258, %cst_217 {dimension_numbers = #tpu.dot_dimension_numbers<[1], [0], [0], [1], [0, 0, 1, 1], [], []>} : vector<16x128xbf16>, vector<128x128xbf16>, vector<16x128xf32> -> vector<16x128xf32>
    %260 = vector.extract_strided_slice %259 {offsets = [9, 0], sizes = [1, 128], strides = [1, 1]} : vector<16x128xf32> to vector<1x128xf32>
    %261 = arith.addf %256, %260 : vector<1x128xf32>
    %c10_218 = arith.constant 10 : index
    %c0_219 = arith.constant 0 : index
    %c0_220 = arith.constant 0 : index
    %262 = vector.load %arg8[%c10_218, %c0_219, %c0_220] : memref<16x128x128xbf16, #tpu.memory_space<vmem>>, vector<1x128x128xbf16>
    %263 = vector.shape_cast %262 : vector<1x128x128xbf16> to vector<128x128xbf16>
    %cst_221 = arith.constant dense<0.000000e+00> : vector<16x128xf32>
    %264 = tpu.matmul %210, %263, %cst_221 {dimension_numbers = #tpu.dot_dimension_numbers<[1], [0], [0], [1], [0, 0, 1, 1], [], []>} : vector<16x128xbf16>, vector<128x128xbf16>, vector<16x128xf32> -> vector<16x128xf32>
    %265 = vector.extract_strided_slice %264 {offsets = [10, 0], sizes = [1, 128], strides = [1, 1]} : vector<16x128xf32> to vector<1x128xf32>
    %266 = arith.addf %261, %265 : vector<1x128xf32>
    %c11_222 = arith.constant 11 : index
    %c0_223 = arith.constant 0 : index
    %c0_224 = arith.constant 0 : index
    %267 = vector.load %arg8[%c11_222, %c0_223, %c0_224] : memref<16x128x128xbf16, #tpu.memory_space<vmem>>, vector<1x128x128xbf16>
    %268 = vector.shape_cast %267 : vector<1x128x128xbf16> to vector<128x128xbf16>
    %cst_225 = arith.constant dense<0.000000e+00> : vector<16x128xf32>
    %269 = tpu.matmul %210, %268, %cst_225 {dimension_numbers = #tpu.dot_dimension_numbers<[1], [0], [0], [1], [0, 0, 1, 1], [], []>} : vector<16x128xbf16>, vector<128x128xbf16>, vector<16x128xf32> -> vector<16x128xf32>
    %270 = vector.extract_strided_slice %269 {offsets = [11, 0], sizes = [1, 128], strides = [1, 1]} : vector<16x128xf32> to vector<1x128xf32>
    %271 = arith.addf %266, %270 : vector<1x128xf32>
    %c12_226 = arith.constant 12 : index
    %c0_227 = arith.constant 0 : index
    %c0_228 = arith.constant 0 : index
    %272 = vector.load %arg8[%c12_226, %c0_227, %c0_228] : memref<16x128x128xbf16, #tpu.memory_space<vmem>>, vector<1x128x128xbf16>
    %273 = vector.shape_cast %272 : vector<1x128x128xbf16> to vector<128x128xbf16>
    %cst_229 = arith.constant dense<0.000000e+00> : vector<16x128xf32>
    %274 = tpu.matmul %210, %273, %cst_229 {dimension_numbers = #tpu.dot_dimension_numbers<[1], [0], [0], [1], [0, 0, 1, 1], [], []>} : vector<16x128xbf16>, vector<128x128xbf16>, vector<16x128xf32> -> vector<16x128xf32>
    %275 = vector.extract_strided_slice %274 {offsets = [12, 0], sizes = [1, 128], strides = [1, 1]} : vector<16x128xf32> to vector<1x128xf32>
    %276 = arith.addf %271, %275 : vector<1x128xf32>
    %c13_230 = arith.constant 13 : index
    %c0_231 = arith.constant 0 : index
    %c0_232 = arith.constant 0 : index
    %277 = vector.load %arg8[%c13_230, %c0_231, %c0_232] : memref<16x128x128xbf16, #tpu.memory_space<vmem>>, vector<1x128x128xbf16>
    %278 = vector.shape_cast %277 : vector<1x128x128xbf16> to vector<128x128xbf16>
    %cst_233 = arith.constant dense<0.000000e+00> : vector<16x128xf32>
    %279 = tpu.matmul %210, %278, %cst_233 {dimension_numbers = #tpu.dot_dimension_numbers<[1], [0], [0], [1], [0, 0, 1, 1], [], []>} : vector<16x128xbf16>, vector<128x128xbf16>, vector<16x128xf32> -> vector<16x128xf32>
    %280 = vector.extract_strided_slice %279 {offsets = [13, 0], sizes = [1, 128], strides = [1, 1]} : vector<16x128xf32> to vector<1x128xf32>
    %281 = arith.addf %276, %280 : vector<1x128xf32>
    %c14_234 = arith.constant 14 : index
    %c0_235 = arith.constant 0 : index
    %c0_236 = arith.constant 0 : index
    %282 = vector.load %arg8[%c14_234, %c0_235, %c0_236] : memref<16x128x128xbf16, #tpu.memory_space<vmem>>, vector<1x128x128xbf16>
    %283 = vector.shape_cast %282 : vector<1x128x128xbf16> to vector<128x128xbf16>
    %cst_237 = arith.constant dense<0.000000e+00> : vector<16x128xf32>
    %284 = tpu.matmul %210, %283, %cst_237 {dimension_numbers = #tpu.dot_dimension_numbers<[1], [0], [0], [1], [0, 0, 1, 1], [], []>} : vector<16x128xbf16>, vector<128x128xbf16>, vector<16x128xf32> -> vector<16x128xf32>
    %285 = vector.extract_strided_slice %284 {offsets = [14, 0], sizes = [1, 128], strides = [1, 1]} : vector<16x128xf32> to vector<1x128xf32>
    %286 = arith.addf %281, %285 : vector<1x128xf32>
    %c15_238 = arith.constant 15 : index
    %c0_239 = arith.constant 0 : index
    %c0_240 = arith.constant 0 : index
    %287 = vector.load %arg8[%c15_238, %c0_239, %c0_240] : memref<16x128x128xbf16, #tpu.memory_space<vmem>>, vector<1x128x128xbf16>
    %288 = vector.shape_cast %287 : vector<1x128x128xbf16> to vector<128x128xbf16>
    %cst_241 = arith.constant dense<0.000000e+00> : vector<16x128xf32>
    %289 = tpu.matmul %210, %288, %cst_241 {dimension_numbers = #tpu.dot_dimension_numbers<[1], [0], [0], [1], [0, 0, 1, 1], [], []>} : vector<16x128xbf16>, vector<128x128xbf16>, vector<16x128xf32> -> vector<16x128xf32>
    %290 = vector.extract_strided_slice %289 {offsets = [15, 0], sizes = [1, 128], strides = [1, 1]} : vector<16x128xf32> to vector<1x128xf32>
    %291 = arith.addf %286, %290 : vector<1x128xf32>
    %cst_242 = arith.constant 0.000000e+00 : f32
    %292 = vector.broadcast %cst_242 : f32 to vector<1x128xf32>
    %293 = arith.maximumf %291, %292 : vector<1x128xf32>
    %294 = vector.shape_cast %293 : vector<1x128xf32> to vector<1x128xf32>
    %295 = vector.broadcast %294 : vector<1x128xf32> to vector<8x128xf32>
    %296 = arith.truncf %295 : vector<8x128xf32> to vector<8x128xbf16>
    %c0_243 = arith.constant 0 : index
    %c0_244 = arith.constant 0 : index
    %297 = vector.load %arg10[%c0_243, %c0_244] : memref<128x128xbf16, #tpu.memory_space<vmem>>, vector<128x128xbf16>
    %cst_245 = arith.constant dense<0.000000e+00> : vector<8x128xf32>
    %298 = tpu.matmul %296, %297, %cst_245 {dimension_numbers = #tpu.dot_dimension_numbers<[1], [0], [0], [1], [0, 0, 1, 1], [], []>} : vector<8x128xbf16>, vector<128x128xbf16>, vector<8x128xf32> -> vector<8x128xf32>
    %c0_246 = arith.constant 0 : index
    %c0_247 = arith.constant 0 : index
    %299 = vector.load %arg11[%c0_246, %c0_247] : memref<1x128xf32, #tpu.memory_space<vmem>>, vector<1x128xf32>
    %300 = vector.broadcast %299 : vector<1x128xf32> to vector<8x128xf32>
    %301 = arith.addf %298, %300 : vector<8x128xf32>
    %cst_248 = arith.constant 0.000000e+00 : f32
    %302 = vector.broadcast %cst_248 : f32 to vector<8x128xf32>
    %303 = arith.maximumf %301, %302 : vector<8x128xf32>
    %304 = arith.truncf %303 : vector<8x128xf32> to vector<8x128xbf16>
    %c0_249 = arith.constant 0 : index
    %c0_250 = arith.constant 0 : index
    %305 = vector.load %arg12[%c0_249, %c0_250] : memref<128x128xbf16, #tpu.memory_space<vmem>>, vector<128x128xbf16>
    %cst_251 = arith.constant dense<0.000000e+00> : vector<8x128xf32>
    %306 = tpu.matmul %304, %305, %cst_251 {dimension_numbers = #tpu.dot_dimension_numbers<[1], [0], [0], [1], [0, 0, 1, 1], [], []>} : vector<8x128xbf16>, vector<128x128xbf16>, vector<8x128xf32> -> vector<8x128xf32>
    %c0_252 = arith.constant 0 : index
    %c0_253 = arith.constant 0 : index
    %307 = vector.load %arg13[%c0_252, %c0_253] : memref<1x128xf32, #tpu.memory_space<vmem>>, vector<1x128xf32>
    %308 = vector.broadcast %307 : vector<1x128xf32> to vector<8x128xf32>
    %309 = arith.addf %306, %308 : vector<8x128xf32>
    %310 = vector.shape_cast %309 : vector<8x128xf32> to vector<1x8x128xf32>
    %c0_254 = arith.constant 0 : index
    %c0_255 = arith.constant 0 : index
    %c0_256 = arith.constant 0 : index
    %311 = vector.load %arg14[%c0_254, %c0_255, %c0_256] : memref<1x8x128xf32, #tpu.memory_space<vmem>>, vector<1x8x128xf32>
    tpu.vector_store %arg14[%c0_254, %c0_255, %c0_256], %310 {strides = array<i32>} : memref<1x8x128xf32, #tpu.memory_space<vmem>>, vector<1x8x128xf32>,
    return
  }
  func.func @transform_0(%arg0: i32) -> (i32, i32, i32) {
    %c0_i32 = arith.constant 0 : i32
    %c0_i32_0 = arith.constant 0 : i32
    %c0_i32_1 = arith.constant 0 : i32
    return %arg0, %c0_i32, %c0_i32_0 : i32, i32, i32
  }
  func.func @transform_1(%arg0: i32) -> (i32, i32, i32) {
    %c0_i32 = arith.constant 0 : i32
    %c0_i32_0 = arith.constant 0 : i32
    %c0_i32_1 = arith.constant 0 : i32
    %c0_i32_2 = arith.constant 0 : i32
    return %c0_i32, %c0_i32_0, %c0_i32_1 : i32, i32, i32
  }
  func.func @transform_2(%arg0: i32) -> (i32, i32) {
    %c0_i32 = arith.constant 0 : i32
    %c0_i32_0 = arith.constant 0 : i32
    %c0_i32_1 = arith.constant 0 : i32
    return %c0_i32, %c0_i32_0 : i32, i32
  }
  func.func @transform_3(%arg0: i32) -> (i32, i32) {
    %c0_i32 = arith.constant 0 : i32
    %c0_i32_0 = arith.constant 0 : i32
    %c0_i32_1 = arith.constant 0 : i32
    return %c0_i32, %c0_i32_0 : i32, i32
  }
  func.func @transform_4(%arg0: i32) -> (i32, i32, i32) {
    %c0_i32 = arith.constant 0 : i32
    %c0_i32_0 = arith.constant 0 : i32
    %c0_i32_1 = arith.constant 0 : i32
    %c0_i32_2 = arith.constant 0 : i32
    return %c0_i32, %c0_i32_0, %c0_i32_1 : i32, i32, i32
  }
  func.func @transform_5(%arg0: i32) -> (i32, i32) {
    %c0_i32 = arith.constant 0 : i32
    %c0_i32_0 = arith.constant 0 : i32
    %c0_i32_1 = arith.constant 0 : i32
    return %c0_i32, %c0_i32_0 : i32, i32
  }
  func.func @transform_6(%arg0: i32) -> (i32, i32) {
    %c0_i32 = arith.constant 0 : i32
    %c0_i32_0 = arith.constant 0 : i32
    %c0_i32_1 = arith.constant 0 : i32
    return %c0_i32, %c0_i32_0 : i32, i32
  }
  func.func @transform_7(%arg0: i32) -> (i32, i32, i32) {
    %c0_i32 = arith.constant 0 : i32
    %c0_i32_0 = arith.constant 0 : i32
    %c0_i32_1 = arith.constant 0 : i32
    %c0_i32_2 = arith.constant 0 : i32
    return %c0_i32, %c0_i32_0, %c0_i32_1 : i32, i32, i32
  }
  func.func @transform_8(%arg0: i32) -> (i32, i32) {
    %c0_i32 = arith.constant 0 : i32
    %c0_i32_0 = arith.constant 0 : i32
    %c0_i32_1 = arith.constant 0 : i32
    return %c0_i32, %c0_i32_0 : i32, i32
  }
  func.func @transform_9(%arg0: i32) -> (i32, i32) {
    %c0_i32 = arith.constant 0 : i32
    %c0_i32_0 = arith.constant 0 : i32
    %c0_i32_1 = arith.constant 0 : i32
    return %c0_i32, %c0_i32_0 : i32, i32
  }
  func.func @transform_10(%arg0: i32) -> (i32, i32) {
    %c0_i32 = arith.constant 0 : i32
    %c0_i32_0 = arith.constant 0 : i32
    %c0_i32_1 = arith.constant 0 : i32
    return %c0_i32, %c0_i32_0 : i32, i32
  }
  func.func @transform_11(%arg0: i32) -> (i32, i32) {
    %c0_i32 = arith.constant 0 : i32
    %c0_i32_0 = arith.constant 0 : i32
    %c0_i32_1 = arith.constant 0 : i32
    return %c0_i32, %c0_i32_0 : i32, i32
  }
  func.func @transform_12(%arg0: i32) -> (i32, i32) {
    %c0_i32 = arith.constant 0 : i32
    %c0_i32_0 = arith.constant 0 : i32
    %c0_i32_1 = arith.constant 0 : i32
    return %c0_i32, %c0_i32_0 : i32, i32
  }
  func.func @transform_13(%arg0: i32) -> (i32, i32, i32) {
    %c0_i32 = arith.constant 0 : i32
    %c0_i32_0 = arith.constant 0 : i32
    %c0_i32_1 = arith.constant 0 : i32
    return %arg0, %c0_i32, %c0_i32_0 : i32, i32, i32
  }
}

</mosaic_0001>

<bundles_post_ra>
// kernel: lenet5_forward.1
= control target key start
LH: loop header
LB: loop body
LE: loop exit
PB: predicated region body
PF: predicated region fallthrough
CT: control target
= control target key end

     0   :  { %s16704_s25 = smov 0   ;;  %s20982_s0 = inlined_call_operand.vmem [shape: f32[2,800,8], index: 0, kind: input, shape index: {}]   ;;  %s20983_s1 = inlined_call_operand.vmem [shape: bf16[5,8,128], index: 1, kind: input, shape index: {}]   ;;  %s20984_s2 = inlined_call_operand.vmem [shape: f32[1,128], index: 2, kind: input, shape index: {}]   ;;  %s20985_s3 = inlined_call_operand.vmem [shape: bf16[160,672], index: 3, kind: input, shape index: {}]   ;;  %s20986_s4 = inlined_call_operand.vmem [shape: bf16[25,128,128], index: 4, kind: input, shape index: {}]   ;;  %s20987_s5 = inlined_call_operand.vmem [shape: f32[1,128], index: 5, kind: input, shape index: {}]   ;;  %s20988_s6 = inlined_call_operand.vmem [shape: bf16[16,96], index: 6, kind: input, shape index: {}]   ;;  %s20989_s7 = inlined_call_operand.vmem [shape: bf16[16,128,128], index: 7, kind: input, shape index: {}]   ;;  %s20990_s8 = inlined_call_operand.vmem [shape: f32[1,128], index: 8, kind: input, shape index: {}]   ;;  %s20991_s9 = inlined_call_operand.vmem [shape: bf16[128,128], index: 9, kind: input, shape index: {}]   ;;  %s20992_s10 = inlined_call_operand.vmem [shape: f32[1,128], index: 10, kind: input, shape index: {}]   ;;  %s20993_s11 = inlined_call_operand.vmem [shape: bf16[128,128], index: 11, kind: input, shape index: {}]   ;;  %s20994_s12 = inlined_call_operand.vmem [shape: f32[1,128], index: 12, kind: input, shape index: {}]   ;;  %s20995_s13 = inlined_call_operand.vmem [shape: f32[2,8,128], index: 13, kind: output, shape index: {}]  }
   0x1 LB: > { %s12399_s26 = sadd.s32 4294967295, %s16628_s25   ;;  %p12403_p0 = scmp.ge.s32.totalorder %s16628_s25, 1  ;;  %s16628_s25 = sphi %s16704_s25, %s23_s25  }
   0x2   : > { %p387_p1 = scmp.lt.s32.totalorder %s16628_s25, 3 }
   0x4   : > { %p388_p2 = pnand %p12403_p0, %p387_p1 }
   0x6   : > { %391 = sbr.rel (%p388_p2) target bundleno = 2745 (0xab9), region = 72 }
   0xb   : > { %v566_v0 = vld [vmem:[%s20983_s1] sm:$0xf]  ;;  %vm694_vm0 = vcmask 1043456   ;;  %v12448_v1 = vld [vmem:[%s20983_s1 + $0x4] sm:$0xf]  ;;  %p430_p3 = scmp.lt.s32.totalorder %s12399_s26, 1 }
   0xc   : > { %16058 = vmatprep.subr.msk.bf16.mxu0 %vm694_vm0, %v566_v0  ;;  %16059 = vmatprep.subr.msk.bf16.mxu1 %vm694_vm0, %v12448_v1  ;;  %v696_v2 = vsel %vm694_vm0, %v566_v0, 0  ;;  %v1406_v3 = vsel %vm694_vm0, %v12448_v1, 0  ;;  %vm567_vm1 = vcmask 64512   ;;  %vm5314_vm2 = vcmask 261120  }
   0xd   : > { %14553 = vmatpush3.bf16.msra.mxu0 %v696_v2  ;;  %14639 = vmatpush3.bf16.msra.mxu1 %v1406_v3  ;;  %s21323_s26 = smov (!%p430_p3, %s12399_s26), 1  ;;  %vm16632_vm3 = vmmov 0   ;;  %vm10123_vm4 = vcmask 785408  }
   0xe   : > { %s16063_s14 = smul.u32 800, %s21323_s26  ;;  %s12405_s19 = sshll.u32 %s21323_s26, 3 }
   0xf   : > { %s438_s24 = scalar_lea.vmem %s20995_s13, %s12405_s19 }
  0x10   : > { %s16728_s17 = scalar_lea.vmem %s20982_s0, %s16063_s14 }
  0x11   : > { %v440_v4 = vld [vmem:[%s16728_s17] sm:$0xff]  ;;  %v441_v5 = vld [vmem:[%s16728_s17 + $0x8] sm:$0xff]  ;;  %v442_v9 = vld [vmem:[%s16728_s17 + $0x10] sm:$0xff] }
  0x12   : > { %v1151_v6 = vld [vmem:[%s16728_s17 + $0x1c] sm:$0xff]  ;;  %v524_v7 = vpack.c.bf16 %v441_v5, %v440_v4  ;;  %v1152_v8 = vld [vmem:[%s16728_s17 + $0x24] sm:$0xff]  ;;  %v1153_v13 = vld [vmem:[%s16728_s17 + $0x2c] sm:$0xff] }
  0x13   : > { %v443_v10 = vld [vmem:[%s16728_s17 + $0x18] sm:$0xff]  ;;  %v1235_v11 = vpack.c.bf16 %v1152_v8, %v1151_v6  ;;  %v444_v15 = vld [vmem:[%s16728_s17 + $0x20] sm:$0xff]  ;;  %v445_v17 = vld [vmem:[%s16728_s17 + $0x28] sm:$0xff] }
  0x14   : > { %v525_v12 = vpack.c.bf16 %v443_v10, %v442_v9  ;;  %v1154_v14 = vld [vmem:[%s16728_s17 + $0x34] sm:$0xff]  ;;  %14554 = vmatprep.mubr.msk.bf16.mxu0 %vm567_vm1, %v524_v7  ;;  %v1155_v18 = vld [vmem:[%s16728_s17 + $0x3c] sm:$0xff]  ;;  %v1156_v19 = vld [vmem:[%s16728_s17 + $0x44] sm:$0xff]  ;;  %v526_v20 = vpack.c.bf16 %v445_v17, %v444_v15 }
  0x15   : > { %v1236_v16 = vpack.c.bf16 %v1154_v14, %v1153_v13  ;;  %14640 = vmatprep.mubr.msk.bf16.mxu1 %vm567_vm1, %v1235_v11  ;;  %v1237_v21 = vpack.c.bf16 %v1156_v19, %v1155_v18  ;;  %v446_v22 = vld [vmem:[%s16728_s17 + $0x30] sm:$0xff]  ;;  %v16748_v23 = vld [vmem:[%s16728_s17 + $0x38] sm:$0xff]  ;;  %v16757_v26 = vld [vmem:[%s16728_s17 + $0x40] sm:$0xff] }
  0x16   : > { %14555 = vmatmul.mubr.msk.bf16.vlgmr.msra.gmra.mxu0 %vm567_vm1, %v525_v12  ;;  %v1157_v24 = vld [vmem:[%s16728_s17 + $0x4c] sm:$0xff]  ;;  %v16754_v25 = vld [vmem:[%s16728_s17 + $0x54] sm:$0xff]  ;;  %v16763_v28 = vld [vmem:[%s16728_s17 + $0x5c] sm:$0xff]  ;;  %v527_v30 = vpack.c.bf16 %v16748_v23, %v446_v22 }
  0x17   : > { %14641 = vmatmul.mubr.msk.bf16.vlgmr.msra.gmra.mxu1 %vm567_vm1, %v1236_v16  ;;  %14558 = vmatprep.mubr.msk.bf16.mxu0 %vm567_vm1, %v526_v20  ;;  %v16760_v27 = vld [vmem:[%s16728_s17 + $0x48] sm:$0xff]  ;;  %v1238_v31 = vpack.c.bf16 %v16754_v25, %v1157_v24  ;;  %v16778_v34 = vld [vmem:[%s16728_s17 + $0x50] sm:$0xff]  ;;  %v16781_v35 = vld [vmem:[%s16728_s17 + $0x58] sm:$0xff] }
  0x18   : > { %14644 = vmatprep.mubr.msk.bf16.mxu1 %vm567_vm1, %v1237_v21  ;;  %v16766_v29 = vld [vmem:[%s16728_s17 + $0x64] sm:$0xff]  ;;  %v528_v32 = vpack.c.bf16 %v16760_v27, %v16757_v26  ;;  %v16784_v36 = vld [vmem:[%s16728_s17 + $0x6c] sm:$0xff]  ;;  %v16788_v37 = vld [vmem:[%s16728_s17 + $0x74] sm:$0xff]  ;;  %v529_v42 = vpack.c.bf16 %v16781_v35, %v16778_v34 }
  0x19   : > { %v1239_v33 = vpack.c.bf16 %v16766_v29, %v16763_v28  ;;  %v16791_v38 = vld [vmem:[%s16728_s17 + $0x60] sm:$0xff]  ;;  %v16794_v39 = vld [vmem:[%s16728_s17 + $0x68] sm:$0xff]  ;;  %v1240_v43 = vpack.c.bf16 %v16788_v37, %v16784_v36  ;;  %v16814_v46 = vld [vmem:[%s16728_s17 + $0x70] sm:$0xff] }
  0x1a   : > { %v16797_v40 = vld [vmem:[%s16728_s17 + $0x7c] sm:$0xff]  ;;  %v16800_v41 = vld [vmem:[%s16728_s17 + $0x84] sm:$0xff]  ;;  %v530_v44 = vpack.c.bf16 %v16794_v39, %v16791_v38  ;;  %v16820_v48 = vld [vmem:[%s16728_s17 + $0x8c] sm:$0xff] }
  0x1b   : > { %v1241_v45 = vpack.c.bf16 %v16800_v41, %v16797_v40  ;;  %v16817_v47 = vld [vmem:[%s16728_s17 + $0x78] sm:$0xff]  ;;  %v16827_v50 = vld [vmem:[%s16728_s17 + $0x80] sm:$0xff]  ;;  %v16830_v51 = vld [vmem:[%s16728_s17 + $0x88] sm:$0xff] }
  0x1c   : > { %v16824_v49 = vld [vmem:[%s16728_s17 + $0x94] sm:$0xff]  ;;  %v16833_v52 = vld [vmem:[%s16728_s17 + $0x9c] sm:$0xff]  ;;  %v16836_v53 = vld [vmem:[%s16728_s17 + $0xa4] sm:$0xff]  ;;  %v531_v54 = vpack.c.bf16 %v16817_v47, %v16814_v46  ;;  %v532_v56 = vpack.c.bf16 %v16830_v51, %v16827_v50 }
  0x1d   : > { %v1242_v55 = vpack.c.bf16 %v16824_v49, %v16820_v48  ;;  %v1243_v57 = vpack.c.bf16 %v16836_v53, %v16833_v52  ;;  %v16850_v58 = vld [vmem:[%s16728_s17 + $0x90] sm:$0xff]  ;;  %v16853_v59 = vld [vmem:[%s16728_s17 + $0x98] sm:$0xff]  ;;  %v16863_v62 = vld [vmem:[%s16728_s17 + $0xa0] sm:$0xff] }
  0x1e   : > { %14559 = vmatmul.mubr.msk.bf16.gmra.mxu0 %vm567_vm1, %v527_v30  ;;  %v16856_v60 = vld [vmem:[%s16728_s17 + $0xac] sm:$0xff]  ;;  %v16860_v61 = vld [vmem:[%s16728_s17 + $0xb4] sm:$0xff]  ;;  %v16869_v0 = vld [vmem:[%s16728_s17 + $0xbc] sm:$0xff]  ;;  %v533_v2 = vpack.c.bf16 %v16853_v59, %v16850_v58 }
  0x1f   : > { %14645 = vmatmul.mubr.msk.bf16.gmra.mxu1 %vm567_vm1, %v1238_v31  ;;  %14562 = vmatprep.mubr.msk.bf16.mxu0 %vm567_vm1, %v528_v32  ;;  %v16866_v63 = vld [vmem:[%s16728_s17 + $0xa8] sm:$0xff]  ;;  %v1244_v3 = vpack.c.bf16 %v16860_v61, %v16856_v60  ;;  %v16886_v6 = vld [vmem:[%s16728_s17 + $0xb0] sm:$0xff]  ;;  %v16889_v7 = vld [vmem:[%s16728_s17 + $0xb8] sm:$0xff] }
  0x20   : > { %14648 = vmatprep.mubr.msk.bf16.mxu1 %vm567_vm1, %v1239_v33  ;;  %v16872_v1 = vld [vmem:[%s16728_s17 + $0xc4] sm:$0xff]  ;;  %v534_v4 = vpack.c.bf16 %v16866_v63, %v16863_v62  ;;  %v16892_v8 = vld [vmem:[%s16728_s17 + $0xcc] sm:$0xff]  ;;  %v16900_v11 = vld [vmem:[%s16728_s17 + $0xd4] sm:$0xff]  ;;  %v535_v16 = vpack.c.bf16 %v16889_v7, %v16886_v6 }
  0x21   : > { %v1245_v5 = vpack.c.bf16 %v16872_v1, %v16869_v0  ;;  %v16903_v12 = vld [vmem:[%s16728_s17 + $0xc0] sm:$0xff]  ;;  %v16906_v13 = vld [vmem:[%s16728_s17 + $0xc8] sm:$0xff]  ;;  %v1246_v17 = vpack.c.bf16 %v16900_v11, %v16892_v8  ;;  %v16930_v22 = vld [vmem:[%s16728_s17 + $0xd0] sm:$0xff] }
  0x22   : > { %v16909_v14 = vld [vmem:[%s16728_s17 + $0xdc] sm:$0xff]  ;;  %v16912_v15 = vld [vmem:[%s16728_s17 + $0xe4] sm:$0xff]  ;;  %v536_v18 = vpack.c.bf16 %v16906_v13, %v16903_v12  ;;  %v16936_v30 = vld [vmem:[%s16728_s17 + $0xec] sm:$0xff] }
  0x23   : > { %v1247_v19 = vpack.c.bf16 %v16912_v15, %v16909_v14  ;;  %v16933_v24 = vld [vmem:[%s16728_s17 + $0xd8] sm:$0xff]  ;;  %v1185_v31 = vld [vmem:[%s16728_s17 + $0x12c] sm:$0xff]  ;;  %v476_v21 = vld [vmem:[%s16728_s17 + $0x120] sm:$0xff] }
  0x24   : > { %v1178_v33 = vld [vmem:[%s16728_s17 + $0xf4] sm:$0xff]  ;;  %v477_v10 = vld [vmem:[%s16728_s17 + $0x128] sm:$0xff] }
  0x25   : > { %v1190_v20 = vld [vmem:[%s16728_s17 + $0x154] sm:$0xff]  ;;  %v481_v9 = vld [vmem:[%s16728_s17 + $0x148] sm:$0xff] }
  0x26   : > { %14563 = vmatmul.mubr.msk.bf16.gmra.mxu0 %vm567_vm1, %v529_v42  ;;  %v16945_v42 = vld [vmem:[%s16728_s17 + $0xe0] sm:$0xff] }
  0x27   : > { %14649 = vmatmul.mubr.msk.bf16.gmra.mxu1 %vm567_vm1, %v1240_v43  ;;  %14566 = vmatprep.mubr.msk.bf16.mxu0 %vm567_vm1, %v530_v44  ;;  %v16948_v43 = vld [vmem:[%s16728_s17 + $0xe8] sm:$0xff]  ;;  %v1179_v44 = vld [vmem:[%s16728_s17 + $0xfc] sm:$0xff] }
  0x28   : > { %14652 = vmatprep.mubr.msk.bf16.mxu1 %vm567_vm1, %v1241_v45  ;;  %v1180_v45 = vld [vmem:[%s16728_s17 + $0x104] sm:$0xff] }
  0x2e   : > { %14567 = vmatmul.mubr.msk.bf16.gmra.mxu0 %vm567_vm1, %v531_v54  ;;  %v537_v54 = vpack.c.bf16 %v16933_v24, %v16930_v22 }
  0x2f   : > { %14653 = vmatmul.mubr.msk.bf16.gmra.mxu1 %vm567_vm1, %v1242_v55  ;;  %14570 = vmatprep.mubr.msk.bf16.mxu0 %vm567_vm1, %v532_v56  ;;  %v12491_v55 = vld [vmem:[%s20983_s1 + $0x8] sm:$0xf]  ;;  %v1248_v56 = vpack.c.bf16 %v1178_v33, %v16936_v30  ;;  %v1182_v33 = vld [vmem:[%s16728_s17 + $0x114] sm:$0xff] }
  0x30   : > { %14656 = vmatprep.mubr.msk.bf16.mxu1 %vm567_vm1, %v1243_v57  ;;  %v538_v57 = vpack.c.bf16 %v16948_v43, %v16945_v42  ;;  %16060 = vmatprep.subr.msk.bf16.mxu0 %vm694_vm0, %v12491_v55 }
  0x36   : > { %14571 = vmatmul.mubr.msk.bf16.gmra.mxu0 %vm567_vm1, %v533_v2  ;;  %v2284_v2 = vsel %vm694_vm0, %v12491_v55, 0  ;;  %v1183_v55 = vld [vmem:[%s16728_s17 + $0x11c] sm:$0xff] }
  0x37   : > { %14657 = vmatmul.mubr.msk.bf16.gmra.mxu1 %vm567_vm1, %v1244_v3  ;;  %14574 = vmatprep.mubr.msk.bf16.mxu0 %vm567_vm1, %v534_v4  ;;  %v1249_v3 = vpack.c.bf16 %v1180_v45, %v1179_v44  ;;  %v472_v44 = vld [vmem:[%s16728_s17 + $0x100] sm:$0xff]  ;;  %v473_v45 = vld [vmem:[%s16728_s17 + $0x108] sm:$0xff]  ;;  %v475_v4 = vld [vmem:[%s16728_s17 + $0x118] sm:$0xff] }
  0x38   : > { %14660 = vmatprep.mubr.msk.bf16.mxu1 %vm567_vm1, %v1245_v5  ;;  %14725 = vmatpush3.bf16.msra.mxu0 %v2284_v2  ;;  %v12534_v2 = vld [vmem:[%s20983_s1 + $0xc] sm:$0xf] }
  0x39   : > { %16061 = vmatprep.subr.msk.bf16.mxu1 %vm694_vm0, %v12534_v2  ;;  %v3162_v5 = vsel %vm694_vm0, %v12534_v2, 0 }
  0x3a   : > { %14811 = vmatpush3.bf16.msra.mxu1 %v3162_v5  ;;  %v1187_v5 = vld [vmem:[%s16728_s17 + $0x13c] sm:$0xff] }
  0x3e   : > { %14575 = vmatmul.mubr.msk.bf16.gmra.mxu0 %vm567_vm1, %v535_v16  ;;  %v16970_v16 = vld [vmem:[%s16728_s17 + $0xf0] sm:$0xff] }
  0x3f   : > { %14661 = vmatmul.mubr.msk.bf16.gmra.mxu1 %vm567_vm1, %v1246_v17  ;;  %14578 = vmatprep.mubr.msk.bf16.mxu0 %vm567_vm1, %v536_v18  ;;  %v471_v17 = vld [vmem:[%s16728_s17 + $0xf8] sm:$0xff]  ;;  %v1181_v18 = vld [vmem:[%s16728_s17 + $0x10c] sm:$0xff] }
  0x40   : > { %14664 = vmatprep.mubr.msk.bf16.mxu1 %vm567_vm1, %v1247_v19  ;;  %v540_v19 = vpack.c.bf16 %v473_v45, %v472_v44  ;;  %v1188_v44 = vld [vmem:[%s16728_s17 + $0x144] sm:$0xff] }
  0x41   : > { %v1253_v2 = vpack.c.bf16 %v1188_v44, %v1187_v5  ;;  %v480_v45 = vld [vmem:[%s16728_s17 + $0x140] sm:$0xff]  ;;  %v493_v44 = vld [vmem:[%s16728_s17 + $0x1a8] sm:$0xff] }
  0x46   : > { %14579 = vmatmul.mubr.msk.bf16.gmra.mxu0 %vm567_vm1, %v537_v54  ;;  %v474_v54 = vld [vmem:[%s16728_s17 + $0x110] sm:$0xff] }
  0x47   : > { %14665 = vmatmul.mubr.msk.bf16.gmra.mxu1 %vm567_vm1, %v1248_v56  ;;  %14582 = vmatprep.mubr.msk.bf16.mxu0 %vm567_vm1, %v538_v57  ;;  %v1184_v56 = vld [vmem:[%s16728_s17 + $0x124] sm:$0xff]  ;;  %v539_v57 = vpack.c.bf16 %v471_v17, %v16970_v16  ;;  %v1186_v17 = vld [vmem:[%s16728_s17 + $0x134] sm:$0xff] }
  0x48   : > { %14668 = vmatprep.mubr.msk.bf16.mxu1 %vm567_vm1, %v1249_v3  ;;  %v1250_v3 = vpack.c.bf16 %v1182_v33, %v1181_v18  ;;  %v1251_v32 = vpack.c.bf16 %v1184_v56, %v1183_v55  ;;  %v541_v55 = vpack.c.bf16 %v475_v4, %v474_v54  ;;  %v1252_v56 = vpack.c.bf16 %v1186_v17, %v1185_v31  ;;  %v478_v33 = vld [vmem:[%s16728_s17 + $0x130] sm:$0xff]  ;;  %v479_v18 = vld [vmem:[%s16728_s17 + $0x138] sm:$0xff] }
  0x49   : > { %v543_v4 = vpack.c.bf16 %v479_v18, %v478_v33  ;;  %v544_v17 = vpack.c.bf16 %v481_v9, %v480_v45  ;;  %v1194_v31 = vld [vmem:[%s16728_s17 + $0x174] sm:$0xff]  ;;  %v484_v18 = vld [vmem:[%s16728_s17 + $0x160] sm:$0xff]  ;;  %v485_v33 = vld [vmem:[%s16728_s17 + $0x168] sm:$0xff] }
  0x4a   : > { %v1196_v45 = vld [vmem:[%s16728_s17 + $0x184] sm:$0xff]  ;;  %v491_v9 = vld [vmem:[%s16728_s17 + $0x198] sm:$0xff] }
  0x4e   : > { %14583 = vmatmul.mubr.msk.bf16.gmra.mxu0 %vm567_vm1, %v539_v57  ;;  %v542_v57 = vpack.c.bf16 %v477_v10, %v476_v21  ;;  %v1191_v10 = vld [vmem:[%s16728_s17 + $0x15c] sm:$0xff]  ;;  %v1192_v21 = vld [vmem:[%s16728_s17 + $0x164] sm:$0xff] }
  0x4f   : > { %14669 = vmatmul.mubr.msk.bf16.gmra.mxu1 %vm567_vm1, %v1250_v3  ;;  %14586 = vmatprep.mubr.msk.bf16.mxu0 %vm567_vm1, %v540_v19  ;;  %v1189_v19 = vld [vmem:[%s16728_s17 + $0x14c] sm:$0xff]  ;;  %v1255_v5 = vpack.c.bf16 %v1192_v21, %v1191_v10  ;;  %v546_v21 = vpack.c.bf16 %v485_v33, %v484_v18 }
  0x50   : > { %14672 = vmatprep.mubr.msk.bf16.mxu1 %vm567_vm1, %v1251_v32  ;;  %v2997_v32 = vpack.c.bf16 %v16869_v0, %v16860_v61  ;;  %v1254_v54 = vpack.c.bf16 %v1190_v20, %v1189_v19  ;;  %v1193_v3 = vld [vmem:[%s16728_s17 + $0x16c] sm:$0xff]  ;;  %v1195_v20 = vld [vmem:[%s16728_s17 + $0x17c] sm:$0xff]  ;;  %v16511_v61 = vld [vmem:[%s16728_s17 + $0xf4] sm:$0xff] }
  0x51   : > { %v1256_v10 = vpack.c.bf16 %v1194_v31, %v1193_v3  ;;  %v489_v3 = vld [vmem:[%s16728_s17 + $0x188] sm:$0xff]  ;;  %v1199_v31 = vld [vmem:[%s16728_s17 + $0x19c] sm:$0xff] }
  0x56   : > { %14587 = vmatmul.mubr.msk.bf16.gmra.mxu0 %vm567_vm1, %v541_v55  ;;  %v482_v55 = vld [vmem:[%s16728_s17 + $0x150] sm:$0xff] }
  0x57   : > { %14673 = vmatmul.mubr.msk.bf16.gmra.mxu1 %vm567_vm1, %v1252_v56  ;;  %14590 = vmatprep.mubr.msk.bf16.mxu0 %vm567_vm1, %v542_v57  ;;  %v483_v56 = vld [vmem:[%s16728_s17 + $0x158] sm:$0xff]  ;;  %v486_v57 = vld [vmem:[%s16728_s17 + $0x170] sm:$0xff] }
  0x58   : > { %14676 = vmatprep.mubr.msk.bf16.mxu1 %vm567_vm1, %v1253_v2  ;;  %v545_v19 = vpack.c.bf16 %v483_v56, %v482_v55  ;;  %v1197_v2 = vld [vmem:[%s16728_s17 + $0x18c] sm:$0xff]  ;;  %v488_v55 = vld [vmem:[%s16728_s17 + $0x180] sm:$0xff] }
  0x59   : > { %v1200_v56 = vld [vmem:[%s16728_s17 + $0x1a4] sm:$0xff] }
  0x5e   : > { %14591 = vmatmul.mubr.msk.bf16.gmra.mxu0 %vm567_vm1, %v543_v4  ;;  %v1257_v4 = vpack.c.bf16 %v1196_v45, %v1195_v20  ;;  %v548_v20 = vpack.c.bf16 %v489_v3, %v488_v55  ;;  %v1259_v45 = vpack.c.bf16 %v1200_v56, %v1199_v31  ;;  %v494_v3 = vld [vmem:[%s16728_s17 + $0x1b0] sm:$0xff]  ;;  %v495_v31 = vld [vmem:[%s16728_s17 + $0x1b8] sm:$0xff] }
  0x5f   : > { %14677 = vmatmul.mubr.msk.bf16.gmra.mxu1 %vm567_vm1, %v1254_v54  ;;  %14594 = vmatprep.mubr.msk.bf16.mxu0 %vm567_vm1, %v544_v17  ;;  %v487_v17 = vld [vmem:[%s16728_s17 + $0x178] sm:$0xff]  ;;  %v1201_v54 = vld [vmem:[%s16728_s17 + $0x1ac] sm:$0xff] }
  0x60   : > { %14680 = vmatprep.mubr.msk.bf16.mxu1 %vm567_vm1, %v1255_v5  ;;  %v1198_v5 = vld [vmem:[%s16728_s17 + $0x194] sm:$0xff]  ;;  %v547_v18 = vpack.c.bf16 %v487_v17, %v486_v57  ;;  %v1203_v57 = vld [vmem:[%s16728_s17 + $0x1bc] sm:$0xff]  ;;  %v1205_v56 = vld [vmem:[%s16728_s17 + $0x1cc] sm:$0xff] }
  0x61   : > { %v1258_v33 = vpack.c.bf16 %v1198_v5, %v1197_v2  ;;  %v1204_v2 = vld [vmem:[%s16728_s17 + $0x1c4] sm:$0xff] }
  0x62   : > { %v1261_v55 = vpack.c.bf16 %v1204_v2, %v1203_v57  ;;  %v499_v57 = vld [vmem:[%s16728_s17 + $0x1d8] sm:$0xff]  ;;  %v1209_v2 = vld [vmem:[%s16728_s17 + $0x1ec] sm:$0xff] }
  0x66   : > { %14595 = vmatmul.mubr.msk.bf16.gmra.mxu0 %vm567_vm1, %v545_v19  ;;  %v490_v19 = vld [vmem:[%s16728_s17 + $0x190] sm:$0xff] }
  0x67   : > { %14681 = vmatmul.mubr.msk.bf16.gmra.mxu1 %vm567_vm1, %v1256_v10  ;;  %14598 = vmatprep.mubr.msk.bf16.mxu0 %vm567_vm1, %v546_v21  ;;  %v1202_v10 = vld [vmem:[%s16728_s17 + $0x1b4] sm:$0xff]  ;;  %v492_v21 = vld [vmem:[%s16728_s17 + $0x1a0] sm:$0xff] }
  0x68   : > { %14684 = vmatprep.mubr.msk.bf16.mxu1 %vm567_vm1, %v1257_v4  ;;  %v549_v4 = vpack.c.bf16 %v491_v9, %v490_v19  ;;  %v1260_v17 = vpack.c.bf16 %v1202_v10, %v1201_v54  ;;  %v550_v5 = vpack.c.bf16 %v493_v44, %v492_v21  ;;  %v1207_v44 = vld [vmem:[%s16728_s17 + $0x1dc] sm:$0xff]  ;;  %v1208_v9 = vld [vmem:[%s16728_s17 + $0x1e4] sm:$0xff]  ;;  %v551_v54 = vpack.c.bf16 %v495_v31, %v494_v3  ;;  %v498_v21 = vld [vmem:[%s16728_s17 + $0x1d0] sm:$0xff] }
  0x69   : > { %v1263_v10 = vpack.c.bf16 %v1208_v9, %v1207_v44  ;;  %v1212_v3 = vld [vmem:[%s16728_s17 + $0x204] sm:$0xff]  ;;  %v553_v31 = vpack.c.bf16 %v499_v57, %v498_v21  ;;  %v503_v44 = vld [vmem:[%s16728_s17 + $0x1f8] sm:$0xff]  ;;  %v1213_v9 = vld [vmem:[%s16728_s17 + $0x20c] sm:$0xff] }
  0x6a   : > { %v1216_v21 = vld [vmem:[%s16728_s17 + $0x224] sm:$0xff] }
  0x6e   : > { %14599 = vmatmul.mubr.msk.bf16.gmra.mxu0 %vm567_vm1, %v547_v18  ;;  %v1206_v18 = vld [vmem:[%s16728_s17 + $0x1d4] sm:$0xff] }
  0x6f   : > { %14685 = vmatmul.mubr.msk.bf16.gmra.mxu1 %vm567_vm1, %v1258_v33  ;;  %14602 = vmatprep.mubr.msk.bf16.mxu0 %vm567_vm1, %v548_v20  ;;  %v496_v33 = vld [vmem:[%s16728_s17 + $0x1c0] sm:$0xff]  ;;  %v497_v20 = vld [vmem:[%s16728_s17 + $0x1c8] sm:$0xff] }
  0x70   : > { %14688 = vmatprep.mubr.msk.bf16.mxu1 %vm567_vm1, %v1259_v45  ;;  %v1262_v45 = vpack.c.bf16 %v1206_v18, %v1205_v56  ;;  %v552_v19 = vpack.c.bf16 %v497_v20, %v496_v33  ;;  %v502_v20 = vld [vmem:[%s16728_s17 + $0x1f0] sm:$0xff] }
  0x71   : > { %v555_v57 = vpack.c.bf16 %v503_v44, %v502_v20  ;;  %v1220_v20 = vld [vmem:[%s16728_s17 + $0x244] sm:$0xff] }
  0x76   : > { %14603 = vmatmul.mubr.msk.bf16.gmra.mxu0 %vm567_vm1, %v549_v4  ;;  %v1210_v4 = vld [vmem:[%s16728_s17 + $0x1f4] sm:$0xff] }
  0x77   : > { %14689 = vmatmul.mubr.msk.bf16.gmra.mxu1 %vm567_vm1, %v1260_v17  ;;  %14606 = vmatprep.mubr.msk.bf16.mxu0 %vm567_vm1, %v550_v5  ;;  %v500_v17 = vld [vmem:[%s16728_s17 + $0x1e0] sm:$0xff]  ;;  %v501_v5 = vld [vmem:[%s16728_s17 + $0x1e8] sm:$0xff]  ;;  %v1264_v56 = vpack.c.bf16 %v1210_v4, %v1209_v2 }
  0x78   : > { %14692 = vmatprep.mubr.msk.bf16.mxu1 %vm567_vm1, %v1261_v55  ;;  %v1211_v55 = vld [vmem:[%s16728_s17 + $0x1fc] sm:$0xff]  ;;  %v554_v18 = vpack.c.bf16 %v501_v5, %v500_v17  ;;  %v506_v5 = vld [vmem:[%s16728_s17 + $0x210] sm:$0xff] }
  0x79   : > { %v1265_v33 = vpack.c.bf16 %v1212_v3, %v1211_v55  ;;  %v507_v55 = vld [vmem:[%s16728_s17 + $0x218] sm:$0xff]  ;;  %v1217_v3 = vld [vmem:[%s16728_s17 + $0x22c] sm:$0xff] }
  0x7a   : > { %v557_v44 = vpack.c.bf16 %v507_v55, %v506_v5  ;;  %v1224_v5 = vld [vmem:[%s16728_s17 + $0x264] sm:$0xff] }
  0x7e   : > { %14607 = vmatmul.mubr.msk.bf16.gmra.mxu0 %vm567_vm1, %v551_v54  ;;  %v1214_v54 = vld [vmem:[%s16728_s17 + $0x214] sm:$0xff] }
  0x7f   : > { %14693 = vmatmul.mubr.msk.bf16.gmra.mxu1 %vm567_vm1, %v1262_v45  ;;  %14610 = vmatprep.mubr.msk.bf16.mxu0 %vm567_vm1, %v552_v19  ;;  %v504_v45 = vld [vmem:[%s16728_s17 + $0x200] sm:$0xff]  ;;  %v505_v19 = vld [vmem:[%s16728_s17 + $0x208] sm:$0xff]  ;;  %v1266_v2 = vpack.c.bf16 %v1214_v54, %v1213_v9 }
  0x80   : > { %14696 = vmatprep.mubr.msk.bf16.mxu1 %vm567_vm1, %v1263_v10  ;;  %v1215_v10 = vld [vmem:[%s16728_s17 + $0x21c] sm:$0xff]  ;;  %v556_v4 = vpack.c.bf16 %v505_v19, %v504_v45  ;;  %v510_v19 = vld [vmem:[%s16728_s17 + $0x230] sm:$0xff] }
  0x81   : > { %v1267_v17 = vpack.c.bf16 %v1216_v21, %v1215_v10  ;;  %v511_v10 = vld [vmem:[%s16728_s17 + $0x238] sm:$0xff]  ;;  %v1221_v21 = vld [vmem:[%s16728_s17 + $0x24c] sm:$0xff] }
  0x82   : > { %v559_v55 = vpack.c.bf16 %v511_v10, %v510_v19  ;;  %v1228_v19 = vld [vmem:[%s16728_s17 + $0x284] sm:$0xff] }
  0x86   : > { %14611 = vmatmul.mubr.msk.bf16.gmra.mxu0 %vm567_vm1, %v553_v31  ;;  %v1218_v31 = vld [vmem:[%s16728_s17 + $0x234] sm:$0xff] }
  0x87   : > { %14697 = vmatmul.mubr.msk.bf16.gmra.mxu1 %vm567_vm1, %v1264_v56  ;;  %14614 = vmatprep.mubr.msk.bf16.mxu0 %vm567_vm1, %v554_v18  ;;  %v508_v56 = vld [vmem:[%s16728_s17 + $0x220] sm:$0xff]  ;;  %v509_v18 = vld [vmem:[%s16728_s17 + $0x228] sm:$0xff]  ;;  %v1268_v9 = vpack.c.bf16 %v1218_v31, %v1217_v3 }
  0x88   : > { %14700 = vmatprep.mubr.msk.bf16.mxu1 %vm567_vm1, %v1265_v33  ;;  %v1219_v33 = vld [vmem:[%s16728_s17 + $0x23c] sm:$0xff]  ;;  %v558_v54 = vpack.c.bf16 %v509_v18, %v508_v56  ;;  %v514_v18 = vld [vmem:[%s16728_s17 + $0x250] sm:$0xff] }
  0x89   : > { %v1269_v45 = vpack.c.bf16 %v1220_v20, %v1219_v33  ;;  %v515_v33 = vld [vmem:[%s16728_s17 + $0x258] sm:$0xff]  ;;  %v1225_v20 = vld [vmem:[%s16728_s17 + $0x26c] sm:$0xff] }
  0x8a   : > { %v561_v10 = vpack.c.bf16 %v515_v33, %v514_v18  ;;  %v1232_v18 = vld [vmem:[%s16728_s17 + $0x2a4] sm:$0xff] }
  0x8e   : > { %14615 = vmatmul.mubr.msk.bf16.gmra.mxu0 %vm567_vm1, %v555_v57  ;;  %v1222_v57 = vld [vmem:[%s16728_s17 + $0x254] sm:$0xff] }
  0x8f   : > { %14701 = vmatmul.mubr.msk.bf16.gmra.mxu1 %vm567_vm1, %v1266_v2  ;;  %14618 = vmatprep.mubr.msk.bf16.mxu0 %vm567_vm1, %v556_v4  ;;  %v512_v2 = vld [vmem:[%s16728_s17 + $0x240] sm:$0xff]  ;;  %v513_v4 = vld [vmem:[%s16728_s17 + $0x248] sm:$0xff]  ;;  %v1270_v3 = vpack.c.bf16 %v1222_v57, %v1221_v21 }
  0x90   : > { %14704 = vmatprep.mubr.msk.bf16.mxu1 %vm567_vm1, %v1267_v17  ;;  %v1223_v17 = vld [vmem:[%s16728_s17 + $0x25c] sm:$0xff]  ;;  %v560_v31 = vpack.c.bf16 %v513_v4, %v512_v2  ;;  %v518_v4 = vld [vmem:[%s16728_s17 + $0x270] sm:$0xff] }
  0x91   : > { %v1271_v56 = vpack.c.bf16 %v1224_v5, %v1223_v17  ;;  %v519_v17 = vld [vmem:[%s16728_s17 + $0x278] sm:$0xff]  ;;  %v1229_v5 = vld [vmem:[%s16728_s17 + $0x28c] sm:$0xff] }
  0x92   : > { %v563_v33 = vpack.c.bf16 %v519_v17, %v518_v4  ;;  %v21002_v4 = vpack.c.bf16 %v16763_v28, %v16754_v25  ;;  %v21003_v17 = vpack.c.bf16 %v16778_v34, %v16760_v27  ;;  %v21006_v25 = vpack.c.bf16 %v16797_v40, %v16788_v37  ;;  %v12577_v34 = vld [vmem:[%s20983_s1 + $0x10] sm:$0xf] }
  0x93   : > { %v21008_v27 = vpack.c.bf16 %v16820_v48, %v16800_v41  ;;  %v21009_v28 = vpack.c.bf16 %v16827_v50, %v16817_v47  ;;  %16062 = vmatprep.subr.msk.bf16.mxu0 %vm694_vm0, %v12577_v34  ;;  %v21012_v37 = vpack.c.bf16 %v16856_v60, %v16836_v53  ;;  %v21014_v40 = vpack.c.bf16 %v16886_v6, %v16866_v63 }
  0x94   : > { %v21016_v47 = vpack.c.bf16 %v16903_v12, %v16889_v7  ;;  %v21017_v50 = vpack.c.bf16 %v16909_v14, %v16900_v11  ;;  %v21018_v7 = vpack.c.bf16 %v16930_v22, %v16906_v13  ;;  %v21019_v11 = vpack.c.bf16 %v16936_v30, %v16912_v15  ;;  %v16513_v15 = vld [vmem:[%s16728_s17 + $0x104] sm:$0xff]  ;;  %v16514_v30 = vld [vmem:[%s16728_s17 + $0x10c] sm:$0xff] }
  0x95   : > { %v21020_v12 = vpack.c.bf16 %v16945_v42, %v16933_v24 }
  0x96   : > { %14619 = vmatmul.mubr.msk.bf16.gmra.mxu0 %vm567_vm1, %v557_v44  ;;  %v1226_v44 = vld [vmem:[%s16728_s17 + $0x274] sm:$0xff] }
  0x97   : > { %14705 = vmatmul.mubr.msk.bf16.gmra.mxu1 %vm567_vm1, %v1268_v9  ;;  %14622 = vmatprep.mubr.msk.bf16.mxu0 %vm567_vm1, %v558_v54  ;;  %v516_v9 = vld [vmem:[%s16728_s17 + $0x260] sm:$0xff]  ;;  %v517_v54 = vld [vmem:[%s16728_s17 + $0x268] sm:$0xff]  ;;  %v1272_v21 = vpack.c.bf16 %v1226_v44, %v1225_v20 }
  0x98   : > { %14708 = vmatprep.mubr.msk.bf16.mxu1 %vm567_vm1, %v1269_v45  ;;  %v1227_v45 = vld [vmem:[%s16728_s17 + $0x27c] sm:$0xff]  ;;  %v562_v57 = vpack.c.bf16 %v517_v54, %v516_v9  ;;  %v522_v54 = vld [vmem:[%s16728_s17 + $0x290] sm:$0xff] }
  0x99   : > { %v1273_v2 = vpack.c.bf16 %v1228_v19, %v1227_v45  ;;  %v523_v45 = vld [vmem:[%s16728_s17 + $0x298] sm:$0xff]  ;;  %v1233_v19 = vld [vmem:[%s16728_s17 + $0x2ac] sm:$0xff] }
  0x9e   : > { %14623 = vmatmul.mubr.msk.bf16.gmra.mxu0 %vm567_vm1, %v559_v55  ;;  %v1230_v55 = vld [vmem:[%s16728_s17 + $0x294] sm:$0xff] }
  0x9f   : > { %14709 = vmatmul.mubr.msk.bf16.gmra.mxu1 %vm567_vm1, %v1270_v3  ;;  %14626 = vmatprep.mubr.msk.bf16.mxu0 %vm567_vm1, %v560_v31  ;;  %v520_v3 = vld [vmem:[%s16728_s17 + $0x280] sm:$0xff]  ;;  %v521_v31 = vld [vmem:[%s16728_s17 + $0x288] sm:$0xff]  ;;  %v1274_v20 = vpack.c.bf16 %v1230_v55, %v1229_v5  ;;  %v21004_v5 = vpack.c.bf16 %v16784_v36, %v16766_v29  ;;  %v21010_v29 = vpack.c.bf16 %v16833_v52, %v16824_v49 }
  0xa0   : > { %14712 = vmatprep.mubr.msk.bf16.mxu1 %vm567_vm1, %v1271_v56  ;;  %v1231_v56 = vld [vmem:[%s16728_s17 + $0x29c] sm:$0xff]  ;;  %v564_v44 = vpack.c.bf16 %v521_v31, %v520_v3  ;;  %v21011_v36 = vpack.c.bf16 %v16850_v58, %v16830_v51  ;;  %v3002_v31 = vpack.c.bf16 %v16514_v30, %v16513_v15 }
  0xa1   : > { %v1275_v9 = vpack.c.bf16 %v1232_v18, %v1231_v56  ;;  %v16515_v56 = vld [vmem:[%s16728_s17 + $0xf8] sm:$0xff]  ;;  %v16516_v18 = vld [vmem:[%s16728_s17 + $0x100] sm:$0xff] }
  0xa2   : > { %v2125_v24 = vpack.c.bf16 %v16516_v18, %v16515_v56  ;;  %v16534_v15 = vld [vmem:[%s16728_s17 + $0x15c] sm:$0xff] }
  0xa6   : > { %14627 = vmatmul.mubr.msk.bf16.gmra.mxu0 %vm567_vm1, %v561_v10  ;;  %v1234_v10 = vld [vmem:[%s16728_s17 + $0x2b4] sm:$0xff] }
  0xa7   : > { %14713 = vmatmul.mubr.msk.bf16.gmra.mxu1 %vm567_vm1, %v1272_v21  ;;  %14630 = vmatprep.mubr.msk.bf16.mxu0 %vm567_vm1, %v562_v57  ;;  %v565_v21 = vpack.c.bf16 %v523_v45, %v522_v54  ;;  %v1276_v57 = vpack.c.bf16 %v1234_v10, %v1233_v19  ;;  %v21021_v10 = vpack.c.bf16 %v16970_v16, %v16948_v43  ;;  %v16519_v16 = vld [vmem:[%s16728_s17 + $0x108] sm:$0xff] }
  0xa8   : > { %14716 = vmatprep.mubr.msk.bf16.mxu1 %vm567_vm1, %v1273_v2  ;;  %v21001_v2 = vpack.c.bf16 %v16757_v26, %v16748_v23  ;;  %v21005_v23 = vpack.c.bf16 %v16791_v38, %v16781_v35  ;;  %v21007_v26 = vpack.c.bf16 %v16814_v46, %v16794_v39  ;;  %v4040_v35 = vsel %vm694_vm0, %v12577_v34, 0  ;;  %v16524_v34 = vld [vmem:[%s16728_s17 + $0x120] sm:$0xff] }
  0xa9   : > { %v21013_v38 = vpack.c.bf16 %v16863_v62, %v16853_v59  ;;  %v21015_v46 = vpack.c.bf16 %v16892_v8, %v16872_v1  ;;  %v16512_v62 = vld [vmem:[%s16728_s17 + $0xfc] sm:$0xff] }
  0xaa   : > { %v3001_v63 = vpack.c.bf16 %v16512_v62, %v16511_v61  ;;  %v16527_v61 = vld [vmem:[%s16728_s17 + $0x128] sm:$0xff]  ;;  %v16528_v62 = vld [vmem:[%s16728_s17 + $0x130] sm:$0xff] }
  0xae   : > { %14631 = vmatmul.mubr.msk.bf16.gmra.mxu0 %vm567_vm1, %v563_v33 }
  0xaf   : > { %14717 = vmatmul.mubr.msk.bf16.gmra.mxu1 %vm567_vm1, %v1274_v20  ;;  %14634 = vmatprep.mubr.msk.bf16.mxu0 %vm567_vm1, %v564_v44  ;;  %v16517_v20 = vld [vmem:[%s16728_s17 + $0x114] sm:$0xff]  ;;  %v16518_v44 = vld [vmem:[%s16728_s17 + $0x11c] sm:$0xff] }
  0xb0   : > { %14720 = vmatprep.mubr.msk.bf16.mxu1 %vm567_vm1, %v1275_v9  ;;  %v3003_v9 = vpack.c.bf16 %v16518_v44, %v16517_v20 }
  0xb6   : > { %14635 = vmatmul.mubr.msk.bf16.gmra.mxu0 %vm567_vm1, %v565_v21 }
  0xb7   : > { %14721 = vmatmul.mubr.msk.bf16.gmra.mxu1 %vm567_vm1, %v1276_v57  ;;  %14726 = vmatprep.mubr.msk.bf16.mxu0 %vm567_vm1, %v21001_v2 }
  0xb8   : > { %14812 = vmatprep.mubr.msk.bf16.mxu1 %vm567_vm1, %v21002_v4 }
  0xbe   : > { %14727 = vmatmul.mubr.msk.bf16.vlgmr.msra.gmra.mxu0 %vm567_vm1, %v21003_v17 }
  0xbf   : > { %14813 = vmatmul.mubr.msk.bf16.vlgmr.msra.gmra.mxu1 %vm567_vm1, %v21004_v5  ;;  %14730 = vmatprep.mubr.msk.bf16.mxu0 %vm567_vm1, %v21005_v23  ;;  %v16520_v5 = vld [vmem:[%s16728_s17 + $0x110] sm:$0xff] }
  0xc0   : > { %14816 = vmatprep.mubr.msk.bf16.mxu1 %vm567_vm1, %v21006_v25  ;;  %14897 = vmatpush3.bf16.msra.mxu0 %v4040_v35  ;;  %v2126_v23 = vpack.c.bf16 %v16520_v5, %v16519_v16  ;;  %v16539_v5 = vld [vmem:[%s16728_s17 + $0x158] sm:$0xff] }
  0xc6   : > { %14731 = vmatmul.mubr.msk.bf16.gmra.mxu0 %vm567_vm1, %v21007_v26  ;;  %v16521_v26 = vld [vmem:[%s16728_s17 + $0x124] sm:$0xff] }
  0xc7   : > { %14817 = vmatmul.mubr.msk.bf16.gmra.mxu1 %vm567_vm1, %v21008_v27  ;;  %14734 = vmatprep.mubr.msk.bf16.mxu0 %vm567_vm1, %v21009_v28  ;;  %v16522_v27 = vld [vmem:[%s16728_s17 + $0x12c] sm:$0xff] }
  0xc8   : > { %14820 = vmatprep.mubr.msk.bf16.mxu1 %vm567_vm1, %v21010_v29  ;;  %v3004_v28 = vpack.c.bf16 %v16522_v27, %v16521_v26  ;;  %v16523_v29 = vld [vmem:[%s16728_s17 + $0x118] sm:$0xff] }
  0xc9   : > { %v2127_v35 = vpack.c.bf16 %v16524_v34, %v16523_v29  ;;  %v16542_v29 = vld [vmem:[%s16728_s17 + $0x17c] sm:$0xff] }
  0xce   : > { %14735 = vmatmul.mubr.msk.bf16.gmra.mxu0 %vm567_vm1, %v21011_v36 }
  0xcf   : > { %14821 = vmatmul.mubr.msk.bf16.gmra.mxu1 %vm567_vm1, %v21012_v37  ;;  %14738 = vmatprep.mubr.msk.bf16.mxu0 %vm567_vm1, %v21013_v38  ;;  %v16525_v38 = vld [vmem:[%s16728_s17 + $0x134] sm:$0xff] }
  0xd0   : > { %14824 = vmatprep.mubr.msk.bf16.mxu1 %vm567_vm1, %v2997_v32 }
  0xd6   : > { %v14556_v39 = vpop.f32.mrf.mxu0  ;;  %14739 = vmatmul.mubr.msk.bf16.gmra.mxu0 %vm567_vm1, %v21014_v40 }
  0xd7   : > { %v14642_v41 = vpop.f32.mrf.mxu1  ;;  %14825 = vmatmul.mubr.msk.bf16.gmra.mxu1 %vm567_vm1, %v21015_v46  ;;  %14742 = vmatprep.mubr.msk.bf16.mxu0 %vm567_vm1, %v21016_v47 }
  0xd8   : > { %v17241_v48 = vadd.f32 %v14642_v41, %v14556_v39  ;;  %v732_v49 = vpop.f32.mrf.mxu0  ;;  %14828 = vmatprep.mubr.msk.bf16.mxu1 %vm567_vm1, %v21017_v50  ;;  %v16526_v39 = vld [vmem:[%s16728_s17 + $0x13c] sm:$0xff] }
  0xd9   : > { %v1442_v51 = vpop.f32.mrf.mxu1  ;;  %v3005_v40 = vpack.c.bf16 %v16526_v39, %v16525_v38 }
  0xda   : > { %v17247_v52 = vadd.f32 %v1442_v51, %v732_v49  ;;  %v14557_v53 = vpop.f32.mrf.mxu0 }
  0xdb   : > { %v14643_v58 = vpop.f32.mrf.mxu1 }
  0xdc   : > { %v17249_v59 = vadd.f32 %v14643_v58, %v14557_v53  ;;  %v735_v60 = vpop.f32.mrf.mxu0 }
  0xdd   : > { %v1445_v0 = vpop.f32.mrf.mxu1 }
  0xde   : > { %v17253_v1 = vadd.f32 %v1445_v0, %v735_v60  ;;  %v14560_v6 = vpop.f32.mrf.mxu0  ;;  %14743 = vmatmul.mubr.msk.bf16.gmra.mxu0 %vm567_vm1, %v21018_v7  ;;  %v16530_v7 = vld [vmem:[%s16728_s17 + $0x14c] sm:$0xff] }
  0xdf   : > { %v14646_v8 = vpop.f32.mrf.mxu1  ;;  %14829 = vmatmul.mubr.msk.bf16.gmra.mxu1 %vm567_vm1, %v21019_v11  ;;  %14746 = vmatprep.mubr.msk.bf16.mxu0 %vm567_vm1, %v21020_v12  ;;  %v16531_v11 = vld [vmem:[%s16728_s17 + $0x138] sm:$0xff]  ;;  %v16532_v12 = vld [vmem:[%s16728_s17 + $0x140] sm:$0xff] }
  0xe0   : > { %v17267_v14 = vadd.f32 %v14646_v8, %v14560_v6  ;;  %v748_v32 = vpop.f32.mrf.mxu0  ;;  %14832 = vmatprep.mubr.msk.bf16.mxu1 %vm567_vm1, %v3001_v63  ;;  %v2128_v63 = vpack.c.bf16 %v16528_v62, %v16527_v61  ;;  %v16529_v6 = vld [vmem:[%s16728_s17 + $0x144] sm:$0xff] }
  0xe1   : > { %v1458_v13 = vpop.f32.mrf.mxu1  ;;  %v3006_v8 = vpack.c.bf16 %v16530_v7, %v16529_v6  ;;  %v16547_v7 = vld [vmem:[%s16728_s17 + $0x178] sm:$0xff] }
  0xe2   : > { %v17270_v22 = vadd.f32 %v1458_v13, %v748_v32  ;;  %v14561_v55 = vpop.f32.mrf.mxu0  ;;  %v2129_v32 = vpack.c.bf16 %v16532_v12, %v16531_v11 }
  0xe3   : > { %v14647_v3 = vpop.f32.mrf.mxu1 }
  0xe4   : > { %v17276_v42 = vadd.f32 %v14647_v3, %v14561_v55  ;;  %v751_v33 = vpop.f32.mrf.mxu0  ;;  %v16533_v3 = vld [vmem:[%s16728_s17 + $0x154] sm:$0xff] }
  0xe5   : > { %v1461_v54 = vpop.f32.mrf.mxu1  ;;  %v3007_v30 = vpack.c.bf16 %v16534_v15, %v16533_v3  ;;  %v16550_v3 = vld [vmem:[%s16728_s17 + $0x19c] sm:$0xff] }
  0xe6   : > { %v17280_v45 = vadd.f32 %v1461_v54, %v751_v33  ;;  %v14564_v19 = vpop.f32.mrf.mxu0  ;;  %14747 = vmatmul.mubr.msk.bf16.gmra.mxu0 %vm567_vm1, %v21021_v10  ;;  %v16536_v10 = vld [vmem:[%s16728_s17 + $0x150] sm:$0xff] }
  0xe7   : > { %v14650_v21 = vpop.f32.mrf.mxu1  ;;  %14833 = vmatmul.mubr.msk.bf16.gmra.mxu1 %vm567_vm1, %v3002_v31  ;;  %14750 = vmatprep.mubr.msk.bf16.mxu0 %vm567_vm1, %v2125_v24 }
  0xe8   : > { %v17288_v57 = vadd.f32 %v14650_v21, %v14564_v19  ;;  %v764_v2 = vpop.f32.mrf.mxu0  ;;  %14836 = vmatprep.mubr.msk.bf16.mxu1 %vm567_vm1, %v3003_v9  ;;  %v16535_v19 = vld [vmem:[%s16728_s17 + $0x148] sm:$0xff] }
  0xe9   : > { %v1474_v4 = vpop.f32.mrf.mxu1  ;;  %v2130_v21 = vpack.c.bf16 %v16536_v10, %v16535_v19 }
  0xea   : > { %v17291_v17 = vadd.f32 %v1474_v4, %v764_v2  ;;  %v14565_v43 = vpop.f32.mrf.mxu0  ;;  %v16537_v4 = vld [vmem:[%s16728_s17 + $0x164] sm:$0xff] }
  0xeb   : > { %v14651_v25 = vpop.f32.mrf.mxu1 }
  0xec   : > { %v17299_v36 = vadd.f32 %v14651_v25, %v14565_v43  ;;  %v767_v37 = vpop.f32.mrf.mxu0  ;;  %v16538_v43 = vld [vmem:[%s16728_s17 + $0x16c] sm:$0xff] }
  0xed   : > { %v1477_v41 = vpop.f32.mrf.mxu1  ;;  %v3008_v16 = vpack.c.bf16 %v16538_v43, %v16537_v4 }
  0xee   : > { %v17303_v46 = vadd.f32 %v1477_v41, %v767_v37  ;;  %v14568_v47 = vpop.f32.mrf.mxu0  ;;  %14751 = vmatmul.mubr.msk.bf16.gmra.mxu0 %vm567_vm1, %v2126_v23  ;;  %v16540_v23 = vld [vmem:[%s16728_s17 + $0x160] sm:$0xff] }
  0xef   : > { %v14654_v49 = vpop.f32.mrf.mxu1  ;;  %14837 = vmatmul.mubr.msk.bf16.gmra.mxu1 %vm567_vm1, %v3004_v28  ;;  %14754 = vmatprep.mubr.msk.bf16.mxu0 %vm567_vm1, %v2127_v35  ;;  %v2131_v25 = vpack.c.bf16 %v16540_v23, %v16539_v5  ;;  %v16541_v28 = vld [vmem:[%s16728_s17 + $0x174] sm:$0xff]  ;;  %v16554_v5 = vld [vmem:[%s16728_s17 + $0x1ac] sm:$0xff] }
  0xf0   : > { %v17308_v50 = vadd.f32 %v14654_v49, %v14568_v47  ;;  %v780_v51 = vpop.f32.mrf.mxu0  ;;  %14840 = vmatprep.mubr.msk.bf16.mxu1 %vm567_vm1, %v3005_v40  ;;  %v3009_v34 = vpack.c.bf16 %v16542_v29, %v16541_v28 }
  0xf1   : > { %v1490_v53 = vpop.f32.mrf.mxu1 }
  0xf2   : > { %v17311_v58 = vadd.f32 %v1490_v53, %v780_v51  ;;  %v14569_v60 = vpop.f32.mrf.mxu0  ;;  %v16543_v53 = vld [vmem:[%s16728_s17 + $0x168] sm:$0xff] }
  0xf3   : > { %v14655_v0 = vpop.f32.mrf.mxu1 }
  0xf4   : > { %v17319_v13 = vadd.f32 %v14655_v0, %v14569_v60  ;;  %v783_v55 = vpop.f32.mrf.mxu0  ;;  %v16544_v60 = vld [vmem:[%s16728_s17 + $0x170] sm:$0xff] }
  0xf5   : > { %v1493_v31 = vpop.f32.mrf.mxu1  ;;  %v2132_v61 = vpack.c.bf16 %v16544_v60, %v16543_v53  ;;  %v16546_v0 = vld [vmem:[%s16728_s17 + $0x18c] sm:$0xff] }
  0xf6   : > { %v17323_v56 = vadd.f32 %v1493_v31, %v783_v55  ;;  %v14572_v18 = vpop.f32.mrf.mxu0  ;;  %14755 = vmatmul.mubr.msk.bf16.gmra.mxu0 %vm567_vm1, %v2128_v63  ;;  %v16545_v63 = vld [vmem:[%s16728_s17 + $0x184] sm:$0xff]  ;;  %v16549_v55 = vld [vmem:[%s16728_s17 + $0x194] sm:$0xff] }
  0xf7   : > { %v14658_v24 = vpop.f32.mrf.mxu1  ;;  %14841 = vmatmul.mubr.msk.bf16.gmra.mxu1 %vm567_vm1, %v3006_v8  ;;  %14758 = vmatprep.mubr.msk.bf16.mxu0 %vm567_vm1, %v2129_v32  ;;  %v3010_v6 = vpack.c.bf16 %v16546_v0, %v16545_v63  ;;  %v16548_v8 = vld [vmem:[%s16728_s17 + $0x180] sm:$0xff]  ;;  %v3011_v15 = vpack.c.bf16 %v16550_v3, %v16549_v55  ;;  %v16562_v55 = vld [vmem:[%s16728_s17 + $0x1cc] sm:$0xff] }
  0xf8   : > { %v17328_v33 = vadd.f32 %v14658_v24, %v14572_v18  ;;  %v796_v20 = vpop.f32.mrf.mxu0  ;;  %14844 = vmatprep.mubr.msk.bf16.mxu1 %vm567_vm1, %v3007_v30  ;;  %v2133_v11 = vpack.c.bf16 %v16548_v8, %v16547_v7  ;;  %v16560_v7 = vld [vmem:[%s16728_s17 + $0x1b0] sm:$0xff] }
  0xf9   : > { %v1506_v44 = vpop.f32.mrf.mxu1 }
  0xfa   : > { %v17331_v9 = vadd.f32 %v1506_v44, %v796_v20  ;;  %v14573_v54 = vpop.f32.mrf.mxu0 }
  0xfb   : > { %v14659_v2 = vpop.f32.mrf.mxu1 }
  0xfc   : > { %v17339_v26 = vadd.f32 %v14659_v2, %v14573_v54  ;;  %v799_v27 = vpop.f32.mrf.mxu0  ;;  %v16552_v2 = vld [vmem:[%s16728_s17 + $0x190] sm:$0xff] }
  0xfd   : > { %v1509_v35 = vpop.f32.mrf.mxu1 }
  0xfe   : > { %v17343_v37 = vadd.f32 %v1509_v35, %v799_v27  ;;  %v14576_v38 = vpop.f32.mrf.mxu0  ;;  %14759 = vmatmul.mubr.msk.bf16.gmra.mxu0 %vm567_vm1, %v2130_v21  ;;  %v16551_v21 = vld [vmem:[%s16728_s17 + $0x188] sm:$0xff]  ;;  %v16556_v27 = vld [vmem:[%s16728_s17 + $0x1a0] sm:$0xff]  ;;  %v16557_v35 = vld [vmem:[%s16728_s17 + $0x1b4] sm:$0xff] }
  0xff   : > { %v14662_v39 = vpop.f32.mrf.mxu1  ;;  %14845 = vmatmul.mubr.msk.bf16.gmra.mxu1 %vm567_vm1, %v3008_v16  ;;  %14762 = vmatprep.mubr.msk.bf16.mxu0 %vm567_vm1, %v2131_v25  ;;  %v2134_v4 = vpack.c.bf16 %v16552_v2, %v16551_v21  ;;  %v16553_v16 = vld [vmem:[%s16728_s17 + $0x1a4] sm:$0xff]  ;;  %v16555_v25 = vld [vmem:[%s16728_s17 + $0x198] sm:$0xff] }
 0x100   : > { %v17348_v40 = vadd.f32 %v14662_v39, %v14576_v38  ;;  %v812_v41 = vpop.f32.mrf.mxu0  ;;  %14848 = vmatprep.mubr.msk.bf16.mxu1 %vm567_vm1, %v3009_v34  ;;  %v3012_v23 = vpack.c.bf16 %v16554_v5, %v16553_v16  ;;  %v2135_v28 = vpack.c.bf16 %v16556_v27, %v16555_v25  ;;  %v16558_v38 = vld [vmem:[%s16728_s17 + $0x1bc] sm:$0xff] }
 0x101   : > { %v1522_v47 = vpop.f32.mrf.mxu1  ;;  %v3013_v39 = vpack.c.bf16 %v16558_v38, %v16557_v35  ;;  %v16568_v35 = vld [vmem:[%s16728_s17 + $0x1d0] sm:$0xff] }
 0x102   : > { %v17351_v49 = vadd.f32 %v1522_v47, %v812_v41  ;;  %v14577_v51 = vpop.f32.mrf.mxu0 }
 0x103   : > { %v14663_v62 = vpop.f32.mrf.mxu1 }
 0x104   : > { %v17359_v12 = vadd.f32 %v14663_v62, %v14577_v51  ;;  %v815_v32 = vpop.f32.mrf.mxu0 }
 0x105   : > { %v1525_v30 = vpop.f32.mrf.mxu1 }
 0x106   : > { %v17363_v31 = vadd.f32 %v1525_v30, %v815_v32  ;;  %v14580_v18 = vpop.f32.mrf.mxu0  ;;  %14763 = vmatmul.mubr.msk.bf16.gmra.mxu0 %vm567_vm1, %v2132_v61  ;;  %v16561_v32 = vld [vmem:[%s16728_s17 + $0x1c4] sm:$0xff] }
 0x107   : > { %v14666_v24 = vpop.f32.mrf.mxu1  ;;  %14849 = vmatmul.mubr.msk.bf16.gmra.mxu1 %vm567_vm1, %v3010_v6  ;;  %14766 = vmatprep.mubr.msk.bf16.mxu0 %vm567_vm1, %v2133_v11  ;;  %v16559_v6 = vld [vmem:[%s16728_s17 + $0x1a8] sm:$0xff]  ;;  %v3014_v3 = vpack.c.bf16 %v16562_v55, %v16561_v32  ;;  %v16564_v30 = vld [vmem:[%s16728_s17 + $0x1c0] sm:$0xff] }
 0x108   : > { %v17368_v20 = vadd.f32 %v14666_v24, %v14580_v18  ;;  %v828_v44 = vpop.f32.mrf.mxu0  ;;  %14852 = vmatprep.mubr.msk.bf16.mxu1 %vm567_vm1, %v3011_v15  ;;  %v2136_v8 = vpack.c.bf16 %v16560_v7, %v16559_v6  ;;  %v16563_v15 = vld [vmem:[%s16728_s17 + $0x1b8] sm:$0xff] }
 0x109   : > { %v1538_v54 = vpop.f32.mrf.mxu1  ;;  %v2137_v18 = vpack.c.bf16 %v16564_v30, %v16563_v15 }
 0x10a   : > { %v17371_v19 = vadd.f32 %v1538_v54, %v828_v44  ;;  %v14581_v10 = vpop.f32.mrf.mxu0  ;;  %v16565_v54 = vld [vmem:[%s16728_s17 + $0x1d4] sm:$0xff] }
 0x10b   : > { %v14667_v43 = vpop.f32.mrf.mxu1 }
 0x10c   : > { %v17379_v29 = vadd.f32 %v14667_v43, %v14581_v10  ;;  %v831_v34 = vpop.f32.mrf.mxu0  ;;  %v16566_v10 = vld [vmem:[%s16728_s17 + $0x1dc] sm:$0xff] }
 0x10d   : > { %v1541_v41 = vpop.f32.mrf.mxu1  ;;  %v3015_v21 = vpack.c.bf16 %v16566_v10, %v16565_v54 }
 0x10e   : > { %v17383_v47 = vadd.f32 %v1541_v41, %v831_v34  ;;  %v14584_v51 = vpop.f32.mrf.mxu0  ;;  %14767 = vmatmul.mubr.msk.bf16.gmra.mxu0 %vm567_vm1, %v2134_v4  ;;  %v16567_v34 = vld [vmem:[%s16728_s17 + $0x1c8] sm:$0xff] }
 0x10f   : > { %v14670_v53 = vpop.f32.mrf.mxu1  ;;  %14853 = vmatmul.mubr.msk.bf16.gmra.mxu1 %vm567_vm1, %v3012_v23  ;;  %14770 = vmatprep.mubr.msk.bf16.mxu0 %vm567_vm1, %v2135_v28  ;;  %v2138_v38 = vpack.c.bf16 %v16568_v35, %v16567_v34  ;;  %v16569_v41 = vld [vmem:[%s16728_s17 + $0x1e4] sm:$0xff]  ;;  %v16579_v35 = vld [vmem:[%s16728_s17 + $0x1f8] sm:$0xff] }
 0x110   : > { %v17388_v60 = vadd.f32 %v14670_v53, %v14584_v51  ;;  %v844_v61 = vpop.f32.mrf.mxu0  ;;  %14856 = vmatprep.mubr.msk.bf16.mxu1 %vm567_vm1, %v3013_v39  ;;  %v16570_v51 = vld [vmem:[%s16728_s17 + $0x1ec] sm:$0xff] }
 0x111   : > { %v1554_v62 = vpop.f32.mrf.mxu1  ;;  %v3016_v53 = vpack.c.bf16 %v16570_v51, %v16569_v41 }
 0x112   : > { %v17391_v63 = vadd.f32 %v1554_v62, %v844_v61  ;;  %v14585_v0 = vpop.f32.mrf.mxu0  ;;  %v16571_v61 = vld [vmem:[%s16728_s17 + $0x1d8] sm:$0xff]  ;;  %v16572_v62 = vld [vmem:[%s16728_s17 + $0x1e0] sm:$0xff] }
 0x113   : > { %v14671_v11 = vpop.f32.mrf.mxu1 }
 0x114   : > { %v17399_v24 = vadd.f32 %v14671_v11, %v14585_v0  ;;  %v847_v44 = vpop.f32.mrf.mxu0  ;;  %v2139_v0 = vpack.c.bf16 %v16572_v62, %v16571_v61  ;;  %v16574_v11 = vld [vmem:[%s16728_s17 + $0x1fc] sm:$0xff] }
 0x115   : > { %v1557_v2 = vpop.f32.mrf.mxu1  ;;  %v16582_v61 = vld [vmem:[%s16728_s17 + $0x21c] sm:$0xff] }
 0x116   : > { %v17403_v4 = vadd.f32 %v1557_v2, %v847_v44  ;;  %v14588_v43 = vpop.f32.mrf.mxu0  ;;  %14771 = vmatmul.mubr.msk.bf16.gmra.mxu0 %vm567_vm1, %v2136_v8  ;;  %v16573_v8 = vld [vmem:[%s16728_s17 + $0x1f4] sm:$0xff]  ;;  %v16575_v2 = vld [vmem:[%s16728_s17 + $0x1e8] sm:$0xff] }
 0x117   : > { %v14674_v16 = vpop.f32.mrf.mxu1  ;;  %14857 = vmatmul.mubr.msk.bf16.gmra.mxu1 %vm567_vm1, %v3014_v3  ;;  %14774 = vmatprep.mubr.msk.bf16.mxu0 %vm567_vm1, %v2137_v18  ;;  %v3017_v32 = vpack.c.bf16 %v16574_v11, %v16573_v8 }
 0x118   : > { %v17408_v5 = vadd.f32 %v14674_v16, %v14588_v43  ;;  %v860_v23 = vpop.f32.mrf.mxu0  ;;  %14860 = vmatprep.mubr.msk.bf16.mxu1 %vm567_vm1, %v3015_v21  ;;  %v16576_v43 = vld [vmem:[%s16728_s17 + $0x1f0] sm:$0xff] }
 0x119   : > { %v1570_v25 = vpop.f32.mrf.mxu1  ;;  %v2140_v16 = vpack.c.bf16 %v16576_v43, %v16575_v2 }
 0x11a   : > { %v17411_v27 = vadd.f32 %v1570_v25, %v860_v23  ;;  %v14589_v28 = vpop.f32.mrf.mxu0  ;;  %v16577_v25 = vld [vmem:[%s16728_s17 + $0x204] sm:$0xff] }
 0x11b   : > { %v14675_v39 = vpop.f32.mrf.mxu1 }
 0x11c   : > { %v17419_v6 = vadd.f32 %v14675_v39, %v14589_v28  ;;  %v863_v7 = vpop.f32.mrf.mxu0  ;;  %v16578_v28 = vld [vmem:[%s16728_s17 + $0x20c] sm:$0xff] }
 0x11d   : > { %v1573_v55 = vpop.f32.mrf.mxu1  ;;  %v3018_v34 = vpack.c.bf16 %v16578_v28, %v16577_v25  ;;  %v16587_v28 = vld [vmem:[%s16728_s17 + $0x218] sm:$0xff] }
 0x11e   : > { %v17423_v3 = vadd.f32 %v1573_v55, %v863_v7  ;;  %v14592_v15 = vpop.f32.mrf.mxu0  ;;  %14775 = vmatmul.mubr.msk.bf16.gmra.mxu0 %vm567_vm1, %v2138_v38  ;;  %v16580_v38 = vld [vmem:[%s16728_s17 + $0x200] sm:$0xff] }
 0x11f   : > { %v14678_v30 = vpop.f32.mrf.mxu1  ;;  %14861 = vmatmul.mubr.msk.bf16.gmra.mxu1 %vm567_vm1, %v3016_v53  ;;  %14778 = vmatprep.mubr.msk.bf16.mxu0 %vm567_vm1, %v2139_v0  ;;  %v2141_v39 = vpack.c.bf16 %v16580_v38, %v16579_v35  ;;  %v16581_v53 = vld [vmem:[%s16728_s17 + $0x214] sm:$0xff] }
 0x120   : > { %v17428_v18 = vadd.f32 %v14678_v30, %v14592_v15  ;;  %v876_v44 = vpop.f32.mrf.mxu0  ;;  %14864 = vmatprep.mubr.msk.bf16.mxu1 %vm567_vm1, %v3017_v32  ;;  %v3019_v62 = vpack.c.bf16 %v16582_v61, %v16581_v53  ;;  %v16590_v53 = vld [vmem:[%s16728_s17 + $0x23c] sm:$0xff] }
 0x121   : > { %v1586_v54 = vpop.f32.mrf.mxu1 }
 0x122   : > { %v17431_v10 = vadd.f32 %v1586_v54, %v876_v44  ;;  %v14593_v21 = vpop.f32.mrf.mxu0  ;;  %v16583_v54 = vld [vmem:[%s16728_s17 + $0x208] sm:$0xff] }
 0x123   : > { %v14679_v23 = vpop.f32.mrf.mxu1 }
 0x124   : > { %v17439_v41 = vadd.f32 %v14679_v23, %v14593_v21  ;;  %v879_v51 = vpop.f32.mrf.mxu0  ;;  %v16584_v21 = vld [vmem:[%s16728_s17 + $0x210] sm:$0xff] }
 0x125   : > { %v1589_v0 = vpop.f32.mrf.mxu1  ;;  %v2142_v2 = vpack.c.bf16 %v16584_v21, %v16583_v54  ;;  %v16586_v23 = vld [vmem:[%s16728_s17 + $0x22c] sm:$0xff] }
 0x126   : > { %v17443_v7 = vadd.f32 %v1589_v0, %v879_v51  ;;  %v14596_v8 = vpop.f32.mrf.mxu0  ;;  %14779 = vmatmul.mubr.msk.bf16.gmra.mxu0 %vm567_vm1, %v2140_v16  ;;  %v16585_v16 = vld [vmem:[%s16728_s17 + $0x224] sm:$0xff]  ;;  %v16589_v51 = vld [vmem:[%s16728_s17 + $0x234] sm:$0xff] }
 0x127   : > { %v14682_v11 = vpop.f32.mrf.mxu1  ;;  %14865 = vmatmul.mubr.msk.bf16.gmra.mxu1 %vm567_vm1, %v3018_v34  ;;  %14782 = vmatprep.mubr.msk.bf16.mxu0 %vm567_vm1, %v2141_v39  ;;  %v3020_v25 = vpack.c.bf16 %v16586_v23, %v16585_v16  ;;  %v16588_v34 = vld [vmem:[%s16728_s17 + $0x220] sm:$0xff]  ;;  %v3021_v61 = vpack.c.bf16 %v16590_v53, %v16589_v51 }
 0x128   : > { %v17448_v32 = vadd.f32 %v14682_v11, %v14596_v8  ;;  %v892_v55 = vpop.f32.mrf.mxu0  ;;  %14868 = vmatprep.mubr.msk.bf16.mxu1 %vm567_vm1, %v3019_v62  ;;  %v2143_v35 = vpack.c.bf16 %v16588_v34, %v16587_v28  ;;  %v16593_v28 = vld [vmem:[%s16728_s17 + $0x244] sm:$0xff] }
 0x129   : > { %v1602_v15 = vpop.f32.mrf.mxu1 }
 0x12a   : > { %v17451_v30 = vadd.f32 %v1602_v15, %v892_v55  ;;  %v14597_v44 = vpop.f32.mrf.mxu0 }
 0x12b   : > { %v14683_v43 = vpop.f32.mrf.mxu1 }
 0x12c   : > { %v17459_v38 = vadd.f32 %v14683_v43, %v14597_v44  ;;  %v895_v39 = vpop.f32.mrf.mxu0  ;;  %v16591_v43 = vld [vmem:[%s16728_s17 + $0x228] sm:$0xff] }
 0x12d   : > { %v1605_v62 = vpop.f32.mrf.mxu1 }
 0x12e   : > { %v17463_v0 = vadd.f32 %v1605_v62, %v895_v39  ;;  %v14600_v8 = vpop.f32.mrf.mxu0  ;;  %14783 = vmatmul.mubr.msk.bf16.gmra.mxu0 %vm567_vm1, %v2142_v2  ;;  %v16592_v2 = vld [vmem:[%s16728_s17 + $0x230] sm:$0xff]  ;;  %v16595_v39 = vld [vmem:[%s16728_s17 + $0x238] sm:$0xff] }
 0x12f   : > { %v14686_v11 = vpop.f32.mrf.mxu1  ;;  %14869 = vmatmul.mubr.msk.bf16.gmra.mxu1 %vm567_vm1, %v3020_v25  ;;  %14786 = vmatprep.mubr.msk.bf16.mxu0 %vm567_vm1, %v2143_v35  ;;  %v2144_v16 = vpack.c.bf16 %v16592_v2, %v16591_v43  ;;  %v16594_v25 = vld [vmem:[%s16728_s17 + $0x24c] sm:$0xff]  ;;  %v16596_v35 = vld [vmem:[%s16728_s17 + $0x240] sm:$0xff] }
 0x130   : > { %21022 = vst [vmem:[#allocation4_spill] sm:$0xff] %v17463_v0  ;;  %v17468_v55 = vadd.f32 %v14686_v11, %v14600_v8  ;;  %v908_v15 = vpop.f32.mrf.mxu0  ;;  %14872 = vmatprep.mubr.msk.bf16.mxu1 %vm567_vm1, %v3021_v61  ;;  %v3022_v34 = vpack.c.bf16 %v16594_v25, %v16593_v28  ;;  %v2145_v51 = vpack.c.bf16 %v16596_v35, %v16595_v39  ;;  %v16597_v61 = vld [vmem:[%s16728_s17 + $0x254] sm:$0xff]  ;;  %v16598_v8 = vld [vmem:[%s16728_s17 + $0x25c] sm:$0xff]  ;;  %v16599_v35 = vld [vmem:[%s16728_s17 + $0x248] sm:$0xff] }
 0x131   : > { %v1618_v44 = vpop.f32.mrf.mxu1  ;;  %v3023_v11 = vpack.c.bf16 %v16598_v8, %v16597_v61  ;;  %v16601_v8 = vld [vmem:[%s16728_s17 + $0x264] sm:$0xff] }
 0x132   : > { %21023 = vst [vmem:[#allocation5_spill] sm:$0xff] %v17468_v55  ;;  %v17471_v54 = vadd.f32 %v1618_v44, %v908_v15  ;;  %v14601_v21 = vpop.f32.mrf.mxu0 }
 0x133   : > { %v14687_v23 = vpop.f32.mrf.mxu1 }
 0x134   : > { %21024 = vst [vmem:[#allocation6_spill] sm:$0xff] %v17471_v54  ;;  %v17479_v53 = vadd.f32 %v14687_v23, %v14601_v21  ;;  %v911_v62 = vpop.f32.mrf.mxu0  ;;  %v17560_v54 = vld [vmem:[%s16728_s17 + $0x2b8] sm:$0xff] }
 0x135   : > { %v1621_v15 = vpop.f32.mrf.mxu1 }
 0x136   : > { %21025 = vst [vmem:[#allocation7_spill] sm:$0xff] %v17479_v53  ;;  %v17483_v44 = vadd.f32 %v1621_v15, %v911_v62  ;;  %v14604_v43 = vpop.f32.mrf.mxu0  ;;  %14787 = vmatmul.mubr.msk.bf16.gmra.mxu0 %vm567_vm1, %v2144_v16  ;;  %v16600_v16 = vld [vmem:[%s16728_s17 + $0x250] sm:$0xff]  ;;  %v16606_v53 = vld [vmem:[%s16728_s17 + $0x27c] sm:$0xff] }
 0x137   : > { %v14690_v2 = vpop.f32.mrf.mxu1  ;;  %14873 = vmatmul.mubr.msk.bf16.gmra.mxu1 %vm567_vm1, %v3022_v34  ;;  %14790 = vmatprep.mubr.msk.bf16.mxu0 %vm567_vm1, %v2145_v51  ;;  %v2146_v62 = vpack.c.bf16 %v16600_v16, %v16599_v35  ;;  %v16602_v34 = vld [vmem:[%s16728_s17 + $0x26c] sm:$0xff]  ;;  %v16604_v51 = vld [vmem:[%s16728_s17 + $0x260] sm:$0xff] }
 0x138   : > { %21026 = vst [vmem:[#allocation8_spill] sm:$0xff] %v17483_v44  ;;  %v17488_v21 = vadd.f32 %v14690_v2, %v14604_v43  ;;  %v924_v23 = vpop.f32.mrf.mxu0  ;;  %14876 = vmatprep.mubr.msk.bf16.mxu1 %vm567_vm1, %v3023_v11  ;;  %v3024_v15 = vpack.c.bf16 %v16602_v34, %v16601_v8  ;;  %v16603_v44 = vld [vmem:[%s16728_s17 + $0x258] sm:$0xff]  ;;  %v16607_v8 = vld [vmem:[%s16728_s17 + $0x268] sm:$0xff] }
 0x139   : > { %v1634_v28 = vpop.f32.mrf.mxu1  ;;  %v2147_v43 = vpack.c.bf16 %v16604_v51, %v16603_v44  ;;  %v16605_v11 = vld [vmem:[%s16728_s17 + $0x274] sm:$0xff] }
 0x13a   : > { %21027 = vst [vmem:[#allocation9_spill] sm:$0xff] %v17488_v21  ;;  %v17491_v25 = vadd.f32 %v1634_v28, %v924_v23  ;;  %v14605_v39 = vpop.f32.mrf.mxu0  ;;  %v3025_v23 = vpack.c.bf16 %v16606_v53, %v16605_v11  ;;  %v16610_v11 = vld [vmem:[%s16728_s17 + $0x28c] sm:$0xff] }
 0x13b   : > { %v14691_v61 = vpop.f32.mrf.mxu1 }
 0x13c   : > { %21028 = vst [vmem:[#allocation10_spill] sm:$0xff] %v17491_v25  ;;  %v17499_v2 = vadd.f32 %v14691_v61, %v14605_v39  ;;  %v927_v21 = vpop.f32.mrf.mxu0 }
 0x13d   : > { %v1637_v28 = vpop.f32.mrf.mxu1 }
 0x13e   : > { %21029 = vst [vmem:[#allocation11_spill] sm:$0xff] %v17499_v2  ;;  %v17503_v25 = vadd.f32 %v1637_v28, %v927_v21  ;;  %v14608_v35 = vpop.f32.mrf.mxu0  ;;  %14791 = vmatmul.mubr.msk.bf16.gmra.mxu0 %vm567_vm1, %v2146_v62  ;;  %v16608_v62 = vld [vmem:[%s16728_s17 + $0x270] sm:$0xff] }
 0x13f   : > { %v14694_v16 = vpop.f32.mrf.mxu1  ;;  %14877 = vmatmul.mubr.msk.bf16.gmra.mxu1 %vm567_vm1, %v3024_v15  ;;  %14794 = vmatprep.mubr.msk.bf16.mxu0 %vm567_vm1, %v2147_v43  ;;  %v2148_v34 = vpack.c.bf16 %v16608_v62, %v16607_v8  ;;  %v16609_v15 = vld [vmem:[%s16728_s17 + $0x284] sm:$0xff]  ;;  %v16611_v43 = vld [vmem:[%s16728_s17 + $0x278] sm:$0xff] }
 0x140   : > { %21030 = vst [vmem:[#allocation12_spill] sm:$0xff] %v17503_v25  ;;  %v17508_v44 = vadd.f32 %v14694_v16, %v14608_v35  ;;  %v940_v39 = vpop.f32.mrf.mxu0  ;;  %14880 = vmatprep.mubr.msk.bf16.mxu1 %vm567_vm1, %v3025_v23  ;;  %v3026_v28 = vpack.c.bf16 %v16610_v11, %v16609_v15  ;;  %v16612_v35 = vld [vmem:[%s16728_s17 + $0x280] sm:$0xff]  ;;  %v16613_v25 = vld [vmem:[%s16728_s17 + $0x294] sm:$0xff] }
 0x141   : > { %v1650_v53 = vpop.f32.mrf.mxu1  ;;  %v2149_v16 = vpack.c.bf16 %v16612_v35, %v16611_v43  ;;  %v17527_v62 = vld [vmem:[%s16728_s17 + $0x2a0] sm:$0xff]  ;;  %v16615_v43 = vld [vmem:[%s16728_s17 + $0x288] sm:$0xff]  ;;  %v16616_v35 = vld [vmem:[%s16728_s17 + $0x290] sm:$0xff] }
 0x142   : > { %21031 = vst [vmem:[#allocation13_spill] sm:$0xff] %v17508_v44  ;;  %v17511_v21 = vadd.f32 %v1650_v53, %v940_v39  ;;  %v14609_v61 = vpop.f32.mrf.mxu0  ;;  %v16614_v39 = vld [vmem:[%s16728_s17 + $0x29c] sm:$0xff]  ;;  %21035 = vst [vmem:[#allocation17_spill] sm:$0xff] %v17527_v62 }
 0x143   : > { %v14695_v51 = vpop.f32.mrf.mxu1  ;;  %v3027_v53 = vpack.c.bf16 %v16614_v39, %v16613_v25  ;;  %v2984_v25 = vld [vmem:[%s16728_s17 + $0x2bc] sm:$0xff]  ;;  %v16617_v39 = vld [vmem:[%s16728_s17 + $0x2a4] sm:$0xff] }
 0x144   : > { %21032 = vst [vmem:[#allocation14_spill] sm:$0xff] %v17511_v21  ;;  %v17519_v23 = vadd.f32 %v14695_v51, %v14609_v61  ;;  %v943_v44 = vpop.f32.mrf.mxu0  ;;  %v2983_v61 = vld [vmem:[%s16728_s17 + $0x2b4] sm:$0xff] }
 0x145   : > { %v1653_v21 = vpop.f32.mrf.mxu1 }
 0x146   : > { %21033 = vst [vmem:[#allocation15_spill] sm:$0xff] %v17519_v23  ;;  %v17523_v2 = vadd.f32 %v1653_v21, %v943_v44  ;;  %v14612_v8 = vpop.f32.mrf.mxu0  ;;  %14795 = vmatmul.mubr.msk.bf16.gmra.mxu0 %vm567_vm1, %v2148_v34 }
 0x147   : > { %v14698_v15 = vpop.f32.mrf.mxu1  ;;  %14881 = vmatmul.mubr.msk.bf16.gmra.mxu1 %vm567_vm1, %v3026_v28  ;;  %14798 = vmatprep.mubr.msk.bf16.mxu0 %vm567_vm1, %v2149_v16  ;;  %v2150_v28 = vpack.c.bf16 %v16616_v35, %v16615_v43  ;;  %v17551_v43 = vld [vmem:[%s16728_s17 + $0x2a8] sm:$0xff]  ;;  %v17554_v35 = vld [vmem:[%s16728_s17 + $0x2b0] sm:$0xff] }
 0x148   : > { %21034 = vst [vmem:[#allocation16_spill] sm:$0xff] %v17523_v2  ;;  %v17533_v51 = vadd.f32 %v14698_v15, %v14612_v8  ;;  %v956_v44 = vpop.f32.mrf.mxu0  ;;  %14884 = vmatprep.mubr.msk.bf16.mxu1 %vm567_vm1, %v3027_v53  ;;  %v16618_v8 = vld [vmem:[%s16728_s17 + $0x2ac] sm:$0xff] }
 0x149   : > { %v1666_v21 = vpop.f32.mrf.mxu1  ;;  %v3028_v15 = vpack.c.bf16 %v16618_v8, %v16617_v39  ;;  %v2985_v39 = vld [vmem:[%s16728_s17 + $0x2c4] sm:$0xff]  ;;  %v2986_v8 = vld [vmem:[%s16728_s17 + $0x2cc] sm:$0xff] }
 0x14a   : > { %21036 = vst [vmem:[#allocation18_spill] sm:$0xff] %v17533_v51  ;;  %v17536_v34 = vadd.f32 %v1666_v21, %v956_v44  ;;  %v14613_v11 = vpop.f32.mrf.mxu0  ;;  %v16619_v51 = vld [vmem:[%s16728_s17 + $0x298] sm:$0xff]  ;;  %v3029_v21 = vpack.c.bf16 %v2984_v25, %v2983_v61 }
 0x14b   : > { %v14699_v16 = vpop.f32.mrf.mxu1  ;;  %v2151_v53 = vpack.c.bf16 %v17527_v62, %v16619_v51  ;;  %v17563_v51 = vld [vmem:[%s16728_s17 + $0x2c0] sm:$0xff]  ;;  %v2987_v61 = vld [vmem:[%s16728_s17 + $0x2d4] sm:$0xff] }
 0x14c   : > { %21037 = vst [vmem:[#allocation19_spill] sm:$0xff] %v17536_v34  ;;  %v17544_v2 = vadd.f32 %v14699_v16, %v14613_v11  ;;  %v17546_v44 = vpop.f32.mrf.mxu0  ;;  %21041 = vst [vmem:[#allocation23_spill] sm:$0xff] %v17563_v51  ;;  %v2988_v25 = vld [vmem:[%s16728_s17 + $0x2dc] sm:$0xff]  ;;  %v2153_v55 = vpack.c.bf16 %v17563_v51, %v17560_v54 }
 0x14d   : > { %21039 = vst [vmem:[#allocation21_spill] sm:$0xff] %v17546_v44  ;;  %v17548_v34 = vpop.f32.mrf.mxu1 }
 0x14e   : > { %21038 = vst [vmem:[#allocation20_spill] sm:$0xff] %v17544_v2  ;;  %21040 = vst [vmem:[#allocation22_spill] sm:$0xff] %v17548_v34  ;;  %v14616_v23 = vpop.f32.mrf.mxu0  ;;  %14799 = vmatmul.mubr.msk.bf16.gmra.mxu0 %vm567_vm1, %v2150_v28 }
 0x14f   : > { %v14702_v11 = vpop.f32.mrf.mxu1  ;;  %14885 = vmatmul.mubr.msk.bf16.gmra.mxu1 %vm567_vm1, %v3028_v15  ;;  %14802 = vmatprep.mubr.msk.bf16.mxu0 %vm567_vm1, %v2151_v53  ;;  %v2152_v15 = vpack.c.bf16 %v17554_v35, %v17551_v43  ;;  %v3030_v53 = vpack.c.bf16 %v2986_v8, %v2985_v39  ;;  %v2989_v39 = vld [vmem:[%s16728_s17 + $0x2e4] sm:$0xff]  ;;  %v2990_v8 = vld [vmem:[%s16728_s17 + $0x2ec] sm:$0xff] }
 0x150   : > { %v17569_v16 = vadd.f32 %v14702_v11, %v14616_v23  ;;  %v972_v34 = vpop.f32.mrf.mxu0  ;;  %14888 = vmatprep.mubr.msk.bf16.mxu1 %vm567_vm1, %v3029_v21  ;;  %v3031_v21 = vpack.c.bf16 %v2988_v25, %v2987_v61  ;;  %v3785_v61 = vld [vmem:[%s16728_s17 + $0x70] sm:$0xff]  ;;  %v3786_v25 = vld [vmem:[%s16728_s17 + $0x78] sm:$0xff] }
 0x151   : > { %v1682_v28 = vpop.f32.mrf.mxu1 }
 0x152   : > { %21042 = vst [vmem:[#allocation24_spill] sm:$0xff] %v17569_v16  ;;  %v17572_v44 = vadd.f32 %v1682_v28, %v972_v34  ;;  %v14617_v2 = vpop.f32.mrf.mxu0  ;;  %v17585_v34 = vld [vmem:[%s16728_s17 + $0x2c8] sm:$0xff]  ;;  %v17588_v28 = vld [vmem:[%s16728_s17 + $0x2d0] sm:$0xff] }
 0x153   : > { %v14703_v62 = vpop.f32.mrf.mxu1  ;;  %21047 = vst [vmem:[#allocation29_spill] sm:$0xff] %v17588_v28 }
 0x154   : > { %21043 = vst [vmem:[#allocation25_spill] sm:$0xff] %v17572_v44  ;;  %v17578_v0 = vadd.f32 %v14703_v62, %v14617_v2  ;;  %v17580_v23 = vpop.f32.mrf.mxu0 }
 0x155   : > { %21045 = vst [vmem:[#allocation27_spill] sm:$0xff] %v17580_v23  ;;  %v17582_v11 = vpop.f32.mrf.mxu1 }
 0x156   : > { %21044 = vst [vmem:[#allocation26_spill] sm:$0xff] %v17578_v0  ;;  %21046 = vst [vmem:[#allocation28_spill] sm:$0xff] %v17582_v11  ;;  %v14620_v44 = vpop.f32.mrf.mxu0  ;;  %14803 = vmatmul.mubr.msk.bf16.gmra.mxu0 %vm567_vm1, %v2152_v15  ;;  %v2154_v0 = vpack.c.bf16 %v17588_v28, %v17585_v34 }
 0x157   : > { %v14706_v16 = vpop.f32.mrf.mxu1  ;;  %14889 = vmatmul.mubr.msk.bf16.gmra.mxu1 %vm567_vm1, %v3030_v53  ;;  %14806 = vmatprep.mubr.msk.bf16.mxu0 %vm567_vm1, %v2153_v55  ;;  %v3032_v55 = vpack.c.bf16 %v2990_v8, %v2989_v39  ;;  %v3789_v8 = vld [vmem:[%s16728_s17 + $0x90] sm:$0xff] }
 0x158   : > { %v17595_v2 = vadd.f32 %v14706_v16, %v14620_v44  ;;  %v988_v62 = vpop.f32.mrf.mxu0  ;;  %14892 = vmatprep.mubr.msk.bf16.mxu1 %vm567_vm1, %v3031_v21  ;;  %v3869_v44 = vpack.c.bf16 %v3786_v25, %v3785_v61  ;;  %v3790_v61 = vld [vmem:[%s16728_s17 + $0x98] sm:$0xff] }
 0x159   : > { %v1698_v11 = vpop.f32.mrf.mxu1 }
 0x15a   : > { %21048 = vst [vmem:[#allocation30_spill] sm:$0xff] %v17595_v2  ;;  %v17600_v23 = vadd.f32 %v1698_v11, %v988_v62  ;;  %v14621_v15 = vpop.f32.mrf.mxu0  ;;  %v3787_v62 = vld [vmem:[%s16728_s17 + $0x80] sm:$0xff] }
 0x15b   : > { %v14707_v53 = vpop.f32.mrf.mxu1 }
 0x15c   : > { %21049 = vst [vmem:[#allocation31_spill] sm:$0xff] %v17600_v23  ;;  %v17604_v16 = vadd.f32 %v14707_v53, %v14621_v15  ;;  %v17606_v2 = vpop.f32.mrf.mxu0  ;;  %v3788_v23 = vld [vmem:[%s16728_s17 + $0x88] sm:$0xff] }
 0x15d   : > { %21051 = vst [vmem:[#allocation33_spill] sm:$0xff] %v17606_v2  ;;  %v17608_v21 = vpop.f32.mrf.mxu1 }
 0x15e   : > { %21050 = vst [vmem:[#allocation32_spill] sm:$0xff] %v17604_v16  ;;  %21052 = vst [vmem:[#allocation34_spill] sm:$0xff] %v17608_v21  ;;  %v14624_v51 = vpop.f32.mrf.mxu0  ;;  %14807 = vmatmul.mubr.msk.bf16.gmra.mxu0 %vm567_vm1, %v2154_v0  ;;  %v3870_v0 = vpack.c.bf16 %v3788_v23, %v3787_v62  ;;  %v3793_v23 = vld [vmem:[%s16728_s17 + $0xb0] sm:$0xff] }
 0x15f   : > { %v14710_v11 = vpop.f32.mrf.mxu1  ;;  %14893 = vmatmul.mubr.msk.bf16.gmra.mxu1 %vm567_vm1, %v3032_v55  ;;  %14898 = vmatprep.mubr.msk.bf16.mxu0 %vm567_vm1, %v3869_v44  ;;  %v3871_v55 = vpack.c.bf16 %v3790_v61, %v3789_v8 }
 0x160   : > { %v17615_v28 = vadd.f32 %v14710_v11, %v14624_v51  ;;  %v1004_v39 = vpop.f32.mrf.mxu0 }
 0x161   : > { %v1714_v25 = vpop.f32.mrf.mxu1 }
 0x162   : > { %21053 = vst [vmem:[#allocation35_spill] sm:$0xff] %v17615_v28  ;;  %v17619_v15 = vadd.f32 %v1714_v25, %v1004_v39  ;;  %v14625_v53 = vpop.f32.mrf.mxu0  ;;  %v3791_v39 = vld [vmem:[%s16728_s17 + $0xa0] sm:$0xff]  ;;  %v3792_v25 = vld [vmem:[%s16728_s17 + $0xa8] sm:$0xff] }
 0x163   : > { %v14711_v21 = vpop.f32.mrf.mxu1 }
 0x164   : > { %21054 = vst [vmem:[#allocation36_spill] sm:$0xff] %v17619_v15  ;;  %v17621_v2 = vadd.f32 %v14711_v21, %v14625_v53  ;;  %v17623_v44 = vpop.f32.mrf.mxu0  ;;  %v3794_v21 = vld [vmem:[%s16728_s17 + $0xb8] sm:$0xff]  ;;  %v3872_v53 = vpack.c.bf16 %v3792_v25, %v3791_v39  ;;  %v3797_v39 = vld [vmem:[%s16728_s17 + $0xd0] sm:$0xff] }
 0x165   : > { %21056 = vst [vmem:[#allocation38_spill] sm:$0xff] %v17623_v44  ;;  %v17625_v51 = vpop.f32.mrf.mxu1  ;;  %v3798_v25 = vld [vmem:[%s16728_s17 + $0xd8] sm:$0xff] }
 0x166   : > { %21055 = vst [vmem:[#allocation37_spill] sm:$0xff] %v17621_v2  ;;  %21057 = vst [vmem:[#allocation39_spill] sm:$0xff] %v17625_v51  ;;  %v14628_v11 = vpop.f32.mrf.mxu0  ;;  %14899 = vmatmul.mubr.msk.bf16.vlgmr.msra.gmra.mxu0 %vm567_vm1, %v3870_v0  ;;  %v3873_v51 = vpack.c.bf16 %v3794_v21, %v3793_v23 }
 0x167   : > { %v14714_v28 = vpop.f32.mrf.mxu1  ;;  %14902 = vmatprep.mubr.msk.bf16.mxu0 %vm567_vm1, %v3871_v55 }
 0x168   : > { %v17631_v15 = vadd.f32 %v14714_v28, %v14628_v11  ;;  %v1020_v16 = vpop.f32.mrf.mxu0 }
 0x169   : > { %v1730_v62 = vpop.f32.mrf.mxu1 }
 0x16a   : > { %21058 = vst [vmem:[#allocation40_spill] sm:$0xff] %v17631_v15  ;;  %v17635_v8 = vadd.f32 %v1730_v62, %v1020_v16  ;;  %v14629_v61 = vpop.f32.mrf.mxu0  ;;  %v3795_v16 = vld [vmem:[%s16728_s17 + $0xc0] sm:$0xff]  ;;  %v3796_v62 = vld [vmem:[%s16728_s17 + $0xc8] sm:$0xff] }
 0x16b   : > { %v14715_v0 = vpop.f32.mrf.mxu1 }
 0x16c   : > { %21059 = vst [vmem:[#allocation41_spill] sm:$0xff] %v17635_v8  ;;  %v17637_v44 = vadd.f32 %v14715_v0, %v14629_v61  ;;  %v17639_v55 = vpop.f32.mrf.mxu0  ;;  %v3874_v0 = vpack.c.bf16 %v3796_v62, %v3795_v16  ;;  %v3801_v16 = vld [vmem:[%s16728_s17 + $0xf0] sm:$0xff]  ;;  %v3802_v62 = vld [vmem:[%s16728_s17 + $0xf8] sm:$0xff] }
 0x16d   : > { %21061 = vst [vmem:[#allocation43_spill] sm:$0xff] %v17639_v55  ;;  %v17641_v28 = vpop.f32.mrf.mxu1 }
 0x16e   : > { %21060 = vst [vmem:[#allocation42_spill] sm:$0xff] %v17637_v44  ;;  %21062 = vst [vmem:[#allocation44_spill] sm:$0xff] %v17641_v28  ;;  %v14632_v11 = vpop.f32.mrf.mxu0  ;;  %14903 = vmatmul.mubr.msk.bf16.gmra.mxu0 %vm567_vm1, %v3872_v53  ;;  %v3875_v28 = vpack.c.bf16 %v3798_v25, %v3797_v39 }
 0x16f   : > { %v14718_v15 = vpop.f32.mrf.mxu1  ;;  %14906 = vmatprep.mubr.msk.bf16.mxu0 %vm567_vm1, %v3873_v51 }
 0x170   : > { %v17647_v8 = vadd.f32 %v14718_v15, %v14632_v11  ;;  %v1036_v2 = vpop.f32.mrf.mxu0 }
 0x171   : > { %v1746_v23 = vpop.f32.mrf.mxu1 }
 0x172   : > { %21063 = vst [vmem:[#allocation45_spill] sm:$0xff] %v17647_v8  ;;  %v17651_v21 = vadd.f32 %v1746_v23, %v1036_v2  ;;  %v14633_v61 = vpop.f32.mrf.mxu0  ;;  %v3799_v2 = vld [vmem:[%s16728_s17 + $0xe0] sm:$0xff]  ;;  %v3800_v23 = vld [vmem:[%s16728_s17 + $0xe8] sm:$0xff] }
 0x173   : > { %v14719_v53 = vpop.f32.mrf.mxu1 }
 0x174   : > { %21064 = vst [vmem:[#allocation46_spill] sm:$0xff] %v17651_v21  ;;  %v17653_v55 = vadd.f32 %v14719_v53, %v14633_v61  ;;  %v17655_v51 = vpop.f32.mrf.mxu0  ;;  %v3876_v53 = vpack.c.bf16 %v3800_v23, %v3799_v2  ;;  %v3805_v2 = vld [vmem:[%s16728_s17 + $0x110] sm:$0xff]  ;;  %v3806_v23 = vld [vmem:[%s16728_s17 + $0x118] sm:$0xff] }
 0x175   : > { %21066 = vst [vmem:[#allocation48_spill] sm:$0xff] %v17655_v51  ;;  %v17657_v15 = vpop.f32.mrf.mxu1 }
 0x176   : > { %21065 = vst [vmem:[#allocation47_spill] sm:$0xff] %v17653_v55  ;;  %21067 = vst [vmem:[#allocation49_spill] sm:$0xff] %v17657_v15  ;;  %v14636_v11 = vpop.f32.mrf.mxu0  ;;  %14907 = vmatmul.mubr.msk.bf16.gmra.mxu0 %vm567_vm1, %v3874_v0  ;;  %v3877_v15 = vpack.c.bf16 %v3802_v62, %v3801_v16 }
 0x177   : > { %v14722_v8 = vpop.f32.mrf.mxu1  ;;  %14910 = vmatprep.mubr.msk.bf16.mxu0 %vm567_vm1, %v3875_v28 }
 0x178   : > { %v17663_v21 = vadd.f32 %v14722_v8, %v14636_v11  ;;  %v1052_v44 = vpop.f32.mrf.mxu0 }
 0x179   : > { %v1762_v39 = vpop.f32.mrf.mxu1 }
 0x17a   : > { %21068 = vst [vmem:[#allocation50_spill] sm:$0xff] %v17663_v21  ;;  %v17667_v25 = vadd.f32 %v1762_v39, %v1052_v44  ;;  %v14637_v61 = vpop.f32.mrf.mxu0  ;;  %v3803_v44 = vld [vmem:[%s16728_s17 + $0x100] sm:$0xff]  ;;  %v3804_v39 = vld [vmem:[%s16728_s17 + $0x108] sm:$0xff] }
 0x17b   : > { %v14723_v0 = vpop.f32.mrf.mxu1 }
 0x17c   : > { %21069 = vst [vmem:[#allocation51_spill] sm:$0xff] %v17667_v25  ;;  %v17669_v51 = vadd.f32 %v14723_v0, %v14637_v61  ;;  %v17671_v28 = vpop.f32.mrf.mxu0 }
 0x17d   : > { %21071 = vst [vmem:[#allocation53_spill] sm:$0xff] %v17671_v28  ;;  %v17673_v8 = vpop.f32.mrf.mxu1 }
 0x17e   : > { %21070 = vst [vmem:[#allocation52_spill] sm:$0xff] %v17669_v51  ;;  %21072 = vst [vmem:[#allocation54_spill] sm:$0xff] %v17673_v8  ;;  %v14728_v11 = vpop.f32.mrf.mxu0  ;;  %14911 = vmatmul.mubr.msk.bf16.gmra.mxu0 %vm567_vm1, %v3876_v53  ;;  %v3878_v8 = vpack.c.bf16 %v3804_v39, %v3803_v44  ;;  %v3807_v44 = vld [vmem:[%s16728_s17 + $0x120] sm:$0xff]  ;;  %v3808_v39 = vld [vmem:[%s16728_s17 + $0x128] sm:$0xff] }
 0x17f   : > { %v2741_v21 = vadd.f32 %v14728_v11, %v17241_v48  ;;  %v14814_v55 = vpop.f32.mrf.mxu1  ;;  %14914 = vmatprep.mubr.msk.bf16.mxu0 %vm567_vm1, %v3877_v15  ;;  %v3879_v11 = vpack.c.bf16 %v3806_v23, %v3805_v2  ;;  %v3809_v2 = vld [vmem:[%s16728_s17 + $0x130] sm:$0xff]  ;;  %v3810_v23 = vld [vmem:[%s16728_s17 + $0x138] sm:$0xff] }
 0x180   : > { %v2320_v25 = vpop.f32.mrf.mxu0 }
 0x181   : > { %v2739_v16 = vadd.f32 %v2320_v25, %v17247_v52  ;;  %v17683_v62 = vadd.f32 %v14814_v55, %v2741_v21  ;;  %v3198_v61 = vpop.f32.mrf.mxu1 }
 0x182   : > { %v14729_v0 = vpop.f32.mrf.mxu0 }
 0x183   : > { %v2742_v53 = vadd.f32 %v14729_v0, %v17249_v59  ;;  %v17686_v48 = vadd.f32 %v3198_v61, %v2739_v16  ;;  %v14815_v15 = vpop.f32.mrf.mxu1 }
 0x184   : > { %v2323_v28 = vpop.f32.mrf.mxu0 }
 0x185   : > { %v17689_v51 = vadd.f32 %v2323_v28, %v17253_v1  ;;  %v17691_v52 = vadd.f32 %v14815_v15, %v2742_v53  ;;  %v17693_v55 = vpop.f32.mrf.mxu1  ;;  %v3880_v53 = vpack.c.bf16 %v3808_v39, %v3807_v44  ;;  %v3811_v39 = vld [vmem:[%s16728_s17 + $0x140] sm:$0xff] }
 0x186   : > { %v14732_v21 = vpop.f32.mrf.mxu0  ;;  %14915 = vmatmul.mubr.msk.bf16.gmra.mxu0 %vm567_vm1, %v3878_v8 }
 0x187   : > { %21073 = vst [vmem:[#allocation55_spill] sm:$0xff] %v17691_v52  ;;  %v2745_v25 = vadd.f32 %v14732_v21, %v17267_v14  ;;  %v14818_v59 = vpop.f32.mrf.mxu1  ;;  %14918 = vmatprep.mubr.msk.bf16.mxu0 %vm567_vm1, %v3879_v11  ;;  %v3881_v11 = vpack.c.bf16 %v3810_v23, %v3809_v2  ;;  %v3813_v23 = vld [vmem:[%s16728_s17 + $0x150] sm:$0xff] }
 0x188   : > { %v2336_v16 = vpop.f32.mrf.mxu0 }
 0x189   : > { %v2743_v1 = vadd.f32 %v2336_v16, %v17270_v22  ;;  %v17703_v28 = vadd.f32 %v14818_v59, %v2745_v25  ;;  %v3214_v61 = vpop.f32.mrf.mxu1  ;;  %v3812_v16 = vld [vmem:[%s16728_s17 + $0x148] sm:$0xff] }
 0x18a   : > { %v14733_v0 = vpop.f32.mrf.mxu0 }
 0x18b   : > { %v2746_v8 = vadd.f32 %v14733_v0, %v17276_v42  ;;  %v17706_v14 = vadd.f32 %v3214_v61, %v2743_v1  ;;  %v14819_v15 = vpop.f32.mrf.mxu1 }
 0x18c   : > { %v2339_v21 = vpop.f32.mrf.mxu0 }
 0x18d   : > { %v17709_v52 = vadd.f32 %v2339_v21, %v17280_v45  ;;  %v17711_v22 = vadd.f32 %v14819_v15, %v2746_v8  ;;  %v17713_v25 = vpop.f32.mrf.mxu1  ;;  %v3814_v45 = vld [vmem:[%s16728_s17 + $0x158] sm:$0xff] }
 0x18e   : > { %v14736_v59 = vpop.f32.mrf.mxu0  ;;  %14919 = vmatmul.mubr.msk.bf16.gmra.mxu0 %vm567_vm1, %v3880_v53  ;;  %v3883_v15 = vpack.c.bf16 %v3814_v45, %v3813_v23  ;;  %v3817_v23 = vld [vmem:[%s16728_s17 + $0x170] sm:$0xff]  ;;  %v3818_v45 = vld [vmem:[%s16728_s17 + $0x178] sm:$0xff] }
 0x18f   : > { %v17717_v44 = vadd.f32 %v14736_v59, %v17288_v57  ;;  %v17719_v42 = vpop.f32.mrf.mxu1  ;;  %14922 = vmatprep.mubr.msk.bf16.mxu0 %vm567_vm1, %v3881_v11  ;;  %v3882_v57 = vpack.c.bf16 %v3812_v16, %v3811_v39  ;;  %v3816_v16 = vld [vmem:[%s16728_s17 + $0x168] sm:$0xff] }
 0x190   : > { %v2352_v2 = vpop.f32.mrf.mxu0 }
 0x191   : > { %v17727_v1 = vadd.f32 %v2352_v2, %v17291_v17  ;;  %v17729_v61 = vpop.f32.mrf.mxu1 }
 0x192   : > { %v14737_v0 = vpop.f32.mrf.mxu0 }
 0x193   : > { %v17732_v53 = vadd.f32 %v14737_v0, %v17299_v36  ;;  %v17734_v8 = vpop.f32.mrf.mxu1  ;;  %v3815_v36 = vld [vmem:[%s16728_s17 + $0x160] sm:$0xff] }
 0x194   : > { %v2355_v11 = vpop.f32.mrf.mxu0 }
 0x195   : > { %v17737_v21 = vadd.f32 %v2355_v11, %v17303_v46  ;;  %v17739_v59 = vpop.f32.mrf.mxu1 }
 0x196   : > { %21075 = vst [vmem:[#allocation57_spill] sm:$0xff] %v17739_v59  ;;  %v14740_v17 = vpop.f32.mrf.mxu0  ;;  %14923 = vmatmul.mubr.msk.bf16.gmra.mxu0 %vm567_vm1, %v3882_v57 }
 0x197   : > { %21074 = vst [vmem:[#allocation56_spill] sm:$0xff] %v17737_v21  ;;  %v17743_v2 = vadd.f32 %v14740_v17, %v17308_v50  ;;  %v17745_v39 = vpop.f32.mrf.mxu1  ;;  %14926 = vmatprep.mubr.msk.bf16.mxu0 %vm567_vm1, %v3883_v15  ;;  %v3884_v50 = vpack.c.bf16 %v3816_v16, %v3815_v36  ;;  %v3820_v16 = vld [vmem:[%s16728_s17 + $0x188] sm:$0xff] }
 0x198   : > { %21077 = vst [vmem:[#allocation59_spill] sm:$0xff] %v17745_v39  ;;  %v2368_v0 = vpop.f32.mrf.mxu0  ;;  %v3885_v39 = vpack.c.bf16 %v3818_v45, %v3817_v23  ;;  %v3821_v23 = vld [vmem:[%s16728_s17 + $0x190] sm:$0xff]  ;;  %v3822_v45 = vld [vmem:[%s16728_s17 + $0x198] sm:$0xff] }
 0x199   : > { %21076 = vst [vmem:[#allocation58_spill] sm:$0xff] %v17743_v2  ;;  %v17753_v46 = vadd.f32 %v2368_v0, %v17311_v58  ;;  %v17755_v11 = vpop.f32.mrf.mxu1 }
 0x19a   : > { %v14741_v57 = vpop.f32.mrf.mxu0 }
 0x19b   : > { %v17758_v17 = vadd.f32 %v14741_v57, %v17319_v13  ;;  %v17760_v15 = vpop.f32.mrf.mxu1  ;;  %v3819_v13 = vld [vmem:[%s16728_s17 + $0x180] sm:$0xff] }
 0x19c   : > { %v2371_v2 = vpop.f32.mrf.mxu0 }
 0x19d   : > { %v17763_v59 = vadd.f32 %v2371_v2, %v17323_v56  ;;  %v17765_v21 = vpop.f32.mrf.mxu1 }
 0x19e   : > { %21079 = vst [vmem:[#allocation61_spill] sm:$0xff] %v17765_v21  ;;  %v14744_v58 = vpop.f32.mrf.mxu0  ;;  %14927 = vmatmul.mubr.msk.bf16.gmra.mxu0 %vm567_vm1, %v3884_v50 }
 0x19f   : > { %21078 = vst [vmem:[#allocation60_spill] sm:$0xff] %v17763_v59  ;;  %v17769_v0 = vadd.f32 %v14744_v58, %v17328_v33  ;;  %v17771_v36 = vpop.f32.mrf.mxu1  ;;  %14930 = vmatprep.mubr.msk.bf16.mxu0 %vm567_vm1, %v3885_v39  ;;  %v3886_v33 = vpack.c.bf16 %v3820_v16, %v3819_v13  ;;  %v3824_v16 = vld [vmem:[%s16728_s17 + $0x1a8] sm:$0xff] }
 0x1a0   : > { %21081 = vst [vmem:[#allocation63_spill] sm:$0xff] %v17771_v36  ;;  %v2384_v57 = vpop.f32.mrf.mxu0  ;;  %v3887_v36 = vpack.c.bf16 %v3822_v45, %v3821_v23  ;;  %v3825_v23 = vld [vmem:[%s16728_s17 + $0x1b0] sm:$0xff]  ;;  %v3826_v45 = vld [vmem:[%s16728_s17 + $0x1b8] sm:$0xff] }
 0x1a1   : > { %21080 = vst [vmem:[#allocation62_spill] sm:$0xff] %v17769_v0  ;;  %v17779_v56 = vadd.f32 %v2384_v57, %v17331_v9  ;;  %v17781_v2 = vpop.f32.mrf.mxu1 }
 0x1a2   : > { %v14745_v50 = vpop.f32.mrf.mxu0 }
 0x1a3   : > { %v17784_v58 = vadd.f32 %v14745_v50, %v17339_v26  ;;  %v17786_v39 = vpop.f32.mrf.mxu1  ;;  %v3823_v26 = vld [vmem:[%s16728_s17 + $0x1a0] sm:$0xff] }
 0x1a4   : > { %v2387_v0 = vpop.f32.mrf.mxu0 }
 0x1a5   : > { %v17789_v21 = vadd.f32 %v2387_v0, %v17343_v37  ;;  %v17791_v59 = vpop.f32.mrf.mxu1 }
 0x1a6   : > { %21083 = vst [vmem:[#allocation65_spill] sm:$0xff] %v17791_v59  ;;  %v14748_v9 = vpop.f32.mrf.mxu0  ;;  %14931 = vmatmul.mubr.msk.bf16.gmra.mxu0 %vm567_vm1, %v3886_v33 }
 0x1a7   : > { %21082 = vst [vmem:[#allocation64_spill] sm:$0xff] %v17789_v21  ;;  %v17795_v57 = vadd.f32 %v14748_v9, %v17348_v40  ;;  %v17797_v13 = vpop.f32.mrf.mxu1  ;;  %14934 = vmatprep.mubr.msk.bf16.mxu0 %vm567_vm1, %v3887_v36  ;;  %v3888_v40 = vpack.c.bf16 %v3824_v16, %v3823_v26  ;;  %v3828_v16 = vld [vmem:[%s16728_s17 + $0x1c8] sm:$0xff] }
 0x1a8   : > { %21085 = vst [vmem:[#allocation67_spill] sm:$0xff] %v17797_v13  ;;  %v2400_v50 = vpop.f32.mrf.mxu0  ;;  %v3889_v13 = vpack.c.bf16 %v3826_v45, %v3825_v23  ;;  %v3829_v23 = vld [vmem:[%s16728_s17 + $0x1d0] sm:$0xff]  ;;  %v3830_v45 = vld [vmem:[%s16728_s17 + $0x1d8] sm:$0xff] }
 0x1a9   : > { %21084 = vst [vmem:[#allocation66_spill] sm:$0xff] %v17795_v57  ;;  %v17805_v37 = vadd.f32 %v2400_v50, %v17351_v49  ;;  %v17807_v0 = vpop.f32.mrf.mxu1 }
 0x1aa   : > { %v14749_v33 = vpop.f32.mrf.mxu0 }
 0x1ab   : > { %v17810_v9 = vadd.f32 %v14749_v33, %v17359_v12  ;;  %v17812_v36 = vpop.f32.mrf.mxu1  ;;  %v3827_v12 = vld [vmem:[%s16728_s17 + $0x1c0] sm:$0xff] }
 0x1ac   : > { %v2403_v57 = vpop.f32.mrf.mxu0 }
 0x1ad   : > { %v17815_v59 = vadd.f32 %v2403_v57, %v17363_v31  ;;  %v17817_v21 = vpop.f32.mrf.mxu1 }
 0x1ae   : > { %21087 = vst [vmem:[#allocation69_spill] sm:$0xff] %v17817_v21  ;;  %v14752_v49 = vpop.f32.mrf.mxu0  ;;  %14935 = vmatmul.mubr.msk.bf16.gmra.mxu0 %vm567_vm1, %v3888_v40 }
 0x1af   : > { %21086 = vst [vmem:[#allocation68_spill] sm:$0xff] %v17815_v59  ;;  %v17821_v50 = vadd.f32 %v14752_v49, %v17368_v20  ;;  %v17823_v26 = vpop.f32.mrf.mxu1  ;;  %14938 = vmatprep.mubr.msk.bf16.mxu0 %vm567_vm1, %v3889_v13  ;;  %v3890_v20 = vpack.c.bf16 %v3828_v16, %v3827_v12  ;;  %v3832_v16 = vld [vmem:[%s16728_s17 + $0x1e8] sm:$0xff] }
 0x1b0   : > { %21089 = vst [vmem:[#allocation71_spill] sm:$0xff] %v17823_v26  ;;  %v2416_v33 = vpop.f32.mrf.mxu0  ;;  %v3891_v26 = vpack.c.bf16 %v3830_v45, %v3829_v23  ;;  %v3833_v23 = vld [vmem:[%s16728_s17 + $0x1f0] sm:$0xff]  ;;  %v3834_v45 = vld [vmem:[%s16728_s17 + $0x1f8] sm:$0xff] }
 0x1b1   : > { %21088 = vst [vmem:[#allocation70_spill] sm:$0xff] %v17821_v50  ;;  %v17831_v31 = vadd.f32 %v2416_v33, %v17371_v19  ;;  %v17833_v57 = vpop.f32.mrf.mxu1 }
 0x1b2   : > { %v14753_v40 = vpop.f32.mrf.mxu0 }
 0x1b3   : > { %v17836_v49 = vadd.f32 %v14753_v40, %v17379_v29  ;;  %v17838_v13 = vpop.f32.mrf.mxu1  ;;  %v3831_v29 = vld [vmem:[%s16728_s17 + $0x1e0] sm:$0xff] }
 0x1b4   : > { %v2419_v50 = vpop.f32.mrf.mxu0 }
 0x1b5   : > { %v17841_v21 = vadd.f32 %v2419_v50, %v17383_v47  ;;  %v17843_v59 = vpop.f32.mrf.mxu1 }
 0x1b6   : > { %21091 = vst [vmem:[#allocation73_spill] sm:$0xff] %v17843_v59  ;;  %v14756_v19 = vpop.f32.mrf.mxu0  ;;  %14939 = vmatmul.mubr.msk.bf16.gmra.mxu0 %vm567_vm1, %v3890_v20 }
 0x1b7   : > { %21090 = vst [vmem:[#allocation72_spill] sm:$0xff] %v17841_v21  ;;  %v17847_v33 = vadd.f32 %v14756_v19, %v17388_v60  ;;  %v17849_v12 = vpop.f32.mrf.mxu1  ;;  %14942 = vmatprep.mubr.msk.bf16.mxu0 %vm567_vm1, %v3891_v26  ;;  %v3892_v60 = vpack.c.bf16 %v3832_v16, %v3831_v29  ;;  %v3835_v29 = vld [vmem:[%s16728_s17 + $0x200] sm:$0xff] }
 0x1b8   : > { %21093 = vst [vmem:[#allocation75_spill] sm:$0xff] %v17849_v12  ;;  %v2432_v40 = vpop.f32.mrf.mxu0  ;;  %v3893_v12 = vpack.c.bf16 %v3834_v45, %v3833_v23 }
 0x1b9   : > { %21092 = vst [vmem:[#allocation74_spill] sm:$0xff] %v17847_v33  ;;  %v17857_v47 = vadd.f32 %v2432_v40, %v17391_v63  ;;  %v17859_v50 = vpop.f32.mrf.mxu1 }
 0x1ba   : > { %21094 = vst [vmem:[#allocation76_spill] sm:$0xff] %v17859_v50  ;;  %v14757_v20 = vpop.f32.mrf.mxu0 }
 0x1bb   : > { %v17862_v19 = vadd.f32 %v14757_v20, %v17399_v24  ;;  %v17864_v26 = vpop.f32.mrf.mxu1  ;;  %v3836_v24 = vld [vmem:[%s16728_s17 + $0x208] sm:$0xff]  ;;  %v3837_v20 = vld [vmem:[%s16728_s17 + $0x210] sm:$0xff] }
 0x1bc   : > { %21096 = vst [vmem:[#allocation78_spill] sm:$0xff] %v17864_v26  ;;  %v2435_v33 = vpop.f32.mrf.mxu0  ;;  %v3838_v26 = vld [vmem:[%s16728_s17 + $0x218] sm:$0xff] }
 0x1bd   : > { %21095 = vst [vmem:[#allocation77_spill] sm:$0xff] %v17862_v19  ;;  %v17867_v59 = vadd.f32 %v2435_v33, %v17403_v4  ;;  %v17869_v21 = vpop.f32.mrf.mxu1 }
 0x1be   : > { %21098 = vst [vmem:[#allocation80_spill] sm:$0xff] %v17869_v21  ;;  %v14760_v63 = vpop.f32.mrf.mxu0  ;;  %14943 = vmatmul.mubr.msk.bf16.gmra.mxu0 %vm567_vm1, %v3892_v60  ;;  %v3894_v21 = vpack.c.bf16 %v3836_v24, %v3835_v29  ;;  %v3839_v24 = vld [vmem:[%s16728_s17 + $0x220] sm:$0xff] }
 0x1bf   : > { %21097 = vst [vmem:[#allocation79_spill] sm:$0xff] %v17867_v59  ;;  %v2773_v40 = vadd.f32 %v14760_v63, %v17408_v5  ;;  %v14846_v50 = vpop.f32.mrf.mxu1  ;;  %14946 = vmatprep.mubr.msk.bf16.mxu0 %vm567_vm1, %v3893_v12  ;;  %v3895_v63 = vpack.c.bf16 %v3838_v26, %v3837_v20  ;;  %v3841_v26 = vld [vmem:[%s16728_s17 + $0x230] sm:$0xff]  ;;  %v3842_v20 = vld [vmem:[%s16728_s17 + $0x238] sm:$0xff] }
 0x1c0   : > { %v2448_v16 = vpop.f32.mrf.mxu0 }
 0x1c1   : > { %v2771_v23 = vadd.f32 %v2448_v16, %v17411_v27  ;;  %v17879_v45 = vadd.f32 %v14846_v50, %v2773_v40  ;;  %v3326_v4 = vpop.f32.mrf.mxu1  ;;  %v3840_v16 = vld [vmem:[%s16728_s17 + $0x228] sm:$0xff] }
 0x1c2   : > { %v14761_v33 = vpop.f32.mrf.mxu0 }
 0x1c3   : > { %v2774_v60 = vadd.f32 %v14761_v33, %v17419_v6  ;;  %v17882_v5 = vadd.f32 %v3326_v4, %v2771_v23  ;;  %v14847_v12 = vpop.f32.mrf.mxu1 }
 0x1c4   : > { %v2451_v59 = vpop.f32.mrf.mxu0 }
 0x1c5   : > { %v17885_v19 = vadd.f32 %v2451_v59, %v17423_v3  ;;  %v17887_v27 = vadd.f32 %v14847_v12, %v2774_v60  ;;  %v17889_v50 = vpop.f32.mrf.mxu1 }
 0x1c6   : > { %v14764_v40 = vpop.f32.mrf.mxu0  ;;  %14947 = vmatmul.mubr.msk.bf16.gmra.mxu0 %vm567_vm1, %v3894_v21  ;;  %v3896_v21 = vpack.c.bf16 %v3840_v16, %v3839_v24  ;;  %v3843_v24 = vld [vmem:[%s16728_s17 + $0x240] sm:$0xff] }
 0x1c7   : > { %21099 = vst [vmem:[#allocation81_spill] sm:$0xff] %v17887_v27  ;;  %v2777_v29 = vadd.f32 %v14764_v40, %v17428_v18  ;;  %v14850_v6 = vpop.f32.mrf.mxu1  ;;  %14950 = vmatprep.mubr.msk.bf16.mxu0 %vm567_vm1, %v3895_v63  ;;  %v3897_v63 = vpack.c.bf16 %v3842_v20, %v3841_v26  ;;  %v3846_v26 = vld [vmem:[%s16728_s17 + $0x258] sm:$0xff] }
 0x1c8   : > { %v2464_v23 = vpop.f32.mrf.mxu0 }
 0x1c9   : > { %v2775_v3 = vadd.f32 %v2464_v23, %v17431_v10  ;;  %v17899_v59 = vadd.f32 %v14850_v6, %v2777_v29  ;;  %v3342_v4 = vpop.f32.mrf.mxu1  ;;  %v3845_v23 = vld [vmem:[%s16728_s17 + $0x250] sm:$0xff] }
 0x1ca   : > { %v14765_v33 = vpop.f32.mrf.mxu0 }
 0x1cb   : > { %v2778_v18 = vadd.f32 %v14765_v33, %v17439_v41  ;;  %v17902_v60 = vadd.f32 %v3342_v4, %v2775_v3  ;;  %v14851_v12 = vpop.f32.mrf.mxu1  ;;  %v3844_v41 = vld [vmem:[%s16728_s17 + $0x248] sm:$0xff] }
 0x1cc   : > { %v2467_v40 = vpop.f32.mrf.mxu0  ;;  %v3898_v3 = vpack.c.bf16 %v3844_v41, %v3843_v24  ;;  %v3850_v41 = vld [vmem:[%s16728_s17 + $0x278] sm:$0xff] }
 0x1cd   : > { %v17905_v27 = vadd.f32 %v2467_v40, %v17443_v7  ;;  %v17907_v10 = vadd.f32 %v14851_v12, %v2778_v18 }
 0x1ce   : > { %v14768_v29 = vpop.f32.mrf.mxu0  ;;  %14951 = vmatmul.mubr.msk.bf16.gmra.mxu0 %vm567_vm1, %v3896_v21  ;;  %v21101_v21 = vld [vmem:[#allocation4_spill] sm:$0xff] }
 0x1cf   : > { %v17911_v6 = vadd.f32 %v14768_v29, %v17448_v32  ;;  %14954 = vmatprep.mubr.msk.bf16.mxu0 %vm567_vm1, %v3897_v63  ;;  %v3899_v32 = vpack.c.bf16 %v3846_v26, %v3845_v23  ;;  %v21103_v63 = vld [vmem:[#allocation5_spill] sm:$0xff] }
 0x1d0   : > { %v2480_v16 = vpop.f32.mrf.mxu0  ;;  %v3848_v29 = vld [vmem:[%s16728_s17 + $0x268] sm:$0xff] }
 0x1d1   : > { %v17919_v7 = vadd.f32 %v2480_v16, %v17451_v30  ;;  %v3847_v30 = vld [vmem:[%s16728_s17 + $0x260] sm:$0xff]  ;;  %v21105_v16 = vld [vmem:[#allocation6_spill] sm:$0xff] }
 0x1d2   : > { %v14769_v20 = vpop.f32.mrf.mxu0 }
 0x1d3   : > { %v17922_v4 = vadd.f32 %v14769_v20, %v17459_v38  ;;  %v3849_v38 = vld [vmem:[%s16728_s17 + $0x270] sm:$0xff]  ;;  %v3900_v20 = vpack.c.bf16 %v3848_v29, %v3847_v30  ;;  %v3854_v29 = vld [vmem:[%s16728_s17 + $0x298] sm:$0xff] }
 0x1d4   : > { %v2483_v33 = vpop.f32.mrf.mxu0  ;;  %v3853_v30 = vld [vmem:[%s16728_s17 + $0x290] sm:$0xff] }
 0x1d5   : > { %21100 = vst [vmem:[#allocation82_spill] sm:$0xff] %v17922_v4  ;;  %v17925_v18 = vadd.f32 %v2483_v33, %v21101_v21  ;;  %v3901_v21 = vpack.c.bf16 %v3850_v41, %v3849_v38 }
 0x1d6   : > { %v14772_v12 = vpop.f32.mrf.mxu0  ;;  %14955 = vmatmul.mubr.msk.bf16.gmra.mxu0 %vm567_vm1, %v3898_v3  ;;  %v21107_v3 = vld [vmem:[#allocation7_spill] sm:$0xff] }
 0x1d7   : > { %21102 = vst [vmem:[#allocation4_spill] sm:$0xff] %v17925_v18  ;;  %v17929_v40 = vadd.f32 %v14772_v12, %v21103_v63  ;;  %14958 = vmatprep.mubr.msk.bf16.mxu0 %vm567_vm1, %v3899_v32  ;;  %v21109_v32 = vld [vmem:[#allocation8_spill] sm:$0xff]  ;;  %v21111_v18 = vld [vmem:[#allocation9_spill] sm:$0xff] }
 0x1d8   : > { %v2496_v24 = vpop.f32.mrf.mxu0 }
 0x1d9   : > { %21104 = vst [vmem:[#allocation5_spill] sm:$0xff] %v17929_v40  ;;  %v17937_v23 = vadd.f32 %v2496_v24, %v21105_v16  ;;  %v3851_v24 = vld [vmem:[%s16728_s17 + $0x280] sm:$0xff]  ;;  %v3852_v16 = vld [vmem:[%s16728_s17 + $0x288] sm:$0xff] }
 0x1da   : > { %v14773_v26 = vpop.f32.mrf.mxu0  ;;  %v3902_v41 = vpack.c.bf16 %v3852_v16, %v3851_v24 }
 0x1db   : > { %21106 = vst [vmem:[#allocation6_spill] sm:$0xff] %v17937_v23  ;;  %v17940_v33 = vadd.f32 %v14773_v26, %v21107_v3  ;;  %v21113_v26 = vld [vmem:[#allocation10_spill] sm:$0xff] }
 0x1dc   : > { %v2499_v12 = vpop.f32.mrf.mxu0 }
 0x1dd   : > { %21108 = vst [vmem:[#allocation7_spill] sm:$0xff] %v17940_v33  ;;  %v17943_v63 = vadd.f32 %v2499_v12, %v21109_v32  ;;  %v21115_v12 = vld [vmem:[#allocation11_spill] sm:$0xff]  ;;  %v21117_v33 = vld [vmem:[#allocation12_spill] sm:$0xff] }
 0x1de   : > { %v14776_v40 = vpop.f32.mrf.mxu0  ;;  %14959 = vmatmul.mubr.msk.bf16.gmra.mxu0 %vm567_vm1, %v3900_v20 }
 0x1df   : > { %21110 = vst [vmem:[#allocation8_spill] sm:$0xff] %v17943_v63  ;;  %v17947_v4 = vadd.f32 %v14776_v40, %v21111_v18  ;;  %14962 = vmatprep.mubr.msk.bf16.mxu0 %vm567_vm1, %v3901_v21  ;;  %v3903_v63 = vpack.c.bf16 %v3854_v29, %v3853_v30  ;;  %v21119_v21 = vld [vmem:[#allocation13_spill] sm:$0xff]  ;;  %v21124_v29 = vld [vmem:[#allocation15_spill] sm:$0xff] }
 0x1e0   : > { %v2512_v23 = vpop.f32.mrf.mxu0 }
 0x1e1   : > { %21112 = vst [vmem:[#allocation9_spill] sm:$0xff] %v17947_v4  ;;  %v17955_v3 = vadd.f32 %v2512_v23, %v21113_v26  ;;  %v21121_v26 = vld [vmem:[#allocation14_spill] sm:$0xff] }
 0x1e2   : > { %v14777_v38 = vpop.f32.mrf.mxu0 }
 0x1e3   : > { %21114 = vst [vmem:[#allocation10_spill] sm:$0xff] %v17955_v3  ;;  %v17958_v32 = vadd.f32 %v14777_v38, %v21115_v12  ;;  %v21123_v38 = vld [vmem:[#allocation17_spill] sm:$0xff] }
 0x1e4   : > { %v2515_v20 = vpop.f32.mrf.mxu0  ;;  %v3904_v30 = vpack.c.bf16 %v17551_v43, %v21123_v38  ;;  %v21132_v38 = vld [vmem:[#allocation23_spill] sm:$0xff] }
 0x1e5   : > { %21116 = vst [vmem:[#allocation11_spill] sm:$0xff] %v17958_v32  ;;  %v17961_v18 = vadd.f32 %v2515_v20, %v21117_v33  ;;  %v21126_v20 = vld [vmem:[#allocation16_spill] sm:$0xff] }
 0x1e6   : > { %v14780_v40 = vpop.f32.mrf.mxu0  ;;  %14963 = vmatmul.mubr.msk.bf16.gmra.mxu0 %vm567_vm1, %v3902_v41  ;;  %v3905_v41 = vpack.c.bf16 %v17560_v54, %v17554_v35 }
 0x1e7   : > { %21118 = vst [vmem:[#allocation12_spill] sm:$0xff] %v17961_v18  ;;  %v17965_v4 = vadd.f32 %v14780_v40, %v21119_v21  ;;  %14966 = vmatprep.mubr.msk.bf16.mxu0 %vm567_vm1, %v3903_v63  ;;  %v21128_v63 = vld [vmem:[#allocation18_spill] sm:$0xff] }
 0x1e8   : > { %v2528_v23 = vpop.f32.mrf.mxu0 }
 0x1e9   : > { %21120 = vst [vmem:[#allocation13_spill] sm:$0xff] %v17965_v4  ;;  %v17969_v24 = vadd.f32 %v2528_v23, %v21121_v26  ;;  %v3862_v26 = vld [vmem:[%s16728_s17 + $0x2d8] sm:$0xff] }
 0x1ea   : > { %v14781_v16 = vpop.f32.mrf.mxu0 }
 0x1eb   : > { %21122 = vst [vmem:[#allocation14_spill] sm:$0xff] %v17969_v24  ;;  %v17974_v33 = vadd.f32 %v14781_v16, %v21124_v29  ;;  %v21130_v16 = vld [vmem:[#allocation19_spill] sm:$0xff]  ;;  %v3906_v29 = vpack.c.bf16 %v17585_v34, %v21132_v38  ;;  %v3865_v38 = vld [vmem:[%s16728_s17 + $0x2f0] sm:$0xff]  ;;  %v3868_v24 = vld [vmem:[%s16728_s17 + $0x308] sm:$0xff] }
 0x1ec   : > { %v2531_v12 = vpop.f32.mrf.mxu0 }
 0x1ed   : > { %21125 = vst [vmem:[#allocation17_spill] sm:$0xff] %v17974_v33  ;;  %v17979_v40 = vadd.f32 %v2531_v12, %v21126_v20  ;;  %v21133_v12 = vld [vmem:[#allocation20_spill] sm:$0xff] }
 0x1ee   : > { %v14784_v21 = vpop.f32.mrf.mxu0  ;;  %14967 = vmatmul.mubr.msk.bf16.gmra.mxu0 %vm567_vm1, %v3904_v30  ;;  %v21135_v30 = vld [vmem:[#allocation29_spill] sm:$0xff]  ;;  %v3867_v33 = vld [vmem:[%s16728_s17 + $0x300] sm:$0xff] }
 0x1ef   : > { %21127 = vst [vmem:[#allocation15_spill] sm:$0xff] %v17979_v40  ;;  %v17983_v23 = vadd.f32 %v14784_v21, %v21128_v63  ;;  %14970 = vmatprep.mubr.msk.bf16.mxu0 %vm567_vm1, %v3905_v41  ;;  %v3907_v40 = vpack.c.bf16 %v3862_v26, %v21135_v30  ;;  %v21137_v41 = vld [vmem:[#allocation24_spill] sm:$0xff] }
 0x1f0   : > { %v2544_v43 = vpop.f32.mrf.mxu0 }
 0x1f1   : > { %21129 = vst [vmem:[#allocation16_spill] sm:$0xff] %v17983_v23  ;;  %v17988_v54 = vadd.f32 %v2544_v43, %v21130_v16  ;;  %v3863_v43 = vld [vmem:[%s16728_s17 + $0x2e0] sm:$0xff]  ;;  %v3864_v16 = vld [vmem:[%s16728_s17 + $0x2e8] sm:$0xff] }
 0x1f2   : > { %v14785_v35 = vpop.f32.mrf.mxu0  ;;  %v3908_v30 = vpack.c.bf16 %v3864_v16, %v3863_v43  ;;  %v21148_v16 = vld [vmem:[#allocation32_spill] sm:$0xff] }
 0x1f3   : > { %21131 = vst [vmem:[#allocation18_spill] sm:$0xff] %v17988_v54  ;;  %v17993_v20 = vadd.f32 %v14785_v35, %v21133_v12  ;;  %v3866_v35 = vld [vmem:[%s16728_s17 + $0x2f8] sm:$0xff]  ;;  %v21139_v12 = vld [vmem:[#allocation25_spill] sm:$0xff] }
 0x1f4   : > { %v17996_v21 = vpop.f32.mrf.mxu0 }
 0x1f5   : > { %21134 = vst [vmem:[#allocation19_spill] sm:$0xff] %v17993_v20  ;;  %21136 = vst [vmem:[#allocation23_spill] sm:$0xff] %v17996_v21  ;;  %v21141_v21 = vld [vmem:[#allocation26_spill] sm:$0xff] }
 0x1f6   : > { %v14788_v63 = vpop.f32.mrf.mxu0  ;;  %14971 = vmatmul.mubr.msk.bf16.gmra.mxu0 %vm567_vm1, %v3906_v29  ;;  %v3909_v29 = vpack.c.bf16 %v3866_v35, %v3865_v38 }
 0x1f7   : > { %v18000_v23 = vadd.f32 %v14788_v63, %v21137_v41  ;;  %14974 = vmatprep.mubr.msk.bf16.mxu0 %vm567_vm1, %v3907_v40  ;;  %v21144_v40 = vld [vmem:[#allocation30_spill] sm:$0xff] }
 0x1f8   : > { %v2560_v34 = vpop.f32.mrf.mxu0 }
 0x1f9   : > { %21138 = vst [vmem:[#allocation20_spill] sm:$0xff] %v18000_v23  ;;  %v18008_v20 = vadd.f32 %v2560_v34, %v21139_v12  ;;  %v21146_v12 = vld [vmem:[#allocation31_spill] sm:$0xff] }
 0x1fa   : > { %v14789_v26 = vpop.f32.mrf.mxu0 }
 0x1fb   : > { %21140 = vst [vmem:[#allocation29_spill] sm:$0xff] %v18008_v20  ;;  %v18011_v54 = vadd.f32 %v14789_v26, %v21141_v21  ;;  %v3910_v21 = vpack.c.bf16 %v3868_v24, %v3867_v33  ;;  %v21155_v33 = vld [vmem:[#allocation37_spill] sm:$0xff] }
 0x1fc   : > { %v18013_v63 = vpop.f32.mrf.mxu0 }
 0x1fd   : > { %21142 = vst [vmem:[#allocation24_spill] sm:$0xff] %v18011_v54  ;;  %21143 = vst [vmem:[#allocation25_spill] sm:$0xff] %v18013_v63 }
 0x1fe   : > { %v14792_v41 = vpop.f32.mrf.mxu0  ;;  %14975 = vmatmul.mubr.msk.bf16.gmra.mxu0 %vm567_vm1, %v3908_v30  ;;  %v21151_v30 = vld [vmem:[#allocation35_spill] sm:$0xff] }
 0x1ff   : > { %v18017_v23 = vadd.f32 %v14792_v41, %v21144_v40  ;;  %14978 = vmatprep.mubr.msk.bf16.mxu0 %vm567_vm1, %v3909_v29  ;;  %v21153_v40 = vld [vmem:[#allocation36_spill] sm:$0xff] }
 0x200   : > { %v2576_v34 = vpop.f32.mrf.mxu0 }
 0x201   : > { %21145 = vst [vmem:[#allocation26_spill] sm:$0xff] %v18017_v23  ;;  %v18023_v20 = vadd.f32 %v2576_v34, %v21146_v12  ;;  %v16078_v34 = vld [vmem:[%s20985_s3 + $0x4] ss:$24 sps:$4 sm:$0xff]  }
 0x202   : > { %v14793_v43 = vpop.f32.mrf.mxu0  ;;  %5377 = vmatprep.mubr.bf16.mxu1 %v16078_v34  ;;  %v18059_v34 = vpop.f32.mrf.mxu1 }
 0x203   : > { %21147 = vst [vmem:[#allocation30_spill] sm:$0xff] %v18023_v20  ;;  %v18026_v38 = vadd.f32 %v14793_v43, %v21148_v16 }
 0x204   : > { %v18028_v35 = vpop.f32.mrf.mxu0 }
 0x205   : > { %21149 = vst [vmem:[#allocation31_spill] sm:$0xff] %v18026_v38  ;;  %21150 = vst [vmem:[#allocation32_spill] sm:$0xff] %v18028_v35 }
 0x206   : > { %v14796_v26 = vpop.f32.mrf.mxu0  ;;  %14979 = vmatmul.mubr.msk.bf16.gmra.mxu0 %vm567_vm1, %v3910_v21  ;;  %v21158_v21 = vld [vmem:[#allocation40_spill] sm:$0xff] }
 0x207   : > { %v18032_v41 = vadd.f32 %v14796_v26, %v21151_v30  ;;  %v21160_v30 = vld [vmem:[#allocation41_spill] sm:$0xff] }
 0x208   : > { %v2592_v29 = vpop.f32.mrf.mxu0 }
 0x209   : > { %21152 = vst [vmem:[#allocation35_spill] sm:$0xff] %v18032_v41  ;;  %v18035_v23 = vadd.f32 %v2592_v29, %v21153_v40  ;;  %v21162_v40 = vld [vmem:[#allocation42_spill] sm:$0xff] }
 0x20a   : > { %v14797_v24 = vpop.f32.mrf.mxu0 }
 0x20b   : > { %21154 = vst [vmem:[#allocation36_spill] sm:$0xff] %v18035_v23  ;;  %v18041_v12 = vadd.f32 %v14797_v24, %v21155_v33  ;;  %v21165_v24 = vld [vmem:[#allocation45_spill] sm:$0xff] }
 0x20c   : > { %v18043_v43 = vpop.f32.mrf.mxu0 }
 0x20d   : > { %21156 = vst [vmem:[#allocation37_spill] sm:$0xff] %v18041_v12  ;;  %21157 = vst [vmem:[#allocation83_spill] sm:$0xff] %v18043_v43  ;;  %v21167_v43 = vld [vmem:[#allocation46_spill] sm:$0xff] }
 0x20e   : > { %v14800_v16 = vpop.f32.mrf.mxu0 }
 0x20f   : > { %v18046_v38 = vadd.f32 %v14800_v16, %v21158_v21 }
 0x210   : > { %v2608_v26 = vpop.f32.mrf.mxu0 }
 0x211   : > { %21159 = vst [vmem:[#allocation40_spill] sm:$0xff] %v18046_v38  ;;  %v18049_v41 = vadd.f32 %v2608_v26, %v21160_v30  ;;  %v21169_v38 = vld [vmem:[#allocation47_spill] sm:$0xff]  ;;  %v18067_v30 = vpop.f32.mrf.mxu1 }
 0x212   : > { %v14801_v29 = vpop.f32.mrf.mxu0 }
 0x213   : > { %21161 = vst [vmem:[#allocation41_spill] sm:$0xff] %v18049_v41  ;;  %v18052_v23 = vadd.f32 %v14801_v29, %v21162_v40 }
 0x214   : > { %v18054_v35 = vpop.f32.mrf.mxu0 }
 0x215   : > { %21163 = vst [vmem:[#allocation42_spill] sm:$0xff] %v18052_v23  ;;  %21164 = vst [vmem:[#allocation84_spill] sm:$0xff] %v18054_v35  ;;  %v21172_v23 = vld [vmem:[#allocation50_spill] sm:$0xff] }
 0x216   : > { %v14804_v20 = vpop.f32.mrf.mxu0 }
 0x217   : > { %v18057_v33 = vadd.f32 %v14804_v20, %v21165_v24  ;;  %v18074_v20 = vpop.f32.mrf.mxu1 }
 0x218   : > { %v2624_v12 = vpop.f32.mrf.mxu0 }
 0x219   : > { %21166 = vst [vmem:[#allocation45_spill] sm:$0xff] %v18057_v33  ;;  %v18062_v16 = vadd.f32 %v2624_v12, %v21167_v43  ;;  %v21174_v33 = vld [vmem:[#allocation51_spill] sm:$0xff]  ;;  %v21176_v43 = vld [vmem:[#allocation52_spill] sm:$0xff] }
 0x21a   : > { %v14805_v21 = vpop.f32.mrf.mxu0 }
 0x21b   : > { %21168 = vst [vmem:[#allocation46_spill] sm:$0xff] %v18062_v16  ;;  %v18065_v26 = vadd.f32 %v14805_v21, %v21169_v38  ;;  %v18082_v38 = vpop.f32.mrf.mxu1 }
 0x21c   : > { %v18069_v29 = vpop.f32.mrf.mxu0 }
 0x21d   : > { %21170 = vst [vmem:[#allocation47_spill] sm:$0xff] %v18065_v26  ;;  %21171 = vst [vmem:[#allocation85_spill] sm:$0xff] %v18069_v29  ;;  %v18087_v54 = vpop.f32.mrf.mxu1 }
 0x21e   : > { %v14808_v40 = vpop.f32.mrf.mxu0 }
 0x21f   : > { %v18072_v35 = vadd.f32 %v14808_v40, %v21172_v23  ;;  %v18092_v23 = vld [vmem:[%s20984_s2] ss:$0 sm:$0xff] }
 0x220   : > { %v2640_v24 = vpop.f32.mrf.mxu0 }
 0x221   : > { %21173 = vst [vmem:[#allocation50_spill] sm:$0xff] %v18072_v35  ;;  %v18077_v41 = vadd.f32 %v2640_v24, %v21174_v33 }
 0x222   : > { %v14809_v12 = vpop.f32.mrf.mxu0 }
 0x223   : > { %21175 = vst [vmem:[#allocation51_spill] sm:$0xff] %v18077_v41  ;;  %v18080_v16 = vadd.f32 %v14809_v12, %v21176_v43  ;;  %v3618_v12 = vadd.f32 %v17693_v55, %v17689_v51  ;;  %v18099_v41 = vpop.f32.mrf.mxu1 }
 0x224   : > { %v18084_v21 = vpop.f32.mrf.mxu0 }
 0x225   : > { %21177 = vst [vmem:[#allocation52_spill] sm:$0xff] %v18080_v16  ;;  %21178 = vst [vmem:[#allocation86_spill] sm:$0xff] %v18084_v21  ;;  %v21179_v16 = vld [vmem:[#allocation55_spill] sm:$0xff]  ;;  %v18105_v51 = vpop.f32.mrf.mxu1 }
 0x226   : > { %v14900_v26 = vpop.f32.mrf.mxu0 }
 0x227   : > { %v4497_v29 = vadd.f32 %v14900_v26, %v17683_v62 }
 0x228   : > { %v4076_v33 = vpop.f32.mrf.mxu0 }
 0x229   : > { %v4495_v40 = vadd.f32 %v4076_v33, %v17686_v48  ;;  %v4756_v43 = vadd.f32 %v18092_v23, %v4497_v29 }
 0x22a   : > { %v14901_v24 = vpop.f32.mrf.mxu0 }
 0x22b   : > { %v4498_v21 = vadd.f32 %v14901_v24, %v21179_v16  ;;  %v4754_v26 = vadd.f32 %v18092_v23, %v4495_v40  ;;  %v4840_v18 = vmax.f32 %v4756_v43, 0.0 }
 0x22c   : > { %v4079_v62 = vpop.f32.mrf.mxu0 }
 0x22d   : > { %v4757_v35 = vadd.f32 %v18092_v23, %v4498_v21  ;;  %v4496_v63 = vadd.f32 %v4079_v62, %v3618_v12  ;;  %v4838_v29 = vmax.f32 %v4754_v26, 0.0  ;;  %v3622_v21 = vadd.f32 %v17713_v25, %v17709_v52 }
 0x22e   : > { %v14904_v4 = vpop.f32.mrf.mxu0  ;;  %v3625_v52 = vadd.f32 %v17729_v61, %v17727_v1  ;;  %v21181_v1 = vld [vmem:[#allocation57_spill] sm:$0xff] }
 0x22f   : > { %v4841_v32 = vmax.f32 %v4757_v35, 0.0  ;;  %v4755_v48 = vadd.f32 %v18092_v23, %v4496_v63  ;;  %v4501_v33 = vadd.f32 %v14904_v4, %v17703_v28  ;;  %v18116_v28 = vpop.f32.mrf.mxu1 }
 0x230   : > { %v4092_v55 = vpop.f32.mrf.mxu0 }
 0x231   : > { %v18107_v16 = vpack.c.bf16 %v4841_v32, %v4840_v18  ;;  %v4839_v24 = vmax.f32 %v4755_v48, 0.0  ;;  %v4499_v3 = vadd.f32 %v4092_v55, %v17706_v14  ;;  %v4760_v35 = vadd.f32 %v18092_v23, %v4501_v33  ;;  %v18127_v55 = vpop.f32.mrf.mxu1 }
 0x232   : > { %v14905_v40 = vpop.f32.mrf.mxu0  ;;  %v3627_v32 = vadd.f32 %v17719_v42, %v17717_v44  ;;  %v3628_v33 = vadd.f32 %v17734_v8, %v17732_v53  ;;  %v21182_v8 = vld [vmem:[#allocation58_spill] sm:$0xff] }
 0x233   : > { %v18112_v12 = vpack.c.bf16 %v4839_v24, %v4838_v29  ;;  %v4502_v63 = vadd.f32 %v14905_v40, %v17711_v22  ;;  %v4758_v18 = vadd.f32 %v18092_v23, %v4499_v3  ;;  %v4844_v62 = vmax.f32 %v4760_v35, 0.0 }
 0x234   : > { %v4095_v4 = vpop.f32.mrf.mxu0 }
 0x235   : > { %v4761_v14 = vadd.f32 %v18092_v23, %v4502_v63  ;;  %v4500_v43 = vadd.f32 %v4095_v4, %v3622_v21  ;;  %v4842_v42 = vmax.f32 %v4758_v18, 0.0  ;;  %v21180_v21 = vld [vmem:[#allocation56_spill] sm:$0xff] }
 0x236   : > { %v14908_v25 = vpop.f32.mrf.mxu0  ;;  %v3626_v61 = vadd.f32 %v21181_v1, %v21180_v21 }
 0x237   : > { %v4845_v26 = vmax.f32 %v4761_v14, 0.0  ;;  %v4759_v48 = vadd.f32 %v18092_v23, %v4500_v43  ;;  %v4505_v22 = vadd.f32 %v14908_v25, %v3627_v32  ;;  %v18136_v32 = vpop.f32.mrf.mxu1  ;;  %v21183_v14 = vld [vmem:[#allocation59_spill] sm:$0xff] }
 0x238   : > { %v4108_v44 = vpop.f32.mrf.mxu0  ;;  %v3631_v43 = vadd.f32 %v21183_v14, %v21182_v8 }
 0x239   : > { %v18129_v3 = vpack.c.bf16 %v4845_v26, %v4844_v62  ;;  %v4843_v29 = vmax.f32 %v4759_v48, 0.0  ;;  %v4503_v24 = vadd.f32 %v4108_v44, %v3625_v52  ;;  %v4764_v63 = vadd.f32 %v18092_v23, %v4505_v22 }
 0x23a   : > { %v14909_v40 = vpop.f32.mrf.mxu0  ;;  %v3629_v62 = vadd.f32 %v17755_v11, %v17753_v46  ;;  %v21185_v46 = vld [vmem:[#allocation61_spill] sm:$0xff] }
 0x23b   : > { %v18133_v35 = vpack.c.bf16 %v4843_v29, %v4842_v42  ;;  %v4506_v4 = vadd.f32 %v14909_v40, %v3628_v33  ;;  %v4762_v18 = vadd.f32 %v18092_v23, %v4503_v24  ;;  %v4848_v48 = vmax.f32 %v4764_v63, 0.0  ;;  %v18147_v29 = vpop.f32.mrf.mxu1 }
 0x23c   : > { %v4111_v53 = vpop.f32.mrf.mxu0  ;;  %v3632_v42 = vadd.f32 %v17760_v15, %v17758_v17  ;;  %v21186_v15 = vld [vmem:[#allocation62_spill] sm:$0xff] }
 0x23d   : > { %v4765_v25 = vadd.f32 %v18092_v23, %v4506_v4  ;;  %v4504_v52 = vadd.f32 %v4111_v53, %v3626_v61  ;;  %v4846_v21 = vmax.f32 %v4762_v18, 0.0  ;;  %v21184_v53 = vld [vmem:[#allocation60_spill] sm:$0xff] }
 0x23e   : > { %v14912_v26 = vpop.f32.mrf.mxu0  ;;  %v3630_v11 = vadd.f32 %v21185_v46, %v21184_v53 }
 0x23f   : > { %v4849_v44 = vmax.f32 %v4765_v25, 0.0  ;;  %v4763_v22 = vadd.f32 %v18092_v23, %v4504_v52  ;;  %v4509_v33 = vadd.f32 %v14912_v26, %v3631_v43  ;;  %v18156_v43 = vpop.f32.mrf.mxu1  ;;  %v21187_v25 = vld [vmem:[#allocation63_spill] sm:$0xff] }
 0x240   : > { %v4124_v40 = vpop.f32.mrf.mxu0  ;;  %v3635_v52 = vadd.f32 %v21187_v25, %v21186_v15 }
 0x241   : > { %v18149_v24 = vpack.c.bf16 %v4849_v44, %v4848_v48  ;;  %v4847_v1 = vmax.f32 %v4763_v22, 0.0  ;;  %v4507_v61 = vadd.f32 %v4124_v40, %v3629_v62  ;;  %v4768_v8 = vadd.f32 %v18092_v23, %v4509_v33 }
 0x242   : > { %v14913_v4 = vpop.f32.mrf.mxu0  ;;  %v3633_v48 = vadd.f32 %v17781_v2, %v17779_v56  ;;  %v21189_v56 = vld [vmem:[#allocation65_spill] sm:$0xff] }
 0x243   : > { %v18153_v63 = vpack.c.bf16 %v4847_v1, %v4846_v21  ;;  %v4510_v14 = vadd.f32 %v14913_v4, %v3632_v42  ;;  %v4766_v18 = vadd.f32 %v18092_v23, %v4507_v61  ;;  %v4852_v22 = vmax.f32 %v4768_v8, 0.0  ;;  %v18167_v1 = vpop.f32.mrf.mxu1 }
 0x244   : > { %v4127_v17 = vpop.f32.mrf.mxu0  ;;  %v3636_v21 = vadd.f32 %v17786_v39, %v17784_v58  ;;  %v21190_v39 = vld [vmem:[#allocation66_spill] sm:$0xff] }
 0x245   : > { %v4769_v26 = vadd.f32 %v18092_v23, %v4510_v14  ;;  %v4508_v62 = vadd.f32 %v4127_v17, %v3630_v11  ;;  %v4850_v53 = vmax.f32 %v4766_v18, 0.0  ;;  %v21188_v17 = vld [vmem:[#allocation64_spill] sm:$0xff] }
 0x246   : > { %v14916_v44 = vpop.f32.mrf.mxu0  ;;  %v3634_v2 = vadd.f32 %v21189_v56, %v21188_v17 }
 0x247   : > { %v4853_v40 = vmax.f32 %v4769_v26, 0.0  ;;  %v4767_v33 = vadd.f32 %v18092_v23, %v4508_v62  ;;  %v4513_v42 = vadd.f32 %v14916_v44, %v3635_v52  ;;  %v18176_v52 = vpop.f32.mrf.mxu1  ;;  %v21191_v26 = vld [vmem:[#allocation67_spill] sm:$0xff] }
 0x248   : > { %v4140_v4 = vpop.f32.mrf.mxu0  ;;  %v3639_v62 = vadd.f32 %v21191_v26, %v21190_v39 }
 0x249   : > { %v18169_v61 = vpack.c.bf16 %v4853_v40, %v4852_v22  ;;  %v4851_v46 = vmax.f32 %v4767_v33, 0.0  ;;  %v4511_v11 = vadd.f32 %v4140_v4, %v3633_v48  ;;  %v4772_v15 = vadd.f32 %v18092_v23, %v4513_v42 }
 0x24a   : > { %v14917_v14 = vpop.f32.mrf.mxu0  ;;  %v3637_v22 = vadd.f32 %v17807_v0, %v17805_v37  ;;  %v21193_v37 = vld [vmem:[#allocation69_spill] sm:$0xff] }
 0x24b   : > { %v18173_v8 = vpack.c.bf16 %v4851_v46, %v4850_v53  ;;  %v4514_v25 = vadd.f32 %v14917_v14, %v3636_v21  ;;  %v4770_v18 = vadd.f32 %v18092_v23, %v4511_v11  ;;  %v4856_v33 = vmax.f32 %v4772_v15, 0.0  ;;  %v18187_v46 = vpop.f32.mrf.mxu1 }
 0x24c   : > { %v4143_v58 = vpop.f32.mrf.mxu0  ;;  %v3640_v53 = vadd.f32 %v17812_v36, %v17810_v9  ;;  %v21194_v36 = vld [vmem:[#allocation70_spill] sm:$0xff] }
 0x24d   : > { %v4773_v44 = vadd.f32 %v18092_v23, %v4514_v25  ;;  %v4512_v48 = vadd.f32 %v4143_v58, %v3634_v2  ;;  %v4854_v17 = vmax.f32 %v4770_v18, 0.0  ;;  %v21192_v58 = vld [vmem:[#allocation68_spill] sm:$0xff] }
 0x24e   : > { %v14920_v40 = vpop.f32.mrf.mxu0  ;;  %v3638_v0 = vadd.f32 %v21193_v37, %v21192_v58 }
 0x24f   : > { %v4857_v4 = vmax.f32 %v4773_v44, 0.0  ;;  %v4771_v42 = vadd.f32 %v18092_v23, %v4512_v48  ;;  %v4517_v21 = vadd.f32 %v14920_v40, %v3639_v62  ;;  %v18196_v62 = vpop.f32.mrf.mxu1  ;;  %v21195_v44 = vld [vmem:[#allocation71_spill] sm:$0xff] }
 0x250   : > { %v4156_v14 = vpop.f32.mrf.mxu0  ;;  %v3643_v48 = vadd.f32 %v21195_v44, %v21194_v36 }
 0x251   : > { %v4855_v11 = vmax.f32 %v4771_v42, 0.0  ;;  %v4515_v56 = vadd.f32 %v4156_v14, %v3637_v22  ;;  %v18189_v25 = vpack.c.bf16 %v4857_v4, %v4856_v33  ;;  %v4776_v15 = vadd.f32 %v18092_v23, %v4517_v21 }
 0x252   : > { %v14921_v2 = vpop.f32.mrf.mxu0  ;;  %v3641_v33 = vadd.f32 %v17833_v57, %v17831_v31  ;;  %v21198_v31 = vld [vmem:[#allocation73_spill] sm:$0xff] }
 0x253   : > { %v4518_v39 = vadd.f32 %v14921_v2, %v3640_v53  ;;  %v18194_v26 = vpack.c.bf16 %v4855_v11, %v4854_v17  ;;  %v4774_v18 = vadd.f32 %v18092_v23, %v4515_v56  ;;  %v4860_v42 = vmax.f32 %v4776_v15, 0.0  ;;  %v18207_v11 = vpop.f32.mrf.mxu1 }
 0x254   : > { %v4159_v9 = vpop.f32.mrf.mxu0  ;;  %v3644_v17 = vadd.f32 %v17838_v13, %v17836_v49  ;;  %21196 = vst [vmem:[#allocation55_spill] sm:$0xff] %v18207_v11  ;;  %v21200_v13 = vld [vmem:[#allocation74_spill] sm:$0xff]  ;;  %v21206_v11 = vld [vmem:[#allocation80_spill] sm:$0xff] }
 0x255   : > { %v4777_v22 = vadd.f32 %v18092_v23, %v4518_v39  ;;  %v4516_v40 = vadd.f32 %v4159_v9, %v3638_v0  ;;  %v4858_v58 = vmax.f32 %v4774_v18, 0.0  ;;  %v21197_v9 = vld [vmem:[#allocation72_spill] sm:$0xff] }
 0x256   : > { %v14924_v4 = vpop.f32.mrf.mxu0  ;;  %v3642_v57 = vadd.f32 %v21198_v31, %v21197_v9 }
 0x257   : > { %v4861_v21 = vmax.f32 %v4777_v22, 0.0  ;;  %v4775_v53 = vadd.f32 %v18092_v23, %v4516_v40  ;;  %v4521_v14 = vadd.f32 %v14924_v4, %v3643_v48  ;;  %v18216_v48 = vpop.f32.mrf.mxu1  ;;  %v21201_v22 = vld [vmem:[#allocation75_spill] sm:$0xff] }
 0x258   : > { %v4172_v2 = vpop.f32.mrf.mxu0  ;;  %21199 = vst [vmem:[#allocation56_spill] sm:$0xff] %v18216_v48  ;;  %v3647_v40 = vadd.f32 %v21201_v22, %v21200_v13 }
 0x259   : > { %v4859_v56 = vmax.f32 %v4775_v53, 0.0  ;;  %v4519_v37 = vadd.f32 %v4172_v2, %v3641_v33  ;;  %v18209_v39 = vpack.c.bf16 %v4861_v21, %v4860_v42  ;;  %v4780_v15 = vadd.f32 %v18092_v23, %v4521_v14  ;;  %v21202_v42 = vld [vmem:[#allocation76_spill] sm:$0xff]  ;;  %v18227_v31 = vpop.f32.mrf.mxu1 }
 0x25a   : > { %v14925_v0 = vpop.f32.mrf.mxu0  ;;  %v3645_v21 = vadd.f32 %v21202_v42, %v17857_v47 }
 0x25b   : > { %v4522_v36 = vadd.f32 %v14925_v0, %v3644_v17  ;;  %v18214_v44 = vpack.c.bf16 %v4859_v56, %v4858_v58  ;;  %v4778_v18 = vadd.f32 %v18092_v23, %v4519_v37  ;;  %v4864_v2 = vmax.f32 %v4780_v15, 0.0  ;;  %v21203_v56 = vld [vmem:[#allocation77_spill] sm:$0xff]  ;;  %v21204_v0 = vld [vmem:[#allocation78_spill] sm:$0xff] }
 0x25c   : > { %v4175_v49 = vpop.f32.mrf.mxu0  ;;  %v3648_v9 = vadd.f32 %v21204_v0, %v21203_v56 }
 0x25d   : > { %v4781_v33 = vadd.f32 %v18092_v23, %v4522_v36  ;;  %v4520_v4 = vadd.f32 %v4175_v49, %v3642_v57  ;;  %v4862_v22 = vmax.f32 %v4778_v18, 0.0  ;;  %v21205_v49 = vld [vmem:[#allocation79_spill] sm:$0xff] }
 0x25e   : > { %v14928_v53 = vpop.f32.mrf.mxu0  ;;  %v3646_v47 = vadd.f32 %v21206_v11, %v21205_v49 }
 0x25f   : > { %v4865_v14 = vmax.f32 %v4781_v33, 0.0  ;;  %v4779_v17 = vadd.f32 %v18092_v23, %v4520_v4  ;;  %v4525_v58 = vadd.f32 %v14928_v53, %v3647_v40  ;;  %v18232_v4 = vpop.f32.mrf.mxu1 }
 0x260   : > { %v4188_v13 = vpop.f32.mrf.mxu0 }
 0x261   : > { %v4863_v37 = vmax.f32 %v4779_v17, 0.0  ;;  %v4523_v48 = vadd.f32 %v4188_v13, %v3645_v21  ;;  %v4935_v36 = vpack.c.bf16 %v4865_v14, %v4864_v2  ;;  %v4784_v15 = vadd.f32 %v18092_v23, %v4525_v58  ;;  %v18238_v11 = vpop.f32.mrf.mxu1 }
 0x262   : > { %v14929_v57 = vpop.f32.mrf.mxu0 }
 0x263   : > { %v4526_v33 = vadd.f32 %v14929_v57, %v3648_v9  ;;  %v4934_v42 = vpack.c.bf16 %v4863_v37, %v4862_v22  ;;  %v4782_v53 = vadd.f32 %v18092_v23, %v4523_v48  ;;  %v4868_v17 = vmax.f32 %v4784_v15, 0.0 }
 0x264   : > { %v4191_v40 = vpop.f32.mrf.mxu0  ;;  %v3650_v48 = vadd.f32 %v17889_v50, %v17885_v19 }
 0x265   : > { %v4785_v56 = vadd.f32 %v18092_v23, %v4526_v33  ;;  %v4524_v0 = vadd.f32 %v4191_v40, %v3646_v47  ;;  %v4866_v9 = vmax.f32 %v4782_v53, 0.0  ;;  %v21207_v47 = vld [vmem:[#allocation81_spill] sm:$0xff]  ;;  %v18245_v40 = vpop.f32.mrf.mxu1 }
 0x266   : > { %v14932_v18 = vpop.f32.mrf.mxu0 }
 0x267   : > { %v4869_v21 = vmax.f32 %v4785_v56, 0.0  ;;  %v4783_v2 = vadd.f32 %v18092_v23, %v4524_v0  ;;  %v4529_v14 = vadd.f32 %v14932_v18, %v17879_v45 }
 0x268   : > { %v4204_v58 = vpop.f32.mrf.mxu0 }
 0x269   : > { %v4867_v13 = vmax.f32 %v4783_v2, 0.0  ;;  %v4527_v22 = vadd.f32 %v4204_v58, %v17882_v5  ;;  %v4937_v37 = vpack.c.bf16 %v4869_v21, %v4868_v17  ;;  %v4788_v49 = vadd.f32 %v18092_v23, %v4529_v14  ;;  %v18252_v21 = vpop.f32.mrf.mxu1 }
 0x26a   : > { %v14933_v57 = vpop.f32.mrf.mxu0 }
 0x26b   : > { %v4530_v15 = vadd.f32 %v14933_v57, %v21207_v47  ;;  %13881 = vmatprep.subr.bf16.mxu1 %v4937_v37  ;;  %v4936_v33 = vpack.c.bf16 %v4867_v13, %v4866_v9  ;;  %v4786_v53 = vadd.f32 %v18092_v23, %v4527_v22  ;;  %v4872_v18 = vmax.f32 %v4788_v49, 0.0 }
 0x26c   : > { %v4207_v45 = vpop.f32.mrf.mxu0  ;;  %13882 = vmatpush3.bf16.msra.mxu1 %v18169_v61  ;;  %v3654_v22 = vadd.f32 %v18059_v34, %v17905_v27  ;;  %v3659_v49 = vadd.f32 %v18067_v30, %v17911_v6  ;;  %v3657_v27 = vadd.f32 %v18074_v20, %v17919_v7  ;;  %v21209_v20 = vld [vmem:[#allocation4_spill] sm:$0xff] }
 0x26d   : > { %v4789_v5 = vadd.f32 %v18092_v23, %v4530_v15  ;;  %v4528_v56 = vadd.f32 %v4207_v45, %v3650_v48  ;;  %13883 = vmatprep.subr.bf16.mxu1 %v4936_v33  ;;  %v4870_v14 = vmax.f32 %v4786_v53, 0.0  ;;  %v18264_v48 = vpop.f32.mrf.mxu1  ;;  %v21208_v53 = vld [vmem:[#allocation82_spill] sm:$0xff] }
 0x26e   : > { %v14936_v0 = vpop.f32.mrf.mxu0 }
 0x26f   : > { %v4873_v19 = vmax.f32 %v4789_v5, 0.0  ;;  %v4787_v50 = vadd.f32 %v18092_v23, %v4528_v56  ;;  %v4533_v17 = vadd.f32 %v14936_v0, %v17899_v59  ;;  %v18276_v5 = vpop.f32.mrf.mxu1 }
 0x270   : > { %v4220_v2 = vpop.f32.mrf.mxu0  ;;  %13884 = vmatpush3.bf16.msra.mxu1 %v18173_v8 }
 0x271   : > { %v18255_v61 = vpack.c.bf16 %v4873_v19, %v4872_v18  ;;  %v4871_v58 = vmax.f32 %v4787_v50, 0.0  ;;  %v4531_v9 = vadd.f32 %v4220_v2, %v17902_v60  ;;  %13885 = vmatprep.subr.bf16.mxu1 %v4935_v36  ;;  %v4792_v59 = vadd.f32 %v18092_v23, %v4533_v17  ;;  %v18287_v17 = vpop.f32.mrf.mxu1 }
 0x272   : > { %v14937_v13 = vpop.f32.mrf.mxu0  ;;  %v3658_v18 = vadd.f32 %v18087_v54, %v21209_v20  ;;  %v21211_v54 = vld [vmem:[#allocation6_spill] sm:$0xff] }
 0x273   : > { %v18260_v37 = vpack.c.bf16 %v4871_v58, %v4870_v14  ;;  %v4534_v57 = vadd.f32 %v14937_v13, %v17907_v10  ;;  %v4790_v60 = vadd.f32 %v18092_v23, %v4531_v9  ;;  %v4876_v15 = vmax.f32 %v4792_v59, 0.0 }
 0x274   : > { %v4223_v8 = vpop.f32.mrf.mxu0  ;;  %13886 = vmatpush3.bf16.msra.mxu1 %v18149_v24  ;;  %v3660_v24 = vadd.f32 %v18082_v38, %v21208_v53  ;;  %v3661_v13 = vadd.f32 %v18105_v51, %v21211_v54 }
 0x275   : > { %v4793_v36 = vadd.f32 %v18092_v23, %v4534_v57  ;;  %v4532_v47 = vadd.f32 %v4223_v8, %v3654_v22  ;;  %13887 = vmatprep.subr.bf16.mxu1 %v4934_v42  ;;  %v4874_v30 = vmax.f32 %v4790_v60, 0.0 }
 0x276   : > { %v14940_v34 = vpop.f32.mrf.mxu0 }
 0x277   : > { %v4877_v10 = vmax.f32 %v4793_v36, 0.0  ;;  %v4791_v33 = vadd.f32 %v18092_v23, %v4532_v47  ;;  %v4537_v45 = vadd.f32 %v14940_v34, %v3659_v49 }
 0x278   : > { %v4236_v6 = vpop.f32.mrf.mxu0  ;;  %13888 = vmatpush3.bf16.msra.mxu1 %v18153_v63  ;;  %v21210_v63 = vld [vmem:[#allocation5_spill] sm:$0xff] }
 0x279   : > { %v18279_v56 = vpack.c.bf16 %v4877_v10, %v4876_v15  ;;  %v4875_v42 = vmax.f32 %v4791_v33, 0.0  ;;  %v4535_v0 = vadd.f32 %v4236_v6, %v3657_v27  ;;  %13889 = vmatprep.subr.bf16.mxu1 %v18209_v39  ;;  %v4796_v38 = vadd.f32 %v18092_v23, %v4537_v45  ;;  %v21213_v15 = vld [vmem:[#allocation8_spill] sm:$0xff] }
 0x27a   : > { %v14941_v7 = vpop.f32.mrf.mxu0  ;;  %v3663_v14 = vadd.f32 %v18099_v41, %v21210_v63  ;;  %v18300_v41 = vpop.f32.mrf.mxu1  ;;  %v3662_v10 = vadd.f32 %v18127_v55, %v21213_v15  ;;  %v21215_v55 = vld [vmem:[#allocation10_spill] sm:$0xff] }
 0x27b   : > { %v18284_v19 = vpack.c.bf16 %v4875_v42, %v4874_v30  ;;  %v4538_v50 = vadd.f32 %v14941_v7, %v3660_v24  ;;  %v4794_v58 = vadd.f32 %v18092_v23, %v4535_v0  ;;  %v4880_v59 = vmax.f32 %v4796_v38, 0.0 }
 0x27c   : > { %v4239_v2 = vpop.f32.mrf.mxu0  ;;  %13890 = vmatpush3.bf16.msra.mxu1 %v18129_v3  ;;  %v21212_v3 = vld [vmem:[#allocation7_spill] sm:$0xff]  ;;  %v18311_v53 = vpop.f32.mrf.mxu1  ;;  %v3665_v0 = vadd.f32 %v18147_v29, %v21215_v55  ;;  %v16081_v29 = vld [vmem:[%s20985_s3 + $0x34] ss:$24 sps:$4 sm:$0xff]  }
 0x27d   : > { %v4797_v39 = vadd.f32 %v18092_v23, %v4538_v50  ;;  %v4536_v9 = vadd.f32 %v4239_v2, %v3658_v18  ;;  %13891 = vmatprep.subr.bf16.mxu1 %v18214_v44  ;;  %v3664_v60 = vadd.f32 %v18116_v28, %v21212_v3  ;;  %v4878_v47 = vmax.f32 %v4794_v58, 0.0 }
 0x27e   : > { %v14944_v22 = vpop.f32.mrf.mxu0  ;;  %v18327_v63 = vpop.f32.mrf.mxu1 }
 0x27f   : > { %v4881_v57 = vmax.f32 %v4797_v39, 0.0  ;;  %v4795_v8 = vadd.f32 %v18092_v23, %v4536_v9  ;;  %v4541_v49 = vadd.f32 %v14944_v22, %v3663_v14 }
 0x280   : > { %v4252_v36 = vpop.f32.mrf.mxu0  ;;  %13892 = vmatpush3.bf16.msra.mxu1 %v18133_v35  ;;  %v21214_v35 = vld [vmem:[#allocation9_spill] sm:$0xff] }
 0x281   : > { %v18303_v27 = vpack.c.bf16 %v4881_v57, %v4880_v59  ;;  %v4879_v44 = vmax.f32 %v4795_v8, 0.0  ;;  %v4539_v34 = vadd.f32 %v4252_v36, %v3661_v13  ;;  %13893 = vmatprep.subr.bf16.mxu1 %v18189_v25  ;;  %v4800_v28 = vadd.f32 %v18092_v23, %v4541_v49  ;;  %v21217_v13 = vld [vmem:[#allocation12_spill] sm:$0xff]  ;;  %v21218_v49 = vld [vmem:[#allocation13_spill] sm:$0xff] }
 0x282   : > { %v14945_v51 = vpop.f32.mrf.mxu0  ;;  %v3667_v6 = vadd.f32 %v18136_v32, %v21214_v35  ;;  %v21216_v32 = vld [vmem:[#allocation11_spill] sm:$0xff]  ;;  %v3666_v22 = vadd.f32 %v18167_v1, %v21217_v13  ;;  %v3671_v3 = vadd.f32 %v18176_v52, %v21218_v49 }
 0x283   : > { %v18308_v33 = vpack.c.bf16 %v4879_v44, %v4878_v47  ;;  %v4542_v45 = vadd.f32 %v14945_v51, %v3664_v60  ;;  %v4798_v30 = vadd.f32 %v18092_v23, %v4539_v34  ;;  %v4884_v20 = vmax.f32 %v4800_v28, 0.0  ;;  %v21219_v44 = vld [vmem:[#allocation14_spill] sm:$0xff] }
 0x284   : > { %v4255_v24 = vpop.f32.mrf.mxu0  ;;  %13894 = vmatpush3.bf16.msra.mxu1 %v18107_v16  ;;  %v16076_v16 = vld [vmem:[%s20985_s3] ss:$24 sps:$4 sm:$0xff]   ;;  %v3668_v2 = vadd.f32 %v18156_v43, %v21216_v32  ;;  %v3669_v1 = vadd.f32 %v18187_v46, %v21219_v44  ;;  %v16084_v46 = vld [vmem:[%s20985_s3 + $0x64] ss:$24 sps:$4 sm:$0xff]   ;;  %v21224_v32 = vld [vmem:[#allocation22_spill] sm:$0xff] }
 0x285   : > { %v4801_v25 = vadd.f32 %v18092_v23, %v4542_v45  ;;  %v4540_v42 = vadd.f32 %v4255_v24, %v3662_v10  ;;  %13895 = vmatprep.subr.bf16.mxu1 %v18194_v26  ;;  %v4882_v26 = vmax.f32 %v4798_v30, 0.0  ;;  %v16079_v45 = vld [vmem:[%s20985_s3 + $0x30] ss:$24 sps:$4 sm:$0xff]  }
 0x286   : > { %v14948_v7 = vpop.f32.mrf.mxu0  ;;  %v21220_v24 = vld [vmem:[#allocation17_spill] sm:$0xff] }
 0x287   : > { %v4885_v18 = vmax.f32 %v4801_v25, 0.0  ;;  %v4799_v38 = vadd.f32 %v18092_v23, %v4540_v42  ;;  %v4545_v50 = vadd.f32 %v14948_v7, %v3667_v6  ;;  %v3672_v52 = vadd.f32 %v18196_v62, %v21220_v24  ;;  %v21221_v7 = vld [vmem:[#allocation15_spill] sm:$0xff] }
 0x288   : > { %v4268_v14 = vpop.f32.mrf.mxu0  ;;  %13896 = vmatpush3.bf16.msra.mxu1 %v18112_v12  ;;  %v18340_v12 = vpop.f32.mrf.mxu1 }
 0x289   : > { %v18333_v58 = vpack.c.bf16 %v4885_v18, %v4884_v20  ;;  %v4883_v39 = vmax.f32 %v4799_v38, 0.0  ;;  %v4543_v9 = vadd.f32 %v4268_v14, %v3665_v0  ;;  %v4804_v43 = vadd.f32 %v18092_v23, %v4545_v50  ;;  %v21222_v20 = vld [vmem:[#allocation55_spill] sm:$0xff] }
 0x28a   : > { %v14949_v54 = vpop.f32.mrf.mxu0  ;;  %v18354_v35 = vpop.f32.mrf.mxu1  ;;  %v3670_v18 = vadd.f32 %v21222_v20, %v21221_v7 }
 0x28b   : > { %v18337_v59 = vpack.c.bf16 %v4883_v39, %v4882_v26  ;;  %v4546_v57 = vadd.f32 %v14949_v54, %v3668_v2  ;;  %5378 = vmatmul.mubr.bf16.vlgmr.msra.gmra.mxu1 %v16076_v16  ;;  %v4802_v60 = vadd.f32 %v18092_v23, %v4543_v9  ;;  %v4888_v51 = vmax.f32 %v4804_v43, 0.0  ;;  %v21223_v16 = vld [vmem:[#allocation21_spill] sm:$0xff]  ;;  %v21225_v26 = vld [vmem:[#allocation16_spill] sm:$0xff]  ;;  %v21227_v43 = vld [vmem:[#allocation18_spill] sm:$0xff] }
 0x28c   : > { %v4271_v8 = vpop.f32.mrf.mxu0  ;;  %5385 = vmatprep.mubr.bf16.mxu1 %v16081_v29  ;;  %v1918_v2 = vadd.f32 %v21224_v32, %v21223_v16  ;;  %v18368_v14 = vpop.f32.mrf.mxu1  ;;  %v21226_v39 = vld [vmem:[#allocation56_spill] sm:$0xff] }
 0x28d   : > { %v4805_v36 = vadd.f32 %v18092_v23, %v4546_v57  ;;  %v4544_v47 = vadd.f32 %v4271_v8, %v3666_v22  ;;  %v4886_v30 = vmax.f32 %v4802_v60, 0.0  ;;  %v3675_v9 = vadd.f32 %v21226_v39, %v21225_v26  ;;  %v21228_v8 = vld [vmem:[#allocation23_spill] sm:$0xff]  ;;  %v21234_v26 = vld [vmem:[#allocation25_spill] sm:$0xff] }
 0x28e   : > { %v14952_v34 = vpop.f32.mrf.mxu0  ;;  %v3673_v57 = vadd.f32 %v18227_v31, %v21227_v43  ;;  %v2796_v49 = vadd.f32 %v21228_v8, %v1918_v2  ;;  %v16087_v31 = vld [vmem:[%s20985_s3 + $0x94] ss:$24 sps:$4 sm:$0xff]  }
 0x28f   : > { %v4889_v15 = vmax.f32 %v4805_v36, 0.0  ;;  %v4803_v10 = vadd.f32 %v18092_v23, %v4544_v47  ;;  %v4549_v28 = vadd.f32 %v14952_v34, %v3671_v3  ;;  %v21229_v34 = vld [vmem:[#allocation19_spill] sm:$0xff]  ;;  %v21233_v2 = vld [vmem:[#allocation29_spill] sm:$0xff] }
 0x290   : > { %v4284_v6 = vpop.f32.mrf.mxu0 }
 0x291   : > { %v4887_v25 = vmax.f32 %v4803_v10, 0.0  ;;  %v4547_v42 = vadd.f32 %v4284_v6, %v3669_v1  ;;  %v18359_v55 = vpack.c.bf16 %v4889_v15, %v4888_v51  ;;  %v4808_v38 = vadd.f32 %v18092_v23, %v4549_v28  ;;  %v16082_v1 = vld [vmem:[%s20985_s3 + $0x60] ss:$24 sps:$4 sm:$0xff]   ;;  %v18383_v15 = vpop.f32.mrf.mxu1 }
 0x292   : > { %v14953_v0 = vpop.f32.mrf.mxu0  ;;  %v3676_v51 = vadd.f32 %v18232_v4, %v21229_v34 }
 0x293   : > { %v4550_v50 = vadd.f32 %v14953_v0, %v3672_v52  ;;  %5386 = vmatmul.mubr.bf16.gmra.mxu1 %v16079_v45  ;;  %v18364_v62 = vpack.c.bf16 %v4887_v25, %v4886_v30  ;;  %v4806_v54 = vadd.f32 %v18092_v23, %v4547_v42  ;;  %v4892_v60 = vmax.f32 %v4808_v38, 0.0  ;;  %v21230_v42 = vld [vmem:[#allocation27_spill] sm:$0xff]  ;;  %v21231_v0 = vld [vmem:[#allocation28_spill] sm:$0xff]  ;;  %v18396_v20 = vpop.f32.mrf.mxu1 }
 0x294   : > { %v4287_v29 = vpop.f32.mrf.mxu0  ;;  %5393 = vmatprep.mubr.bf16.mxu1 %v16084_v46  ;;  %v3674_v46 = vadd.f32 %v18238_v11, %v2796_v49  ;;  %v1922_v7 = vadd.f32 %v21231_v0, %v21230_v42  ;;  %v21232_v38 = vld [vmem:[#allocation20_spill] sm:$0xff]  ;;  %v21239_v0 = vld [vmem:[#allocation30_spill] sm:$0xff] }
 0x295   : > { %v4809_v13 = vadd.f32 %v18092_v23, %v4550_v50  ;;  %v4548_v22 = vadd.f32 %v4287_v29, %v3670_v18  ;;  %v4890_v28 = vmax.f32 %v4806_v54, 0.0  ;;  %v3679_v50 = vadd.f32 %v18245_v40, %v21232_v38  ;;  %v16085_v40 = vld [vmem:[%s20985_s3 + $0x90] ss:$24 sps:$4 sm:$0xff]   ;;  %v18411_v49 = vpop.f32.mrf.mxu1 }
 0x296   : > { %v14956_v3 = vpop.f32.mrf.mxu0  ;;  %v3677_v29 = vadd.f32 %v18252_v21, %v21233_v2  ;;  %v2800_v39 = vadd.f32 %v21234_v26, %v1922_v7  ;;  %v16090_v21 = vld [vmem:[%s20985_s3 + $0xc4] ss:$24 sps:$4 sm:$0xff]   ;;  %v3681_v7 = vadd.f32 %v18300_v41, %v21239_v0  ;;  %v16093_v41 = vld [vmem:[%s20985_s3 + $0xf4] ss:$24 sps:$4 sm:$0xff]  }
 0x297   : > { %v4893_v36 = vmax.f32 %v4809_v13, 0.0  ;;  %v4807_v47 = vadd.f32 %v18092_v23, %v4548_v22  ;;  %v4553_v44 = vadd.f32 %v14956_v3, %v3675_v9  ;;  %v21247_v0 = vld [vmem:[#allocation37_spill] sm:$0xff] }
 0x298   : > { %v4300_v10 = vpop.f32.mrf.mxu0  ;;  %v3678_v34 = vadd.f32 %v18276_v5, %v2800_v39 }
 0x299   : > { %v4891_v45 = vmax.f32 %v4807_v47, 0.0  ;;  %v4551_v24 = vadd.f32 %v4300_v10, %v3673_v57  ;;  %v18388_v52 = vpack.c.bf16 %v4893_v36, %v4892_v60  ;;  %v4812_v30 = vadd.f32 %v18092_v23, %v4553_v44  ;;  %v21235_v57 = vld [vmem:[#allocation24_spill] sm:$0xff] }
 0x29a   : > { %v14957_v6 = vpop.f32.mrf.mxu0  ;;  %v3680_v8 = vadd.f32 %v18264_v48, %v21235_v57 }
 0x29b   : > { %v4554_v25 = vadd.f32 %v14957_v6, %v3676_v51  ;;  %5394 = vmatmul.mubr.bf16.gmra.mxu1 %v16082_v1  ;;  %v18392_v4 = vpack.c.bf16 %v4891_v45, %v4890_v28  ;;  %v4810_v16 = vadd.f32 %v18092_v23, %v4551_v24  ;;  %v4896_v54 = vmax.f32 %v4812_v30, 0.0  ;;  %v21237_v28 = vld [vmem:[#allocation34_spill] sm:$0xff]  ;;  %v18424_v24 = vpop.f32.mrf.mxu1 }
 0x29c   : > { %v4303_v18 = vpop.f32.mrf.mxu0  ;;  %5401 = vmatprep.mubr.bf16.mxu1 %v16087_v31  ;;  %v21236_v31 = vld [vmem:[#allocation33_spill] sm:$0xff] }
 0x29d   : > { %v4813_v11 = vadd.f32 %v18092_v23, %v4554_v25  ;;  %v4552_v32 = vadd.f32 %v4303_v18, %v3674_v46  ;;  %v4894_v60 = vmax.f32 %v4810_v16, 0.0  ;;  %v1926_v45 = vadd.f32 %v21237_v28, %v21236_v31  ;;  %v21238_v46 = vld [vmem:[#allocation26_spill] sm:$0xff]  ;;  %v21240_v18 = vld [vmem:[#allocation32_spill] sm:$0xff]  ;;  %v18439_v39 = vpop.f32.mrf.mxu1 }
 0x29e   : > { %v14960_v9 = vpop.f32.mrf.mxu0  ;;  %v3683_v30 = vadd.f32 %v18287_v17, %v21238_v46  ;;  %v16088_v17 = vld [vmem:[%s20985_s3 + $0xc0] ss:$24 sps:$4 sm:$0xff]  }
 0x29f   : > { %v4897_v13 = vmax.f32 %v4813_v11, 0.0  ;;  %v4811_v22 = vadd.f32 %v18092_v23, %v4552_v32  ;;  %v4557_v43 = vadd.f32 %v14960_v9, %v3679_v50  ;;  %v2804_v38 = vadd.f32 %v21240_v18, %v1926_v45  ;;  %v21245_v28 = vld [vmem:[#allocation36_spill] sm:$0xff] }
 0x2a0   : > { %v4316_v3 = vpop.f32.mrf.mxu0  ;;  %v3685_v45 = vadd.f32 %v18354_v35, %v21245_v28  ;;  %v16096_v35 = vld [vmem:[%s20985_s3 + $0x124] ss:$24 sps:$4 sm:$0xff]  }
 0x2a1   : > { %v4895_v36 = vmax.f32 %v4811_v22, 0.0  ;;  %v4555_v47 = vadd.f32 %v4316_v3, %v3677_v29  ;;  %v18416_v44 = vpack.c.bf16 %v4897_v13, %v4896_v54  ;;  %v4816_v51 = vadd.f32 %v18092_v23, %v4557_v43  ;;  %v21241_v29 = vld [vmem:[#allocation31_spill] sm:$0xff] }
 0x2a2   : > { %v14961_v1 = vpop.f32.mrf.mxu0  ;;  %v3684_v26 = vadd.f32 %v18311_v53, %v21241_v29 }
 0x2a3   : > { %v4558_v10 = vadd.f32 %v14961_v1, %v3680_v8  ;;  %5402 = vmatmul.mubr.bf16.gmra.mxu1 %v16085_v40  ;;  %v18420_v48 = vpack.c.bf16 %v4895_v36, %v4894_v60  ;;  %v4814_v25 = vadd.f32 %v18092_v23, %v4555_v47  ;;  %v4900_v16 = vmax.f32 %v4816_v51, 0.0  ;;  %v21243_v60 = vld [vmem:[#allocation39_spill] sm:$0xff]  ;;  %v18448_v47 = vpop.f32.mrf.mxu1 }
 0x2a4   : > { %v4319_v6 = vpop.f32.mrf.mxu0  ;;  %5409 = vmatprep.mubr.bf16.mxu1 %v16090_v21  ;;  %v3682_v40 = vadd.f32 %v18327_v63, %v2804_v38  ;;  %v21242_v21 = vld [vmem:[#allocation38_spill] sm:$0xff] }
 0x2a5   : > { %v4817_v5 = vadd.f32 %v18092_v23, %v4558_v10  ;;  %v4556_v42 = vadd.f32 %v4319_v6, %v3678_v34  ;;  %v4898_v54 = vmax.f32 %v4814_v25, 0.0  ;;  %v1930_v36 = vadd.f32 %v21243_v60, %v21242_v21  ;;  %v21244_v34 = vld [vmem:[#allocation35_spill] sm:$0xff]  ;;  %v3502_v18 = vpop.f32.mrf.mxu1 }
 0x2a6   : > { %v14964_v50 = vpop.f32.mrf.mxu0  ;;  %v3687_v51 = vadd.f32 %v18340_v12, %v21244_v34  ;;  %v21246_v6 = vld [vmem:[#allocation83_spill] sm:$0xff]  ;;  %v16091_v12 = vld [vmem:[%s20985_s3 + $0xf0] ss:$24 sps:$4 sm:$0xff]  }
 0x2a7   : > { %v4901_v11 = vmax.f32 %v4817_v5, 0.0  ;;  %v4815_v32 = vadd.f32 %v18092_v23, %v4556_v42  ;;  %v4561_v2 = vadd.f32 %v14964_v50, %v3683_v30  ;;  %v2808_v46 = vadd.f32 %v21246_v6, %v1930_v36  ;;  %v21253_v34 = vld [vmem:[#allocation42_spill] sm:$0xff] }
 0x2a8   : > { %v4332_v9 = vpop.f32.mrf.mxu0 }
 0x2a9   : > { %v4899_v13 = vmax.f32 %v4815_v32, 0.0  ;;  %v4559_v22 = vadd.f32 %v4332_v9, %v3681_v7  ;;  %v4953_v43 = vpack.c.bf16 %v4901_v11, %v4900_v16  ;;  %v4820_v8 = vadd.f32 %v18092_v23, %v4561_v2  ;;  %v21249_v9 = vld [vmem:[#allocation44_spill] sm:$0xff] }
 0x2aa   : > { %v14965_v57 = vpop.f32.mrf.mxu0  ;;  %v3688_v7 = vadd.f32 %v18368_v14, %v21247_v0  ;;  %v21256_v0 = vld [vmem:[#allocation45_spill] sm:$0xff] }
 0x2ab   : > { %v4562_v3 = vadd.f32 %v14965_v57, %v3684_v26  ;;  %5410 = vmatmul.mubr.bf16.gmra.mxu1 %v16088_v17  ;;  %13957 = vmatprep.subr.bf16.mxu1 %v4953_v43  ;;  %v4952_v53 = vpack.c.bf16 %v4899_v13, %v4898_v54  ;;  %v4818_v63 = vadd.f32 %v18092_v23, %v4559_v22  ;;  %v4904_v25 = vmax.f32 %v4820_v8, 0.0  ;;  %v14891_v54 = vpop.f32.mrf.mxu1  ;;  %v21250_v22 = vld [vmem:[#allocation40_spill] sm:$0xff]  ;;  %v21251_v57 = vld [vmem:[#allocation41_spill] sm:$0xff] }
 0x2ac   : > { %v4335_v1 = vpop.f32.mrf.mxu0  ;;  %13958 = vmatpush3.bf16.msra.mxu1 %v18333_v58  ;;  %5417 = vmatprep.mubr.bf16.mxu1 %v16093_v41  ;;  %v3686_v17 = vadd.f32 %v18383_v15, %v2808_v46  ;;  %v3689_v8 = vadd.f32 %v18411_v49, %v21251_v57  ;;  %v16099_v49 = vld [vmem:[%s20985_s3 + $0x154] ss:$24 sps:$4 sm:$0xff]  }
 0x2ad   : > { %v4821_v10 = vadd.f32 %v18092_v23, %v4562_v3  ;;  %v4560_v31 = vadd.f32 %v4335_v1, %v3682_v40  ;;  %13959 = vmatprep.subr.bf16.mxu1 %v4952_v53  ;;  %v4902_v50 = vmax.f32 %v4818_v63, 0.0  ;;  %v21252_v3 = vld [vmem:[#allocation84_spill] sm:$0xff]  ;;  %v3505_v63 = vpop.f32.mrf.mxu1 }
 0x2ae   : > { %v14968_v30 = vpop.f32.mrf.mxu0 }
 0x2af   : > { %v4905_v5 = vmax.f32 %v4821_v10, 0.0  ;;  %v4819_v58 = vadd.f32 %v18092_v23, %v4560_v31  ;;  %v4565_v42 = vadd.f32 %v14968_v30, %v3687_v51  ;;  %v3692_v51 = vadd.f32 %v18424_v24, %v21253_v34  ;;  %v21263_v34 = vld [vmem:[#allocation51_spill] sm:$0xff] }
 0x2b0   : > { %v4348_v38 = vpop.f32.mrf.mxu0  ;;  %13960 = vmatpush3.bf16.msra.mxu1 %v18337_v59  ;;  %v21248_v59 = vld [vmem:[#allocation43_spill] sm:$0xff] }
 0x2b1   : > { %v18468_v16 = vpack.c.bf16 %v4905_v5, %v4904_v25  ;;  %v4903_v11 = vmax.f32 %v4819_v58, 0.0  ;;  %v4563_v32 = vadd.f32 %v4348_v38, %v3685_v45  ;;  %13961 = vmatprep.subr.bf16.mxu1 %v18416_v44  ;;  %v4824_v14 = vadd.f32 %v18092_v23, %v4565_v42  ;;  %v21255_v5 = vld [vmem:[#allocation49_spill] sm:$0xff]  ;;  %v14894_v42 = vpop.f32.mrf.mxu1 }
 0x2b2   : > { %v14969_v2 = vpop.f32.mrf.mxu0  ;;  %v1934_v41 = vadd.f32 %v21249_v9, %v21248_v59  ;;  %v3691_v44 = vadd.f32 %v18396_v20, %v21250_v22  ;;  %v16094_v20 = vld [vmem:[%s20985_s3 + $0x120] ss:$24 sps:$4 sm:$0xff]  }
 0x2b3   : > { %v18472_v29 = vpack.c.bf16 %v4903_v11, %v4902_v50  ;;  %v4566_v26 = vadd.f32 %v14969_v2, %v3688_v7  ;;  %5418 = vmatmul.mubr.bf16.gmra.mxu1 %v16091_v12  ;;  %v4822_v43 = vadd.f32 %v18092_v23, %v4563_v32  ;;  %v4908_v60 = vmax.f32 %v4824_v14, 0.0  ;;  %v21258_v11 = vld [vmem:[#allocation85_spill] sm:$0xff]  ;;  %v21259_v59 = vld [vmem:[#allocation47_spill] sm:$0xff] }
 0x2b4   : > { %v4351_v13 = vpop.f32.mrf.mxu0  ;;  %13962 = vmatpush3.bf16.msra.mxu1 %v18303_v27  ;;  %5425 = vmatprep.mubr.bf16.mxu1 %v16096_v35  ;;  %v2812_v53 = vadd.f32 %v21252_v3, %v1934_v41  ;;  %v21257_v35 = vld [vmem:[#allocation46_spill] sm:$0xff]  ;;  %v3696_v9 = vadd.f32 %v14891_v54, %v21259_v59  ;;  %v3518_v41 = vpop.f32.mrf.mxu1  ;;  %v16620_v54 = vld [vmem:[%s20984_s2] ss:$0 sm:$0xff] }
 0x2b5   : > { %v4825_v15 = vadd.f32 %v18092_v23, %v4566_v26  ;;  %v4564_v40 = vadd.f32 %v4351_v13, %v3686_v17  ;;  %13963 = vmatprep.subr.bf16.mxu1 %v18420_v48  ;;  %v4906_v10 = vmax.f32 %v4822_v43, 0.0  ;;  %v3693_v50 = vadd.f32 %v3502_v18, %v21257_v35  ;;  %v21261_v3 = vld [vmem:[#allocation54_spill] sm:$0xff] }
 0x2b6   : > { %v14972_v21 = vpop.f32.mrf.mxu0  ;;  %v3690_v46 = vadd.f32 %v18439_v39, %v2812_v53 }
 0x2b7   : > { %v4909_v36 = vmax.f32 %v4825_v15, 0.0  ;;  %v4823_v27 = vadd.f32 %v18092_v23, %v4564_v40  ;;  %v4569_v1 = vadd.f32 %v14972_v21, %v3691_v44  ;;  %v14895_v21 = vpop.f32.mrf.mxu1 }
 0x2b8   : > { %v4364_v48 = vpop.f32.mrf.mxu0  ;;  %13964 = vmatpush3.bf16.msra.mxu1 %v18308_v33  ;;  %v21254_v33 = vld [vmem:[#allocation48_spill] sm:$0xff] }
 0x2b9   : > { %v18496_v31 = vpack.c.bf16 %v4909_v36, %v4908_v60  ;;  %v4907_v28 = vmax.f32 %v4823_v27, 0.0  ;;  %v4567_v45 = vadd.f32 %v4364_v48, %v3689_v8  ;;  %13965 = vmatprep.subr.bf16.mxu1 %v18388_v52  ;;  %v4828_v24 = vadd.f32 %v18092_v23, %v4569_v1  ;;  %v21260_v8 = vld [vmem:[#allocation53_spill] sm:$0xff] }
 0x2ba   : > { %v14973_v6 = vpop.f32.mrf.mxu0  ;;  %v1938_v58 = vadd.f32 %v21255_v5, %v21254_v33  ;;  %v3695_v52 = vadd.f32 %v18448_v47, %v21256_v0  ;;  %v16097_v47 = vld [vmem:[%s20985_s3 + $0x150] ss:$24 sps:$4 sm:$0xff]   ;;  %v1942_v53 = vadd.f32 %v21261_v3, %v21260_v8  ;;  %v16630_v0 = vmov 0   ;;  %v16135_v3 = vld [vmem:[%s20985_s3 + $0x1bc] ss:$24 sps:$4 sm:$0xff]  }
 0x2bb   : > { %v18500_v30 = vpack.c.bf16 %v4907_v28, %v4906_v10  ;;  %v4570_v25 = vadd.f32 %v14973_v6, %v3692_v51  ;;  %5426 = vmatmul.mubr.bf16.gmra.mxu1 %v16094_v20  ;;  %v4826_v7 = vadd.f32 %v18092_v23, %v4567_v45  ;;  %v4912_v17 = vmax.f32 %v4828_v24, 0.0  ;;  %v16130_v8 = vld [vmem:[%s20985_s3 + $0x188] ss:$24 sps:$4 sm:$0xff]  }
 0x2bc   : > { %v4367_v12 = vpop.f32.mrf.mxu0  ;;  %13966 = vmatpush3.bf16.msra.mxu1 %v18279_v56  ;;  %5433 = vmatprep.mubr.bf16.mxu1 %v16099_v49  ;;  %v2816_v32 = vadd.f32 %v21258_v11, %v1938_v58  ;;  %v3697_v51 = vadd.f32 %v3518_v41, %v21263_v34  ;;  %v16147_v34 = vld [vmem:[%s20985_s3 + $0xa0] ss:$24 sps:$4 sm:$0xff]  }
 0x2bd   : > { %v4829_v39 = vadd.f32 %v18092_v23, %v4570_v25  ;;  %v4568_v38 = vadd.f32 %v4367_v12, %v3690_v46  ;;  %13967 = vmatprep.subr.bf16.mxu1 %v18392_v4  ;;  %v16102_v4 = vld [vmem:[%s20985_s3 + $0x184] ss:$24 sps:$4 sm:$0xff]   ;;  %v4910_v18 = vmax.f32 %v4826_v7, 0.0  ;;  %v3521_v25 = vpop.f32.mrf.mxu1 }
 0x2be   : > { %v14976_v2 = vpop.f32.mrf.mxu0  ;;  %v3694_v15 = vadd.f32 %v3505_v63, %v2816_v32  ;;  %v21264_v63 = vld [vmem:[#allocation86_spill] sm:$0xff]  ;;  %v21265_v46 = vld [vmem:[#allocation52_spill] sm:$0xff] }
 0x2bf   : > { %v4913_v14 = vmax.f32 %v4829_v39, 0.0  ;;  %v4827_v56 = vadd.f32 %v18092_v23, %v4568_v38  ;;  %v4573_v26 = vadd.f32 %v14976_v2, %v3695_v52  ;;  %v2820_v48 = vadd.f32 %v21264_v63, %v1942_v53  ;;  %v16133_v53 = vld [vmem:[%s20985_s3 + $0x1b8] ss:$24 sps:$4 sm:$0xff]  }
 0x2c0   : > { %v4380_v13 = vpop.f32.mrf.mxu0  ;;  %13968 = vmatpush3.bf16.msra.mxu1 %v18284_v19  ;;  %v3700_v24 = vadd.f32 %v14895_v21, %v21265_v46  ;;  %v16138_v21 = vld [vmem:[%s20985_s3 + $0x14] ss:$24 sps:$4 sm:$0xff]   ;;  %v16150_v63 = vld [vmem:[%s20985_s3 + $0xd0] ss:$24 sps:$4 sm:$0xff]  }
 0x2c1   : > { %v18522_v22 = vpack.c.bf16 %v4913_v14, %v4912_v17  ;;  %v4911_v44 = vmax.f32 %v4827_v56, 0.0  ;;  %v4571_v23 = vadd.f32 %v4380_v13, %v3693_v50  ;;  %13969 = vmatprep.subr.bf16.mxu1 %v18359_v55  ;;  %v4832_v19 = vadd.f32 %v16620_v54, %v4573_v26  ;;  %v21262_v55 = vld [vmem:[#allocation50_spill] sm:$0xff]  ;;  %v16108_v26 = vld [vmem:[%s20985_s3 + $0xc] ss:$24 sps:$4 sm:$0xff]   ;;  %v16106_v13 = vld [vmem:[%s20985_s3 + $0x8] ss:$24 sps:$4 sm:$0xff]  }
 0x2c2   : > { %v14977_v43 = vpop.f32.mrf.mxu0  ;;  %v3699_v36 = vadd.f32 %v14894_v42, %v21262_v55  ;;  %v3698_v7 = vadd.f32 %v3521_v25, %v2820_v48  ;;  %v16103_v56 = vld [vmem:[%s20985_s3 + $0x1b0] ss:$24 sps:$4 sm:$0xff]   ;;  %v16139_v55 = vld [vmem:[%s20985_s3 + $0x44] ss:$24 sps:$4 sm:$0xff]  }
 0x2c3   : > { %v18525_v40 = vpack.c.bf16 %v4911_v44, %v4910_v18  ;;  %v4574_v57 = vadd.f32 %v14977_v43, %v3696_v9  ;;  %5434 = vmatmul.mubr.bf16.gmra.mxu1 %v16097_v47  ;;  %v4830_v27 = vadd.f32 %v16620_v54, %v4571_v23  ;;  %v4916_v10 = vmax.f32 %v4832_v19, 0.0  ;;  %v16109_v18 = vld [vmem:[%s20985_s3 + $0x38] ss:$24 sps:$4 sm:$0xff]   ;;  %v16114_v44 = vld [vmem:[%s20985_s3 + $0x6c] ss:$24 sps:$4 sm:$0xff]  }
 0x2c4   : > { %v4383_v60 = vpop.f32.mrf.mxu0  ;;  %13970 = vmatpush3.bf16.msra.mxu1 %v18255_v61  ;;  %5441 = vmatprep.mubr.bf16.mxu1 %v16102_v4  ;;  %v16100_v61 = vld [vmem:[%s20985_s3 + $0x180] ss:$24 sps:$4 sm:$0xff]   ;;  %v16111_v4 = vld [vmem:[%s20985_s3 + $0x3c] ss:$24 sps:$4 sm:$0xff]  }
 0x2c5   : > { %v4833_v1 = vadd.f32 %v16620_v54, %v4574_v57  ;;  %v4572_v20 = vadd.f32 %v4383_v60, %v3694_v15  ;;  %13971 = vmatprep.subr.bf16.mxu1 %v18364_v62  ;;  %v16105_v62 = vld [vmem:[%s20985_s3 + $0x1b4] ss:$24 sps:$4 sm:$0xff]   ;;  %v4914_v5 = vmax.f32 %v4830_v27, 0.0  ;;  %v16112_v23 = vld [vmem:[%s20985_s3 + $0x68] ss:$24 sps:$4 sm:$0xff]  }
 0x2c6   : > { %v14980_v49 = vpop.f32.mrf.mxu0  ;;  %v16117_v43 = vld [vmem:[%s20985_s3 + $0x9c] ss:$24 sps:$4 sm:$0xff]   ;;  %v16120_v15 = vld [vmem:[%s20985_s3 + $0xcc] ss:$24 sps:$4 sm:$0xff]   ;;  %v16127_v19 = vld [vmem:[%s20985_s3 + $0x158] ss:$24 sps:$4 sm:$0xff]  }
 0x2c7   : > { %v4917_v28 = vmax.f32 %v4833_v1, 0.0  ;;  %v4831_v45 = vadd.f32 %v16620_v54, %v4572_v20  ;;  %v4577_v6 = vadd.f32 %v14980_v49, %v3699_v36  ;;  %v16132_v57 = vld [vmem:[%s20985_s3 + $0x18c] ss:$24 sps:$4 sm:$0xff]   ;;  %v16136_v60 = vld [vmem:[%s20985_s3 + $0x10] ss:$24 sps:$4 sm:$0xff]  }
 0x2c8   : > { %v4396_v33 = vpop.f32.mrf.mxu0  ;;  %13972 = vmatpush3.bf16.msra.mxu1 %v18260_v37  ;;  %v16141_v36 = vld [vmem:[%s20985_s3 + $0x40] ss:$24 sps:$4 sm:$0xff]   ;;  %v16142_v27 = vld [vmem:[%s20985_s3 + $0x74] ss:$24 sps:$4 sm:$0xff]   ;;  %v16144_v1 = vld [vmem:[%s20985_s3 + $0x70] ss:$24 sps:$4 sm:$0xff]  }
 0x2c9   : > { %v4961_v58 = vpack.c.bf16 %v4917_v28, %v4916_v10  ;;  %v4915_v42 = vmax.f32 %v4831_v45, 0.0  ;;  %v4575_v12 = vadd.f32 %v4396_v33, %v3697_v51  ;;  %5571 = vmatprep.subr.bf16.mxu1 %v16630_v0  ;;  %v4836_v38 = vadd.f32 %v16620_v54, %v4577_v6  ;;  %v16145_v20 = vld [vmem:[%s20985_s3 + $0xa4] ss:$24 sps:$4 sm:$0xff]   ;;  %v16148_v51 = vld [vmem:[%s20985_s3 + $0xd4] ss:$24 sps:$4 sm:$0xff]  }
 0x2ca   : > { %v14981_v52 = vpop.f32.mrf.mxu0  ;;  %v16151_v48 = vld [vmem:[%s20985_s3 + $0x104] ss:$24 sps:$4 sm:$0xff]   ;;  %v16153_v6 = vld [vmem:[%s20985_s3 + $0x100] ss:$24 sps:$4 sm:$0xff]  }
 0x2cb   : > { %v4960_v39 = vpack.c.bf16 %v4915_v42, %v4914_v5  ;;  %v4578_v35 = vadd.f32 %v14981_v52, %v3700_v24  ;;  %5442 = vmatmul.mubr.bf16.gmra.mxu1 %v16100_v61  ;;  %v4834_v11 = vadd.f32 %v16620_v54, %v4575_v12  ;;  %v4920_v2 = vmax.f32 %v4836_v38, 0.0  ;;  %v16154_v61 = vld [vmem:[%s20985_s3 + $0x134] ss:$24 sps:$4 sm:$0xff]   ;;  %v16157_v42 = vld [vmem:[%s20985_s3 + $0x164] ss:$24 sps:$4 sm:$0xff]  }
 0x2cc   : > { %v4399_v50 = vpop.f32.mrf.mxu0  ;;  %5449 = vmatprep.mubr.bf16.mxu1 %v16105_v62 }
 0x2cd   : > { %v4837_v37 = vadd.f32 %v16620_v54, %v4578_v35  ;;  %v4576_v32 = vadd.f32 %v4399_v50, %v3698_v7  ;;  %v4918_v47 = vmax.f32 %v4834_v11, 0.0  ;;  %v16159_v35 = vld [vmem:[%s20985_s3 + $0x160] ss:$24 sps:$4 sm:$0xff]   ;;  %v16160_v50 = vld [vmem:[%s20985_s3 + $0x194] ss:$24 sps:$4 sm:$0xff]  }
 0x2cf   : > { %v4921_v17 = vmax.f32 %v4837_v37, 0.0  ;;  %v4835_v14 = vadd.f32 %v16620_v54, %v4576_v32  ;;  %v16129_v54 = vld [vmem:[%s20985_s3 + $0x15c] ss:$24 sps:$4 sm:$0xff]  }
 0x2d1   : > { %v4963_v59 = vpack.c.bf16 %v4921_v17, %v4920_v2  ;;  %v4919_v9 = vmax.f32 %v4835_v14, 0.0  ;;  %v16162_v14 = vld [vmem:[%s20985_s3 + $0x190] ss:$24 sps:$4 sm:$0xff]  }
 0x2d3   : > { %v4962_v41 = vpack.c.bf16 %v4919_v9, %v4918_v47  ;;  %5450 = vmatmul.mubr.bf16.gmra.mxu1 %v16103_v56  ;;  %v16166_v56 = vld [vmem:[%s20986_s4 + $0x78] sm:$0xff]  }
 0x2d4   : > { %5490 = vmatprep.mubr.bf16.mxu1 %v16108_v26  ;;  %v16167_v26 = vld [vmem:[%s20986_s4 + $0xf8] sm:$0xff]   ;;  %14982 = vmatprep.subr.bf16.mxu0 %v16166_v56 }
 0x2d5   : > { %v16163_v47 = vld [vmem:[%s20985_s3 + $0x1c4] ss:$24 sps:$4 sm:$0xff]   ;;  %14983 = vmatpush3.bf16.msra.mxu0 %v16166_v56 }
 0x2db   : > { %5491 = vmatmul.mubr.bf16.vlgmr.msra.gmra.mxu1 %v16106_v13  ;;  %v16169_v13 = vld [vmem:[%s20986_s4 + $0xf0] sm:$0xff]  }
 0x2dc   : > { %5572 = vmatpush1.bf16.msra.mxu1 %v4961_v58  ;;  %5498 = vmatprep.mubr.bf16.mxu1 %v16111_v4  ;;  %v16156_v58 = vld [vmem:[%s20985_s3 + $0x130] ss:$24 sps:$4 sm:$0xff]  }
 0x2dd   : > { %5573 = vmatprep.subr.bf16.mxu1 %v16630_v0 }
 0x2e0   : > { %5574 = vmatpush1.bf16.msra.mxu1 %v4960_v39 }
 0x2e1   : > { %5575 = vmatprep.subr.bf16.mxu1 %v16630_v0 }
 0x2e3   : > { %5499 = vmatmul.mubr.bf16.gmra.mxu1 %v16109_v18 }
 0x2e4   : > { %5576 = vmatpush1.bf16.msra.mxu1 %v18522_v22  ;;  %5506 = vmatprep.mubr.bf16.mxu1 %v16114_v44  ;;  %v16115_v22 = vld [vmem:[%s20985_s3 + $0x98] ss:$24 sps:$4 sm:$0xff]  }
 0x2e5   : > { %5577 = vmatprep.subr.bf16.mxu1 %v16630_v0 }
 0x2e8   : > { %5578 = vmatpush1.bf16.msra.mxu1 %v18525_v40  ;;  %v16126_v40 = vld [vmem:[%s20985_s3 + $0x12c] ss:$24 sps:$4 sm:$0xff]  }
 0x2e9   : > { %5579 = vmatprep.subr.bf16.mxu1 %v16630_v0 }
 0x2eb   : > { %5507 = vmatmul.mubr.bf16.gmra.mxu1 %v16112_v23  ;;  %v16165_v23 = vld [vmem:[%s20985_s3 + $0x1c0] ss:$24 sps:$4 sm:$0xff]  }
 0x2ec   : > { %5580 = vmatpush1.bf16.msra.mxu1 %v18496_v31  ;;  %5514 = vmatprep.mubr.bf16.mxu1 %v16117_v43  ;;  %v16118_v31 = vld [vmem:[%s20985_s3 + $0xc8] ss:$24 sps:$4 sm:$0xff]  }
 0x2ed   : > { %5581 = vmatprep.subr.bf16.mxu1 %v16630_v0  ;;  %v16170_v43 = vld [vmem:[%s20986_s4 + $0x68] sm:$0xff]  }
 0x2f0   : > { %5582 = vmatpush1.bf16.msra.mxu1 %v18500_v30  ;;  %v16123_v30 = vld [vmem:[%s20985_s3 + $0xfc] ss:$24 sps:$4 sm:$0xff]  }
 0x2f1   : > { %5583 = vmatprep.subr.bf16.mxu1 %v16630_v0 }
 0x2f3   : > { %5515 = vmatmul.mubr.bf16.gmra.mxu1 %v16115_v22  ;;  %v16171_v22 = vld [vmem:[%s20986_s4 + $0xe8] sm:$0xff]  }
 0x2f4   : > { %5584 = vmatpush1.bf16.msra.mxu1 %v18468_v16  ;;  %5522 = vmatprep.mubr.bf16.mxu1 %v16120_v15  ;;  %v16121_v16 = vld [vmem:[%s20985_s3 + $0xf8] ss:$24 sps:$4 sm:$0xff]  }
 0x2f5   : > { %5585 = vmatprep.subr.bf16.mxu1 %v16630_v0 }
 0x2f8   : > { %5586 = vmatpush1.bf16.msra.mxu1 %v18472_v29  ;;  %v16124_v29 = vld [vmem:[%s20985_s3 + $0x128] ss:$24 sps:$4 sm:$0xff]  }
 0x2f9   : > { %5599 = vmatprep.subr.bf16.mxu1 %v16630_v0 }
 0x2fb   : > { %5523 = vmatmul.mubr.bf16.gmra.mxu1 %v16118_v31 }
 0x2fc   : > { %5600 = vmatpush2.bf16.msra.mxu1 %v4963_v59  ;;  %5530 = vmatprep.mubr.bf16.mxu1 %v16123_v30  ;;  %v16172_v30 = vld [vmem:[%s20986_s4 + $0x60] sm:$0xff]  }
 0x2fd   : > { %5601 = vmatprep.subr.bf16.mxu1 %v16630_v0 }
 0x300   : > { %5602 = vmatpush2.bf16.msra.mxu1 %v4962_v41  ;;  %v16168_v41 = vld [vmem:[%s20986_s4 + $0x70] sm:$0xff]  }
 0x301   : > { %15066 = vmatprep.subr.bf16.mxu1 %v16167_v26  ;;  %14984 = vmatprep.subr.bf16.mxu0 %v16168_v41 }
 0x302   : > { %14985 = vmatpush3.bf16.msra.mxu0 %v16168_v41 }
 0x303   : > { %5531 = vmatmul.mubr.bf16.gmra.mxu1 %v16121_v16  ;;  %14986 = vmatprep.subr.bf16.mxu0 %v16170_v43  ;;  %v16173_v16 = vld [vmem:[%s20986_s4 + $0xe0] sm:$0xff]  }
 0x304   : > { %5538 = vmatprep.mubr.bf16.mxu1 %v16126_v40 }
 0x306   : > { %14987 = vmatpush3.bf16.msra.mxu0 %v16170_v43 }
 0x307   : > { %14988 = vmatprep.subr.bf16.mxu0 %v16172_v30 }
 0x30a   : > { %14989 = vmatpush3.bf16.msra.mxu0 %v16172_v30 }
 0x30b   : > { %5539 = vmatmul.mubr.bf16.gmra.mxu1 %v16124_v29 }
 0x30c   : > { %5546 = vmatprep.mubr.bf16.mxu1 %v16129_v54 }
 0x313   : > { %5547 = vmatmul.mubr.bf16.gmra.mxu1 %v16127_v19  ;;  %v16174_v19 = vld [vmem:[%s20986_s4 + $0x58] sm:$0xff]  }
 0x314   : > { %5554 = vmatprep.mubr.bf16.mxu1 %v16132_v57  ;;  %v16175_v57 = vld [vmem:[%s20986_s4 + $0xd8] sm:$0xff]   ;;  %14990 = vmatprep.subr.bf16.mxu0 %v16174_v19 }
 0x315   : > { %14991 = vmatpush3.bf16.msra.mxu0 %v16174_v19 }
 0x31b   : > { %5555 = vmatmul.mubr.bf16.gmra.mxu1 %v16130_v8 }
 0x31c   : > { %5562 = vmatprep.mubr.bf16.mxu1 %v16135_v3 }
 0x323   : > { %5563 = vmatmul.mubr.bf16.gmra.mxu1 %v16133_v53  ;;  %v16176_v53 = vld [vmem:[%s20986_s4 + $0x50] sm:$0xff]  }
 0x324   : > { %12681 = vmatprep.mubr.msk.bf16.mxu1 %vm5314_vm2, %v16138_v21  ;;  %v16177_v21 = vld [vmem:[%s20986_s4 + $0xd0] sm:$0xff]   ;;  %14992 = vmatprep.subr.bf16.mxu0 %v16176_v53 }
 0x325   : > { %14993 = vmatpush3.bf16.msra.mxu0 %v16176_v53 }
 0x32b   : > { %5604 = vmatmul.mubr.bf16.vlgmr.msra.gmra.mxu1 %v16136_v60 }
 0x32c   : > { %12682 = vmatprep.mubr.msk.bf16.mxu1 %vm5314_vm2, %v16139_v55  ;;  %15067 = vmatpush3.bf16.msra.mxu1 %v16167_v26 }
 0x32d   : > { %15068 = vmatprep.subr.bf16.mxu1 %v16169_v13 }
 0x330   : > { %15069 = vmatpush3.bf16.msra.mxu1 %v16169_v13 }
 0x331   : > { %15070 = vmatprep.subr.bf16.mxu1 %v16171_v22 }
 0x333   : > { %5612 = vmatmul.mubr.bf16.gmra.mxu1 %v16141_v36 }
 0x334   : > { %12683 = vmatprep.mubr.msk.bf16.mxu1 %vm5314_vm2, %v16142_v27  ;;  %15071 = vmatpush3.bf16.msra.mxu1 %v16171_v22  ;;  %v16178_v27 = vld [vmem:[%s20986_s4 + $0x48] sm:$0xff]  }
 0x335   : > { %15072 = vmatprep.subr.bf16.mxu1 %v16173_v16  ;;  %14994 = vmatprep.subr.bf16.mxu0 %v16178_v27 }
 0x336   : > { %14995 = vmatpush3.bf16.msra.mxu0 %v16178_v27 }
 0x338   : > { %15073 = vmatpush3.bf16.msra.mxu1 %v16173_v16 }
 0x339   : > { %15074 = vmatprep.subr.bf16.mxu1 %v16175_v57 }
 0x33b   : > { %5620 = vmatmul.mubr.bf16.gmra.mxu1 %v16144_v1  ;;  %v16179_v1 = vld [vmem:[%s20986_s4 + $0xc8] sm:$0xff]  }
 0x33c   : > { %12684 = vmatprep.mubr.msk.bf16.mxu1 %vm5314_vm2, %v16145_v20  ;;  %15075 = vmatpush3.bf16.msra.mxu1 %v16175_v57 }
 0x33d   : > { %15076 = vmatprep.subr.bf16.mxu1 %v16177_v21 }
 0x340   : > { %15077 = vmatpush3.bf16.msra.mxu1 %v16177_v21 }
 0x341   : > { %15078 = vmatprep.subr.bf16.mxu1 %v16179_v1 }
 0x343   : > { %5628 = vmatmul.mubr.bf16.gmra.mxu1 %v16147_v34 }
 0x344   : > { %12685 = vmatprep.mubr.msk.bf16.mxu1 %vm5314_vm2, %v16148_v51  ;;  %15079 = vmatpush3.bf16.msra.mxu1 %v16179_v1  ;;  %v16180_v51 = vld [vmem:[%s20986_s4 + $0x40] sm:$0xff]  }
 0x345   : > { %14996 = vmatprep.subr.bf16.mxu0 %v16180_v51 }
 0x346   : > { %14997 = vmatpush3.bf16.msra.mxu0 %v16180_v51 }
 0x34b   : > { %v13897_v49 = vpop.f32.mrf.mxu1  ;;  %5636 = vmatmul.mubr.bf16.gmra.mxu1 %v16150_v63  ;;  %v16181_v63 = vld [vmem:[%s20986_s4 + $0xc0] sm:$0xff]  }
 0x34c   : > { %12686 = vmatprep.mubr.msk.bf16.mxu1 %vm5314_vm2, %v16151_v48  ;;  %15080 = vmatprep.subr.bf16.mxu1 %v16181_v63 }
 0x34d   : > { %v13898_v10 = vpop.f32.mrf.mxu1  ;;  %15081 = vmatpush3.bf16.msra.mxu1 %v16181_v63 }
 0x34e   : > { %v18653_v28 = vadd.f32 %v13898_v10, %v13897_v49 }
 0x34f   : > { %v13900_v45 = vpop.f32.mrf.mxu1 }
 0x351   : > { %v13901_v46 = vpop.f32.mrf.mxu1 }
 0x352   : > { %v18661_v24 = vadd.f32 %v13901_v46, %v13900_v45 }
 0x353   : > { %v13903_v25 = vpop.f32.mrf.mxu1  ;;  %5644 = vmatmul.mubr.bf16.gmra.mxu1 %v16153_v6 }
 0x354   : > { %12687 = vmatprep.mubr.msk.bf16.mxu1 %vm5314_vm2, %v16154_v61 }
 0x355   : > { %v13904_v33 = vpop.f32.mrf.mxu1 }
 0x356   : > { %v18664_v62 = vadd.f32 %v13904_v33, %v13903_v25  ;;  %v18781_v25 = vld [vmem:[%s20986_s4 + $0x38] sm:$0xff]  }
 0x357   : > { %v13906_v5 = vpop.f32.mrf.mxu1  ;;  %v18786_v33 = vld [vmem:[%s20986_s4 + $0x178] sm:$0xff]   ;;  %15010 = vmatprep.subr.bf16.mxu0 %v18781_v25 }
 0x358   : > { %15122 = vmatprep.subr.bf16.mxu1 %v18786_v33 }
 0x359   : > { %v13907_v12 = vpop.f32.mrf.mxu1 }
 0x35a   : > { %v18672_v0 = vadd.f32 %v13907_v12, %v13906_v5 }
 0x35b   : > { %v13909_v52 = vpop.f32.mrf.mxu1  ;;  %5652 = vmatmul.mubr.bf16.gmra.mxu1 %v16156_v58 }
 0x35c   : > { %12688 = vmatprep.mubr.msk.bf16.mxu1 %vm5314_vm2, %v16157_v42 }
 0x35d   : > { %v13910_v7 = vpop.f32.mrf.mxu1 }
 0x35e   : > { %v18675_v39 = vadd.f32 %v13910_v7, %v13909_v52 }
 0x35f   : > { %v18677_v38 = vpop.f32.mrf.mxu1 }
 0x361   : > { %v18685_v11 = vpop.f32.mrf.mxu1 }
 0x363   : > { %v13915_v37 = vpop.f32.mrf.mxu1  ;;  %5660 = vmatmul.mubr.bf16.gmra.mxu1 %v16159_v35 }
 0x364   : > { %12689 = vmatprep.mubr.msk.bf16.mxu1 %vm5314_vm2, %v16160_v50 }
 0x365   : > { %v13916_v32 = vpop.f32.mrf.mxu1 }
 0x366   : > { %v18688_v2 = vadd.f32 %v13916_v32, %v13915_v37 }
 0x367   : > { %v18690_v17 = vpop.f32.mrf.mxu1 }
 0x369   : > { %v18704_v59 = vpop.f32.mrf.mxu1 }
 0x36a   : > { %v13920_v51 = vadd.f32 %v18704_v59, %v18690_v17 }
 0x36b   : > { %v13921_v9 = vpop.f32.mrf.mxu1  ;;  %5668 = vmatmul.mubr.bf16.gmra.mxu1 %v16162_v14 }
 0x36c   : > { %12690 = vmatprep.mubr.msk.bf16.mxu1 %vm5314_vm2, %v16163_v47 }
 0x36d   : > { %v13922_v4 = vpop.f32.mrf.mxu1 }
 0x36e   : > { %v18713_v18 = vadd.f32 %v13922_v4, %v13921_v9 }
 0x36f   : > { %v18715_v44 = vpop.f32.mrf.mxu1 }
 0x371   : > { %v18726_v15 = vpop.f32.mrf.mxu1 }
 0x373   : > { %v13927_v31 = vpop.f32.mrf.mxu1  ;;  %5676 = vmatmul.mubr.bf16.gmra.mxu1 %v16165_v23 }
 0x375   : > { %v13928_v40 = vpop.f32.mrf.mxu1 }
 0x376   : > { %v18734_v29 = vadd.f32 %v13928_v40, %v13927_v31 }
 0x377   : > { %v18736_v54 = vpop.f32.mrf.mxu1 }
 0x379   : > { %v18744_v8 = vpop.f32.mrf.mxu1 }
 0x37b   : > { %v13933_v3 = vpop.f32.mrf.mxu1 }
 0x37d   : > { %v13934_v60 = vpop.f32.mrf.mxu1 }
 0x37e   : > { %v18752_v55 = vadd.f32 %v13934_v60, %v13933_v3  ;;  %v13914_v3 = vadd.f32 %v18685_v11, %v18677_v38 }
 0x37f   : > { %v18754_v36 = vpop.f32.mrf.mxu1 }
 0x381   : > { %v18762_v20 = vpop.f32.mrf.mxu1 }
 0x383   : > { %v13939_v34 = vpop.f32.mrf.mxu1 }
 0x385   : > { %v13940_v48 = vpop.f32.mrf.mxu1 }
 0x386   : > { %v18770_v49 = vadd.f32 %v13940_v48, %v13939_v34 }
 0x387   : > { %v18772_v10 = vpop.f32.mrf.mxu1 }
 0x389   : > { %v18774_v45 = vpop.f32.mrf.mxu1 }
 0x38b   : > { %v13945_v6 = vpop.f32.mrf.mxu1 }
 0x38d   : > { %v13946_v61 = vpop.f32.mrf.mxu1 }
 0x38e   : > { %v18776_v46 = vadd.f32 %v13946_v61, %v13945_v6 }
 0x38f   : > { %v18788_v5 = vpop.f32.mrf.mxu1 }
 0x391   : > { %v18792_v58 = vpop.f32.mrf.mxu1 }
 0x393   : > { %v13951_v42 = vpop.f32.mrf.mxu1 }
 0x395   : > { %v13952_v12 = vpop.f32.mrf.mxu1 }
 0x396   : > { %v18794_v52 = vadd.f32 %v13952_v12, %v13951_v42  ;;  %v13926_v12 = vadd.f32 %v18726_v15, %v18715_v44 }
 0x397   : > { %v13954_v7 = vpop.f32.mrf.mxu1 }
 0x399   : > { %v13955_v35 = vpop.f32.mrf.mxu1 }
 0x39b   : > { %v13973_v50 = vpop.f32.mrf.mxu1 }
 0x39d   : > { %v13974_v37 = vpop.f32.mrf.mxu1 }
 0x39e   : > { %v13975_v32 = vadd.f32 %v13974_v37, %v13973_v50 }
 0x39f   : > { %v13976_v14 = vpop.f32.mrf.mxu1 }
 0x3a0   : > { %v18797_v56 = vadd.f32 %v13975_v32, %v18653_v28 }
 0x3a1   : > { %v13977_v26 = vpop.f32.mrf.mxu1 }
 0x3a2   : > { %v13978_v47 = vadd.f32 %v13977_v26, %v13976_v14  ;;  %v13932_v14 = vadd.f32 %v18744_v8, %v18736_v54 }
 0x3a3   : > { %v13979_v9 = vpop.f32.mrf.mxu1 }
 0x3a4   : > { %v18800_v41 = vadd.f32 %v13978_v47, %v18661_v24 }
 0x3a5   : > { %v13980_v13 = vpop.f32.mrf.mxu1 }
 0x3a6   : > { %v13981_v4 = vadd.f32 %v13980_v13, %v13979_v9 }
 0x3a7   : > { %v13982_v23 = vpop.f32.mrf.mxu1 }
 0x3a8   : > { %v18803_v43 = vadd.f32 %v13981_v4, %v18664_v62 }
 0x3a9   : > { %v13983_v22 = vpop.f32.mrf.mxu1 }
 0x3aa   : > { %v13984_v31 = vadd.f32 %v13983_v22, %v13982_v23  ;;  %v13938_v23 = vadd.f32 %v18762_v20, %v18754_v36 }
 0x3ab   : > { %v13985_v30 = vpop.f32.mrf.mxu1 }
 0x3ac   : > { %v18806_v16 = vadd.f32 %v13984_v31, %v18672_v0 }
 0x3ad   : > { %v13986_v28 = vpop.f32.mrf.mxu1 }
 0x3ae   : > { %v13987_v40 = vadd.f32 %v13986_v28, %v13985_v30 }
 0x3af   : > { %v13988_v19 = vpop.f32.mrf.mxu1 }
 0x3b0   : > { %v18809_v57 = vadd.f32 %v13987_v40, %v18675_v39 }
 0x3b1   : > { %v13989_v24 = vpop.f32.mrf.mxu1 }
 0x3b2   : > { %v13990_v53 = vadd.f32 %v13989_v24, %v13988_v19  ;;  %v13944_v19 = vadd.f32 %v18774_v45, %v18772_v10 }
 0x3b3   : > { %v13991_v21 = vpop.f32.mrf.mxu1 }
 0x3b4   : > { %v18813_v62 = vadd.f32 %v13990_v53, %v13914_v3 }
 0x3b5   : > { %v13992_v60 = vpop.f32.mrf.mxu1 }
 0x3b6   : > { %v13993_v27 = vadd.f32 %v13992_v60, %v13991_v21 }
 0x3b7   : > { %v13994_v1 = vpop.f32.mrf.mxu1 }
 0x3b8   : > { %v18816_v0 = vadd.f32 %v13993_v27, %v18688_v2  ;;  %v13950_v27 = vadd.f32 %v18792_v58, %v18788_v5 }
 0x3b9   : > { %v13995_v34 = vpop.f32.mrf.mxu1 }
 0x3ba   : > { %v13996_v39 = vadd.f32 %v13995_v34, %v13994_v1 }
 0x3bb   : > { %v13997_v63 = vpop.f32.mrf.mxu1 }
 0x3bc   : > { %v18820_v48 = vadd.f32 %v13996_v39, %v13920_v51 }
 0x3bd   : > { %v13998_v6 = vpop.f32.mrf.mxu1 }
 0x3be   : > { %v13999_v38 = vadd.f32 %v13998_v6, %v13997_v63 }
 0x3bf   : > { %v14000_v11 = vpop.f32.mrf.mxu1 }
 0x3c0   : > { %v18823_v61 = vadd.f32 %v13999_v38, %v18713_v18 }
 0x3c1   : > { %v14001_v42 = vpop.f32.mrf.mxu1 }
 0x3c2   : > { %v14002_v2 = vadd.f32 %v14001_v42, %v14000_v11 }
 0x3c3   : > { %v14003_v7 = vpop.f32.mrf.mxu1 }
 0x3c4   : > { %v18827_v35 = vadd.f32 %v14002_v2, %v13926_v12 }
 0x3c5   : > { %v14004_v50 = vpop.f32.mrf.mxu1 }
 0x3c6   : > { %v14005_v17 = vadd.f32 %v14004_v50, %v14003_v7 }
 0x3c7   : > { %v14006_v59 = vpop.f32.mrf.mxu1 }
 0x3c8   : > { %v18830_v37 = vadd.f32 %v14005_v17, %v18734_v29 }
 0x3c9   : > { %v14007_v32 = vpop.f32.mrf.mxu1 }
 0x3ca   : > { %v14008_v18 = vadd.f32 %v14007_v32, %v14006_v59 }
 0x3cb   : > { %v14009_v26 = vpop.f32.mrf.mxu1 }
 0x3cc   : > { %v18834_v47 = vadd.f32 %v14008_v18, %v13932_v14 }
 0x3cd   : > { %v14010_v9 = vpop.f32.mrf.mxu1 }
 0x3ce   : > { %v14011_v44 = vadd.f32 %v14010_v9, %v14009_v26 }
 0x3cf   : > { %v14012_v15 = vpop.f32.mrf.mxu1 }
 0x3d0   : > { %v18837_v13 = vadd.f32 %v14011_v44, %v18752_v55 }
 0x3d1   : > { %v14013_v4 = vpop.f32.mrf.mxu1 }
 0x3d2   : > { %v14014_v29 = vadd.f32 %v14013_v4, %v14012_v15 }
 0x3d3   : > { %v14015_v22 = vpop.f32.mrf.mxu1 }
 0x3d4   : > { %v18841_v31 = vadd.f32 %v14014_v29, %v13938_v23 }
 0x3d5   : > { %v14016_v30 = vpop.f32.mrf.mxu1 }
 0x3d6   : > { %v14017_v54 = vadd.f32 %v14016_v30, %v14015_v22 }
 0x3d7   : > { %v14018_v8 = vpop.f32.mrf.mxu1 }
 0x3d8   : > { %v18844_v28 = vadd.f32 %v14017_v54, %v18770_v49 }
 0x3d9   : > { %v14019_v40 = vpop.f32.mrf.mxu1 }
 0x3da   : > { %v14020_v55 = vadd.f32 %v14019_v40, %v14018_v8 }
 0x3db   : > { %v14021_v24 = vpop.f32.mrf.mxu1 }
 0x3dc   : > { %v18848_v3 = vadd.f32 %v14020_v55, %v13944_v19 }
 0x3dd   : > { %v14022_v53 = vpop.f32.mrf.mxu1 }
 0x3de   : > { %v14023_v36 = vadd.f32 %v14022_v53, %v14021_v24  ;;  %v16184_v53 = vld [vmem:[%s20986_s4 + $0x30] sm:$0xff]  }
 0x3df   : > { %v14024_v20 = vpop.f32.mrf.mxu1 }
 0x3e0   : > { %v18851_v21 = vadd.f32 %v14023_v36, %v18776_v46 }
 0x3e1   : > { %v14025_v60 = vpop.f32.mrf.mxu1 }
 0x3e2   : > { %v14026_v49 = vadd.f32 %v14025_v60, %v14024_v20 }
 0x3e3   : > { %v14027_v1 = vpop.f32.mrf.mxu1 }
 0x3e4   : > { %v18855_v34 = vadd.f32 %v14026_v49, %v13950_v27  ;;  %v16186_v49 = vld [vmem:[%s20986_s4 + $0x28] sm:$0xff]  }
 0x3e5   : > { %v14028_v51 = vpop.f32.mrf.mxu1 }
 0x3e6   : > { %v14029_v10 = vadd.f32 %v14028_v51, %v14027_v1  ;;  %v16187_v1 = vld [vmem:[%s20986_s4 + $0x168] sm:$0xff]  }
 0x3e7   : > { %v14030_v45 = vpop.f32.mrf.mxu1 }
 0x3e8   : > { %v18858_v39 = vadd.f32 %v14029_v10, %v18794_v52 }
 0x3e9   : > { %v14031_v63 = vpop.f32.mrf.mxu1 }
 0x3eb   : > { %v5605_v6 = vpop.f32.mrf.mxu1 }
 0x3ec   : > { %v18861_v38 = vadd.f32 %v5605_v6, %v18797_v56 }
 0x3ed   : > { %v5607_v46 = vpop.f32.mrf.mxu1 }
 0x3ee   : > { %5684 = vst [vmem:[#allocation3] sm:$0xff] %v18861_v38 }
 0x3ef   : > { %v5608_v11 = vpop.f32.mrf.mxu1 }
 0x3f0   : > { %v18865_v5 = vadd.f32 %v5608_v11, %v18800_v41 }
 0x3f1   : > { %v5610_v58 = vpop.f32.mrf.mxu1 }
 0x3f2   : > { %5685 = vst [vmem:[#allocation3 + $0x8] sm:$0xff] %v18865_v5  ;;  %v5716_v42 = vpack.c.bf16 %v18865_v5, %v18861_v38  ;;  %v16188_v58 = vld [vmem:[%s20986_s4 + $0x20] sm:$0xff]  }
 0x3f3   : > { %v5613_v52 = vpop.f32.mrf.mxu1 }
 0x3f4   : > { %v5614_v12 = vadd.f32 %v5613_v52, %v18803_v43 }
 0x3f5   : > { %v5615_v2 = vpop.f32.mrf.mxu1 }
 0x3f6   : > { %5686 = vst [vmem:[#allocation3 + $0x10] sm:$0xff] %v5614_v12 }
 0x3f7   : > { %v5616_v56 = vpop.f32.mrf.mxu1 }
 0x3f8   : > { %v5617_v7 = vadd.f32 %v5616_v56, %v18806_v16  ;;  %v16190_v56 = vld [vmem:[%s20986_s4 + $0x18] sm:$0xff]  }
 0x3f9   : > { %v5618_v50 = vpop.f32.mrf.mxu1  ;;  %v5738_v32 = vld [vmem:[#allocation3 + $0x1] sm:$0xff] }
 0x3fa   : > { %5687 = vst [vmem:[#allocation3 + $0x18] sm:$0xff] %v5617_v7  ;;  %v18872_v17 = vpack.c.bf16 %v5617_v7, %v5614_v12  ;;  %v6207_v26 = vld [vmem:[#allocation3 + $0x3] sm:$0xff]  ;;  %v16191_v7 = vld [vmem:[%s20986_s4 + $0x158] sm:$0xff]  }
 0x3fb   : > { %v5621_v41 = vpop.f32.mrf.mxu1 }
 0x3fc   : > { %v5622_v59 = vadd.f32 %v5621_v41, %v18809_v57 }
 0x3fd   : > { %v5623_v14 = vpop.f32.mrf.mxu1  ;;  %v5739_v18 = vld [vmem:[#allocation3 + $0x9] sm:$0xff] }
 0x3fe   : > { %v6208_v9 = vld [vmem:[#allocation3 + $0xb] sm:$0xff]  ;;  %5688 = vst [vmem:[#allocation3 + $0x20] sm:$0xff] %v5622_v59  ;;  %v5750_v44 = vpack.c.bf16 %v5739_v18, %v5738_v32 }
 0x3ff   : > { %v6219_v43 = vpack.c.bf16 %v6208_v9, %v6207_v26  ;;  %v5624_v15 = vpop.f32.mrf.mxu1 }
 0x400   : > { %v5625_v4 = vadd.f32 %v5624_v15, %v18813_v62  ;;  %14998 = vmatprep.mubr.bf16.mxu0 %v5750_v44 }
 0x401   : > { %15082 = vmatprep.mubr.bf16.mxu1 %v6219_v43  ;;  %v5626_v16 = vpop.f32.mrf.mxu1  ;;  %v5740_v22 = vld [vmem:[#allocation3 + $0x11] sm:$0xff] }
 0x402   : > { %5689 = vst [vmem:[#allocation3 + $0x28] sm:$0xff] %v5625_v4  ;;  %v18876_v23 = vpack.c.bf16 %v5625_v4, %v5622_v59  ;;  %v6209_v30 = vld [vmem:[#allocation3 + $0x13] sm:$0xff] }
 0x403   : > { %v5629_v29 = vpop.f32.mrf.mxu1  ;;  %v18879_v54 = vld [vmem:[#allocation3 + $0x14] sm:$0xff] }
 0x404   : > { %v5630_v57 = vadd.f32 %v5629_v29, %v18816_v0  ;;  %v16185_v0 = vld [vmem:[%s20986_s4 + $0x170] sm:$0xff]  }
 0x405   : > { %v5631_v8 = vpop.f32.mrf.mxu1  ;;  %v5741_v40 = vld [vmem:[#allocation3 + $0x19] sm:$0xff]  ;;  %v16193_v4 = vld [vmem:[%s20986_s4 + $0x150] sm:$0xff]  }
 0x406   : > { %v6210_v19 = vld [vmem:[#allocation3 + $0x1b] sm:$0xff]  ;;  %5690 = vst [vmem:[#allocation3 + $0x30] sm:$0xff] %v5630_v57  ;;  %v5751_v62 = vpack.c.bf16 %v5741_v40, %v5740_v22 }
 0x407   : > { %v18881_v55 = vld [vmem:[#allocation3 + $0x1c] sm:$0xff]  ;;  %v6220_v24 = vpack.c.bf16 %v6210_v19, %v6209_v30  ;;  %v5632_v20 = vpop.f32.mrf.mxu1  ;;  %v16194_v19 = vld [vmem:[%s20986_s4 + $0x8] sm:$0xff]  }
 0x408   : > { %v6396_v36 = vpack.c.bf16 %v18881_v55, %v18879_v54  ;;  %v5633_v60 = vadd.f32 %v5632_v20, %v18820_v48  ;;  %14999 = vmatmul.mubr.bf16.vlgmr.msra.gmra.mxu0 %v5751_v62 }
 0x409   : > { %15083 = vmatmul.mubr.bf16.vlgmr.msra.gmra.mxu1 %v6220_v24  ;;  %v5634_v27 = vpop.f32.mrf.mxu1  ;;  %15011 = vmatpush3.bf16.msra.mxu0 %v18781_v25  ;;  %v5742_v45 = vld [vmem:[#allocation3 + $0x21] sm:$0xff] }
 0x40a   : > { %15123 = vmatpush3.bf16.msra.mxu1 %v18786_v33  ;;  %5691 = vst [vmem:[#allocation3 + $0x38] sm:$0xff] %v5633_v60  ;;  %15012 = vmatprep.subr.bf16.mxu0 %v16184_v53  ;;  %v18900_v51 = vpack.c.bf16 %v5633_v60, %v5630_v57  ;;  %v6211_v33 = vld [vmem:[#allocation3 + $0x23] sm:$0xff] }
 0x40b   : > { %15124 = vmatprep.subr.bf16.mxu1 %v16185_v0  ;;  %v5637_v48 = vpop.f32.mrf.mxu1 }
 0x40c   : > { %v5638_v10 = vadd.f32 %v5637_v48, %v18823_v61  ;;  %v16189_v61 = vld [vmem:[%s20986_s4 + $0x160] sm:$0xff]  }
 0x40d   : > { %v5639_v25 = vpop.f32.mrf.mxu1  ;;  %v5743_v63 = vld [vmem:[#allocation3 + $0x29] sm:$0xff]  ;;  %15013 = vmatpush3.bf16.msra.mxu0 %v16184_v53 }
 0x40e   : > { %v6212_v6 = vld [vmem:[#allocation3 + $0x2b] sm:$0xff]  ;;  %15125 = vmatpush3.bf16.msra.mxu1 %v16185_v0  ;;  %5692 = vst [vmem:[#allocation3 + $0x40] sm:$0xff] %v5638_v10  ;;  %v5752_v46 = vpack.c.bf16 %v5743_v63, %v5742_v45  ;;  %15014 = vmatprep.subr.bf16.mxu0 %v16186_v49 }
 0x40f   : > { %v6221_v11 = vpack.c.bf16 %v6212_v6, %v6211_v33  ;;  %15126 = vmatprep.subr.bf16.mxu1 %v16187_v1  ;;  %v5640_v52 = vpop.f32.mrf.mxu1  ;;  %v18932_v22 = vld [vmem:[#allocation3 + $0x2c] sm:$0xff] }
 0x410   : > { %v5641_v12 = vadd.f32 %v5640_v52, %v18827_v35  ;;  %15002 = vmatprep.mubr.bf16.mxu0 %v5752_v46 }
 0x411   : > { %15086 = vmatprep.mubr.bf16.mxu1 %v6221_v11  ;;  %v5642_v2 = vpop.f32.mrf.mxu1  ;;  %15015 = vmatpush3.bf16.msra.mxu0 %v16186_v49  ;;  %v5744_v59 = vld [vmem:[#allocation3 + $0x31] sm:$0xff] }
 0x412   : > { %15127 = vmatpush3.bf16.msra.mxu1 %v16187_v1  ;;  %5693 = vst [vmem:[#allocation3 + $0x48] sm:$0xff] %v5641_v12  ;;  %15016 = vmatprep.subr.bf16.mxu0 %v16188_v58  ;;  %v18916_v50 = vpack.c.bf16 %v5641_v12, %v5638_v10  ;;  %v6213_v32 = vld [vmem:[#allocation3 + $0x33] sm:$0xff]  ;;  %v16197_v10 = vld [vmem:[%s20986_s4 + $0x140] sm:$0xff]  }
 0x413   : > { %15128 = vmatprep.subr.bf16.mxu1 %v16189_v61  ;;  %v5645_v41 = vpop.f32.mrf.mxu1  ;;  %v18919_v14 = vld [vmem:[#allocation3 + $0x34] sm:$0xff] }
 0x414   : > { %v5646_v35 = vadd.f32 %v5645_v41, %v18830_v37  ;;  %v16192_v37 = vld [vmem:[%s20986_s4 + $0x10] sm:$0xff]   ;;  %v16199_v11 = vld [vmem:[%s20986_s4 + $0x1f8] sm:$0xff]  }
 0x415   : > { %v5647_v18 = vpop.f32.mrf.mxu1  ;;  %v5745_v26 = vld [vmem:[#allocation3 + $0x39] sm:$0xff]  ;;  %15017 = vmatpush3.bf16.msra.mxu0 %v16188_v58 }
 0x416   : > { %v6214_v9 = vld [vmem:[#allocation3 + $0x3b] sm:$0xff]  ;;  %15129 = vmatpush3.bf16.msra.mxu1 %v16189_v61  ;;  %5694 = vst [vmem:[#allocation3 + $0x50] sm:$0xff] %v5646_v35  ;;  %v5753_v43 = vpack.c.bf16 %v5745_v26, %v5744_v59  ;;  %15018 = vmatprep.subr.bf16.mxu0 %v16190_v56  ;;  %v18988_v26 = vld [vmem:[#allocation3 + $0xc] sm:$0xff] }
 0x417   : > { %v18921_v44 = vld [vmem:[#allocation3 + $0x3c] sm:$0xff]  ;;  %v6222_v15 = vpack.c.bf16 %v6214_v9, %v6213_v32  ;;  %15130 = vmatprep.subr.bf16.mxu1 %v16191_v7  ;;  %v5648_v29 = vpop.f32.mrf.mxu1  ;;  %v18934_v30 = vld [vmem:[#allocation3 + $0x34] sm:$0xff] }
 0x418   : > { %v6398_v16 = vpack.c.bf16 %v18921_v44, %v18919_v14  ;;  %v5649_v57 = vadd.f32 %v5648_v29, %v18834_v47  ;;  %15003 = vmatmul.mubr.bf16.gmra.mxu0 %v5753_v43  ;;  %v16195_v47 = vld [vmem:[%s20986_s4 + $0x148] sm:$0xff]   ;;  %v18962_v63 = vld [vmem:[#allocation3 + $0x3c] sm:$0xff]  ;;  %v6571_v43 = vpack.c.bf16 %v18879_v54, %v18988_v26 }
 0x419   : > { %15087 = vmatmul.mubr.bf16.gmra.mxu1 %v6222_v15  ;;  %v5650_v8 = vpop.f32.mrf.mxu1  ;;  %15019 = vmatpush3.bf16.msra.mxu0 %v16190_v56  ;;  %v18949_v0 = vld [vmem:[#allocation3 + $0x41] sm:$0xff] }
 0x41a   : > { %15131 = vmatpush3.bf16.msra.mxu1 %v16191_v7  ;;  %5695 = vst [vmem:[#allocation3 + $0x58] sm:$0xff] %v5649_v57  ;;  %15020 = vmatprep.subr.bf16.mxu0 %v16192_v37  ;;  %v18944_v62 = vpack.c.bf16 %v5649_v57, %v5646_v35  ;;  %v6215_v27 = vld [vmem:[#allocation3 + $0x43] sm:$0xff] }
 0x41b   : > { %15132 = vmatprep.subr.bf16.mxu1 %v16193_v4  ;;  %v5653_v24 = vpop.f32.mrf.mxu1  ;;  %v18964_v33 = vld [vmem:[#allocation3 + $0x44] sm:$0xff] }
 0x41c   : > { %v18947_v53 = vadd.f32 %v5653_v24, %v18837_v13  ;;  %v16196_v13 = vld [vmem:[%s20986_s4] sm:$0xff]   ;;  %v16235_v54 = vld [vmem:[%s20986_s4 + $0x2e8] sm:$0xff]  }
 0x41d   : > { %v5655_v20 = vpop.f32.mrf.mxu1  ;;  %v5747_v60 = vld [vmem:[#allocation3 + $0x49] sm:$0xff]  ;;  %15021 = vmatpush3.bf16.msra.mxu0 %v16192_v37 }
 0x41e   : > { %v6216_v49 = vld [vmem:[#allocation3 + $0x4b] sm:$0xff]  ;;  %15133 = vmatpush3.bf16.msra.mxu1 %v16193_v4  ;;  %5696 = vst [vmem:[#allocation3 + $0x60] sm:$0xff] %v18947_v53  ;;  %v5754_v1 = vpack.c.bf16 %v5747_v60, %v18949_v0  ;;  %15022 = vmatprep.subr.bf16.mxu0 %v16194_v19 }
 0x41f   : > { %v6223_v48 = vpack.c.bf16 %v6216_v49, %v6215_v27  ;;  %15134 = vmatprep.subr.bf16.mxu1 %v16195_v47  ;;  %v5656_v45 = vpop.f32.mrf.mxu1  ;;  %v18998_v29 = vld [vmem:[#allocation3 + $0x24] sm:$0xff]  ;;  %v19000_v57 = vld [vmem:[#allocation3 + $0x4c] sm:$0xff] }
 0x420   : > { %v18960_v25 = vadd.f32 %v5656_v45, %v18841_v31  ;;  %15006 = vmatprep.mubr.bf16.mxu0 %v5754_v1  ;;  %v16198_v31 = vld [vmem:[%s20986_s4 + $0xb8] sm:$0xff]   ;;  %v6572_v38 = vpack.c.bf16 %v18998_v29, %v18881_v55  ;;  %v19013_v20 = vld [vmem:[#allocation3 + $0x2c] sm:$0xff]  ;;  %v16236_v55 = vld [vmem:[%s20986_s4 + $0x1a0] sm:$0xff]  }
 0x421   : > { %15090 = vmatprep.mubr.bf16.mxu1 %v6223_v48  ;;  %v5658_v6 = vpop.f32.mrf.mxu1  ;;  %15023 = vmatpush3.bf16.msra.mxu0 %v16194_v19  ;;  %v18978_v12 = vld [vmem:[#allocation3 + $0x51] sm:$0xff]  ;;  %v6573_v1 = vpack.c.bf16 %v18919_v14, %v19013_v20 }
 0x422   : > { %15135 = vmatpush3.bf16.msra.mxu1 %v16195_v47  ;;  %5697 = vst [vmem:[#allocation3 + $0x68] sm:$0xff] %v18960_v25  ;;  %15024 = vmatprep.subr.bf16.mxu0 %v16196_v13  ;;  %v7280_v58 = vpack.c.bf16 %v18960_v25, %v18947_v53  ;;  %v6217_v2 = vld [vmem:[#allocation3 + $0x53] sm:$0xff]  ;;  %v16244_v53 = vld [vmem:[%s20986_s4 + $0x180] sm:$0xff]  }
 0x423   : > { %15136 = vmatprep.subr.bf16.mxu1 %v16197_v10  ;;  %v5661_v61 = vpop.f32.mrf.mxu1  ;;  %v18980_v56 = vld [vmem:[#allocation3 + $0x54] sm:$0xff]  ;;  %v16245_v25 = vld [vmem:[%s20986_s4 + $0x2c0] sm:$0xff]  }
 0x424   : > { %v5662_v52 = vadd.f32 %v5661_v61, %v18844_v28  ;;  %v19002_v8 = vld [vmem:[#allocation3 + $0x54] sm:$0xff] }
 0x425   : > { %v5663_v7 = vpop.f32.mrf.mxu1  ;;  %v18982_v41 = vld [vmem:[#allocation3 + $0x59] sm:$0xff]  ;;  %15025 = vmatpush3.bf16.msra.mxu0 %v16196_v13  ;;  %v16200_v60 = vld [vmem:[%s20986_s4 + $0xb0] sm:$0xff]   ;;  %v16202_v13 = vld [vmem:[%s20986_s4 + $0xa8] sm:$0xff]  }
 0x426   : > { %v6218_v35 = vld [vmem:[#allocation3 + $0x5b] sm:$0xff]  ;;  %15137 = vmatpush3.bf16.msra.mxu1 %v16197_v10  ;;  %5698 = vst [vmem:[#allocation3 + $0x70] sm:$0xff] %v5662_v52  ;;  %v5755_v32 = vpack.c.bf16 %v18982_v41, %v18978_v12  ;;  %15038 = vmatprep.subr.bf16.mxu0 %v16198_v31 }
 0x427   : > { %v18984_v59 = vld [vmem:[#allocation3 + $0x5c] sm:$0xff]  ;;  %v6224_v18 = vpack.c.bf16 %v6218_v35, %v6217_v2  ;;  %15178 = vmatprep.subr.bf16.mxu1 %v16199_v11  ;;  %v5664_v9 = vpop.f32.mrf.mxu1  ;;  %v19045_v35 = vld [vmem:[#allocation3 + $0x4c] sm:$0xff] }
 0x428   : > { %v6400_v28 = vpack.c.bf16 %v18984_v59, %v18980_v56  ;;  %v5665_v15 = vadd.f32 %v5664_v9, %v18848_v3  ;;  %15007 = vmatmul.mubr.bf16.gmra.mxu0 %v5755_v32  ;;  %v19009_v5 = vld [vmem:[#allocation3 + $0x5c] sm:$0xff] }
 0x429   : > { %15091 = vmatmul.mubr.bf16.gmra.mxu1 %v6224_v18  ;;  %v5666_v37 = vpop.f32.mrf.mxu1  ;;  %15026 = vmatprep.mubr.bf16.mxu0 %v5716_v42  ;;  %v19011_v42 = vld [vmem:[#allocation3 + $0x64] sm:$0xff]  ;;  %v6575_v18 = vpack.c.bf16 %v18980_v56, %v19045_v35  ;;  %v16239_v14 = vld [vmem:[%s20986_s4 + $0x2d8] sm:$0xff]  }
 0x42a   : > { %15138 = vmatprep.mubr.bf16.mxu1 %v6571_v43  ;;  %5699 = vst [vmem:[#allocation3 + $0x78] sm:$0xff] %v5665_v15  ;;  %v16204_v32 = vld [vmem:[%s20986_s4 + $0xa0] sm:$0xff]   ;;  %v16206_v43 = vld [vmem:[%s20986_s4 + $0x98] sm:$0xff]   ;;  %v16242_v56 = vld [vmem:[%s20986_s4 + $0x188] sm:$0xff]  }
 0x42b   : > { %v5669_v4 = vpop.f32.mrf.mxu1  ;;  %v16207_v15 = vld [vmem:[%s20986_s4 + $0x1d8] sm:$0xff]   ;;  %v6570_v37 = vld [vmem:[#allocation3 + $0x64] sm:$0xff] }
 0x42c   : > { %v5670_v19 = vadd.f32 %v5669_v4, %v18851_v21  ;;  %v16201_v21 = vld [vmem:[%s20986_s4 + $0x1f0] sm:$0xff]  }
 0x42d   : > { %v5671_v47 = vpop.f32.mrf.mxu1  ;;  %v19034_v10 = vld [vmem:[#allocation3 + $0x6c] sm:$0xff] }
 0x42e   : > { %5700 = vst [vmem:[#allocation3 + $0x80] sm:$0xff] %v5670_v19  ;;  %v6032_v4 = vld [vmem:[#allocation3 + $0xa] sm:$0xff]  ;;  %v6912_v19 = vld [vmem:[#allocation3 + $0x16] sm:$0xff]  ;;  %v6576_v47 = vpack.c.bf16 %v6570_v37, %v18984_v59  ;;  %v6035_v37 = vld [vmem:[#allocation3 + $0x22] sm:$0xff] }
 0x42f   : > { %v5672_v24 = vpop.f32.mrf.mxu1  ;;  %v16243_v59 = vld [vmem:[%s20986_s4 + $0x2c8] sm:$0xff]  }
 0x430   : > { %v5673_v49 = vadd.f32 %v5672_v24, %v18855_v34  ;;  %15027 = vmatmul.mubr.bf16.vlgmr.msra.gmra.mxu0 %v18872_v17  ;;  %v16203_v34 = vld [vmem:[%s20986_s4 + $0x1e8] sm:$0xff]  }
 0x431   : > { %15139 = vmatmul.mubr.bf16.vlgmr.msra.gmra.mxu1 %v6572_v38  ;;  %15039 = vmatpush3.bf16.msra.mxu0 %v16198_v31  ;;  %v5674_v48 = vpop.f32.mrf.mxu1  ;;  %v19036_v45 = vld [vmem:[#allocation3 + $0x74] sm:$0xff]  ;;  %v19038_v31 = vld [vmem:[#allocation3 + $0x44] sm:$0xff] }
 0x432   : > { %15179 = vmatpush3.bf16.msra.mxu1 %v16199_v11  ;;  %5701 = vst [vmem:[#allocation3 + $0x88] sm:$0xff] %v5673_v49  ;;  %15030 = vmatprep.mubr.bf16.mxu0 %v18876_v23  ;;  %v6574_v2 = vpack.c.bf16 %v19038_v31, %v18921_v44  ;;  %v16208_v38 = vld [vmem:[%s20986_s4 + $0x90] sm:$0xff]   ;;  %v6031_v24 = vld [vmem:[#allocation3 + $0x2] sm:$0xff] }
 0x433   : > { %15142 = vmatprep.mubr.bf16.mxu1 %v6573_v1  ;;  %v5677_v6 = vpop.f32.mrf.mxu1  ;;  %15040 = vmatprep.subr.bf16.mxu0 %v16200_v60  ;;  %v6043_v49 = vpack.c.bf16 %v6032_v4, %v6031_v24  ;;  %v16210_v48 = vld [vmem:[%s20986_s4 + $0x88] sm:$0xff]   ;;  %v6736_v44 = vld [vmem:[#allocation3 + $0x15] sm:$0xff] }
 0x434   : > { %15180 = vmatprep.subr.bf16.mxu1 %v16201_v21  ;;  %v5678_v61 = vadd.f32 %v5677_v6, %v18858_v39  ;;  %v16205_v39 = vld [vmem:[%s20986_s4 + $0x1e0] sm:$0xff]  }
 0x435   : > { %15041 = vmatpush3.bf16.msra.mxu0 %v16200_v60  ;;  %v5679_v52 = vpop.f32.mrf.mxu1  ;;  %v6911_v60 = vld [vmem:[#allocation3 + $0xe] sm:$0xff]  ;;  %v16213_v6 = vld [vmem:[%s20986_s4 + $0x1c0] sm:$0xff]  }
 0x436   : > { %15181 = vmatpush3.bf16.msra.mxu1 %v16201_v21  ;;  %5702 = vst [vmem:[#allocation3 + $0x90] sm:$0xff] %v5678_v61  ;;  %15042 = vmatprep.subr.bf16.mxu0 %v16202_v13  ;;  %v16209_v21 = vld [vmem:[%s20986_s4 + $0x1d0] sm:$0xff]   ;;  %v6923_v1 = vpack.c.bf16 %v6912_v19, %v6911_v60  ;;  %v16214_v61 = vld [vmem:[%s20986_s4 + $0x138] sm:$0xff]   ;;  %v16218_v60 = vld [vmem:[%s20986_s4 + $0x128] sm:$0xff]  }
 0x437   : > { %15182 = vmatprep.subr.bf16.mxu1 %v16203_v34  ;;  %v5680_v7 = vpop.f32.mrf.mxu1  ;;  %v16215_v52 = vld [vmem:[%s20986_s4 + $0x278] sm:$0xff]   ;;  %v6915_v19 = vld [vmem:[#allocation3 + $0x2e] sm:$0xff]  ;;  %v8675_v11 = vld [vmem:[#allocation3 + $0x46] sm:$0xff] }
 0x438   : > { %15031 = vmatmul.mubr.bf16.gmra.mxu0 %v18900_v51  ;;  %v6914_v7 = vld [vmem:[#allocation3 + $0x26] sm:$0xff] }
 0x439   : > { %15143 = vmatmul.mubr.bf16.gmra.mxu1 %v6574_v2  ;;  %15043 = vmatpush3.bf16.msra.mxu0 %v16202_v13  ;;  %v5682_v9 = vpop.f32.mrf.mxu1  ;;  %v16211_v13 = vld [vmem:[%s20986_s4 + $0x1c8] sm:$0xff]   ;;  %v6034_v2 = vld [vmem:[#allocation3 + $0x1a] sm:$0xff] }
 0x43a   : > { %15183 = vmatpush3.bf16.msra.mxu1 %v16203_v34  ;;  %15034 = vmatprep.mubr.bf16.mxu0 %v18916_v50  ;;  %v16212_v34 = vld [vmem:[%s20986_s4 + $0x80] sm:$0xff]   ;;  %v6916_v9 = vld [vmem:[#allocation3 + $0x36] sm:$0xff] }
 0x43b   : > { %15146 = vmatprep.mubr.bf16.mxu1 %v6575_v18  ;;  %15044 = vmatprep.subr.bf16.mxu0 %v16204_v32  ;;  %v6913_v18 = vld [vmem:[#allocation3 + $0x1e] sm:$0xff]  ;;  %v6925_v24 = vpack.c.bf16 %v6916_v9, %v6915_v19  ;;  %v6041_v19 = vld [vmem:[#allocation3 + $0x52] sm:$0xff] }
 0x43c   : > { %15184 = vmatprep.subr.bf16.mxu1 %v16205_v39 }
 0x43d   : > { %15045 = vmatpush3.bf16.msra.mxu0 %v16204_v32  ;;  %v6036_v32 = vld [vmem:[#allocation3 + $0x2a] sm:$0xff] }
 0x43e   : > { %15185 = vmatpush3.bf16.msra.mxu1 %v16205_v39  ;;  %15046 = vmatprep.subr.bf16.mxu0 %v16206_v43  ;;  %v6033_v39 = vld [vmem:[#allocation3 + $0x12] sm:$0xff]  ;;  %v6045_v4 = vpack.c.bf16 %v6036_v32, %v6035_v37  ;;  %v6922_v37 = vld [vmem:[#allocation3 + $0x66] sm:$0xff] }
 0x43f   : > { %15186 = vmatprep.subr.bf16.mxu1 %v16207_v15  ;;  %v6919_v32 = vld [vmem:[#allocation3 + $0x4e] sm:$0xff] }
 0x440   : > { %15035 = vmatmul.mubr.bf16.gmra.mxu0 %v18944_v62 }
 0x441   : > { %15147 = vmatmul.mubr.bf16.gmra.mxu1 %v6576_v47  ;;  %15047 = vmatpush3.bf16.msra.mxu0 %v16206_v43  ;;  %v6044_v43 = vpack.c.bf16 %v6034_v2, %v6033_v39  ;;  %v16216_v47 = vld [vmem:[%s20986_s4 + $0x130] sm:$0xff]   ;;  %v6039_v2 = vld [vmem:[#allocation3 + $0x42] sm:$0xff] }
 0x442   : > { %15187 = vmatpush3.bf16.msra.mxu1 %v16207_v15  ;;  %15054 = vmatprep.mubr.bf16.mxu0 %v6043_v49  ;;  %v6924_v15 = vpack.c.bf16 %v6914_v7, %v6913_v18  ;;  %v6918_v49 = vld [vmem:[#allocation3 + $0x46] sm:$0xff] }
 0x443   : > { %15194 = vmatprep.mubr.bf16.mxu1 %v6923_v1  ;;  %15048 = vmatprep.subr.bf16.mxu0 %v16208_v38  ;;  %v16219_v1 = vld [vmem:[%s20986_s4 + $0x268] sm:$0xff]   ;;  %v16220_v39 = vld [vmem:[%s20986_s4 + $0x120] sm:$0xff]  }
 0x444   : > { %15188 = vmatprep.subr.bf16.mxu1 %v16209_v21  ;;  %v16221_v18 = vld [vmem:[%s20986_s4 + $0x260] sm:$0xff]  }
 0x445   : > { %15049 = vmatpush3.bf16.msra.mxu0 %v16208_v38  ;;  %v16217_v38 = vld [vmem:[%s20986_s4 + $0x270] sm:$0xff]  }
 0x446   : > { %15189 = vmatpush3.bf16.msra.mxu1 %v16209_v21  ;;  %15050 = vmatprep.subr.bf16.mxu0 %v16210_v48  ;;  %v6038_v21 = vld [vmem:[#allocation3 + $0x3a] sm:$0xff] }
 0x447   : > { %15190 = vmatprep.subr.bf16.mxu1 %v16211_v13 }
 0x449   : > { %15051 = vmatpush3.bf16.msra.mxu0 %v16210_v48  ;;  %v6040_v48 = vld [vmem:[#allocation3 + $0x4a] sm:$0xff] }
 0x44a   : > { %15191 = vmatpush3.bf16.msra.mxu1 %v16211_v13  ;;  %15052 = vmatprep.subr.bf16.mxu0 %v16212_v34  ;;  %v6037_v13 = vld [vmem:[#allocation3 + $0x32] sm:$0xff]  ;;  %v6047_v7 = vpack.c.bf16 %v6040_v48, %v6039_v2  ;;  %v16226_v48 = vld [vmem:[%s20986_s4 + $0x108] sm:$0xff]  }
 0x44b   : > { %15192 = vmatprep.subr.bf16.mxu1 %v16213_v6  ;;  %v16233_v2 = vld [vmem:[%s20986_s4 + $0x2f0] sm:$0xff]  }
 0x44d   : > { %15053 = vmatpush3.bf16.msra.mxu0 %v16212_v34  ;;  %v6917_v34 = vld [vmem:[#allocation3 + $0x3e] sm:$0xff] }
 0x44e   : > { %15193 = vmatpush3.bf16.msra.mxu1 %v16213_v6  ;;  %15094 = vmatprep.subr.bf16.mxu0 %v16214_v61  ;;  %v6920_v6 = vld [vmem:[#allocation3 + $0x56] sm:$0xff] }
 0x44f   : > { %15234 = vmatprep.subr.bf16.mxu1 %v16215_v52  ;;  %v6927_v9 = vpack.c.bf16 %v6920_v6, %v6919_v32  ;;  %v16231_v6 = vld [vmem:[%s20986_s4 + $0x2f8] sm:$0xff]  }
 0x450   : > { %15055 = vmatmul.mubr.bf16.vlgmr.msra.gmra.mxu0 %v6044_v43  ;;  %v16222_v43 = vld [vmem:[%s20986_s4 + $0x118] sm:$0xff]  }
 0x451   : > { %15195 = vmatmul.mubr.bf16.vlgmr.msra.gmra.mxu1 %v6924_v15  ;;  %15058 = vmatprep.mubr.bf16.mxu0 %v6045_v4  ;;  %v6042_v15 = vld [vmem:[#allocation3 + $0x5a] sm:$0xff] }
 0x452   : > { %15095 = vmatpush3.bf16.msra.mxu0 %v16214_v61  ;;  %15198 = vmatprep.mubr.bf16.mxu1 %v6925_v24  ;;  %v6046_v61 = vpack.c.bf16 %v6038_v21, %v6037_v13  ;;  %v16223_v4 = vld [vmem:[%s20986_s4 + $0x258] sm:$0xff]   ;;  %v16228_v13 = vld [vmem:[%s20986_s4 + $0x100] sm:$0xff]  }
 0x453   : > { %15235 = vmatpush3.bf16.msra.mxu1 %v16215_v52  ;;  %15096 = vmatprep.subr.bf16.mxu0 %v16216_v47  ;;  %v6926_v52 = vpack.c.bf16 %v6918_v49, %v6917_v34  ;;  %v16224_v49 = vld [vmem:[%s20986_s4 + $0x110] sm:$0xff]   ;;  %v16230_v34 = vld [vmem:[%s20986_s4 + $0x1b8] sm:$0xff]  }
 0x454   : > { %15236 = vmatprep.subr.bf16.mxu1 %v16217_v38  ;;  %v16247_v32 = vld [vmem:[%s20986_s4 + $0x378] sm:$0xff]  }
 0x456   : > { %15097 = vmatpush3.bf16.msra.mxu0 %v16216_v47  ;;  %v6921_v47 = vld [vmem:[#allocation3 + $0x5e] sm:$0xff] }
 0x457   : > { %15237 = vmatpush3.bf16.msra.mxu1 %v16217_v38  ;;  %15098 = vmatprep.subr.bf16.mxu0 %v16218_v60  ;;  %v6048_v38 = vpack.c.bf16 %v6042_v15, %v6041_v19  ;;  %v6928_v24 = vpack.c.bf16 %v6922_v37, %v6921_v47  ;;  %v7617_v15 = vld [vmem:[#allocation3 + $0x29] sm:$0xff]  ;;  %v7619_v47 = vld [vmem:[#allocation3 + $0x39] sm:$0xff] }
 0x458   : > { %15238 = vmatprep.subr.bf16.mxu1 %v16219_v1  ;;  %15059 = vmatmul.mubr.bf16.gmra.mxu0 %v6046_v61  ;;  %v6397_v61 = vpack.c.bf16 %v19013_v20, %v18998_v29  ;;  %v16234_v29 = vld [vmem:[%s20986_s4 + $0x1a8] sm:$0xff]  }
 0x459   : > { %15199 = vmatmul.mubr.bf16.gmra.mxu1 %v6926_v52  ;;  %15062 = vmatprep.mubr.bf16.mxu0 %v6047_v7  ;;  %v16232_v52 = vld [vmem:[%s20986_s4 + $0x1b0] sm:$0xff]  }
 0x45a   : > { %15099 = vmatpush3.bf16.msra.mxu0 %v16218_v60  ;;  %15202 = vmatprep.mubr.bf16.mxu1 %v6927_v9  ;;  %v6383_v60 = vld [vmem:[#allocation3 + $0x4] sm:$0xff]  ;;  %v6735_v20 = vld [vmem:[#allocation3 + $0xd] sm:$0xff] }
 0x45b   : > { %15239 = vmatpush3.bf16.msra.mxu1 %v16219_v1  ;;  %15100 = vmatprep.subr.bf16.mxu0 %v16220_v39  ;;  %v6395_v21 = vpack.c.bf16 %v18988_v26, %v6383_v60  ;;  %v16225_v1 = vld [vmem:[%s20986_s4 + $0x250] sm:$0xff]   ;;  %v16227_v26 = vld [vmem:[%s20986_s4 + $0x248] sm:$0xff]   ;;  %v6737_v9 = vld [vmem:[#allocation3 + $0x1d] sm:$0xff] }
 0x45c   : > { %15240 = vmatprep.subr.bf16.mxu1 %v16221_v18  ;;  %v16241_v7 = vld [vmem:[%s20986_s4 + $0x2d0] sm:$0xff]  }
 0x45d   : > { %v6739_v37 = vld [vmem:[#allocation3 + $0x2d] sm:$0xff] }
 0x45e   : > { %15101 = vmatpush3.bf16.msra.mxu0 %v16220_v39  ;;  %v7618_v39 = vld [vmem:[#allocation3 + $0x31] sm:$0xff] }
 0x45f   : > { %15241 = vmatpush3.bf16.msra.mxu1 %v16221_v18  ;;  %15102 = vmatprep.subr.bf16.mxu0 %v16222_v43  ;;  %v6740_v18 = vld [vmem:[#allocation3 + $0x35] sm:$0xff] }
 0x460   : > { %15242 = vmatprep.subr.bf16.mxu1 %v16223_v4  ;;  %15063 = vmatmul.mubr.bf16.gmra.mxu0 %v6048_v38  ;;  %v6749_v19 = vpack.c.bf16 %v6740_v18, %v6739_v37  ;;  %v16248_v38 = vld [vmem:[%s20986_s4 + $0x230] sm:$0xff]  }
 0x461   : > { %15203 = vmatmul.mubr.bf16.gmra.mxu1 %v6928_v24  ;;  %15110 = vmatprep.mubr.bf16.mxu0 %v6395_v21  ;;  %v7629_v24 = vpack.c.bf16 %v18949_v0, %v7619_v47  ;;  %v16249_v60 = vld [vmem:[%s20986_s4 + $0x370] sm:$0xff]   ;;  %v6742_v21 = vld [vmem:[#allocation3 + $0x45] sm:$0xff] }
 0x462   : > { %15103 = vmatpush3.bf16.msra.mxu0 %v16222_v43  ;;  %15250 = vmatprep.mubr.bf16.mxu1 %v18872_v17  ;;  %v16229_v17 = vld [vmem:[%s20986_s4 + $0x240] sm:$0xff]   ;;  %v16251_v0 = vld [vmem:[%s20986_s4 + $0x368] sm:$0xff]   ;;  %v7092_v18 = vld [vmem:[#allocation3 + $0x37] sm:$0xff] }
 0x463   : > { %15243 = vmatpush3.bf16.msra.mxu1 %v16223_v4  ;;  %15104 = vmatprep.subr.bf16.mxu0 %v16224_v49  ;;  %v7628_v4 = vpack.c.bf16 %v7618_v39, %v7617_v15  ;;  %v7970_v39 = vld [vmem:[#allocation3 + $0x33] sm:$0xff]  ;;  %v7969_v37 = vld [vmem:[#allocation3 + $0x2b] sm:$0xff] }
 0x464   : > { %15244 = vmatprep.subr.bf16.mxu1 %v16225_v1 }
 0x466   : > { %15105 = vmatpush3.bf16.msra.mxu0 %v16224_v49  ;;  %v16250_v49 = vld [vmem:[%s20986_s4 + $0x228] sm:$0xff]  }
 0x467   : > { %15245 = vmatpush3.bf16.msra.mxu1 %v16225_v1  ;;  %15106 = vmatprep.subr.bf16.mxu0 %v16226_v48  ;;  %v6744_v1 = vld [vmem:[#allocation3 + $0x55] sm:$0xff] }
 0x468   : > { %15246 = vmatprep.subr.bf16.mxu1 %v16227_v26 }
 0x46a   : > { %15107 = vmatpush3.bf16.msra.mxu0 %v16226_v48  ;;  %v6741_v48 = vld [vmem:[#allocation3 + $0x3d] sm:$0xff] }
 0x46b   : > { %15247 = vmatpush3.bf16.msra.mxu1 %v16227_v26  ;;  %15108 = vmatprep.subr.bf16.mxu0 %v16228_v13  ;;  %v7624_v26 = vld [vmem:[#allocation3 + $0x61] sm:$0xff] }
 0x46c   : > { %15248 = vmatprep.subr.bf16.mxu1 %v16229_v17 }
 0x46e   : > { %15109 = vmatpush3.bf16.msra.mxu0 %v16228_v13  ;;  %v6750_v13 = vpack.c.bf16 %v6742_v21, %v6741_v48  ;;  %v16265_v21 = vld [vmem:[%s20986_s4 + $0x3f0] sm:$0xff]   ;;  %v16267_v48 = vld [vmem:[%s20986_s4 + $0x3e8] sm:$0xff]  }
 0x46f   : > { %15249 = vmatpush3.bf16.msra.mxu1 %v16229_v17  ;;  %15150 = vmatprep.subr.bf16.mxu0 %v16230_v34  ;;  %v7621_v17 = vld [vmem:[#allocation3 + $0x49] sm:$0xff] }
 0x470   : > { %15290 = vmatprep.subr.bf16.mxu1 %v16231_v6 }
 0x471   : > { %15111 = vmatmul.mubr.bf16.vlgmr.msra.gmra.mxu0 %v6396_v36  ;;  %v16237_v36 = vld [vmem:[%s20986_s4 + $0x2e0] sm:$0xff]  }
 0x472   : > { %15251 = vmatmul.mubr.bf16.vlgmr.msra.gmra.mxu1 %v18876_v23  ;;  %15114 = vmatprep.mubr.bf16.mxu0 %v6397_v61  ;;  %v6399_v23 = vpack.c.bf16 %v19045_v35, %v19038_v31  ;;  %v7615_v31 = vld [vmem:[#allocation3 + $0x19] sm:$0xff] }
 0x473   : > { %15151 = vmatpush3.bf16.msra.mxu0 %v16230_v34  ;;  %15254 = vmatprep.mubr.bf16.mxu1 %v18900_v51  ;;  %v16238_v51 = vld [vmem:[%s20986_s4 + $0x198] sm:$0xff]   ;;  %v6743_v34 = vld [vmem:[#allocation3 + $0x4d] sm:$0xff] }
 0x474   : > { %15291 = vmatpush3.bf16.msra.mxu1 %v16231_v6  ;;  %15152 = vmatprep.subr.bf16.mxu0 %v16232_v52  ;;  %v7630_v6 = vpack.c.bf16 %v18978_v12, %v7621_v17  ;;  %v6751_v61 = vpack.c.bf16 %v6744_v1, %v6743_v34  ;;  %v6746_v12 = vld [vmem:[#allocation3 + $0x65] sm:$0xff]  ;;  %v7974_v1 = vld [vmem:[#allocation3 + $0x53] sm:$0xff] }
 0x475   : > { %15292 = vmatprep.subr.bf16.mxu1 %v16233_v2  ;;  %v7976_v17 = vld [vmem:[#allocation3 + $0x63] sm:$0xff] }
 0x477   : > { %15153 = vmatpush3.bf16.msra.mxu0 %v16232_v52  ;;  %v16252_v52 = vld [vmem:[%s20986_s4 + $0x220] sm:$0xff]  }
 0x478   : > { %15293 = vmatpush3.bf16.msra.mxu1 %v16233_v2  ;;  %15154 = vmatprep.subr.bf16.mxu0 %v16234_v29  ;;  %v7631_v2 = vpack.c.bf16 %v7624_v26, %v18982_v41  ;;  %v16255_v41 = vld [vmem:[%s20986_s4 + $0x358] sm:$0xff]  }
 0x479   : > { %15115 = vmatmul.mubr.bf16.gmra.mxu0 %v6398_v16  ;;  %15294 = vmatprep.subr.bf16.mxu1 %v16235_v54  ;;  %v7616_v16 = vld [vmem:[#allocation3 + $0x21] sm:$0xff]  ;;  %v7096_v26 = vld [vmem:[#allocation3 + $0x57] sm:$0xff] }
 0x47a   : > { %15255 = vmatmul.mubr.bf16.gmra.mxu1 %v18916_v50  ;;  %15118 = vmatprep.mubr.bf16.mxu0 %v6399_v23  ;;  %v6747_v50 = vpack.c.bf16 %v6736_v44, %v6735_v20  ;;  %v7627_v35 = vpack.c.bf16 %v7616_v16, %v7615_v31  ;;  %v7626_v23 = vld [vmem:[#allocation3 + $0x71] sm:$0xff]  ;;  %v7625_v44 = vld [vmem:[#allocation3 + $0x69] sm:$0xff]  ;;  %v7967_v31 = vld [vmem:[#allocation3 + $0x1b] sm:$0xff] }
 0x47b   : > { %15155 = vmatpush3.bf16.msra.mxu0 %v16234_v29  ;;  %15258 = vmatprep.mubr.bf16.mxu1 %v18944_v62  ;;  %v16240_v62 = vld [vmem:[%s20986_s4 + $0x190] sm:$0xff]   ;;  %v16253_v29 = vld [vmem:[%s20986_s4 + $0x360] sm:$0xff]   ;;  %v7632_v20 = vpack.c.bf16 %v7626_v23, %v7625_v44 }
 0x47c   : > { %15295 = vmatpush3.bf16.msra.mxu1 %v16235_v54  ;;  %15156 = vmatprep.subr.bf16.mxu0 %v16236_v55  ;;  %v16254_v54 = vld [vmem:[%s20986_s4 + $0x218] sm:$0xff]   ;;  %v7087_v16 = vld [vmem:[#allocation3 + $0xf] sm:$0xff]  ;;  %v16269_v23 = vld [vmem:[%s20986_s4 + $0x3e0] sm:$0xff]  }
 0x47d   : > { %15296 = vmatprep.subr.bf16.mxu1 %v16237_v36  ;;  %v7097_v44 = vld [vmem:[#allocation3 + $0x5f] sm:$0xff] }
 0x47f   : > { %15157 = vmatpush3.bf16.msra.mxu0 %v16236_v55  ;;  %v7088_v55 = vld [vmem:[#allocation3 + $0x17] sm:$0xff] }
 0x480   : > { %15297 = vmatpush3.bf16.msra.mxu1 %v16237_v36  ;;  %15158 = vmatprep.subr.bf16.mxu0 %v16238_v51  ;;  %v6745_v36 = vld [vmem:[#allocation3 + $0x5d] sm:$0xff] }
 0x481   : > { %15119 = vmatmul.mubr.bf16.gmra.mxu0 %v6400_v28  ;;  %15298 = vmatprep.subr.bf16.mxu1 %v16239_v14  ;;  %v6738_v28 = vld [vmem:[#allocation3 + $0x25] sm:$0xff] }
 0x482   : > { %15259 = vmatmul.mubr.bf16.gmra.mxu1 %v7280_v58  ;;  %15166 = vmatprep.mubr.bf16.mxu0 %v6747_v50  ;;  %v16246_v58 = vld [vmem:[%s20986_s4 + $0x238] sm:$0xff]   ;;  %v6748_v43 = vpack.c.bf16 %v6738_v28, %v6737_v9  ;;  %v7099_v50 = vpack.c.bf16 %v7088_v55, %v7087_v16  ;;  %v7090_v28 = vld [vmem:[#allocation3 + $0x27] sm:$0xff] }
 0x483   : > { %15159 = vmatpush3.bf16.msra.mxu0 %v16238_v51  ;;  %15306 = vmatprep.mubr.bf16.mxu1 %v7627_v35  ;;  %v7968_v51 = vld [vmem:[#allocation3 + $0x23] sm:$0xff]  ;;  %v16270_v55 = vld [vmem:[%s20986_s4 + $0x298] sm:$0xff]  }
 0x484   : > { %15299 = vmatpush3.bf16.msra.mxu1 %v16239_v14  ;;  %15160 = vmatprep.subr.bf16.mxu0 %v16240_v62  ;;  %v6752_v14 = vpack.c.bf16 %v6746_v12, %v6745_v36  ;;  %v7979_v35 = vpack.c.bf16 %v7968_v51, %v7967_v31  ;;  %v7089_v9 = vld [vmem:[#allocation3 + $0x1f] sm:$0xff]  ;;  %v7978_v36 = vld [vmem:[#allocation3 + $0x73] sm:$0xff] }
 0x485   : > { %15300 = vmatprep.subr.bf16.mxu1 %v16241_v7  ;;  %v7100_v15 = vpack.c.bf16 %v7090_v28, %v7089_v9  ;;  %v16268_v12 = vld [vmem:[%s20986_s4 + $0x2a0] sm:$0xff]   ;;  %v16271_v51 = vld [vmem:[%s20986_s4 + $0x3d8] sm:$0xff]   ;;  %v7442_v9 = vld [vmem:[#allocation3 + $0x30] sm:$0xff] }
 0x486   : > { %v16277_v28 = vld [vmem:[%s20986_s4 + $0x3c0] sm:$0xff]  }
 0x487   : > { %15161 = vmatpush3.bf16.msra.mxu0 %v16240_v62  ;;  %v16256_v62 = vld [vmem:[%s20986_s4 + $0x210] sm:$0xff]  }
 0x488   : > { %15301 = vmatpush3.bf16.msra.mxu1 %v16241_v7  ;;  %15162 = vmatprep.subr.bf16.mxu0 %v16242_v56  ;;  %v16257_v7 = vld [vmem:[%s20986_s4 + $0x350] sm:$0xff]  }
 0x489   : > { %15302 = vmatprep.subr.bf16.mxu1 %v16243_v59 }
 0x48b   : > { %15163 = vmatpush3.bf16.msra.mxu0 %v16242_v56  ;;  %v16258_v56 = vld [vmem:[%s20986_s4 + $0x208] sm:$0xff]  }
 0x48c   : > { %15303 = vmatpush3.bf16.msra.mxu1 %v16243_v59  ;;  %15164 = vmatprep.subr.bf16.mxu0 %v16244_v53  ;;  %v16259_v59 = vld [vmem:[%s20986_s4 + $0x348] sm:$0xff]  }
 0x48d   : > { %15304 = vmatprep.subr.bf16.mxu1 %v16245_v25 }
 0x48f   : > { %15165 = vmatpush3.bf16.msra.mxu0 %v16244_v53  ;;  %v16260_v53 = vld [vmem:[%s20986_s4 + $0x200] sm:$0xff]  }
 0x490   : > { %15305 = vmatpush3.bf16.msra.mxu1 %v16245_v25  ;;  %15206 = vmatprep.subr.bf16.mxu0 %v16246_v58  ;;  %v16261_v25 = vld [vmem:[%s20986_s4 + $0x340] sm:$0xff]  }
 0x491   : > { %15346 = vmatprep.subr.bf16.mxu1 %v16247_v32 }
 0x492   : > { %15167 = vmatmul.mubr.bf16.vlgmr.msra.gmra.mxu0 %v6748_v43  ;;  %v7972_v43 = vld [vmem:[#allocation3 + $0x43] sm:$0xff] }
 0x493   : > { %15307 = vmatmul.mubr.bf16.vlgmr.msra.gmra.mxu1 %v7628_v4  ;;  %15170 = vmatprep.mubr.bf16.mxu0 %v6749_v19  ;;  %v7091_v4 = vld [vmem:[#allocation3 + $0x2f] sm:$0xff]  ;;  %v7980_v19 = vpack.c.bf16 %v7970_v39, %v7969_v37 }
 0x494   : > { %15207 = vmatpush3.bf16.msra.mxu0 %v16246_v58  ;;  %15310 = vmatprep.mubr.bf16.mxu1 %v7629_v24  ;;  %v16262_v58 = vld [vmem:[%s20986_s4 + $0x2b8] sm:$0xff]   ;;  %v7101_v47 = vpack.c.bf16 %v7092_v18, %v7091_v4  ;;  %v16264_v24 = vld [vmem:[%s20986_s4 + $0x2b0] sm:$0xff]  }
 0x495   : > { %15347 = vmatpush3.bf16.msra.mxu1 %v16247_v32  ;;  %15208 = vmatprep.subr.bf16.mxu0 %v16248_v38  ;;  %v16263_v32 = vld [vmem:[%s20986_s4 + $0x3f8] sm:$0xff]  }
 0x496   : > { %15348 = vmatprep.subr.bf16.mxu1 %v16249_v60  ;;  %v16278_v18 = vld [vmem:[%s20986_s4 + $0x338] sm:$0xff]  }
 0x498   : > { %15209 = vmatpush3.bf16.msra.mxu0 %v16248_v38  ;;  %v7971_v38 = vld [vmem:[#allocation3 + $0x3b] sm:$0xff] }
 0x499   : > { %15349 = vmatpush3.bf16.msra.mxu1 %v16249_v60  ;;  %15210 = vmatprep.subr.bf16.mxu0 %v16250_v49  ;;  %v7981_v60 = vpack.c.bf16 %v7972_v43, %v7971_v38  ;;  %v16279_v43 = vld [vmem:[%s20986_s4 + $0x478] sm:$0xff]  }
 0x49a   : > { %15171 = vmatmul.mubr.bf16.gmra.mxu0 %v6750_v13  ;;  %15350 = vmatprep.subr.bf16.mxu1 %v16251_v0  ;;  %v7093_v13 = vld [vmem:[#allocation3 + $0x3f] sm:$0xff] }
 0x49b   : > { %15311 = vmatmul.mubr.bf16.gmra.mxu1 %v7630_v6  ;;  %15174 = vmatprep.mubr.bf16.mxu0 %v6751_v61  ;;  %v7973_v6 = vld [vmem:[#allocation3 + $0x4b] sm:$0xff]  ;;  %v7443_v38 = vld [vmem:[#allocation3 + $0x38] sm:$0xff] }
 0x49c   : > { %15211 = vmatpush3.bf16.msra.mxu0 %v16250_v49  ;;  %15314 = vmatprep.mubr.bf16.mxu1 %v7631_v2  ;;  %v7094_v49 = vld [vmem:[#allocation3 + $0x47] sm:$0xff]  ;;  %v7095_v61 = vld [vmem:[#allocation3 + $0x4f] sm:$0xff] }
 0x49d   : > { %15351 = vmatpush3.bf16.msra.mxu1 %v16251_v0  ;;  %15212 = vmatprep.subr.bf16.mxu0 %v16252_v52  ;;  %v16266_v0 = vld [vmem:[%s20986_s4 + $0x2a8] sm:$0xff]   ;;  %v7102_v34 = vpack.c.bf16 %v7094_v49, %v7093_v13  ;;  %v7103_v2 = vpack.c.bf16 %v7096_v26, %v7095_v61  ;;  %v16280_v49 = vld [vmem:[%s20986_s4 + $0x330] sm:$0xff]  }
 0x49e   : > { %15352 = vmatprep.subr.bf16.mxu1 %v16253_v29  ;;  %v7446_v13 = vld [vmem:[#allocation3 + $0x50] sm:$0xff] }
 0x4a0   : > { %15213 = vmatpush3.bf16.msra.mxu0 %v16252_v52  ;;  %v7982_v52 = vpack.c.bf16 %v7974_v1, %v7973_v6  ;;  %v16281_v1 = vld [vmem:[%s20986_s4 + $0x470] sm:$0xff]   ;;  %v7448_v6 = vld [vmem:[#allocation3 + $0x60] sm:$0xff] }
 0x4a1   : > { %15353 = vmatpush3.bf16.msra.mxu1 %v16253_v29  ;;  %15214 = vmatprep.subr.bf16.mxu0 %v16254_v54  ;;  %v7975_v29 = vld [vmem:[#allocation3 + $0x5b] sm:$0xff] }
 0x4a2   : > { %15175 = vmatmul.mubr.bf16.gmra.mxu0 %v6752_v14  ;;  %15354 = vmatprep.subr.bf16.mxu1 %v16255_v41  ;;  %v7440_v14 = vld [vmem:[#allocation3 + $0x20] sm:$0xff] }
 0x4a3   : > { %15315 = vmatmul.mubr.bf16.gmra.mxu1 %v7632_v20  ;;  %15222 = vmatprep.mubr.bf16.mxu0 %v7099_v50  ;;  %v7977_v20 = vld [vmem:[#allocation3 + $0x6b] sm:$0xff]  ;;  %v7439_v50 = vld [vmem:[#allocation3 + $0x18] sm:$0xff] }
 0x4a4   : > { %15215 = vmatpush3.bf16.msra.mxu0 %v16254_v54  ;;  %15362 = vmatprep.mubr.bf16.mxu1 %v7979_v35  ;;  %v7983_v54 = vpack.c.bf16 %v7976_v17, %v7975_v29  ;;  %v7984_v31 = vpack.c.bf16 %v7978_v36, %v7977_v20  ;;  %v19282_v35 = vld [vmem:[#allocation3 + $0x24] sm:$0xff]  ;;  %v7450_v20 = vld [vmem:[#allocation3 + $0x70] sm:$0xff] }
 0x4a5   : > { %15355 = vmatpush3.bf16.msra.mxu1 %v16255_v41  ;;  %15216 = vmatprep.subr.bf16.mxu0 %v16256_v62  ;;  %v7098_v41 = vld [vmem:[#allocation3 + $0x67] sm:$0xff] }
 0x4a6   : > { %15356 = vmatprep.subr.bf16.mxu1 %v16257_v7  ;;  %v7104_v16 = vpack.c.bf16 %v7098_v41, %v7097_v44  ;;  %v16282_v17 = vld [vmem:[%s20986_s4 + $0x328] sm:$0xff]   ;;  %v16284_v36 = vld [vmem:[%s20986_s4 + $0x320] sm:$0xff]  }
 0x4a8   : > { %15217 = vmatpush3.bf16.msra.mxu0 %v16256_v62  ;;  %v7451_v62 = vpack.c.bf16 %v7440_v14, %v7439_v50  ;;  %v16285_v14 = vld [vmem:[%s20986_s4 + $0x460] sm:$0xff]   ;;  %v16286_v50 = vld [vmem:[%s20986_s4 + $0x318] sm:$0xff]  }
 0x4a9   : > { %15357 = vmatpush3.bf16.msra.mxu1 %v16257_v7  ;;  %15218 = vmatprep.subr.bf16.mxu0 %v16258_v56  ;;  %v16272_v7 = vld [vmem:[%s20986_s4 + $0x290] sm:$0xff]  }
 0x4aa   : > { %15358 = vmatprep.subr.bf16.mxu1 %v16259_v59 }
 0x4ac   : > { %15219 = vmatpush3.bf16.msra.mxu0 %v16258_v56  ;;  %v8331_v56 = vpack.c.bf16 %v18932_v22, %v19282_v35 }
 0x4ad   : > { %15359 = vmatpush3.bf16.msra.mxu1 %v16259_v59  ;;  %15220 = vmatprep.subr.bf16.mxu0 %v16260_v53  ;;  %v16273_v59 = vld [vmem:[%s20986_s4 + $0x3d0] sm:$0xff]  }
 0x4ae   : > { %15360 = vmatprep.subr.bf16.mxu1 %v16261_v25 }
 0x4b0   : > { %15221 = vmatpush3.bf16.msra.mxu0 %v16260_v53  ;;  %v16274_v53 = vld [vmem:[%s20986_s4 + $0x288] sm:$0xff]  }
 0x4b1   : > { %15361 = vmatpush3.bf16.msra.mxu1 %v16261_v25  ;;  %15262 = vmatprep.subr.bf16.mxu0 %v16262_v58  ;;  %v16275_v25 = vld [vmem:[%s20986_s4 + $0x3c8] sm:$0xff]  }
 0x4b2   : > { %15402 = vmatprep.subr.bf16.mxu1 %v16263_v32 }
 0x4b3   : > { %15223 = vmatmul.mubr.bf16.vlgmr.msra.gmra.mxu0 %v7100_v15  ;;  %v7444_v15 = vld [vmem:[#allocation3 + $0x40] sm:$0xff] }
 0x4b4   : > { %15363 = vmatmul.mubr.bf16.vlgmr.msra.gmra.mxu1 %v7980_v19  ;;  %15226 = vmatprep.mubr.bf16.mxu0 %v7101_v47  ;;  %v7441_v19 = vld [vmem:[#allocation3 + $0x28] sm:$0xff] }
 0x4b5   : > { %15263 = vmatpush3.bf16.msra.mxu0 %v16262_v58  ;;  %15366 = vmatprep.mubr.bf16.mxu1 %v7981_v60  ;;  %v16276_v58 = vld [vmem:[%s20986_s4 + $0x280] sm:$0xff]   ;;  %v19318_v47 = vpack.c.bf16 %v7442_v9, %v7441_v19 }
 0x4b6   : > { %15403 = vmatpush3.bf16.msra.mxu1 %v16263_v32  ;;  %15264 = vmatprep.subr.bf16.mxu0 %v16264_v24 }
 0x4b7   : > { %15404 = vmatprep.subr.bf16.mxu1 %v16265_v21 }
 0x4b9   : > { %15265 = vmatpush3.bf16.msra.mxu0 %v16264_v24  ;;  %v16621_v24 = vld [vmem:[#allocation3 + $0x34] sm:$0xff] }
 0x4ba   : > { %15405 = vmatpush3.bf16.msra.mxu1 %v16265_v21  ;;  %15266 = vmatprep.subr.bf16.mxu0 %v16266_v0  ;;  %v8332_v60 = vpack.c.bf16 %v18962_v63, %v16621_v24  ;;  %v19321_v21 = vpack.c.bf16 %v7444_v15, %v7443_v38  ;;  %v16288_v15 = vld [vmem:[%s20986_s4 + $0x310] sm:$0xff]  }
 0x4bb   : > { %15227 = vmatmul.mubr.bf16.gmra.mxu0 %v7102_v34  ;;  %15406 = vmatprep.subr.bf16.mxu1 %v16267_v48  ;;  %v16283_v34 = vld [vmem:[%s20986_s4 + $0x468] sm:$0xff]   ;;  %v16289_v38 = vld [vmem:[%s20986_s4 + $0x450] sm:$0xff]  }
 0x4bc   : > { %15367 = vmatmul.mubr.bf16.gmra.mxu1 %v7982_v52  ;;  %15230 = vmatprep.mubr.bf16.mxu0 %v7103_v2  ;;  %v7445_v2 = vld [vmem:[#allocation3 + $0x48] sm:$0xff] }
 0x4bd   : > { %15267 = vmatpush3.bf16.msra.mxu0 %v16266_v0  ;;  %15370 = vmatprep.mubr.bf16.mxu1 %v7983_v54  ;;  %v8333_v0 = vpack.c.bf16 %v19000_v57, %v18964_v33  ;;  %v19347_v29 = vpack.c.bf16 %v7446_v13, %v7445_v2  ;;  %v8334_v54 = vpack.c.bf16 %v19009_v5, %v19002_v8  ;;  %v16293_v2 = vld [vmem:[%s20986_s4 + $0x440] sm:$0xff]  }
 0x4be   : > { %15407 = vmatpush3.bf16.msra.mxu1 %v16267_v48  ;;  %15268 = vmatprep.subr.bf16.mxu0 %v16268_v12 }
 0x4bf   : > { %15408 = vmatprep.subr.bf16.mxu1 %v16269_v23 }
 0x4c1   : > { %15269 = vmatpush3.bf16.msra.mxu0 %v16268_v12  ;;  %v7447_v12 = vld [vmem:[#allocation3 + $0x58] sm:$0xff] }
 0x4c2   : > { %15409 = vmatpush3.bf16.msra.mxu1 %v16269_v23  ;;  %15270 = vmatprep.subr.bf16.mxu0 %v16270_v55 }
 0x4c3   : > { %15231 = vmatmul.mubr.bf16.gmra.mxu0 %v7104_v16  ;;  %15410 = vmatprep.subr.bf16.mxu1 %v16271_v51 }
 0x4c4   : > { %15371 = vmatmul.mubr.bf16.gmra.mxu1 %v7984_v31  ;;  %15278 = vmatprep.mubr.bf16.mxu0 %v7451_v62  ;;  %v8330_v31 = vld [vmem:[#allocation3 + $0x7c] sm:$0xff] }
 0x4c5   : > { %15271 = vmatpush3.bf16.msra.mxu0 %v16270_v55  ;;  %15418 = vmatprep.mubr.bf16.mxu1 %v8331_v56  ;;  %v19355_v55 = vpack.c.bf16 %v7448_v6, %v7447_v12  ;;  %v16287_v62 = vld [vmem:[%s20986_s4 + $0x458] sm:$0xff]   ;;  %v7449_v56 = vld [vmem:[#allocation3 + $0x68] sm:$0xff]  ;;  %v16292_v6 = vld [vmem:[%s20986_s4 + $0x300] sm:$0xff]  }
 0x4c6   : > { %15411 = vmatpush3.bf16.msra.mxu1 %v16271_v51  ;;  %15272 = vmatprep.subr.bf16.mxu0 %v16272_v7  ;;  %v8335_v51 = vpack.c.bf16 %v19034_v10, %v19011_v42 }
 0x4c7   : > { %15412 = vmatprep.subr.bf16.mxu1 %v16273_v59 }
 0x4c8   : > { %v19304_v32 = vpop.f32.mrf.mxu0 }
 0x4c9   : > { %15273 = vmatpush3.bf16.msra.mxu0 %v16272_v7  ;;  %v19306_v39 = vpop.f32.mrf.mxu1  ;;  %v7792_v7 = vld [vmem:[#allocation3 + $0x22] sm:$0xff] }
 0x4ca   : > { %15413 = vmatpush3.bf16.msra.mxu1 %v16273_v59  ;;  %15274 = vmatprep.subr.bf16.mxu0 %v16274_v53  ;;  %v19314_v37 = vpop.f32.mrf.mxu0  ;;  %v8672_v59 = vld [vmem:[#allocation3 + $0x2e] sm:$0xff] }
 0x4cb   : > { %15414 = vmatprep.subr.bf16.mxu1 %v16275_v25  ;;  %v19316_v4 = vpop.f32.mrf.mxu1 }
 0x4cc   : > { %v19332_v48 = vpop.f32.mrf.mxu0 }
 0x4cd   : > { %15275 = vmatpush3.bf16.msra.mxu0 %v16274_v53  ;;  %v19334_v26 = vpop.f32.mrf.mxu1  ;;  %v19377_v53 = vpack.c.bf16 %v7450_v20, %v7449_v56  ;;  %v7794_v20 = vld [vmem:[#allocation3 + $0x32] sm:$0xff]  ;;  %v7796_v56 = vld [vmem:[#allocation3 + $0x42] sm:$0xff] }
 0x4ce   : > { %15415 = vmatpush3.bf16.msra.mxu1 %v16275_v25  ;;  %15276 = vmatprep.subr.bf16.mxu0 %v16276_v58  ;;  %v19343_v61 = vpop.f32.mrf.mxu0  ;;  %v7791_v25 = vld [vmem:[#allocation3 + $0x1a] sm:$0xff] }
 0x4cf   : > { %15416 = vmatprep.subr.bf16.mxu1 %v16277_v28  ;;  %21266 = vst [vmem:[#allocation57_spill] sm:$0xff] %v19343_v61  ;;  %v19345_v52 = vpop.f32.mrf.mxu1  ;;  %v7803_v9 = vpack.c.bf16 %v7792_v7, %v7791_v25  ;;  %v9731_v61 = vld [vmem:[#allocation3 + $0x53] sm:$0xff] }
 0x4d0   : > { %21267 = vst [vmem:[#allocation58_spill] sm:$0xff] %v19345_v52 }
 0x4d1   : > { %15277 = vmatpush3.bf16.msra.mxu0 %v16276_v58 }
 0x4d2   : > { %15417 = vmatpush3.bf16.msra.mxu1 %v16277_v28  ;;  %15318 = vmatprep.subr.bf16.mxu0 %v16278_v18 }
 0x4d3   : > { %15458 = vmatprep.subr.bf16.mxu1 %v16279_v43 }
 0x4d4   : > { %15279 = vmatmul.mubr.bf16.vlgmr.msra.gmra.mxu0 %v19318_v47 }
 0x4d5   : > { %15419 = vmatmul.mubr.bf16.vlgmr.msra.gmra.mxu1 %v8332_v60  ;;  %15282 = vmatprep.mubr.bf16.mxu0 %v19321_v21 }
 0x4d6   : > { %15319 = vmatpush3.bf16.msra.mxu0 %v16278_v18  ;;  %15422 = vmatprep.mubr.bf16.mxu1 %v8333_v0  ;;  %v8336_v18 = vpack.c.bf16 %v8330_v31, %v19036_v45  ;;  %v16291_v0 = vld [vmem:[%s20986_s4 + $0x448] sm:$0xff]   ;;  %v8674_v31 = vld [vmem:[#allocation3 + $0x3e] sm:$0xff] }
 0x4d7   : > { %15459 = vmatpush3.bf16.msra.mxu1 %v16279_v43  ;;  %15320 = vmatprep.subr.bf16.mxu0 %v16280_v49  ;;  %v8671_v43 = vld [vmem:[#allocation3 + $0x26] sm:$0xff] }
 0x4d8   : > { %15460 = vmatprep.subr.bf16.mxu1 %v16281_v1  ;;  %v19351_v23 = vpop.f32.mrf.mxu0  ;;  %v8683_v19 = vpack.c.bf16 %v8672_v59, %v8671_v43  ;;  %v7793_v59 = vld [vmem:[#allocation3 + $0x2a] sm:$0xff]  ;;  %v8673_v43 = vld [vmem:[#allocation3 + $0x36] sm:$0xff] }
 0x4d9   : > { %v19353_v41 = vpop.f32.mrf.mxu1 }
 0x4da   : > { %15321 = vmatpush3.bf16.msra.mxu0 %v16280_v49  ;;  %v19367_v44 = vpop.f32.mrf.mxu0  ;;  %v16290_v49 = vld [vmem:[%s20986_s4 + $0x308] sm:$0xff]  }
 0x4db   : > { %15461 = vmatpush3.bf16.msra.mxu1 %v16281_v1  ;;  %15322 = vmatprep.subr.bf16.mxu0 %v16282_v17  ;;  %v19369_v16 = vpop.f32.mrf.mxu1 }
 0x4dc   : > { %15283 = vmatmul.mubr.bf16.gmra.mxu0 %v19347_v29  ;;  %15462 = vmatprep.subr.bf16.mxu1 %v16283_v34  ;;  %v19379_v58 = vpop.f32.mrf.mxu0 }
 0x4dd   : > { %15423 = vmatmul.mubr.bf16.gmra.mxu1 %v8334_v54  ;;  %15286 = vmatprep.mubr.bf16.mxu0 %v19355_v55  ;;  %v19381_v28 = vpop.f32.mrf.mxu1 }
 0x4de   : > { %15323 = vmatpush3.bf16.msra.mxu0 %v16282_v17  ;;  %15426 = vmatprep.mubr.bf16.mxu1 %v8335_v51  ;;  %v19391_v24 = vpop.f32.mrf.mxu0 }
 0x4df   : > { %15463 = vmatpush3.bf16.msra.mxu1 %v16283_v34  ;;  %15324 = vmatprep.subr.bf16.mxu0 %v16284_v36  ;;  %21268 = vst [vmem:[#allocation59_spill] sm:$0xff] %v19391_v24  ;;  %v19393_v60 = vpop.f32.mrf.mxu1  ;;  %v9379_v24 = vld [vmem:[#allocation3 + $0x51] sm:$0xff] }
 0x4e0   : > { %15464 = vmatprep.subr.bf16.mxu1 %v16285_v14  ;;  %21269 = vst [vmem:[#allocation60_spill] sm:$0xff] %v19393_v60  ;;  %v8679_v60 = vld [vmem:[#allocation3 + $0x66] sm:$0xff] }
 0x4e2   : > { %15325 = vmatpush3.bf16.msra.mxu0 %v16284_v36 }
 0x4e3   : > { %15465 = vmatpush3.bf16.msra.mxu1 %v16285_v14  ;;  %15326 = vmatprep.subr.bf16.mxu0 %v16286_v50  ;;  %v16294_v14 = vld [vmem:[%s20986_s4 + $0x3b8] sm:$0xff]  }
 0x4e4   : > { %15287 = vmatmul.mubr.bf16.gmra.mxu0 %v19377_v53  ;;  %15466 = vmatprep.subr.bf16.mxu1 %v16287_v62 }
 0x4e5   : > { %15427 = vmatmul.mubr.bf16.gmra.mxu1 %v8336_v18  ;;  %15334 = vmatprep.mubr.bf16.mxu0 %v7803_v9  ;;  %v8676_v18 = vld [vmem:[#allocation3 + $0x4e] sm:$0xff]  ;;  %v7804_v9 = vpack.c.bf16 %v7794_v20, %v7793_v59 }
 0x4e6   : > { %15327 = vmatpush3.bf16.msra.mxu0 %v16286_v50  ;;  %15474 = vmatprep.mubr.bf16.mxu1 %v8683_v19  ;;  %v16295_v50 = vld [vmem:[%s20986_s4 + $0x4f8] sm:$0xff]   ;;  %v16298_v59 = vld [vmem:[%s20986_s4 + $0x3a8] sm:$0xff]  }
 0x4e7   : > { %15467 = vmatpush3.bf16.msra.mxu1 %v16287_v62  ;;  %15328 = vmatprep.subr.bf16.mxu0 %v16288_v15 }
 0x4e8   : > { %15468 = vmatprep.subr.bf16.mxu1 %v16289_v38  ;;  %v19401_v1 = vpop.f32.mrf.mxu0 }
 0x4e9   : > { %v19403_v13 = vpop.f32.mrf.mxu1 }
 0x4ea   : > { %15329 = vmatpush3.bf16.msra.mxu0 %v16288_v15  ;;  %v19405_v17 = vpop.f32.mrf.mxu0  ;;  %v7795_v15 = vld [vmem:[#allocation3 + $0x3a] sm:$0xff] }
 0x4eb   : > { %15469 = vmatpush3.bf16.msra.mxu1 %v16289_v38  ;;  %15330 = vmatprep.subr.bf16.mxu0 %v16290_v49  ;;  %v19407_v34 = vpop.f32.mrf.mxu1 }
 0x4ec   : > { %15470 = vmatprep.subr.bf16.mxu1 %v16291_v0  ;;  %v19415_v12 = vpop.f32.mrf.mxu0 }
 0x4ed   : > { %v19417_v54 = vpop.f32.mrf.mxu1 }
 0x4ee   : > { %15331 = vmatpush3.bf16.msra.mxu0 %v16290_v49  ;;  %v19419_v36 = vpop.f32.mrf.mxu0  ;;  %v8684_v49 = vpack.c.bf16 %v8674_v31, %v8673_v43  ;;  %v7800_v43 = vld [vmem:[#allocation3 + $0x62] sm:$0xff] }
 0x4ef   : > { %15471 = vmatpush3.bf16.msra.mxu1 %v16291_v0  ;;  %15332 = vmatprep.subr.bf16.mxu0 %v16292_v6  ;;  %v19421_v51 = vpop.f32.mrf.mxu1  ;;  %v7805_v0 = vpack.c.bf16 %v7796_v56, %v7795_v15  ;;  %v7797_v15 = vld [vmem:[#allocation3 + $0x4a] sm:$0xff] }
 0x4f0   : > { %15472 = vmatprep.subr.bf16.mxu1 %v16293_v2  ;;  %v15028_v62 = vpop.f32.mrf.mxu0 }
 0x4f1   : > { %v19429_v7 = vpop.f32.mrf.mxu1  ;;  %v19432_v25 = vadd.f32 %v15028_v62, %v19304_v32  ;;  %v16296_v32 = vld [vmem:[%s20986_s4 + $0x3b0] sm:$0xff]  }
 0x4f2   : > { %15333 = vmatpush3.bf16.msra.mxu0 %v16292_v6  ;;  %v5984_v19 = vpop.f32.mrf.mxu0  ;;  %v8685_v6 = vpack.c.bf16 %v8676_v18, %v8675_v11  ;;  %v7798_v11 = vld [vmem:[#allocation3 + $0x52] sm:$0xff]  ;;  %v8678_v18 = vld [vmem:[#allocation3 + $0x5e] sm:$0xff] }
 0x4f3   : > { %15473 = vmatpush3.bf16.msra.mxu1 %v16293_v2  ;;  %15374 = vmatprep.subr.bf16.mxu0 %v16294_v14  ;;  %v19434_v38 = vpop.f32.mrf.mxu1  ;;  %v19437_v27 = vadd.f32 %v5984_v19, %v19314_v37  ;;  %v16297_v2 = vld [vmem:[%s20986_s4 + $0x4f0] sm:$0xff]  }
 0x4f4   : > { %15514 = vmatprep.subr.bf16.mxu1 %v16295_v50  ;;  %v15029_v20 = vpop.f32.mrf.mxu0 }
 0x4f5   : > { %15335 = vmatmul.mubr.bf16.vlgmr.msra.gmra.mxu0 %v7804_v9  ;;  %v19445_v62 = vpop.f32.mrf.mxu1  ;;  %v19448_v31 = vadd.f32 %v15029_v20, %v19332_v48  ;;  %v16299_v48 = vld [vmem:[%s20986_s4 + $0x4e8] sm:$0xff]  }
 0x4f6   : > { %15475 = vmatmul.mubr.bf16.vlgmr.msra.gmra.mxu1 %v8684_v49  ;;  %15338 = vmatprep.mubr.bf16.mxu0 %v7805_v0  ;;  %v19450_v37 = vpop.f32.mrf.mxu0  ;;  %v7806_v49 = vpack.c.bf16 %v7798_v11, %v7797_v15  ;;  %v8677_v0 = vld [vmem:[#allocation3 + $0x56] sm:$0xff]  ;;  %v16301_v11 = vld [vmem:[%s20986_s4 + $0x4e0] sm:$0xff]  }
 0x4f7   : > { %15375 = vmatpush3.bf16.msra.mxu0 %v16294_v14  ;;  %15478 = vmatprep.mubr.bf16.mxu1 %v8685_v6  ;;  %21270 = vst [vmem:[#allocation61_spill] sm:$0xff] %v19450_v37  ;;  %v19452_v56 = vpop.f32.mrf.mxu1  ;;  %v7799_v6 = vld [vmem:[#allocation3 + $0x5a] sm:$0xff]  ;;  %v8686_v46 = vpack.c.bf16 %v8678_v18, %v8677_v0 }
 0x4f8   : > { %21271 = vst [vmem:[#allocation62_spill] sm:$0xff] %v19452_v56  ;;  %15515 = vmatpush3.bf16.msra.mxu1 %v16295_v50  ;;  %15376 = vmatprep.subr.bf16.mxu0 %v16296_v32  ;;  %v15032_v9 = vpop.f32.mrf.mxu0  ;;  %v8680_v50 = vld [vmem:[#allocation3 + $0x6e] sm:$0xff]  ;;  %v7807_v40 = vpack.c.bf16 %v7800_v43, %v7799_v6  ;;  %v16302_v15 = vld [vmem:[%s20986_s4 + $0x398] sm:$0xff]  }
 0x4f9   : > { %15516 = vmatprep.subr.bf16.mxu1 %v16297_v2  ;;  %v19460_v14 = vpop.f32.mrf.mxu1  ;;  %v19463_v19 = vadd.f32 %v15032_v9, %v19351_v23  ;;  %v16300_v23 = vld [vmem:[%s20986_s4 + $0x3a0] sm:$0xff]  }
 0x4fa   : > { %v6000_v20 = vpop.f32.mrf.mxu0  ;;  %v8143_v6 = vld [vmem:[#allocation3 + $0x1c] sm:$0xff] }
 0x4fb   : > { %15377 = vmatpush3.bf16.msra.mxu0 %v16296_v32  ;;  %v19465_v3 = vpop.f32.mrf.mxu1  ;;  %v19468_v56 = vadd.f32 %v6000_v20, %v19367_v44  ;;  %v8687_v32 = vpack.c.bf16 %v8680_v50, %v8679_v60  ;;  %v7802_v60 = vld [vmem:[#allocation3 + $0x72] sm:$0xff]  ;;  %v8682_v50 = vld [vmem:[#allocation3 + $0x7e] sm:$0xff] }
 0x4fc   : > { %15517 = vmatpush3.bf16.msra.mxu1 %v16297_v2  ;;  %15378 = vmatprep.subr.bf16.mxu0 %v16298_v59  ;;  %v15033_v9 = vpop.f32.mrf.mxu0 }
 0x4fd   : > { %15339 = vmatmul.mubr.bf16.gmra.mxu0 %v7806_v49  ;;  %15518 = vmatprep.subr.bf16.mxu1 %v16299_v48  ;;  %v19476_v2 = vpop.f32.mrf.mxu1  ;;  %v19479_v18 = vadd.f32 %v15033_v9, %v19379_v58  ;;  %v7801_v58 = vld [vmem:[#allocation3 + $0x6a] sm:$0xff]  ;;  %v8155_v9 = vpack.c.bf16 %v19282_v35, %v8143_v6  ;;  %v16311_v6 = vld [vmem:[%s20986_s4 + $0x578] sm:$0xff]  }
 0x4fe   : > { %15479 = vmatmul.mubr.bf16.gmra.mxu1 %v8686_v46  ;;  %15342 = vmatprep.mubr.bf16.mxu0 %v7807_v40  ;;  %v19481_v44 = vpop.f32.mrf.mxu0  ;;  %v16303_v40 = vld [vmem:[%s20986_s4 + $0x4d8] sm:$0xff]   ;;  %v7808_v49 = vpack.c.bf16 %v7802_v60, %v7801_v58 }
 0x4ff   : > { %15379 = vmatpush3.bf16.msra.mxu0 %v16298_v59  ;;  %15482 = vmatprep.mubr.bf16.mxu1 %v8687_v32  ;;  %21272 = vst [vmem:[#allocation63_spill] sm:$0xff] %v19481_v44  ;;  %v19483_v43 = vpop.f32.mrf.mxu1  ;;  %v16310_v58 = vld [vmem:[%s20986_s4 + $0x438] sm:$0xff]  }
 0x500   : > { %21273 = vst [vmem:[#allocation64_spill] sm:$0xff] %v19483_v43  ;;  %15519 = vmatpush3.bf16.msra.mxu1 %v16299_v48  ;;  %15380 = vmatprep.subr.bf16.mxu0 %v16300_v23  ;;  %v15036_v46 = vpop.f32.mrf.mxu0  ;;  %v8681_v48 = vld [vmem:[#allocation3 + $0x76] sm:$0xff] }
 0x501   : > { %15520 = vmatprep.subr.bf16.mxu1 %v16301_v11  ;;  %v19492_v59 = vadd.f32 %v15036_v46, %v19401_v1  ;;  %v19494_v0 = vpop.f32.mrf.mxu1  ;;  %v8688_v32 = vpack.c.bf16 %v8682_v50, %v8681_v48  ;;  %v16304_v1 = vld [vmem:[%s20986_s4 + $0x390] sm:$0xff]   ;;  %v16307_v50 = vld [vmem:[%s20986_s4 + $0x4c8] sm:$0xff]  }
 0x502   : > { %v6016_v20 = vpop.f32.mrf.mxu0 }
 0x503   : > { %15381 = vmatpush3.bf16.msra.mxu0 %v16300_v23  ;;  %v19498_v43 = vadd.f32 %v6016_v20, %v19405_v17  ;;  %v16305_v23 = vld [vmem:[%s20986_s4 + $0x4d0] sm:$0xff]   ;;  %v19510_v35 = vpop.f32.mrf.mxu1  ;;  %v16306_v17 = vld [vmem:[%s20986_s4 + $0x388] sm:$0xff]  }
 0x504   : > { %15521 = vmatpush3.bf16.msra.mxu1 %v16301_v11  ;;  %15382 = vmatprep.subr.bf16.mxu0 %v16302_v15  ;;  %v15037_v60 = vpop.f32.mrf.mxu0 }
 0x505   : > { %15343 = vmatmul.mubr.bf16.gmra.mxu0 %v7808_v49  ;;  %15522 = vmatprep.subr.bf16.mxu1 %v16303_v40  ;;  %v19507_v11 = vadd.f32 %v15037_v60, %v19415_v12  ;;  %v19518_v46 = vpop.f32.mrf.mxu1  ;;  %v16309_v12 = vld [vmem:[%s20986_s4 + $0x4c0] sm:$0xff]  }
 0x506   : > { %15483 = vmatmul.mubr.bf16.gmra.mxu1 %v8688_v32  ;;  %15390 = vmatprep.mubr.bf16.mxu0 %v8155_v9 }
 0x507   : > { %15383 = vmatpush3.bf16.msra.mxu0 %v16302_v15  ;;  %15530 = vmatprep.mubr.bf16.mxu1 %v19318_v47  ;;  %v16308_v47 = vld [vmem:[%s20986_s4 + $0x380] sm:$0xff]   ;;  %v19526_v15 = vpop.f32.mrf.mxu0 }
 0x508   : > { %15523 = vmatpush3.bf16.msra.mxu1 %v16303_v40  ;;  %15384 = vmatprep.subr.bf16.mxu0 %v16304_v1  ;;  %v19528_v40 = vpop.f32.mrf.mxu1 }
 0x509   : > { %15524 = vmatprep.subr.bf16.mxu1 %v16305_v23 }
 0x50b   : > { %15385 = vmatpush3.bf16.msra.mxu0 %v16304_v1 }
 0x50c   : > { %15525 = vmatpush3.bf16.msra.mxu1 %v16305_v23  ;;  %15386 = vmatprep.subr.bf16.mxu0 %v16306_v17 }
 0x50d   : > { %15526 = vmatprep.subr.bf16.mxu1 %v16307_v50 }
 0x50f   : > { %15387 = vmatpush3.bf16.msra.mxu0 %v16306_v17  ;;  %v16312_v17 = vld [vmem:[%s20986_s4 + $0x430] sm:$0xff]  }
 0x510   : > { %15527 = vmatpush3.bf16.msra.mxu1 %v16307_v50  ;;  %15388 = vmatprep.subr.bf16.mxu0 %v16308_v47  ;;  %v15056_v49 = vpop.f32.mrf.mxu0 }
 0x511   : > { %15528 = vmatprep.subr.bf16.mxu1 %v16309_v12  ;;  %v19533_v48 = vpop.f32.mrf.mxu1  ;;  %v19539_v20 = vadd.f32 %v15056_v49, %v19432_v25  ;;  %v21274_v25 = vpack.c.bf16 %v18934_v30, %v18932_v22 }
 0x512   : > { %v6148_v32 = vpop.f32.mrf.mxu0 }
 0x513   : > { %15389 = vmatpush3.bf16.msra.mxu0 %v16308_v47  ;;  %v19541_v9 = vpop.f32.mrf.mxu1  ;;  %v19544_v1 = vadd.f32 %v6148_v32, %v19437_v27  ;;  %v16313_v27 = vld [vmem:[%s20986_s4 + $0x570] sm:$0xff]   ;;  %v21275_v47 = vpack.c.bf16 %v18964_v33, %v18962_v63  ;;  %v16315_v33 = vld [vmem:[%s20986_s4 + $0x568] sm:$0xff]  }
 0x514   : > { %15529 = vmatpush3.bf16.msra.mxu1 %v16309_v12  ;;  %15430 = vmatprep.subr.bf16.mxu0 %v16310_v58  ;;  %v15057_v23 = vpop.f32.mrf.mxu0 }
 0x515   : > { %15570 = vmatprep.subr.bf16.mxu1 %v16311_v6  ;;  %v19546_v60 = vpop.f32.mrf.mxu1  ;;  %v19555_v50 = vadd.f32 %v15057_v23, %v19448_v31  ;;  %v21278_v23 = vpack.c.bf16 %v19002_v8, %v19000_v57 }
 0x516   : > { %15391 = vmatmul.mubr.bf16.vlgmr.msra.gmra.mxu0 %v21274_v25  ;;  %v19564_v12 = vpop.f32.mrf.mxu0 }
 0x517   : > { %15531 = vmatmul.mubr.bf16.vlgmr.msra.gmra.mxu1 %v19321_v21  ;;  %15394 = vmatprep.mubr.bf16.mxu0 %v21275_v47  ;;  %21276 = vst [vmem:[#allocation65_spill] sm:$0xff] %v19564_v12  ;;  %v19566_v49 = vpop.f32.mrf.mxu1  ;;  %v16314_v21 = vld [vmem:[%s20986_s4 + $0x428] sm:$0xff]   ;;  %v19612_v47 = vld [vmem:[#allocation3 + $0x80] sm:$0xff] }
 0x518   : > { %21277 = vst [vmem:[#allocation66_spill] sm:$0xff] %v19566_v49  ;;  %15431 = vmatpush3.bf16.msra.mxu0 %v16310_v58  ;;  %15534 = vmatprep.mubr.bf16.mxu1 %v19347_v29  ;;  %v15060_v22 = vpop.f32.mrf.mxu0  ;;  %v21282_v49 = vpack.c.bf16 %v19036_v45, %v19034_v10  ;;  %v16322_v45 = vld [vmem:[%s20986_s4 + $0x408] sm:$0xff]  }
 0x519   : > { %15571 = vmatpush3.bf16.msra.mxu1 %v16311_v6  ;;  %15432 = vmatprep.subr.bf16.mxu0 %v16312_v17  ;;  %v19569_v30 = vpop.f32.mrf.mxu1  ;;  %v19575_v63 = vadd.f32 %v15060_v22, %v19463_v19  ;;  %v16316_v19 = vld [vmem:[%s20986_s4 + $0x420] sm:$0xff]  }
 0x51a   : > { %15572 = vmatprep.subr.bf16.mxu1 %v16313_v27  ;;  %v6164_v31 = vpop.f32.mrf.mxu0 }
 0x51b   : > { %v19580_v58 = vpop.f32.mrf.mxu1  ;;  %v19583_v29 = vadd.f32 %v6164_v31, %v19468_v56  ;;  %v16317_v56 = vld [vmem:[%s20986_s4 + $0x560] sm:$0xff]  }
 0x51c   : > { %15433 = vmatpush3.bf16.msra.mxu0 %v16312_v17  ;;  %v15061_v6 = vpop.f32.mrf.mxu0  ;;  %v21279_v17 = vpack.c.bf16 %v19011_v42, %v19009_v5  ;;  %v16319_v5 = vld [vmem:[%s20986_s4 + $0x558] sm:$0xff]   ;;  %v8496_v42 = vld [vmem:[#allocation3 + $0x2d] sm:$0xff]  ;;  %v8495_v31 = vld [vmem:[#allocation3 + $0x25] sm:$0xff] }
 0x51d   : > { %15573 = vmatpush3.bf16.msra.mxu1 %v16313_v27  ;;  %15434 = vmatprep.subr.bf16.mxu0 %v16314_v21  ;;  %v19585_v32 = vpop.f32.mrf.mxu1  ;;  %v19594_v25 = vadd.f32 %v15061_v6, %v19479_v18  ;;  %v16318_v18 = vld [vmem:[%s20986_s4 + $0x418] sm:$0xff]  }
 0x51e   : > { %15395 = vmatmul.mubr.bf16.gmra.mxu0 %v21278_v23  ;;  %15574 = vmatprep.subr.bf16.mxu1 %v16315_v33  ;;  %v19603_v27 = vpop.f32.mrf.mxu0 }
 0x51f   : > { %15535 = vmatmul.mubr.bf16.gmra.mxu1 %v19355_v55  ;;  %15398 = vmatprep.mubr.bf16.mxu0 %v21279_v17  ;;  %21280 = vst [vmem:[#allocation67_spill] sm:$0xff] %v19603_v27  ;;  %v19606_v57 = vpop.f32.mrf.mxu1  ;;  %v8507_v17 = vpack.c.bf16 %v8496_v42, %v8495_v31  ;;  %v8499_v27 = vld [vmem:[#allocation3 + $0x45] sm:$0xff] }
 0x520   : > { %15435 = vmatpush3.bf16.msra.mxu0 %v16314_v21  ;;  %15538 = vmatprep.mubr.bf16.mxu1 %v19377_v53  ;;  %21281 = vst [vmem:[#allocation68_spill] sm:$0xff] %v19606_v57  ;;  %v15064_v8 = vpop.f32.mrf.mxu0  ;;  %v9376_v53 = vld [vmem:[#allocation3 + $0x39] sm:$0xff] }
 0x521   : > { %15575 = vmatpush3.bf16.msra.mxu1 %v16315_v33  ;;  %15436 = vmatprep.subr.bf16.mxu0 %v16316_v19  ;;  %v6205_v55 = vadd.f32 %v15064_v8, %v19492_v59  ;;  %v19617_v21 = vpop.f32.mrf.mxu1  ;;  %v19619_v33 = vld [vmem:[#allocation3 + $0x78] sm:$0xff] }
 0x522   : > { %15576 = vmatprep.subr.bf16.mxu1 %v16317_v56  ;;  %v6180_v22 = vpop.f32.mrf.mxu0  ;;  %v9040_v59 = vpack.c.bf16 %v19612_v47, %v19619_v33  ;;  %v9375_v8 = vld [vmem:[#allocation3 + $0x31] sm:$0xff] }
 0x523   : > { %v6203_v6 = vadd.f32 %v6180_v22, %v19498_v43  ;;  %v19623_v23 = vadd.f32 %v19403_v13, %v6205_v55  ;;  %v9387_v43 = vpack.c.bf16 %v9376_v53, %v9375_v8  ;;  %v19640_v42 = vpop.f32.mrf.mxu1  ;;  %v16326_v22 = vld [vmem:[%s20986_s4 + $0x4b8] sm:$0xff]   ;;  %v8500_v8 = vld [vmem:[#allocation3 + $0x4d] sm:$0xff] }
 0x524   : > { %15437 = vmatpush3.bf16.msra.mxu0 %v16316_v19  ;;  %v15065_v57 = vpop.f32.mrf.mxu0  ;;  %v16320_v19 = vld [vmem:[%s20986_s4 + $0x410] sm:$0xff]  }
 0x525   : > { %15577 = vmatpush3.bf16.msra.mxu1 %v16317_v56  ;;  %15438 = vmatprep.subr.bf16.mxu0 %v16318_v18  ;;  %v6206_v13 = vadd.f32 %v15065_v57, %v19507_v11  ;;  %v16321_v56 = vld [vmem:[%s20986_s4 + $0x550] sm:$0xff]   ;;  %v19638_v55 = vadd.f32 %v19407_v34, %v6203_v6  ;;  %v16323_v34 = vld [vmem:[%s20986_s4 + $0x548] sm:$0xff]   ;;  %v19651_v11 = vpop.f32.mrf.mxu1 }
 0x526   : > { %15399 = vmatmul.mubr.bf16.gmra.mxu0 %v21282_v49  ;;  %15578 = vmatprep.subr.bf16.mxu1 %v16319_v5  ;;  %v16325_v49 = vld [vmem:[%s20986_s4 + $0x540] sm:$0xff]   ;;  %v19659_v57 = vpop.f32.mrf.mxu0 }
 0x527   : > { %15539 = vmatmul.mubr.bf16.gmra.mxu1 %v9040_v59  ;;  %15446 = vmatprep.mubr.bf16.mxu0 %v8507_v17  ;;  %v19643_v10 = vadd.f32 %v19417_v54, %v6206_v13  ;;  %v16324_v54 = vld [vmem:[%s20986_s4 + $0x400] sm:$0xff]   ;;  %v16327_v17 = vld [vmem:[%s20986_s4 + $0x5f8] sm:$0xff]  }
 0x528   : > { %15439 = vmatpush3.bf16.msra.mxu0 %v16318_v18  ;;  %15586 = vmatprep.mubr.bf16.mxu1 %v9387_v43  ;;  %v19661_v18 = vpop.f32.mrf.mxu1  ;;  %v8498_v59 = vld [vmem:[#allocation3 + $0x3d] sm:$0xff]  ;;  %v8497_v43 = vld [vmem:[#allocation3 + $0x35] sm:$0xff] }
 0x529   : > { %15579 = vmatpush3.bf16.msra.mxu1 %v16319_v5  ;;  %15440 = vmatprep.subr.bf16.mxu0 %v16320_v19  ;;  %v6373_v5 = vadd.f32 %v19306_v39, %v19539_v20  ;;  %v6371_v39 = vadd.f32 %v19316_v4, %v19544_v1  ;;  %v9378_v20 = vld [vmem:[#allocation3 + $0x49] sm:$0xff]  ;;  %v9380_v13 = vld [vmem:[#allocation3 + $0x59] sm:$0xff]  ;;  %v8509_v1 = vpack.c.bf16 %v8500_v8, %v8499_v27 }
 0x52a   : > { %15580 = vmatprep.subr.bf16.mxu1 %v16321_v56  ;;  %v8502_v8 = vld [vmem:[#allocation3 + $0x5d] sm:$0xff] }
 0x52c   : > { %15441 = vmatpush3.bf16.msra.mxu0 %v16320_v19 }
 0x52d   : > { %15581 = vmatpush3.bf16.msra.mxu1 %v16321_v56  ;;  %15442 = vmatprep.subr.bf16.mxu0 %v16322_v45 }
 0x52e   : > { %15582 = vmatprep.subr.bf16.mxu1 %v16323_v34 }
 0x530   : > { %15443 = vmatpush3.bf16.msra.mxu0 %v16322_v45 }
 0x531   : > { %15583 = vmatpush3.bf16.msra.mxu1 %v16323_v34  ;;  %15444 = vmatprep.subr.bf16.mxu0 %v16324_v54  ;;  %v15112_v53 = vpop.f32.mrf.mxu0  ;;  %v6374_v34 = vadd.f32 %v19334_v26, %v19555_v50  ;;  %v9389_v26 = vpack.c.bf16 %v9380_v13, %v9379_v24  ;;  %v16329_v50 = vld [vmem:[%s20986_s4 + $0x5f0] sm:$0xff]  }
 0x532   : > { %15584 = vmatprep.subr.bf16.mxu1 %v16325_v49  ;;  %v19668_v31 = vadd.f32 %v15112_v53, %v6373_v5  ;;  %v19670_v6 = vpop.f32.mrf.mxu1  ;;  %v8508_v5 = vpack.c.bf16 %v8498_v59, %v8497_v43  ;;  %v9377_v53 = vld [vmem:[#allocation3 + $0x41] sm:$0xff]  ;;  %v6375_v43 = vadd.f32 %v19369_v16, %v19583_v29  ;;  %v9382_v13 = vld [vmem:[#allocation3 + $0x69] sm:$0xff] }
 0x533   : > { %v6500_v19 = vpop.f32.mrf.mxu0  ;;  %v9388_v4 = vpack.c.bf16 %v9378_v20, %v9377_v53  ;;  %v9381_v16 = vld [vmem:[#allocation3 + $0x61] sm:$0xff] }
 0x534   : > { %15445 = vmatpush3.bf16.msra.mxu0 %v16324_v54  ;;  %v19677_v56 = vadd.f32 %v6500_v19, %v6371_v39  ;;  %v19679_v45 = vpop.f32.mrf.mxu1  ;;  %v16328_v39 = vld [vmem:[%s20986_s4 + $0x4b0] sm:$0xff]   ;;  %v16330_v19 = vld [vmem:[%s20986_s4 + $0x4a8] sm:$0xff]  }
 0x535   : > { %15585 = vmatpush3.bf16.msra.mxu1 %v16325_v49  ;;  %15486 = vmatprep.subr.bf16.mxu0 %v16326_v22  ;;  %v15113_v44 = vpop.f32.mrf.mxu0  ;;  %v8503_v29 = vld [vmem:[#allocation3 + $0x65] sm:$0xff] }
 0x536   : > { %15626 = vmatprep.subr.bf16.mxu1 %v16327_v17  ;;  %v19683_v54 = vadd.f32 %v15113_v44, %v6374_v34  ;;  %v19685_v52 = vpop.f32.mrf.mxu1  ;;  %v6377_v44 = vadd.f32 %v19353_v41, %v19575_v63  ;;  %v16331_v41 = vld [vmem:[%s20986_s4 + $0x5e8] sm:$0xff]   ;;  %v9384_v34 = vld [vmem:[#allocation3 + $0x79] sm:$0xff] }
 0x537   : > { %15447 = vmatmul.mubr.bf16.vlgmr.msra.gmra.mxu0 %v8508_v5  ;;  %v19693_v49 = vpop.f32.mrf.mxu0  ;;  %v8504_v63 = vld [vmem:[#allocation3 + $0x6d] sm:$0xff] }
 0x538   : > { %21283 = vst [vmem:[#allocation69_spill] sm:$0xff] %v19693_v49  ;;  %15587 = vmatmul.mubr.bf16.vlgmr.msra.gmra.mxu1 %v9388_v4  ;;  %15450 = vmatprep.mubr.bf16.mxu0 %v8509_v1  ;;  %v19695_v27 = vpop.f32.mrf.mxu1  ;;  %v6378_v4 = vadd.f32 %v19381_v28, %v19594_v25  ;;  %v16333_v25 = vld [vmem:[%s20986_s4 + $0x5e0] sm:$0xff]  }
 0x539   : > { %21284 = vst [vmem:[#allocation70_spill] sm:$0xff] %v19695_v27  ;;  %15487 = vmatpush3.bf16.msra.mxu0 %v16326_v22  ;;  %15590 = vmatprep.mubr.bf16.mxu1 %v9389_v26  ;;  %v15116_v59 = vpop.f32.mrf.mxu0  ;;  %v9383_v27 = vld [vmem:[#allocation3 + $0x71] sm:$0xff] }
 0x53a   : > { %15627 = vmatpush3.bf16.msra.mxu1 %v16327_v17  ;;  %15488 = vmatprep.subr.bf16.mxu0 %v16328_v39  ;;  %v19699_v20 = vadd.f32 %v15116_v59, %v6377_v44  ;;  %v19701_v24 = vpop.f32.mrf.mxu1  ;;  %v8501_v17 = vld [vmem:[#allocation3 + $0x55] sm:$0xff]  ;;  %v9390_v44 = vpack.c.bf16 %v9382_v13, %v9381_v16  ;;  %v8511_v59 = vpack.c.bf16 %v8504_v63, %v8503_v29  ;;  %v8506_v63 = vld [vmem:[#allocation3 + $0x7d] sm:$0xff] }
 0x53b   : > { %15628 = vmatprep.subr.bf16.mxu1 %v16329_v50  ;;  %v6516_v22 = vpop.f32.mrf.mxu0  ;;  %v8510_v1 = vpack.c.bf16 %v8502_v8, %v8501_v17  ;;  %v9391_v28 = vpack.c.bf16 %v9384_v34, %v9383_v27  ;;  %v16334_v27 = vld [vmem:[%s20986_s4 + $0x498] sm:$0xff]   ;;  %v8848_v17 = vld [vmem:[#allocation3 + $0x2f] sm:$0xff]  ;;  %v9385_v29 = vld [vmem:[#allocation3 + $0x81] sm:$0xff] }
 0x53c   : > { %v19711_v5 = vadd.f32 %v6516_v22, %v6375_v43  ;;  %v19713_v53 = vpop.f32.mrf.mxu1  ;;  %v16332_v43 = vld [vmem:[%s20986_s4 + $0x4a0] sm:$0xff]   ;;  %v9386_v22 = vld [vmem:[#allocation3 + $0x89] sm:$0xff] }
 0x53d   : > { %15489 = vmatpush3.bf16.msra.mxu0 %v16328_v39  ;;  %v15117_v26 = vpop.f32.mrf.mxu0 }
 0x53e   : > { %15629 = vmatpush3.bf16.msra.mxu1 %v16329_v50  ;;  %15490 = vmatprep.subr.bf16.mxu0 %v16330_v19  ;;  %v19717_v49 = vadd.f32 %v15117_v26, %v6378_v4  ;;  %v19719_v12 = vpop.f32.mrf.mxu1  ;;  %v8505_v4 = vld [vmem:[#allocation3 + $0x75] sm:$0xff]  ;;  %v8847_v26 = vld [vmem:[#allocation3 + $0x27] sm:$0xff] }
 0x53f   : > { %15451 = vmatmul.mubr.bf16.gmra.mxu0 %v8510_v1  ;;  %15630 = vmatprep.subr.bf16.mxu1 %v16331_v41  ;;  %v19727_v39 = vpop.f32.mrf.mxu0  ;;  %v9728_v1 = vld [vmem:[#allocation3 + $0x3b] sm:$0xff]  ;;  %v8512_v16 = vpack.c.bf16 %v8506_v63, %v8505_v4  ;;  %v16337_v63 = vld [vmem:[%s20986_s4 + $0x5d0] sm:$0xff]  }
 0x540   : > { %21285 = vst [vmem:[#allocation71_spill] sm:$0xff] %v19727_v39  ;;  %15591 = vmatmul.mubr.bf16.gmra.mxu1 %v9390_v44  ;;  %15454 = vmatprep.mubr.bf16.mxu0 %v8511_v59  ;;  %v19729_v50 = vpop.f32.mrf.mxu1  ;;  %v9392_v59 = vpack.c.bf16 %v9386_v22, %v9385_v29  ;;  %v16339_v22 = vld [vmem:[%s20986_s4 + $0x5c8] sm:$0xff]   ;;  %v16342_v29 = vld [vmem:[%s20986_s4 + $0x538] sm:$0xff]  }
 0x541   : > { %15491 = vmatpush3.bf16.msra.mxu0 %v16330_v19  ;;  %15594 = vmatprep.mubr.bf16.mxu1 %v9391_v28  ;;  %21286 = vst [vmem:[#allocation72_spill] sm:$0xff] %v19729_v50  ;;  %v15120_v8 = vpop.f32.mrf.mxu0  ;;  %v16335_v19 = vld [vmem:[%s20986_s4 + $0x5d8] sm:$0xff]   ;;  %v8859_v28 = vpack.c.bf16 %v8848_v17, %v8847_v26  ;;  %v8851_v39 = vld [vmem:[#allocation3 + $0x47] sm:$0xff] }
 0x542   : > { %15631 = vmatpush3.bf16.msra.mxu1 %v16331_v41  ;;  %15492 = vmatprep.subr.bf16.mxu0 %v16332_v43  ;;  %v19732_v13 = vadd.f32 %v15120_v8, %v19623_v23  ;;  %v19743_v23 = vpop.f32.mrf.mxu1  ;;  %v9727_v8 = vld [vmem:[#allocation3 + $0x33] sm:$0xff] }
 0x543   : > { %15632 = vmatprep.subr.bf16.mxu1 %v16333_v25  ;;  %v6532_v34 = vpop.f32.mrf.mxu0 }
 0x544   : > { %v19741_v41 = vadd.f32 %v6532_v34, %v19638_v55  ;;  %v16336_v55 = vld [vmem:[%s20986_s4 + $0x490] sm:$0xff]  }
 0x545   : > { %15493 = vmatpush3.bf16.msra.mxu0 %v16332_v43  ;;  %v15121_v44 = vpop.f32.mrf.mxu0  ;;  %v9739_v43 = vpack.c.bf16 %v9728_v1, %v9727_v8  ;;  %v6725_v1 = vadd.f32 %v19429_v7, %v19668_v31  ;;  %v9730_v8 = vld [vmem:[#allocation3 + $0x4b] sm:$0xff]  ;;  %v8849_v7 = vld [vmem:[#allocation3 + $0x37] sm:$0xff] }
 0x546   : > { %15633 = vmatpush3.bf16.msra.mxu1 %v16333_v25  ;;  %15494 = vmatprep.subr.bf16.mxu0 %v16334_v27  ;;  %v19746_v50 = vadd.f32 %v15121_v44, %v19643_v10  ;;  %v19754_v25 = vpop.f32.mrf.mxu1  ;;  %v16338_v10 = vld [vmem:[%s20986_s4 + $0x488] sm:$0xff]   ;;  %v9732_v31 = vld [vmem:[#allocation3 + $0x5b] sm:$0xff] }
 0x547   : > { %15455 = vmatmul.mubr.bf16.gmra.mxu0 %v8512_v16  ;;  %15634 = vmatprep.subr.bf16.mxu1 %v16335_v19  ;;  %v19770_v34 = vpop.f32.mrf.mxu0 }
 0x548   : > { %15595 = vmatmul.mubr.bf16.gmra.mxu1 %v9392_v59  ;;  %15502 = vmatprep.mubr.bf16.mxu0 %v8859_v28  ;;  %v19762_v17 = vpop.f32.mrf.mxu1  ;;  %v8850_v59 = vld [vmem:[#allocation3 + $0x3f] sm:$0xff]  ;;  %v6723_v28 = vadd.f32 %v19434_v38, %v19677_v56 }
 0x549   : > { %15495 = vmatpush3.bf16.msra.mxu0 %v16334_v27  ;;  %15642 = vmatprep.mubr.bf16.mxu1 %v9739_v43  ;;  %v16340_v27 = vld [vmem:[%s20986_s4 + $0x480] sm:$0xff]  }
 0x54a   : > { %15635 = vmatpush3.bf16.msra.mxu1 %v16335_v19  ;;  %15496 = vmatprep.subr.bf16.mxu0 %v16336_v55  ;;  %v16341_v19 = vld [vmem:[%s20986_s4 + $0x5c0] sm:$0xff]   ;;  %v19772_v4 = vpop.f32.mrf.mxu1 }
 0x54b   : > { %15636 = vmatprep.subr.bf16.mxu1 %v16337_v63  ;;  %21287 = vst [vmem:[#allocation73_spill] sm:$0xff] %v19772_v4 }
 0x54d   : > { %15497 = vmatpush3.bf16.msra.mxu0 %v16336_v55  ;;  %v8852_v55 = vld [vmem:[#allocation3 + $0x4f] sm:$0xff] }
 0x54e   : > { %15637 = vmatpush3.bf16.msra.mxu1 %v16337_v63  ;;  %15498 = vmatprep.subr.bf16.mxu0 %v16338_v10  ;;  %v8861_v56 = vpack.c.bf16 %v8852_v55, %v8851_v39  ;;  %v6729_v39 = vadd.f32 %v19460_v14, %v19699_v20  ;;  %v9734_v55 = vld [vmem:[#allocation3 + $0x6b] sm:$0xff]  ;;  %v8853_v14 = vld [vmem:[#allocation3 + $0x57] sm:$0xff] }
 0x54f   : > { %15638 = vmatprep.subr.bf16.mxu1 %v16339_v22  ;;  %v9736_v20 = vld [vmem:[#allocation3 + $0x7b] sm:$0xff] }
 0x551   : > { %15499 = vmatpush3.bf16.msra.mxu0 %v16338_v10 }
 0x552   : > { %15639 = vmatpush3.bf16.msra.mxu1 %v16339_v22  ;;  %15500 = vmatprep.subr.bf16.mxu0 %v16340_v27  ;;  %v15168_v16 = vpop.f32.mrf.mxu0  ;;  %v6726_v22 = vadd.f32 %v19445_v62, %v19683_v54 }
 0x553   : > { %15640 = vmatprep.subr.bf16.mxu1 %v16341_v19  ;;  %v19779_v26 = vadd.f32 %v15168_v16, %v6725_v1  ;;  %v19781_v44 = vpop.f32.mrf.mxu1  ;;  %v8860_v1 = vpack.c.bf16 %v8850_v59, %v8849_v7  ;;  %v9729_v16 = vld [vmem:[#allocation3 + $0x43] sm:$0xff]  ;;  %v8856_v7 = vld [vmem:[#allocation3 + $0x6f] sm:$0xff] }
 0x554   : > { %v6852_v43 = vpop.f32.mrf.mxu0  ;;  %v9740_v38 = vpack.c.bf16 %v9730_v8, %v9729_v16  ;;  %v8854_v59 = vld [vmem:[#allocation3 + $0x5f] sm:$0xff]  ;;  %v6727_v8 = vadd.f32 %v19465_v3, %v19711_v5  ;;  %v9735_v5 = vld [vmem:[#allocation3 + $0x73] sm:$0xff] }
 0x555   : > { %15501 = vmatpush3.bf16.msra.mxu0 %v16340_v27  ;;  %v19785_v63 = vadd.f32 %v6852_v43, %v6723_v28  ;;  %v19787_v10 = vpop.f32.mrf.mxu1  ;;  %v16343_v28 = vld [vmem:[%s20986_s4 + $0x530] sm:$0xff]   ;;  %v9741_v43 = vpack.c.bf16 %v9732_v31, %v9731_v61  ;;  %v16344_v61 = vld [vmem:[%s20986_s4 + $0x528] sm:$0xff]   ;;  %v8862_v16 = vpack.c.bf16 %v8854_v59, %v8853_v14  ;;  %v6731_v14 = vadd.f32 %v19510_v35, %v19741_v41 }
 0x556   : > { %15641 = vmatpush3.bf16.msra.mxu1 %v16341_v19  ;;  %15542 = vmatprep.subr.bf16.mxu0 %v16342_v29  ;;  %v15169_v37 = vpop.f32.mrf.mxu0  ;;  %v16347_v41 = vld [vmem:[%s20986_s4 + $0x510] sm:$0xff]  }
 0x557   : > { %v19791_v4 = vadd.f32 %v15169_v37, %v6726_v22  ;;  %v19793_v27 = vpop.f32.mrf.mxu1 }
 0x558   : > { %15503 = vmatmul.mubr.bf16.vlgmr.msra.gmra.mxu0 %v8860_v1  ;;  %v19798_v62 = vpop.f32.mrf.mxu0  ;;  %v6730_v1 = vadd.f32 %v19476_v2, %v19717_v49  ;;  %v6733_v49 = vadd.f32 %v19494_v0, %v19732_v13  ;;  %v8857_v0 = vld [vmem:[#allocation3 + $0x77] sm:$0xff] }
 0x559   : > { %15643 = vmatmul.mubr.bf16.vlgmr.msra.gmra.mxu1 %v9740_v38  ;;  %15506 = vmatprep.mubr.bf16.mxu0 %v8861_v56  ;;  %v19800_v54 = vpop.f32.mrf.mxu1  ;;  %v9733_v38 = vld [vmem:[#allocation3 + $0x63] sm:$0xff] }
 0x55a   : > { %21288 = vst [vmem:[#allocation74_spill] sm:$0xff] %v19800_v54  ;;  %15543 = vmatpush3.bf16.msra.mxu0 %v16342_v29  ;;  %15646 = vmatprep.mubr.bf16.mxu1 %v9741_v43  ;;  %v15172_v37 = vpop.f32.mrf.mxu0  ;;  %v8855_v56 = vld [vmem:[#allocation3 + $0x67] sm:$0xff] }
 0x55b   : > { %15544 = vmatprep.subr.bf16.mxu0 %v16343_v28  ;;  %v19804_v19 = vadd.f32 %v15172_v37, %v6729_v39  ;;  %v19811_v22 = vpop.f32.mrf.mxu1  ;;  %v9742_v39 = vpack.c.bf16 %v9734_v55, %v9733_v38  ;;  %v8863_v3 = vpack.c.bf16 %v8856_v7, %v8855_v56  ;;  %v16345_v54 = vld [vmem:[%s20986_s4 + $0x520] sm:$0xff]   ;;  %v16346_v7 = vld [vmem:[%s20986_s4 + $0x518] sm:$0xff]  }
 0x55c   : > { %v6868_v31 = vpop.f32.mrf.mxu0  ;;  %v8858_v55 = vld [vmem:[#allocation3 + $0x7f] sm:$0xff] }
 0x55d   : > { %v19813_v29 = vadd.f32 %v6868_v31, %v6727_v8  ;;  %v9743_v8 = vpack.c.bf16 %v9736_v20, %v9735_v5  ;;  %v19824_v2 = vpop.f32.mrf.mxu1  ;;  %v9738_v20 = vld [vmem:[#allocation3 + $0x8b] sm:$0xff]  ;;  %v8864_v56 = vpack.c.bf16 %v8858_v55, %v8857_v0  ;;  %v7075_v0 = vadd.f32 %v19541_v9, %v19785_v63 }
 0x55e   : > { %15545 = vmatpush3.bf16.msra.mxu0 %v16343_v28  ;;  %v15173_v43 = vpop.f32.mrf.mxu0 }
 0x55f   : > { %15546 = vmatprep.subr.bf16.mxu0 %v16344_v61  ;;  %v19817_v37 = vadd.f32 %v15173_v43, %v6730_v1  ;;  %v9200_v1 = vld [vmem:[#allocation3 + $0x38] sm:$0xff]  ;;  %v19835_v38 = vpop.f32.mrf.mxu1  ;;  %v9737_v43 = vld [vmem:[#allocation3 + $0x83] sm:$0xff] }
 0x560   : > { %15507 = vmatmul.mubr.bf16.gmra.mxu0 %v8862_v16  ;;  %v19822_v31 = vpop.f32.mrf.mxu0  ;;  %v9744_v5 = vpack.c.bf16 %v9738_v20, %v9737_v43  ;;  %v16350_v20 = vld [vmem:[%s20986_s4 + $0x5b8] sm:$0xff]  }
 0x561   : > { %15647 = vmatmul.mubr.bf16.gmra.mxu1 %v9742_v39  ;;  %15510 = vmatprep.mubr.bf16.mxu0 %v8863_v3  ;;  %v9199_v39 = vld [vmem:[#allocation3 + $0x30] sm:$0xff] }
 0x562   : > { %15547 = vmatpush3.bf16.msra.mxu0 %v16344_v61  ;;  %15650 = vmatprep.mubr.bf16.mxu1 %v9743_v8  ;;  %v15176_v28 = vpop.f32.mrf.mxu0  ;;  %v6734_v61 = vadd.f32 %v19518_v46, %v19746_v50  ;;  %v9211_v8 = vpack.c.bf16 %v9200_v1, %v9199_v39  ;;  %v16348_v46 = vld [vmem:[%s20986_s4 + $0x508] sm:$0xff]   ;;  %v9201_v39 = vld [vmem:[#allocation3 + $0x40] sm:$0xff] }
 0x563   : > { %15548 = vmatprep.subr.bf16.mxu0 %v16345_v54  ;;  %v19828_v59 = vadd.f32 %v15176_v28, %v6733_v49  ;;  %v19846_v49 = vpop.f32.mrf.mxu1 }
 0x564   : > { %v6884_v16 = vpop.f32.mrf.mxu0 }
 0x565   : > { %v19837_v13 = vadd.f32 %v6884_v16, %v6731_v14  ;;  %v19851_v50 = vpop.f32.mrf.mxu1  ;;  %v9202_v16 = vld [vmem:[#allocation3 + $0x48] sm:$0xff] }
 0x566   : > { %15549 = vmatpush3.bf16.msra.mxu0 %v16345_v54  ;;  %v15177_v3 = vpop.f32.mrf.mxu0  ;;  %v16349_v54 = vld [vmem:[%s20986_s4 + $0x500] sm:$0xff]  }
 0x567   : > { %15550 = vmatprep.subr.bf16.mxu0 %v16346_v7  ;;  %v19841_v35 = vadd.f32 %v15177_v3, %v6734_v61  ;;  %v19856_v28 = vpop.f32.mrf.mxu1 }
 0x568   : > { %15511 = vmatmul.mubr.bf16.gmra.mxu0 %v8864_v56  ;;  %v19858_v55 = vpop.f32.mrf.mxu0  ;;  %v9204_v56 = vld [vmem:[#allocation3 + $0x58] sm:$0xff] }
 0x569   : > { %15651 = vmatmul.mubr.bf16.gmra.mxu1 %v9744_v5  ;;  %15558 = vmatprep.mubr.bf16.mxu0 %v9211_v8  ;;  %v19869_v61 = vpop.f32.mrf.mxu1  ;;  %v9203_v5 = vld [vmem:[#allocation3 + $0x50] sm:$0xff] }
 0x56a   : > { %15551 = vmatpush3.bf16.msra.mxu0 %v16346_v7  ;;  %v7077_v7 = vadd.f32 %v19533_v48, %v19779_v26  ;;  %v7078_v48 = vadd.f32 %v19546_v60, %v19791_v4  ;;  %v9212_v26 = vpack.c.bf16 %v9202_v16, %v9201_v39  ;;  %v9213_v9 = vpack.c.bf16 %v9204_v56, %v9203_v5 }
 0x56b   : > { %15552 = vmatprep.subr.bf16.mxu0 %v16347_v41  ;;  %v7081_v60 = vadd.f32 %v19569_v30, %v19804_v19  ;;  %v7079_v56 = vadd.f32 %v19580_v58, %v19813_v29  ;;  %v7082_v30 = vadd.f32 %v19585_v32, %v19817_v37  ;;  %v7085_v32 = vadd.f32 %v19617_v21, %v19828_v59 }
 0x56c   : > { %v7086_v21 = vadd.f32 %v19651_v11, %v19841_v35  ;;  %v16357_v35 = vld [vmem:[%s20986_s4 + $0x580] sm:$0xff]  }
 0x56e   : > { %15553 = vmatpush3.bf16.msra.mxu0 %v16347_v41  ;;  %v16351_v41 = vld [vmem:[%s20986_s4 + $0x5b0] sm:$0xff]  }
 0x56f   : > { %15554 = vmatprep.subr.bf16.mxu0 %v16348_v46 }
 0x572   : > { %15555 = vmatpush3.bf16.msra.mxu0 %v16348_v46  ;;  %v19880_v46 = vpop.f32.mrf.mxu1 }
 0x573   : > { %15556 = vmatprep.subr.bf16.mxu0 %v16349_v54  ;;  %v15224_v14 = vpop.f32.mrf.mxu0 }
 0x574   : > { %v19865_v1 = vadd.f32 %v15224_v14, %v7077_v7  ;;  %v19886_v4 = vpop.f32.mrf.mxu1  ;;  %v16352_v14 = vld [vmem:[%s20986_s4 + $0x5a8] sm:$0xff]  }
 0x575   : > { %v7204_v43 = vpop.f32.mrf.mxu0 }
 0x576   : > { %15557 = vmatpush3.bf16.msra.mxu0 %v16349_v54  ;;  %v19871_v3 = vadd.f32 %v7204_v43, %v7075_v0  ;;  %v9206_v0 = vld [vmem:[#allocation3 + $0x68] sm:$0xff]  ;;  %v19899_v19 = vpop.f32.mrf.mxu1 }
 0x577   : > { %15598 = vmatprep.subr.bf16.mxu0 %v16350_v20  ;;  %v15225_v8 = vpop.f32.mrf.mxu0 }
 0x578   : > { %v19878_v63 = vadd.f32 %v15225_v8, %v7078_v48  ;;  %v16353_v8 = vld [vmem:[%s20986_s4 + $0x5a0] sm:$0xff]   ;;  %v19911_v37 = vpop.f32.mrf.mxu1 }
 0x579   : > { %15559 = vmatmul.mubr.bf16.vlgmr.msra.gmra.mxu0 %v9212_v26  ;;  %v19882_v54 = vpop.f32.mrf.mxu0  ;;  %v9207_v26 = vld [vmem:[#allocation3 + $0x70] sm:$0xff] }
 0x57a   : > { %15562 = vmatprep.mubr.bf16.mxu0 %v9213_v9  ;;  %15599 = vmatpush3.bf16.msra.mxu0 %v16350_v20  ;;  %v9205_v20 = vld [vmem:[#allocation3 + $0x60] sm:$0xff]  ;;  %v9215_v58 = vpack.c.bf16 %v19619_v33, %v9207_v26  ;;  %v9210_v33 = vld [vmem:[#allocation3 + $0x88] sm:$0xff]  ;;  %v19924_v59 = vpop.f32.mrf.mxu1  ;;  %v16355_v26 = vld [vmem:[%s20986_s4 + $0x590] sm:$0xff]  }
 0x57b   : > { %15600 = vmatprep.subr.bf16.mxu0 %v16351_v41  ;;  %v15228_v7 = vpop.f32.mrf.mxu0  ;;  %v9214_v48 = vpack.c.bf16 %v9206_v0, %v9205_v20  ;;  %v7083_v0 = vadd.f32 %v19640_v42, %v19837_v13  ;;  %v9216_v20 = vpack.c.bf16 %v9210_v33, %v19612_v47  ;;  %v16356_v47 = vld [vmem:[%s20986_s4 + $0x588] sm:$0xff]  }
 0x57c   : > { %v19891_v16 = vadd.f32 %v15228_v7, %v7081_v60  ;;  %v16354_v60 = vld [vmem:[%s20986_s4 + $0x598] sm:$0xff]   ;;  %v9554_v33 = vld [vmem:[#allocation3 + $0x4a] sm:$0xff] }
 0x57d   : > { %v7220_v43 = vpop.f32.mrf.mxu0 }
 0x57e   : > { %15601 = vmatpush3.bf16.msra.mxu0 %v16351_v41  ;;  %v19895_v39 = vadd.f32 %v7220_v43, %v7079_v56  ;;  %v9552_v56 = vld [vmem:[#allocation3 + $0x3a] sm:$0xff] }
 0x57f   : > { %15602 = vmatprep.subr.bf16.mxu0 %v16352_v14  ;;  %v15229_v5 = vpop.f32.mrf.mxu0 }
 0x580   : > { %v19905_v29 = vadd.f32 %v15229_v5, %v7082_v30  ;;  %v9551_v30 = vld [vmem:[#allocation3 + $0x32] sm:$0xff]  ;;  %v19932_v5 = vpop.f32.mrf.mxu1 }
 0x581   : > { %15563 = vmatmul.mubr.bf16.gmra.mxu0 %v9214_v48  ;;  %v19907_v41 = vpop.f32.mrf.mxu0  ;;  %v9563_v42 = vpack.c.bf16 %v9552_v56, %v9551_v30  ;;  %v9556_v56 = vld [vmem:[#allocation3 + $0x5a] sm:$0xff] }
 0x582   : > { %15566 = vmatprep.mubr.bf16.mxu0 %v9215_v58  ;;  %15603 = vmatpush3.bf16.msra.mxu0 %v16352_v14  ;;  %v19937_v11 = vpop.f32.mrf.mxu1 }
 0x583   : > { %15604 = vmatprep.subr.bf16.mxu0 %v16353_v8  ;;  %v15232_v9 = vpop.f32.mrf.mxu0 }
 0x584   : > { %v19916_v7 = vadd.f32 %v15232_v9, %v7085_v32  ;;  %v19944_v58 = vpop.f32.mrf.mxu1  ;;  %v7429_v32 = vadd.f32 %v19670_v6, %v19865_v1  ;;  %v16358_v9 = vld [vmem:[%s20986_s4 + $0x638] sm:$0xff]  }
 0x585   : > { %v7236_v43 = vpop.f32.mrf.mxu0  ;;  %v9555_v6 = vld [vmem:[#allocation3 + $0x52] sm:$0xff] }
 0x586   : > { %15605 = vmatpush3.bf16.msra.mxu0 %v16353_v8  ;;  %v19920_v14 = vadd.f32 %v7236_v43, %v7083_v0  ;;  %v7427_v43 = vadd.f32 %v19679_v45, %v19871_v3  ;;  %v19955_v30 = vpop.f32.mrf.mxu1 }
 0x587   : > { %15606 = vmatprep.subr.bf16.mxu0 %v16354_v60  ;;  %v15233_v48 = vpop.f32.mrf.mxu0 }
 0x588   : > { %v19930_v13 = vadd.f32 %v15233_v48, %v7086_v21  ;;  %v9553_v21 = vld [vmem:[#allocation3 + $0x42] sm:$0xff] }
 0x589   : > { %15567 = vmatmul.mubr.bf16.gmra.mxu0 %v9216_v20  ;;  %v19942_v8 = vpop.f32.mrf.mxu0  ;;  %v9564_v48 = vpack.c.bf16 %v9554_v33, %v9553_v21  ;;  %v9558_v33 = vld [vmem:[#allocation3 + $0x6a] sm:$0xff]  ;;  %v9557_v21 = vld [vmem:[#allocation3 + $0x62] sm:$0xff] }
 0x58a   : > { %15607 = vmatpush3.bf16.msra.mxu0 %v16354_v60  ;;  %15614 = vmatprep.mubr.bf16.mxu0 %v9563_v42  ;;  %v16359_v42 = vld [vmem:[%s20986_s4 + $0x630] sm:$0xff]  }
 0x58b   : > { %15608 = vmatprep.subr.bf16.mxu0 %v16355_v26 }
 0x58e   : > { %15609 = vmatpush3.bf16.msra.mxu0 %v16355_v26  ;;  %v7430_v26 = vadd.f32 %v19685_v52, %v19878_v63  ;;  %v16360_v52 = vld [vmem:[%s20986_s4 + $0x628] sm:$0xff]  }
 0x58f   : > { %15610 = vmatprep.subr.bf16.mxu0 %v16356_v47 }
 0x592   : > { %15611 = vmatpush3.bf16.msra.mxu0 %v16356_v47  ;;  %v9565_v47 = vpack.c.bf16 %v9556_v56, %v9555_v6  ;;  %v9566_v6 = vpack.c.bf16 %v9558_v33, %v9557_v21  ;;  %v9562_v33 = vld [vmem:[#allocation3 + $0x8a] sm:$0xff]  ;;  %v9561_v21 = vld [vmem:[#allocation3 + $0x82] sm:$0xff] }
 0x593   : > { %15612 = vmatprep.subr.bf16.mxu0 %v16357_v35 }
 0x594   : > { %v15280_v60 = vpop.f32.mrf.mxu0 }
 0x595   : > { %v19951_v0 = vadd.f32 %v15280_v60, %v7429_v32  ;;  %v7433_v60 = vadd.f32 %v19701_v24, %v19891_v16  ;;  %v9559_v24 = vld [vmem:[#allocation3 + $0x72] sm:$0xff] }
 0x596   : > { %15613 = vmatpush3.bf16.msra.mxu0 %v16357_v35  ;;  %v7556_v20 = vpop.f32.mrf.mxu0  ;;  %v19968_v35 = vpop.f32.mrf.mxu1 }
 0x597   : > { %15654 = vmatprep.subr.bf16.mxu0 %v16358_v9  ;;  %v19957_v1 = vadd.f32 %v7556_v20, %v7427_v43  ;;  %v9560_v43 = vld [vmem:[#allocation3 + $0x7a] sm:$0xff] }
 0x598   : > { %v15281_v32 = vpop.f32.mrf.mxu0 }
 0x599   : > { %15615 = vmatmul.mubr.bf16.vlgmr.msra.gmra.mxu0 %v9564_v48  ;;  %v19964_v45 = vadd.f32 %v15281_v32, %v7430_v26  ;;  %v19979_v48 = vpop.f32.mrf.mxu1  ;;  %v7434_v26 = vadd.f32 %v19719_v12, %v19905_v29  ;;  %v9567_v32 = vpack.c.bf16 %v9560_v43, %v9559_v24  ;;  %v16362_v12 = vld [vmem:[%s20986_s4 + $0x618] sm:$0xff]   ;;  %v9568_v24 = vpack.c.bf16 %v9562_v33, %v9561_v21  ;;  %v16365_v33 = vld [vmem:[%s20986_s4 + $0x600] sm:$0xff]  }
 0x59a   : > { %15618 = vmatprep.mubr.bf16.mxu0 %v9565_v47  ;;  %15655 = vmatpush3.bf16.msra.mxu0 %v16358_v9  ;;  %v19966_v3 = vpop.f32.mrf.mxu0  ;;  %v7431_v9 = vadd.f32 %v19713_v53, %v19895_v39  ;;  %v16361_v47 = vld [vmem:[%s20986_s4 + $0x620] sm:$0xff]  }
 0x59b   : > { %15656 = vmatprep.subr.bf16.mxu0 %v16359_v42 }
 0x59c   : > { %v15284_v63 = vpop.f32.mrf.mxu0 }
 0x59d   : > { %v19975_v56 = vadd.f32 %v15284_v63, %v7433_v60  ;;  %v7437_v63 = vadd.f32 %v19743_v23, %v19916_v7  ;;  %v9903_v23 = vld [vmem:[#allocation3 + $0x34] sm:$0xff] }
 0x59e   : > { %15657 = vmatpush3.bf16.msra.mxu0 %v16359_v42  ;;  %v7572_v20 = vpop.f32.mrf.mxu0  ;;  %v19992_v42 = vpop.f32.mrf.mxu1 }
 0x59f   : > { %15658 = vmatprep.subr.bf16.mxu0 %v16360_v52  ;;  %v19981_v16 = vadd.f32 %v7572_v20, %v7431_v9  ;;  %v9904_v9 = vld [vmem:[#allocation3 + $0x3c] sm:$0xff] }
 0x5a0   : > { %v15285_v60 = vpop.f32.mrf.mxu0 }
 0x5a1   : > { %15619 = vmatmul.mubr.bf16.gmra.mxu0 %v9566_v6  ;;  %v19988_v53 = vadd.f32 %v15285_v60, %v7434_v26  ;;  %v20003_v6 = vpop.f32.mrf.mxu1  ;;  %v7438_v26 = vadd.f32 %v19762_v17, %v19930_v13  ;;  %v9915_v60 = vpack.c.bf16 %v9904_v9, %v9903_v23  ;;  %v6020_v17 = vadd.f32 %v19526_v15, %v19419_v36  ;;  %v9906_v15 = vld [vmem:[#allocation3 + $0x4c] sm:$0xff] }
 0x5a2   : > { %15622 = vmatprep.mubr.bf16.mxu0 %v9567_v32  ;;  %15659 = vmatpush3.bf16.msra.mxu0 %v16360_v52  ;;  %v19990_v39 = vpop.f32.mrf.mxu0  ;;  %v7435_v52 = vadd.f32 %v19754_v25, %v19920_v14  ;;  %v16363_v32 = vld [vmem:[%s20986_s4 + $0x610] sm:$0xff]   ;;  %v7781_v36 = vadd.f32 %v19781_v44, %v19951_v0  ;;  %v7782_v44 = vadd.f32 %v19793_v27, %v19964_v45 }
 0x5a3   : > { %15660 = vmatprep.subr.bf16.mxu0 %v16361_v47  ;;  %v20012_v25 = vpop.f32.mrf.mxu1 }
 0x5a4   : > { %v15288_v29 = vpop.f32.mrf.mxu0 }
 0x5a5   : > { %v19999_v43 = vadd.f32 %v15288_v29, %v7437_v63  ;;  %v20021_v13 = vpop.f32.mrf.mxu1  ;;  %v6204_v29 = vadd.f32 %v19659_v57, %v6020_v17 }
 0x5a6   : > { %15661 = vmatpush3.bf16.msra.mxu0 %v16361_v47  ;;  %v7588_v20 = vpop.f32.mrf.mxu0  ;;  %v16364_v47 = vld [vmem:[%s20986_s4 + $0x608] sm:$0xff]  }
 0x5a7   : > { %15662 = vmatprep.subr.bf16.mxu0 %v16362_v12  ;;  %v20005_v7 = vadd.f32 %v7588_v20, %v7435_v52  ;;  %v6380_v9 = vadd.f32 %v19421_v51, %v6204_v29  ;;  %v7779_v51 = vadd.f32 %v19787_v10, %v19957_v1  ;;  %v7785_v10 = vadd.f32 %v19811_v22, %v19975_v56  ;;  %v9910_v1 = vld [vmem:[#allocation3 + $0x6c] sm:$0xff] }
 0x5a8   : > { %v15289_v63 = vpop.f32.mrf.mxu0  ;;  %v7786_v22 = vadd.f32 %v19835_v38, %v19988_v53  ;;  %v9913_v38 = vld [vmem:[#allocation3 + $0x84] sm:$0xff] }
 0x5a9   : > { %15623 = vmatmul.mubr.bf16.gmra.mxu0 %v9568_v24  ;;  %v20014_v14 = vadd.f32 %v15289_v63, %v7438_v26  ;;  %v6556_v21 = vadd.f32 %v19770_v34, %v6380_v9  ;;  %v9908_v24 = vld [vmem:[#allocation3 + $0x5c] sm:$0xff]  ;;  %v9905_v26 = vld [vmem:[#allocation3 + $0x44] sm:$0xff]  ;;  %v7787_v53 = vadd.f32 %v19856_v28, %v20005_v7 }
 0x5aa   : > { %15663 = vmatpush3.bf16.msra.mxu0 %v16362_v12  ;;  %15670 = vmatprep.mubr.bf16.mxu0 %v9915_v60  ;;  %v20027_v12 = vpop.f32.mrf.mxu1  ;;  %v7591_v52 = vpop.f32.mrf.mxu0  ;;  %v9907_v60 = vld [vmem:[#allocation3 + $0x54] sm:$0xff]  ;;  %v21290_v7 = vld [vmem:[#allocation57_spill] sm:$0xff] }
 0x5ab   : > { %15664 = vmatprep.subr.bf16.mxu0 %v16363_v32  ;;  %v6732_v34 = vadd.f32 %v19528_v40, %v6556_v21 }
 0x5ac   : > { %v20033_v57 = vpop.f32.mrf.mxu1 }
 0x5ae   : > { %15665 = vmatpush3.bf16.msra.mxu0 %v16363_v32  ;;  %v9916_v32 = vpack.c.bf16 %v9906_v15, %v9905_v26  ;;  %v20042_v0 = vpop.f32.mrf.mxu1  ;;  %v9912_v15 = vld [vmem:[#allocation3 + $0x7c] sm:$0xff]  ;;  %v9911_v26 = vld [vmem:[#allocation3 + $0x74] sm:$0xff] }
 0x5af   : > { %15666 = vmatprep.subr.bf16.mxu0 %v16364_v47 }
 0x5b0   : > { %v20049_v40 = vpop.f32.mrf.mxu1 }
 0x5b2   : > { %15667 = vmatpush3.bf16.msra.mxu0 %v16364_v47  ;;  %v9917_v47 = vpack.c.bf16 %v9908_v24, %v9907_v60  ;;  %v7783_v24 = vadd.f32 %v19824_v2, %v19981_v16  ;;  %v9919_v60 = vpack.c.bf16 %v9912_v15, %v9911_v26  ;;  %v20057_v56 = vpop.f32.mrf.mxu1  ;;  %v7789_v16 = vadd.f32 %v19851_v50, %v19999_v43 }
 0x5b3   : > { %15668 = vmatprep.subr.bf16.mxu0 %v16365_v33 }
 0x5b5   : > { %v15336_v20 = vpop.f32.mrf.mxu0 }
 0x5b6   : > { %15669 = vmatpush3.bf16.msra.mxu0 %v16365_v33  ;;  %v20035_v23 = vadd.f32 %v15336_v20, %v7781_v36  ;;  %v6908_v33 = vadd.f32 %v19858_v55, %v6732_v34  ;;  %v9909_v20 = vld [vmem:[#allocation3 + $0x64] sm:$0xff] }
 0x5b7   : > { %v7908_v63 = vpop.f32.mrf.mxu0  ;;  %v9918_v55 = vpack.c.bf16 %v9910_v1, %v9909_v20  ;;  %v7790_v20 = vadd.f32 %v19869_v61, %v20014_v14 }
 0x5b8   : > { %v7955_v17 = vadd.f32 %v7908_v63, %v7779_v51  ;;  %v7084_v27 = vadd.f32 %v19661_v18, %v6908_v33 }
 0x5b9   : > { %15671 = vmatmul.mubr.bf16.vlgmr.msra.gmra.mxu0 %v9916_v32  ;;  %v15337_v29 = vpop.f32.mrf.mxu0 }
 0x5ba   : > { %15674 = vmatprep.mubr.bf16.mxu0 %v9917_v47  ;;  %v7958_v9 = vadd.f32 %v15337_v29, %v7782_v44  ;;  %v7260_v32 = vadd.f32 %v19942_v8, %v7084_v27  ;;  %v21289_v44 = vld [vmem:[#allocation73_spill] sm:$0xff]  ;;  %v20064_v8 = vpop.f32.mrf.mxu1 }
 0x5bb   : > { %v20045_v36 = vpop.f32.mrf.mxu0  ;;  %v9914_v29 = vld [vmem:[#allocation3 + $0x8c] sm:$0xff] }
 0x5bc   : > { %v7436_v2 = vadd.f32 %v21289_v44, %v7260_v32  ;;  %v8133_v44 = vadd.f32 %v19886_v4, %v20035_v23  ;;  %v21297_v23 = vld [vmem:[#allocation67_spill] sm:$0xff] }
 0x5bd   : > { %v15340_v21 = vpop.f32.mrf.mxu0 }
 0x5be   : > { %v7961_v45 = vadd.f32 %v15340_v21, %v7785_v10  ;;  %v7612_v10 = vadd.f32 %v7591_v52, %v7436_v2  ;;  %v9920_v21 = vpack.c.bf16 %v9914_v29, %v9913_v38  ;;  %v8131_v29 = vadd.f32 %v19899_v19, %v7955_v17  ;;  %v21298_v17 = vld [vmem:[#allocation62_spill] sm:$0xff] }
 0x5bf   : > { %v7924_v51 = vpop.f32.mrf.mxu0 }
 0x5c0   : > { %v7959_v63 = vadd.f32 %v7924_v51, %v7783_v24  ;;  %v20070_v24 = vpop.f32.mrf.mxu1  ;;  %v8137_v19 = vadd.f32 %v19932_v5, %v7961_v45 }
 0x5c1   : > { %15675 = vmatmul.mubr.bf16.gmra.mxu0 %v9918_v55  ;;  %v15341_v34 = vpop.f32.mrf.mxu0  ;;  %v7788_v55 = vadd.f32 %v19880_v46, %v7612_v10 }
 0x5c2   : > { %15678 = vmatprep.mubr.bf16.mxu0 %v9919_v60  ;;  %v7962_v18 = vadd.f32 %v15341_v34, %v7786_v22  ;;  %v20073_v51 = vpop.f32.mrf.mxu1  ;;  %v21291_v60 = vld [vmem:[#allocation61_spill] sm:$0xff] }
 0x5c3   : > { %v20059_v47 = vpop.f32.mrf.mxu0  ;;  %v5988_v22 = vadd.f32 %v21291_v60, %v21290_v7  ;;  %v21292_v34 = vld [vmem:[#allocation65_spill] sm:$0xff] }
 0x5c4   : > { %v20076_v28 = vpop.f32.mrf.mxu1 }
 0x5c5   : > { %v15344_v33 = vpop.f32.mrf.mxu0  ;;  %v6196_v61 = vadd.f32 %v21292_v34, %v5988_v22 }
 0x5c6   : > { %v7965_v1 = vadd.f32 %v15344_v33, %v7789_v16  ;;  %v8471_v14 = vpop.f32.mrf.mxu1  ;;  %v21293_v33 = vld [vmem:[#allocation58_spill] sm:$0xff] }
 0x5c7   : > { %v7940_v15 = vpop.f32.mrf.mxu0  ;;  %v6372_v10 = vadd.f32 %v21293_v33, %v6196_v61 }
 0x5c8   : > { %v7963_v27 = vadd.f32 %v7940_v15, %v7787_v53  ;;  %v20083_v16 = vpop.f32.mrf.mxu1  ;;  %v8134_v53 = vadd.f32 %v19911_v37, %v7958_v9  ;;  %v21295_v15 = vld [vmem:[#allocation63_spill] sm:$0xff]  ;;  %v8135_v9 = vadd.f32 %v19937_v11, %v7959_v63  ;;  %v21302_v11 = vld [vmem:[#allocation64_spill] sm:$0xff] }
 0x5c9   : > { %15679 = vmatmul.mubr.bf16.gmra.mxu0 %v9920_v21  ;;  %v15345_v50 = vpop.f32.mrf.mxu0  ;;  %v21294_v21 = vld [vmem:[#allocation59_spill] sm:$0xff] }
 0x5ca   : > { %v7966_v43 = vadd.f32 %v15345_v50, %v7790_v20  ;;  %v6004_v20 = vadd.f32 %v21295_v15, %v21294_v21  ;;  %v21296_v50 = vld [vmem:[#allocation69_spill] sm:$0xff] }
 0x5cb   : > { %v7943_v26 = vpop.f32.mrf.mxu0 }
 0x5cc   : > { %v7964_v52 = vadd.f32 %v7943_v26, %v7788_v55  ;;  %v6548_v55 = vadd.f32 %v21296_v50, %v6372_v10  ;;  %v6200_v7 = vadd.f32 %v21297_v23, %v6004_v20  ;;  %v21301_v20 = vld [vmem:[#allocation66_spill] sm:$0xff] }
 0x5ce   : > { %v8140_v32 = vadd.f32 %v20003_v6, %v7964_v52  ;;  %v20091_v52 = vpop.f32.mrf.mxu1  ;;  %v6724_v22 = vadd.f32 %v21298_v17, %v6548_v55 }
 0x5d0   : > { %v20096_v61 = vpop.f32.mrf.mxu1 }
 0x5d2   : > { %v20103_v5 = vpop.f32.mrf.mxu1 }
 0x5d6   : > { %v15392_v2 = vpop.f32.mrf.mxu0 }
 0x5d7   : > { %v8309_v46 = vadd.f32 %v15392_v2, %v8133_v44  ;;  %v21299_v44 = vld [vmem:[#allocation60_spill] sm:$0xff] }
 0x5d8   : > { %v8260_v6 = vpop.f32.mrf.mxu0  ;;  %v6376_v2 = vadd.f32 %v21299_v44, %v6200_v7  ;;  %v20109_v7 = vpop.f32.mrf.mxu1 }
 0x5d9   : > { %v8307_v38 = vadd.f32 %v8260_v6, %v8131_v29  ;;  %v6900_v29 = vadd.f32 %v19798_v62, %v6724_v22  ;;  %v8138_v6 = vadd.f32 %v19944_v58, %v7962_v18  ;;  %v8139_v58 = vadd.f32 %v19979_v48, %v7963_v27 }
 0x5da   : > { %v15393_v26 = vpop.f32.mrf.mxu0 }
 0x5db   : > { %v8310_v4 = vadd.f32 %v15393_v26, %v8134_v53  ;;  %v21300_v53 = vld [vmem:[#allocation71_spill] sm:$0xff]  ;;  %v7076_v50 = vadd.f32 %v21301_v20, %v6900_v29  ;;  %v8141_v26 = vadd.f32 %v19968_v35, %v7965_v1  ;;  %v20115_v35 = vpop.f32.mrf.mxu1  ;;  %v21304_v29 = vld [vmem:[#allocation68_spill] sm:$0xff] }
 0x5dc   : > { %v8263_v60 = vpop.f32.mrf.mxu0  ;;  %v6552_v21 = vadd.f32 %v21300_v53, %v6376_v2 }
 0x5dd   : > { %v7252_v23 = vadd.f32 %v19882_v54, %v7076_v50  ;;  %v20120_v27 = vpop.f32.mrf.mxu1 }
 0x5de   : > { %v15396_v34 = vpop.f32.mrf.mxu0  ;;  %v6728_v63 = vadd.f32 %v21302_v11, %v6552_v21  ;;  %v21305_v21 = vld [vmem:[#allocation74_spill] sm:$0xff] }
 0x5df   : > { %v8313_v37 = vadd.f32 %v15396_v34, %v8137_v19  ;;  %v8142_v34 = vadd.f32 %v19992_v42, %v7966_v43  ;;  %v21306_v42 = vld [vmem:[#allocation72_spill] sm:$0xff]  ;;  %v20125_v50 = vpop.f32.mrf.mxu1 }
 0x5e0   : > { %v8276_v33 = vpop.f32.mrf.mxu0  ;;  %v6904_v18 = vadd.f32 %v19822_v31, %v6728_v63 }
 0x5e1   : > { %v8311_v10 = vadd.f32 %v8276_v33, %v8135_v9  ;;  %v21303_v9 = vld [vmem:[#allocation70_spill] sm:$0xff] }
 0x5e2   : > { %v15397_v15 = vpop.f32.mrf.mxu0  ;;  %v7428_v44 = vadd.f32 %v21303_v9, %v7252_v23  ;;  %v7080_v54 = vadd.f32 %v21304_v29, %v6904_v18 }
 0x5e3   : > { %v8314_v45 = vadd.f32 %v15397_v15, %v8138_v6 }
 0x5e4   : > { %v8279_v55 = vpop.f32.mrf.mxu0  ;;  %v7604_v33 = vadd.f32 %v19966_v3, %v7428_v44  ;;  %v7256_v48 = vadd.f32 %v19907_v41, %v7080_v54  ;;  %v8485_v3 = vadd.f32 %v20012_v25, %v8309_v46 }
 0x5e5   : > { %v8490_v29 = vadd.f32 %v20057_v56, %v8314_v45 }
 0x5e6   : > { %v15400_v62 = vpop.f32.mrf.mxu0  ;;  %v7780_v15 = vadd.f32 %v21305_v21, %v7604_v33  ;;  %v7432_v43 = vadd.f32 %v21306_v42, %v7256_v48 }
 0x5e7   : > { %v8317_v19 = vadd.f32 %v15400_v62, %v8141_v26  ;;  %v8483_v62 = vadd.f32 %v20021_v13, %v8307_v38 }
 0x5e8   : > { %v8292_v17 = vpop.f32.mrf.mxu0  ;;  %v7956_v20 = vadd.f32 %v20045_v36, %v7780_v15  ;;  %v7608_v26 = vadd.f32 %v19990_v39, %v7432_v43 }
 0x5e9   : > { %v8315_v22 = vadd.f32 %v8292_v17, %v8139_v58  ;;  %v8486_v17 = vadd.f32 %v20027_v12, %v8310_v4 }
 0x5ea   : > { %v15401_v2 = vpop.f32.mrf.mxu0  ;;  %v8132_v11 = vadd.f32 %v19924_v59, %v7956_v20  ;;  %v7784_v41 = vadd.f32 %v19846_v49, %v7608_v26 }
 0x5eb   : > { %v8318_v1 = vadd.f32 %v15401_v2, %v8142_v34  ;;  %v8487_v2 = vadd.f32 %v20049_v40, %v8311_v10  ;;  %v8491_v40 = vadd.f32 %v20073_v51, %v8315_v22  ;;  %v20999_v22 = vmov 0.0  }
 0x5ec   : > { %v8295_v6 = vpop.f32.mrf.mxu0  ;;  %v8308_v23 = vadd.f32 %v8263_v60, %v8132_v11  ;;  %v7960_v18 = vadd.f32 %v20059_v47, %v7784_v41  ;;  %v8489_v60 = vadd.f32 %v20042_v0, %v8313_v37  ;;  %15682 = vmatprep.subr.bf16.mxu1 %v20999_v22  ;;  %15698 = vmatprep.subr.bf16.mxu0 %v20999_v22 }
 0x5ed   : > { %v8316_v53 = vadd.f32 %v8295_v6, %v8140_v32  ;;  %v15484_v32 = vpop.f32.mrf.mxu1  ;;  %v8494_v45 = vadd.f32 %v20076_v28, %v8318_v1  ;;  %15694 = vmatprep.mubr.msk.bf16.mxu1 %vm16632_vm3, %v20999_v22  ;;  %15714 = vmatprep.mubr.msk.bf16.mxu0 %vm16632_vm3, %v20999_v22 }
 0x5ee   : > { %v8484_v25 = vadd.f32 %v20033_v57, %v8308_v23  ;;  %v8136_v9 = vadd.f32 %v19955_v30, %v7960_v18 }
 0x5ef   : > { %v8492_v31 = vadd.f32 %v8471_v14, %v8316_v53  ;;  %v20134_v34 = vpop.f32.mrf.mxu1  ;;  %v8493_v53 = vadd.f32 %v20070_v24, %v8317_v19 }
 0x5f0   : > { %v8312_v38 = vadd.f32 %v8279_v55, %v8136_v9 }
 0x5f1   : > { %v20139_v44 = vpop.f32.mrf.mxu1 }
 0x5f2   : > { %v8488_v30 = vadd.f32 %v20064_v8, %v8312_v38 }
 0x5f3   : > { %v20143_v54 = vpop.f32.mrf.mxu1 }
 0x5f5   : > { %v20146_v6 = vpop.f32.mrf.mxu1 }
 0x5f7   : > { %v15448_v63 = vpop.f32.mrf.mxu0  ;;  %v20150_v10 = vpop.f32.mrf.mxu1 }
 0x5f8   : > { %v8661_v14 = vadd.f32 %v15448_v63, %v8485_v3 }
 0x5f9   : > { %v8612_v58 = vpop.f32.mrf.mxu0  ;;  %v20155_v8 = vpop.f32.mrf.mxu1 }
 0x5fa   : > { %v8659_v36 = vadd.f32 %v8612_v58, %v8483_v62  ;;  %v8837_v51 = vadd.f32 %v20083_v16, %v8661_v14 }
 0x5fb   : > { %v15449_v39 = vpop.f32.mrf.mxu0  ;;  %v20159_v24 = vpop.f32.mrf.mxu1 }
 0x5fc   : > { %v8662_v59 = vadd.f32 %v15449_v39, %v8486_v17  ;;  %v8835_v3 = vadd.f32 %v20091_v52, %v8659_v36 }
 0x5fd   : > { %v8615_v46 = vpop.f32.mrf.mxu0  ;;  %v20161_v19 = vpop.f32.mrf.mxu1 }
 0x5fe   : > { %v8660_v49 = vadd.f32 %v8615_v46, %v8484_v25  ;;  %v8838_v63 = vadd.f32 %v20096_v61, %v8662_v59 }
 0x5ff   : > { %v15452_v13 = vpop.f32.mrf.mxu0  ;;  %v20166_v1 = vpop.f32.mrf.mxu1 }
 0x600   : > { %v8665_v47 = vadd.f32 %v15452_v13, %v8489_v60  ;;  %v8836_v16 = vadd.f32 %v20103_v5, %v8660_v49 }
 0x601   : > { %v8628_v12 = vpop.f32.mrf.mxu0  ;;  %v20170_v23 = vpop.f32.mrf.mxu1 }
 0x602   : > { %v8663_v4 = vadd.f32 %v8628_v12, %v8487_v2  ;;  %v8841_v18 = vadd.f32 %v20109_v7, %v8665_v47 }
 0x603   : > { %v15453_v57 = vpop.f32.mrf.mxu0  ;;  %v20174_v39 = vpop.f32.mrf.mxu1 }
 0x604   : > { %v8666_v33 = vadd.f32 %v15453_v57, %v8490_v29  ;;  %v8839_v52 = vadd.f32 %v20115_v35, %v8663_v4 }
 0x605   : > { %v8631_v0 = vpop.f32.mrf.mxu0  ;;  %v20182_v9 = vpop.f32.mrf.mxu1 }
 0x606   : > { %v8664_v37 = vadd.f32 %v8631_v0, %v8488_v30  ;;  %v8842_v61 = vadd.f32 %v20120_v27, %v8666_v33  ;;  %v16371_v33 = vld [vmem:[%s20989_s7 + $0x28] sm:$0xff]  }
 0x607   : > { %v15456_v55 = vpop.f32.mrf.mxu0  ;;  %v20189_v38 = vpop.f32.mrf.mxu1 }
 0x608   : > { %v8669_v48 = vadd.f32 %v15456_v55, %v8493_v53  ;;  %v8840_v49 = vadd.f32 %v20125_v50, %v8664_v37  ;;  %v16367_v50 = vld [vmem:[%s20989_s7 + $0x38] sm:$0xff]   ;;  %v16373_v37 = vld [vmem:[%s20989_s7 + $0x20] sm:$0xff]  }
 0x609   : > { %v8644_v21 = vpop.f32.mrf.mxu0  ;;  %v20200_v27 = vpop.f32.mrf.mxu1  ;;  %15699 = vmatpush3.bf16.msra.mxu0 %v16367_v50 }
 0x60a   : > { %v8667_v56 = vadd.f32 %v8644_v21, %v8491_v40  ;;  %v8845_v15 = vadd.f32 %v15484_v32, %v8669_v48  ;;  %15700 = vmatprep.subr.bf16.mxu0 %v20999_v22 }
 0x60b   : > { %v15457_v42 = vpop.f32.mrf.mxu0  ;;  %v20209_v4 = vpop.f32.mrf.mxu1 }
 0x60c   : > { %v20153_v43 = vadd.f32 %v15457_v42, %v8494_v45  ;;  %v8843_v35 = vadd.f32 %v20134_v34, %v8667_v56  ;;  %v16369_v34 = vld [vmem:[%s20989_s7 + $0x30] sm:$0xff]   ;;  %v16375_v45 = vld [vmem:[%s20989_s7 + $0x18] sm:$0xff]  }
 0x60d   : > { %v8647_v20 = vpop.f32.mrf.mxu0  ;;  %v20211_v29 = vpop.f32.mrf.mxu1  ;;  %15701 = vmatpush3.bf16.msra.mxu0 %v16369_v34 }
 0x60e   : > { %v20157_v26 = vadd.f32 %v8647_v20, %v8492_v31  ;;  %15702 = vmatprep.subr.bf16.mxu0 %v20999_v22 }
 0x60f   : > { %v20219_v30 = vpop.f32.mrf.mxu1 }
 0x611   : > { %15703 = vmatpush3.bf16.msra.mxu0 %v16371_v33  ;;  %v15589_v21 = vpop.f32.mrf.mxu1 }
 0x612   : > { %15704 = vmatprep.subr.bf16.mxu0 %v20999_v22 }
 0x615   : > { %15705 = vmatpush3.bf16.msra.mxu0 %v16373_v37 }
 0x616   : > { %15706 = vmatprep.subr.bf16.mxu0 %v20999_v22 }
 0x618   : > { %v15504_v28 = vpop.f32.mrf.mxu0 }
 0x619   : > { %v9013_v11 = vadd.f32 %v15504_v28, %v8837_v51  ;;  %v9495_v28 = vpop.f32.mrf.mxu1  ;;  %15707 = vmatpush3.bf16.msra.mxu0 %v16375_v45 }
 0x61a   : > { %v8964_v32 = vpop.f32.mrf.mxu0  ;;  %15708 = vmatprep.subr.bf16.mxu0 %v20999_v22 }
 0x61b   : > { %v9011_v31 = vadd.f32 %v8964_v32, %v8835_v3  ;;  %v9189_v53 = vadd.f32 %v20146_v6, %v9013_v11 }
 0x61c   : > { %v15505_v41 = vpop.f32.mrf.mxu0 }
 0x61d   : > { %v9014_v62 = vadd.f32 %v15505_v41, %v8838_v63  ;;  %v9187_v40 = vadd.f32 %v20150_v10, %v9011_v31  ;;  %v16377_v10 = vld [vmem:[%s20989_s7 + $0x10] sm:$0xff]   ;;  %v15592_v31 = vpop.f32.mrf.mxu1 }
 0x61e   : > { %v8967_v14 = vpop.f32.mrf.mxu0  ;;  %15709 = vmatpush3.bf16.msra.mxu0 %v16377_v10 }
 0x61f   : > { %v9012_v58 = vadd.f32 %v8967_v14, %v8836_v16  ;;  %v9190_v42 = vadd.f32 %v20155_v8, %v9014_v62  ;;  %v16379_v8 = vld [vmem:[%s20989_s7 + $0x8] sm:$0xff]   ;;  %15710 = vmatprep.subr.bf16.mxu0 %v20999_v22  ;;  %v9508_v41 = vpop.f32.mrf.mxu1 }
 0x620   : > { %v15508_v17 = vpop.f32.mrf.mxu0 }
 0x621   : > { %v20176_v25 = vadd.f32 %v15508_v17, %v8841_v18  ;;  %v9188_v51 = vadd.f32 %v20159_v24, %v9012_v58  ;;  %v20244_v16 = vpop.f32.mrf.mxu1 }
 0x622   : > { %v8980_v36 = vpop.f32.mrf.mxu0  ;;  %15711 = vmatpush3.bf16.msra.mxu0 %v16379_v8 }
 0x623   : > { %v20179_v46 = vadd.f32 %v8980_v36, %v8839_v52  ;;  %15712 = vmatprep.subr.bf16.mxu0 %v20999_v22  ;;  %v20246_v58 = vpop.f32.mrf.mxu1  ;;  %v9193_v10 = vadd.f32 %v20161_v19, %v20176_v25 }
 0x624   : > { %v15509_v59 = vpop.f32.mrf.mxu0 }
 0x625   : > { %v20184_v5 = vadd.f32 %v15509_v59, %v8842_v61  ;;  %v20250_v17 = vpop.f32.mrf.mxu1 }
 0x626   : > { %v8983_v7 = vpop.f32.mrf.mxu0  ;;  %21307 = vst [vmem:[#allocation75_spill] sm:$0xff] %v20250_v17 }
 0x627   : > { %v20187_v60 = vadd.f32 %v8983_v7, %v8840_v49  ;;  %v20254_v36 = vpop.f32.mrf.mxu1 }
 0x628   : > { %v15512_v13 = vpop.f32.mrf.mxu0  ;;  %21308 = vst [vmem:[#allocation76_spill] sm:$0xff] %v20254_v36 }
 0x629   : > { %v20191_v47 = vadd.f32 %v15512_v13, %v8845_v15  ;;  %v20258_v49 = vpop.f32.mrf.mxu1 }
 0x62a   : > { %v8996_v2 = vpop.f32.mrf.mxu0  ;;  %21310 = vst [vmem:[#allocation78_spill] sm:$0xff] %v20258_v49  ;;  %v9191_v49 = vadd.f32 %v20166_v1, %v20179_v46  ;;  %v8844_v1 = vadd.f32 %v20143_v54, %v20157_v26  ;;  %v9192_v46 = vadd.f32 %v20174_v39, %v20187_v60  ;;  %v20293_v54 = vld [vmem:[%s20987_s5] ss:$0 sm:$0xff] }
 0x62b   : > { %v20194_v12 = vadd.f32 %v8996_v2, %v8843_v35  ;;  %v20260_v35 = vpop.f32.mrf.mxu1 }
 0x62c   : > { %v20213_v57 = vpop.f32.mrf.mxu0  ;;  %21311 = vst [vmem:[#allocation79_spill] sm:$0xff] %v20260_v35 }
 0x62d   : > { %v15644_v50 = vpop.f32.mrf.mxu1 }
 0x62e   : > { %v20221_v0 = vpop.f32.mrf.mxu0 }
 0x62f   : > { %v9844_v37 = vpop.f32.mrf.mxu1 }
 0x639   : > { %v15560_v55 = vpop.f32.mrf.mxu0 }
 0x63a   : > { %v9365_v48 = vadd.f32 %v15560_v55, %v9189_v53 }
 0x63b   : > { %v9316_v56 = vpop.f32.mrf.mxu0 }
 0x63c   : > { %v9363_v15 = vadd.f32 %v9316_v56, %v9187_v40  ;;  %v15645_v40 = vpop.f32.mrf.mxu1 }
 0x63d   : > { %v15561_v20 = vpop.f32.mrf.mxu0 }
 0x63e   : > { %v9366_v6 = vadd.f32 %v15561_v20, %v9190_v42  ;;  %v9847_v45 = vpop.f32.mrf.mxu1  ;;  %v9539_v22 = vadd.f32 %v20219_v30, %v9363_v15 }
 0x63f   : > { %v9319_v11 = vpop.f32.mrf.mxu0 }
 0x640   : > { %v9364_v3 = vadd.f32 %v9319_v11, %v9188_v51  ;;  %v15648_v20 = vpop.f32.mrf.mxu1  ;;  %v9541_v51 = vadd.f32 %v20211_v29, %v9365_v48  ;;  %v9194_v29 = vadd.f32 %v20170_v23, %v20184_v5  ;;  %v9020_v5 = vadd.f32 %v20221_v0, %v8844_v1 }
 0x641   : > { %v15564_v32 = vpop.f32.mrf.mxu0 }
 0x642   : > { %v9860_v35 = vpop.f32.mrf.mxu1  ;;  %v9369_v36 = vadd.f32 %v15564_v32, %v9193_v10  ;;  %v9540_v25 = vadd.f32 %v9495_v28, %v9364_v3  ;;  %v9197_v28 = vadd.f32 %v20182_v9, %v20191_v47 }
 0x643   : > { %v9332_v63 = vpop.f32.mrf.mxu0 }
 0x644   : > { %v9367_v17 = vadd.f32 %v9332_v63, %v9191_v49  ;;  %v15649_v30 = vpop.f32.mrf.mxu1  ;;  %v9196_v49 = vadd.f32 %v20209_v4, %v9020_v5 }
 0x645   : > { %v15565_v24 = vpop.f32.mrf.mxu0 }
 0x646   : > { %v9543_v3 = vadd.f32 %v9508_v41, %v9367_v17  ;;  %v9863_v63 = vpop.f32.mrf.mxu1 }
 0x647   : > { %v9335_v62 = vpop.f32.mrf.mxu0 }
 0x648   : > { %v9368_v32 = vadd.f32 %v9335_v62, %v9192_v46 }
 0x649   : > { %v15568_v14 = vpop.f32.mrf.mxu0 }
 0x64b   : > { %v20248_v18 = vpop.f32.mrf.mxu0 }
 0x64d   : > { %v20252_v52 = vpop.f32.mrf.mxu0 }
 0x64f   : > { %v20256_v61 = vpop.f32.mrf.mxu0 }
 0x650   : > { %21309 = vst [vmem:[#allocation77_spill] sm:$0xff] %v20256_v61  ;;  %v9542_v61 = vadd.f32 %v15589_v21, %v9366_v6  ;;  %v9545_v21 = vadd.f32 %v15592_v31, %v9369_v36  ;;  %v9373_v31 = vadd.f32 %v15568_v14, %v9197_v28  ;;  %v9544_v14 = vadd.f32 %v20246_v58, %v9368_v32  ;;  %v21320_v32 = vld [vmem:[#allocation79_spill] sm:$0xff] }
 0x659   : > { %v15616_v59 = vpop.f32.mrf.mxu0 }
 0x65a   : > { %v9717_v8 = vadd.f32 %v15616_v59, %v9541_v51 }
 0x65b   : > { %v9668_v7 = vpop.f32.mrf.mxu0 }
 0x65c   : > { %v9893_v59 = vadd.f32 %v15644_v50, %v9717_v8  ;;  %v15652_v50 = vpop.f32.mrf.mxu1  ;;  %v21317_v8 = vld [vmem:[#allocation76_spill] sm:$0xff] }
 0x65d   : > { %v15617_v13 = vpop.f32.mrf.mxu0 }
 0x65e   : > { %v9718_v19 = vadd.f32 %v15617_v13, %v9542_v61 }
 0x65f   : > { %v9671_v2 = vpop.f32.mrf.mxu0 }
 0x660   : > { %v9894_v60 = vadd.f32 %v15645_v40, %v9718_v19 }
 0x661   : > { %v15620_v34 = vpop.f32.mrf.mxu0 }
 0x663   : > { %v9684_v33 = vpop.f32.mrf.mxu0 }
 0x664   : > { %v9719_v0 = vadd.f32 %v9684_v33, %v9543_v3  ;;  %v21314_v33 = vld [vmem:[#allocation75_spill] sm:$0xff] }
 0x665   : > { %v15621_v53 = vpop.f32.mrf.mxu0 }
 0x666   : > { %v9895_v40 = vadd.f32 %v9860_v35, %v9719_v0 }
 0x667   : > { %v20262_v55 = vpop.f32.mrf.mxu0 }
 0x669   : > { %v20264_v56 = vpop.f32.mrf.mxu0 }
 0x66a   : > { %21312 = vst [vmem:[#allocation80_spill] sm:$0xff] %v20264_v56  ;;  %v9715_v56 = vadd.f32 %v9668_v7, %v9539_v22  ;;  %v9370_v22 = vadd.f32 %v15565_v24, %v9194_v29  ;;  %v9195_v24 = vadd.f32 %v20189_v38, %v20194_v12 }
 0x66b   : > { %v20266_v42 = vpop.f32.mrf.mxu0 }
 0x66c   : > { %21313 = vst [vmem:[#allocation81_spill] sm:$0xff] %v20266_v42  ;;  %v8846_v42 = vadd.f32 %v20139_v44, %v20153_v43  ;;  %v9716_v43 = vadd.f32 %v9671_v2, %v9540_v25  ;;  %v9891_v23 = vadd.f32 %v9844_v37, %v9715_v56  ;;  %v9546_v62 = vadd.f32 %v20244_v16, %v9370_v22  ;;  %v21319_v22 = vld [vmem:[#allocation78_spill] sm:$0xff] }
 0x66d   : > { %v20269_v11 = vpop.f32.mrf.mxu0  ;;  %v9371_v61 = vadd.f32 %v20248_v18, %v9195_v24  ;;  %v9549_v37 = vadd.f32 %v21314_v33, %v9373_v31 }
 0x66e   : > { %v9022_v15 = vadd.f32 %v20213_v57, %v8846_v42  ;;  %v9721_v57 = vadd.f32 %v15620_v34, %v9545_v21  ;;  %v9892_v17 = vadd.f32 %v9847_v45, %v9716_v43  ;;  %v9722_v7 = vadd.f32 %v15621_v53, %v9546_v62  ;;  %v21315_v45 = vld [vmem:[#allocation77_spill] sm:$0xff] }
 0x66f   : > { %v20280_v48 = vpop.f32.mrf.mxu0  ;;  %v9720_v34 = vadd.f32 %v20262_v55, %v9544_v14  ;;  %v9372_v42 = vadd.f32 %v21315_v45, %v9196_v49  ;;  %v16370_v45 = vld [vmem:[%s20989_s7 + $0x70] sm:$0xff]  }
 0x670   : > { %v9198_v9 = vadd.f32 %v20200_v27, %v9022_v15  ;;  %v9897_v2 = vadd.f32 %v15648_v20, %v9721_v57  ;;  %v9547_v20 = vadd.f32 %v21317_v8, %v9371_v61  ;;  %v9898_v19 = vadd.f32 %v15649_v30, %v9722_v7  ;;  %v9876_v15 = vpop.f32.mrf.mxu1  ;;  %v16378_v8 = vld [vmem:[%s20989_s7 + $0x50] sm:$0xff]  }
 0x671   : > { %v21316_v51 = vld [vmem:[#allocation80_spill] sm:$0xff]  ;;  %v9548_v28 = vadd.f32 %v21320_v32, %v9372_v42  ;;  %v16372_v42 = vld [vmem:[%s20989_s7 + $0x68] sm:$0xff]   ;;  %v16393_v32 = vld [vmem:[%s20989_s7 + $0x90] sm:$0xff]  }
 0x672   : > { %v9374_v27 = vadd.f32 %v20252_v52, %v9198_v9  ;;  %v9725_v10 = vadd.f32 %v21316_v51, %v9549_v37  ;;  %v16374_v51 = vld [vmem:[%s20989_s7 + $0x60] sm:$0xff]  }
 0x673   : > { %v21318_v1 = vld [vmem:[#allocation81_spill] sm:$0xff]  ;;  %v9724_v31 = vadd.f32 %v20280_v48, %v9548_v28  ;;  %v16394_v28 = vld [vmem:[%s20989_s7 + $0xd0] sm:$0xff]  }
 0x674   : > { %v9723_v35 = vadd.f32 %v21318_v1, %v9547_v20  ;;  %v9550_v46 = vadd.f32 %v21319_v22, %v9374_v27  ;;  %v16380_v20 = vld [vmem:[%s20989_s7 + $0x48] sm:$0xff]   ;;  %v16385_v22 = vld [vmem:[%s20989_s7 + $0xb0] sm:$0xff]  }
 0x676   : > { %v9726_v5 = vadd.f32 %v20269_v11, %v9550_v46  ;;  %v9899_v0 = vadd.f32 %v9876_v15, %v9723_v35  ;;  %v16384_v15 = vld [vmem:[%s20989_s7 + $0xf8] sm:$0xff]   ;;  %v16386_v46 = vld [vmem:[%s20989_s7 + $0xf0] sm:$0xff]  }
 0x679   : > { %v15672_v44 = vpop.f32.mrf.mxu0 }
 0x67a   : > { %v10069_v6 = vadd.f32 %v15672_v44, %v9893_v59 }
 0x67b   : > { %v10020_v26 = vpop.f32.mrf.mxu0 }
 0x67c   : > { %v10067_v39 = vadd.f32 %v10020_v26, %v9891_v23  ;;  %v10088_v47 = vadd.f32 %v20293_v54, %v10069_v6  ;;  %v9896_v23 = vadd.f32 %v9863_v63, %v9720_v34 }
 0x67d   : > { %v15673_v36 = vpop.f32.mrf.mxu0 }
 0x67e   : > { %v10070_v41 = vadd.f32 %v15673_v36, %v9894_v60  ;;  %v10086_v38 = vadd.f32 %v20293_v54, %v10067_v39  ;;  %v10100_v4 = vmax.f32 %v10088_v47, 0.0  ;;  %v9901_v39 = vadd.f32 %v15652_v50, %v9725_v10  ;;  %v15653_v60 = vpop.f32.mrf.mxu1  ;;  %v16376_v10 = vld [vmem:[%s20989_s7 + $0x58] sm:$0xff]  }
 0x67f   : > { %v10023_v13 = vpop.f32.mrf.mxu0  ;;  %v9902_v47 = vadd.f32 %v15653_v60, %v9726_v5  ;;  %v16392_v5 = vld [vmem:[%s20989_s7 + $0xd8] sm:$0xff]  }
 0x680   : > { %v10089_v12 = vadd.f32 %v20293_v54, %v10070_v41  ;;  %v10068_v16 = vadd.f32 %v10023_v13, %v9892_v17  ;;  %v10098_v52 = vmax.f32 %v10086_v38, 0.0  ;;  %v9879_v7 = vpop.f32.mrf.mxu1  ;;  %v16400_v60 = vld [vmem:[%s20989_s7 + $0x178] sm:$0xff]  }
 0x681   : > { %v15676_v18 = vpop.f32.mrf.mxu0  ;;  %v9900_v48 = vadd.f32 %v9879_v7, %v9724_v31  ;;  %v16401_v31 = vld [vmem:[%s20989_s7 + $0x130] sm:$0xff]   ;;  %v16414_v7 = vld [vmem:[%s20989_s7 + $0x140] sm:$0xff]  }
 0x682   : > { %v10101_v53 = vmax.f32 %v10089_v12, 0.0  ;;  %v10087_v58 = vadd.f32 %v20293_v54, %v10068_v16  ;;  %v10073_v56 = vadd.f32 %v15676_v18, %v9897_v2 }
 0x683   : > { %v10036_v29 = vpop.f32.mrf.mxu0 }
 0x684   : > { %v10111_v25 = vpack.c.bf16 %v10101_v53, %v10100_v4  ;;  %v10099_v55 = vmax.f32 %v10087_v58, 0.0  ;;  %v10071_v59 = vadd.f32 %v10036_v29, %v9895_v40  ;;  %v10092_v21 = vadd.f32 %v20293_v54, %v10073_v56  ;;  %v16368_v56 = vld [vmem:[%s20989_s7 + $0x78] sm:$0xff]   ;;  %v16381_v29 = vld [vmem:[%s20989_s7] sm:$0xff]  }
 0x685   : > { %v15677_v44 = vpop.f32.mrf.mxu0  ;;  %v21321_v58 = vmov 0.0   ;;  %15713 = vmatpush3.bf16.msra.mxu0 %v16381_v29  ;;  %v16439_v29 = vld [vmem:[%s20989_s7 + $0x218] sm:$0xff]  }
 0x686   : > { %v10110_v43 = vpack.c.bf16 %v10099_v55, %v10098_v52  ;;  %v10074_v6 = vadd.f32 %v15677_v44, %v9898_v19  ;;  %v10090_v3 = vadd.f32 %v20293_v54, %v10071_v59  ;;  %v10104_v62 = vmax.f32 %v10092_v21, 0.0  ;;  %v16382_v19 = vld [vmem:[%s20989_s7 + $0x40] sm:$0xff]   ;;  %15738 = vmatprep.subr.bf16.mxu0 %v21321_v58  ;;  %v16383_v59 = vld [vmem:[%s20989_s7 + $0xb8] sm:$0xff]   ;;  %v16387_v44 = vld [vmem:[%s20989_s7 + $0xa8] sm:$0xff]  }
 0x687   : > { %v10039_v30 = vpop.f32.mrf.mxu0  ;;  %v16389_v21 = vld [vmem:[%s20989_s7 + $0xa0] sm:$0xff]  }
 0x688   : > { %v10093_v26 = vadd.f32 %v20293_v54, %v10074_v6  ;;  %v10072_v57 = vadd.f32 %v10039_v30, %v9896_v23  ;;  %v10102_v41 = vmax.f32 %v10090_v3, 0.0  ;;  %v16390_v6 = vld [vmem:[%s20989_s7 + $0xe0] sm:$0xff]   ;;  %v16391_v23 = vld [vmem:[%s20989_s7 + $0x98] sm:$0xff]   ;;  %v16395_v30 = vld [vmem:[%s20989_s7 + $0x88] sm:$0xff]  }
 0x689   : > { %v15680_v24 = vpop.f32.mrf.mxu0  ;;  %v16396_v3 = vld [vmem:[%s20989_s7 + $0xc8] sm:$0xff]  }
 0x68a   : > { %v10105_v36 = vmax.f32 %v10093_v26, 0.0  ;;  %v10091_v63 = vadd.f32 %v20293_v54, %v10072_v57  ;;  %v10077_v9 = vadd.f32 %v15680_v24, %v9901_v39  ;;  %v16397_v26 = vld [vmem:[%s20989_s7 + $0x80] sm:$0xff]   ;;  %v16399_v39 = vld [vmem:[%s20989_s7 + $0x138] sm:$0xff]   ;;  %v16402_v24 = vld [vmem:[%s20989_s7 + $0x170] sm:$0xff]  }
 0x68b   : > { %v10052_v11 = vpop.f32.mrf.mxu0  ;;  %v16398_v57 = vld [vmem:[%s20989_s7 + $0xc0] sm:$0xff]  }
 0x68c   : > { %v10113_v17 = vpack.c.bf16 %v10105_v36, %v10104_v62  ;;  %v10103_v61 = vmax.f32 %v10091_v63, 0.0  ;;  %v10075_v49 = vadd.f32 %v10052_v11, %v9899_v0  ;;  %v10096_v38 = vadd.f32 %v20293_v54, %v10077_v9  ;;  %v16403_v0 = vld [vmem:[%s20989_s7 + $0x128] sm:$0xff]   ;;  %v16405_v36 = vld [vmem:[%s20989_s7 + $0x120] sm:$0xff]   ;;  %v16407_v9 = vld [vmem:[%s20989_s7 + $0x118] sm:$0xff]  }
 0x68d   : > { %v15681_v14 = vpop.f32.mrf.mxu0  ;;  %v16404_v62 = vld [vmem:[%s20989_s7 + $0x168] sm:$0xff]   ;;  %v16406_v63 = vld [vmem:[%s20989_s7 + $0x160] sm:$0xff]   ;;  %v16408_v11 = vld [vmem:[%s20989_s7 + $0x158] sm:$0xff]  }
 0x68e   : > { %v10112_v13 = vpack.c.bf16 %v10103_v61, %v10102_v41  ;;  %v10078_v12 = vadd.f32 %v15681_v14, %v9902_v47  ;;  %v10094_v2 = vadd.f32 %v20293_v54, %v10075_v49  ;;  %v10108_v34 = vmax.f32 %v10096_v38, 0.0  ;;  %v16409_v47 = vld [vmem:[%s20989_s7 + $0x110] sm:$0xff]   ;;  %v16412_v61 = vld [vmem:[%s20989_s7 + $0x148] sm:$0xff]   ;;  %v16413_v49 = vld [vmem:[%s20989_s7 + $0x100] sm:$0xff]  }
 0x68f   : > { %v10055_v16 = vpop.f32.mrf.mxu0  ;;  %v16410_v41 = vld [vmem:[%s20989_s7 + $0x150] sm:$0xff]   ;;  %v16415_v14 = vld [vmem:[%s20989_s7 + $0x1b8] sm:$0xff]  }
 0x690   : > { %v10097_v50 = vadd.f32 %v20293_v54, %v10078_v12  ;;  %v10076_v27 = vadd.f32 %v10055_v16, %v9900_v48  ;;  %v10106_v18 = vmax.f32 %v10094_v2, 0.0  ;;  %v16417_v38 = vld [vmem:[%s20989_s7 + $0x1b0] sm:$0xff]   ;;  %v16419_v48 = vld [vmem:[%s20989_s7 + $0x1a8] sm:$0xff]   ;;  %v16421_v2 = vld [vmem:[%s20989_s7 + $0x1a0] sm:$0xff]  }
 0x691   : > { %v16418_v12 = vld [vmem:[%s20989_s7 + $0x1f0] sm:$0xff]   ;;  %v16420_v16 = vld [vmem:[%s20989_s7 + $0x1e8] sm:$0xff]  }
 0x692   : > { %v10109_v33 = vmax.f32 %v10097_v50, 0.0  ;;  %v10095_v37 = vadd.f32 %v20293_v54, %v10076_v27  ;;  %v16366_v54 = vld [vmem:[%s20988_s6] sm:$0xff]   ;;  %v16423_v27 = vld [vmem:[%s20989_s7 + $0x198] sm:$0xff]  }
 0x693   : > { %v16422_v50 = vld [vmem:[%s20989_s7 + $0x1e0] sm:$0xff]  }
 0x694   : > { %v10115_v40 = vpack.c.bf16 %v10109_v33, %v10108_v34  ;;  %v10107_v4 = vmax.f32 %v10095_v37, 0.0  ;;  %v16424_v34 = vld [vmem:[%s20989_s7 + $0x1d8] sm:$0xff]   ;;  %v16425_v33 = vld [vmem:[%s20989_s7 + $0x190] sm:$0xff]  }
 0x695   : > { %v16426_v37 = vld [vmem:[%s20989_s7 + $0x1d0] sm:$0xff]  }
 0x696   : > { %v10114_v53 = vpack.c.bf16 %v10107_v4, %v10106_v18  ;;  %15683 = vmatpush3.bf16.msra.mxu1 %v10115_v40  ;;  %v16427_v18 = vld [vmem:[%s20989_s7 + $0x188] sm:$0xff]   ;;  %v16429_v4 = vld [vmem:[%s20989_s7 + $0x180] sm:$0xff]  }
 0x697   : > { %15684 = vmatprep.subr.bf16.mxu1 %v21321_v58  ;;  %v16428_v40 = vld [vmem:[%s20989_s7 + $0x1c8] sm:$0xff]  }
 0x69a   : > { %15685 = vmatpush3.bf16.msra.mxu1 %v10114_v53  ;;  %v16430_v53 = vld [vmem:[%s20989_s7 + $0x1c0] sm:$0xff]  }
 0x69b   : > { %15686 = vmatprep.subr.bf16.mxu1 %v21321_v58 }
 0x69e   : > { %15687 = vmatpush3.bf16.msra.mxu1 %v10113_v17  ;;  %v16411_v17 = vld [vmem:[%s20989_s7 + $0x108] sm:$0xff]  }
 0x69f   : > { %15688 = vmatprep.subr.bf16.mxu1 %v21321_v58 }
 0x6a2   : > { %15689 = vmatpush3.bf16.msra.mxu1 %v10112_v13  ;;  %v16416_v13 = vld [vmem:[%s20989_s7 + $0x1f8] sm:$0xff]  }
 0x6a3   : > { %15690 = vmatprep.subr.bf16.mxu1 %v21321_v58 }
 0x6a6   : > { %15691 = vmatpush3.bf16.msra.mxu1 %v10111_v25 }
 0x6a7   : > { %15692 = vmatprep.subr.bf16.mxu1 %v21321_v58 }
 0x6aa   : > { %15693 = vmatpush3.bf16.msra.mxu1 %v10110_v43  ;;  %v16388_v43 = vld [vmem:[%s20989_s7 + $0xe8] sm:$0xff]  }
 0x6ab   : > { %15718 = vmatprep.subr.bf16.mxu1 %v21321_v58 }
 0x6ad   : > { %15695 = vmatmul.mubr.msk.bf16.vlgmr.msra.gmra.mxu1 %vm10123_vm4, %v16366_v54  ;;  %v16431_v54 = vld [vmem:[%s20989_s7 + $0x238] sm:$0xff]  }
 0x6ae   : > { %15719 = vmatpush3.bf16.msra.mxu1 %v16368_v56  ;;  %15734 = vmatprep.mubr.msk.bf16.mxu1 %vm16632_vm3, %v21321_v58  ;;  %v16432_v56 = vld [vmem:[%s20989_s7 + $0x278] sm:$0xff]  }
 0x6af   : > { %15720 = vmatprep.subr.bf16.mxu1 %v21321_v58 }
 0x6b2   : > { %15721 = vmatpush3.bf16.msra.mxu1 %v16370_v45  ;;  %v16433_v45 = vld [vmem:[%s20989_s7 + $0x230] sm:$0xff]  }
 0x6b3   : > { %15722 = vmatprep.subr.bf16.mxu1 %v21321_v58 }
 0x6b6   : > { %15723 = vmatpush3.bf16.msra.mxu1 %v16372_v42  ;;  %v16434_v42 = vld [vmem:[%s20989_s7 + $0x270] sm:$0xff]  }
 0x6b7   : > { %15724 = vmatprep.subr.bf16.mxu1 %v21321_v58 }
 0x6ba   : > { %15725 = vmatpush3.bf16.msra.mxu1 %v16374_v51  ;;  %v16435_v51 = vld [vmem:[%s20989_s7 + $0x228] sm:$0xff]  }
 0x6bb   : > { %15726 = vmatprep.subr.bf16.mxu1 %v21321_v58 }
 0x6be   : > { %15727 = vmatpush3.bf16.msra.mxu1 %v16376_v10  ;;  %v16436_v10 = vld [vmem:[%s20989_s7 + $0x268] sm:$0xff]  }
 0x6bf   : > { %15728 = vmatprep.subr.bf16.mxu1 %v21321_v58 }
 0x6c2   : > { %15729 = vmatpush3.bf16.msra.mxu1 %v16378_v8  ;;  %v16437_v8 = vld [vmem:[%s20989_s7 + $0x220] sm:$0xff]  }
 0x6c3   : > { %15730 = vmatprep.subr.bf16.mxu1 %v21321_v58 }
 0x6c6   : > { %15731 = vmatpush3.bf16.msra.mxu1 %v16380_v20  ;;  %v16438_v20 = vld [vmem:[%s20989_s7 + $0x260] sm:$0xff]  }
 0x6c7   : > { %15732 = vmatprep.subr.bf16.mxu1 %v21321_v58 }
 0x6ca   : > { %15733 = vmatpush3.bf16.msra.mxu1 %v16382_v19  ;;  %v16440_v19 = vld [vmem:[%s20989_s7 + $0x258] sm:$0xff]  }
 0x6cb   : > { %15758 = vmatprep.subr.bf16.mxu1 %v21321_v58 }
 0x76d   : > { %v10161_v52 = vpop.f32.mrf.mxu1 }
 0x76f   : > { %v15696_v25 = vpop.f32.mrf.mxu1 }
 0x770   : > { %v16442_v25 = vld [vmem:[%s20989_s7 + $0x250] sm:$0xff]  }
 0x771   : > { %v10164_v55 = vpop.f32.mrf.mxu1 }
 0x772   : > { %v20378_v1 = vpack.c.bf16 %v10164_v55, %v10161_v52  ;;  %v16441_v52 = vld [vmem:[%s20989_s7 + $0x210] sm:$0xff]   ;;  %v16443_v55 = vld [vmem:[%s20989_s7 + $0x208] sm:$0xff]  }
 0x773   : > { %v15697_v35 = vpop.f32.mrf.mxu1 }
 0x774   : > { %15715 = vmatmul.mubr.bf16.vlgmr.msra.gmra.mxu0 %v20378_v1  ;;  %15735 = vmatmul.mubr.bf16.vlgmr.msra.gmra.mxu1 %v20378_v1  ;;  %v16446_v35 = vld [vmem:[%s20989_s7 + $0x240] sm:$0xff]  }
 0x775   : > { %15739 = vmatpush3.bf16.msra.mxu0 %v16383_v59  ;;  %15759 = vmatpush3.bf16.msra.mxu1 %v16384_v15  ;;  %v16444_v59 = vld [vmem:[%s20989_s7 + $0x248] sm:$0xff]   ;;  %v16445_v15 = vld [vmem:[%s20989_s7 + $0x200] sm:$0xff]  }
 0x776   : > { %15740 = vmatprep.subr.bf16.mxu0 %v21321_v58  ;;  %15760 = vmatprep.subr.bf16.mxu1 %v21321_v58 }
 0x777   : > { %15754 = vmatprep.mubr.msk.bf16.mxu0 %vm16632_vm3, %v21321_v58  ;;  %15774 = vmatprep.mubr.msk.bf16.mxu1 %vm16632_vm3, %v21321_v58 }
 0x779   : > { %15741 = vmatpush3.bf16.msra.mxu0 %v16385_v22  ;;  %15761 = vmatpush3.bf16.msra.mxu1 %v16386_v46  ;;  %v16447_v22 = vld [vmem:[%s20989_s7 + $0x2b8] sm:$0xff]  }
 0x77a   : > { %15742 = vmatprep.subr.bf16.mxu0 %v21321_v58  ;;  %15762 = vmatprep.subr.bf16.mxu1 %v21321_v58  ;;  %v16448_v46 = vld [vmem:[%s20989_s7 + $0x2f8] sm:$0xff]  }
 0x77d   : > { %15743 = vmatpush3.bf16.msra.mxu0 %v16387_v44  ;;  %15763 = vmatpush3.bf16.msra.mxu1 %v16388_v43  ;;  %v16449_v44 = vld [vmem:[%s20989_s7 + $0x2b0] sm:$0xff]  }
 0x77e   : > { %15744 = vmatprep.subr.bf16.mxu0 %v21321_v58  ;;  %15764 = vmatprep.subr.bf16.mxu1 %v21321_v58  ;;  %v16450_v43 = vld [vmem:[%s20989_s7 + $0x2f0] sm:$0xff]  }
 0x781   : > { %15745 = vmatpush3.bf16.msra.mxu0 %v16389_v21  ;;  %15765 = vmatpush3.bf16.msra.mxu1 %v16390_v6  ;;  %v16451_v21 = vld [vmem:[%s20989_s7 + $0x2a8] sm:$0xff]  }
 0x782   : > { %15746 = vmatprep.subr.bf16.mxu0 %v21321_v58  ;;  %15766 = vmatprep.subr.bf16.mxu1 %v21321_v58  ;;  %v16452_v6 = vld [vmem:[%s20989_s7 + $0x2e8] sm:$0xff]  }
 0x785   : > { %15747 = vmatpush3.bf16.msra.mxu0 %v16391_v23  ;;  %15767 = vmatpush3.bf16.msra.mxu1 %v16392_v5  ;;  %v16453_v23 = vld [vmem:[%s20989_s7 + $0x2a0] sm:$0xff]  }
 0x786   : > { %15748 = vmatprep.subr.bf16.mxu0 %v21321_v58  ;;  %15768 = vmatprep.subr.bf16.mxu1 %v21321_v58  ;;  %v16454_v5 = vld [vmem:[%s20989_s7 + $0x2e0] sm:$0xff]  }
 0x789   : > { %15749 = vmatpush3.bf16.msra.mxu0 %v16393_v32  ;;  %15769 = vmatpush3.bf16.msra.mxu1 %v16394_v28  ;;  %v16455_v32 = vld [vmem:[%s20989_s7 + $0x298] sm:$0xff]  }
 0x78a   : > { %15750 = vmatprep.subr.bf16.mxu0 %v21321_v58  ;;  %15770 = vmatprep.subr.bf16.mxu1 %v21321_v58  ;;  %v16456_v28 = vld [vmem:[%s20989_s7 + $0x2d8] sm:$0xff]  }
 0x78d   : > { %15751 = vmatpush3.bf16.msra.mxu0 %v16395_v30  ;;  %15771 = vmatpush3.bf16.msra.mxu1 %v16396_v3  ;;  %v16457_v30 = vld [vmem:[%s20989_s7 + $0x290] sm:$0xff]  }
 0x78e   : > { %15752 = vmatprep.subr.bf16.mxu0 %v21321_v58  ;;  %15772 = vmatprep.subr.bf16.mxu1 %v21321_v58  ;;  %v16458_v3 = vld [vmem:[%s20989_s7 + $0x2d0] sm:$0xff]  }
 0x791   : > { %15753 = vmatpush3.bf16.msra.mxu0 %v16397_v26  ;;  %15773 = vmatpush3.bf16.msra.mxu1 %v16398_v57  ;;  %v16459_v26 = vld [vmem:[%s20989_s7 + $0x288] sm:$0xff]  }
 0x792   : > { %15778 = vmatprep.subr.bf16.mxu0 %v21321_v58  ;;  %15798 = vmatprep.subr.bf16.mxu1 %v21321_v58  ;;  %v16460_v57 = vld [vmem:[%s20989_s7 + $0x2c8] sm:$0xff]  }
 0x794   : > { %15755 = vmatmul.mubr.bf16.vlgmr.msra.gmra.mxu0 %v20378_v1  ;;  %15775 = vmatmul.mubr.bf16.vlgmr.msra.gmra.mxu1 %v20378_v1 }
 0x795   : > { %15779 = vmatpush3.bf16.msra.mxu0 %v16399_v39  ;;  %15799 = vmatpush3.bf16.msra.mxu1 %v16400_v60  ;;  %v16461_v39 = vld [vmem:[%s20989_s7 + $0x280] sm:$0xff]  }
 0x796   : > { %15780 = vmatprep.subr.bf16.mxu0 %v21321_v58  ;;  %15800 = vmatprep.subr.bf16.mxu1 %v21321_v58  ;;  %v16462_v60 = vld [vmem:[%s20989_s7 + $0x2c0] sm:$0xff]  }
 0x797   : > { %15794 = vmatprep.mubr.msk.bf16.mxu0 %vm16632_vm3, %v21321_v58  ;;  %15814 = vmatprep.mubr.msk.bf16.mxu1 %vm16632_vm3, %v21321_v58 }
 0x799   : > { %15781 = vmatpush3.bf16.msra.mxu0 %v16401_v31  ;;  %15801 = vmatpush3.bf16.msra.mxu1 %v16402_v24  ;;  %v16463_v31 = vld [vmem:[%s20989_s7 + $0x338] sm:$0xff]  }
 0x79a   : > { %15782 = vmatprep.subr.bf16.mxu0 %v21321_v58  ;;  %15802 = vmatprep.subr.bf16.mxu1 %v21321_v58  ;;  %v16464_v24 = vld [vmem:[%s20989_s7 + $0x378] sm:$0xff]  }
 0x79d   : > { %15783 = vmatpush3.bf16.msra.mxu0 %v16403_v0  ;;  %15803 = vmatpush3.bf16.msra.mxu1 %v16404_v62  ;;  %v16465_v0 = vld [vmem:[%s20989_s7 + $0x330] sm:$0xff]  }
 0x79e   : > { %15784 = vmatprep.subr.bf16.mxu0 %v21321_v58  ;;  %15804 = vmatprep.subr.bf16.mxu1 %v21321_v58  ;;  %v16466_v62 = vld [vmem:[%s20989_s7 + $0x370] sm:$0xff]  }
 0x7a1   : > { %15785 = vmatpush3.bf16.msra.mxu0 %v16405_v36  ;;  %15805 = vmatpush3.bf16.msra.mxu1 %v16406_v63  ;;  %v16467_v36 = vld [vmem:[%s20989_s7 + $0x328] sm:$0xff]  }
 0x7a2   : > { %15786 = vmatprep.subr.bf16.mxu0 %v21321_v58  ;;  %15806 = vmatprep.subr.bf16.mxu1 %v21321_v58  ;;  %v16468_v63 = vld [vmem:[%s20989_s7 + $0x368] sm:$0xff]  }
 0x7a5   : > { %15787 = vmatpush3.bf16.msra.mxu0 %v16407_v9  ;;  %15807 = vmatpush3.bf16.msra.mxu1 %v16408_v11  ;;  %v16469_v9 = vld [vmem:[%s20989_s7 + $0x320] sm:$0xff]  }
 0x7a6   : > { %15788 = vmatprep.subr.bf16.mxu0 %v21321_v58  ;;  %15808 = vmatprep.subr.bf16.mxu1 %v21321_v58  ;;  %v16470_v11 = vld [vmem:[%s20989_s7 + $0x360] sm:$0xff]  }
 0x7a9   : > { %15789 = vmatpush3.bf16.msra.mxu0 %v16409_v47  ;;  %15809 = vmatpush3.bf16.msra.mxu1 %v16410_v41  ;;  %v16471_v47 = vld [vmem:[%s20989_s7 + $0x318] sm:$0xff]  }
 0x7aa   : > { %15790 = vmatprep.subr.bf16.mxu0 %v21321_v58  ;;  %15810 = vmatprep.subr.bf16.mxu1 %v21321_v58  ;;  %v16472_v41 = vld [vmem:[%s20989_s7 + $0x358] sm:$0xff]  }
 0x7ad   : > { %15791 = vmatpush3.bf16.msra.mxu0 %v16411_v17  ;;  %15811 = vmatpush3.bf16.msra.mxu1 %v16412_v61  ;;  %v16473_v17 = vld [vmem:[%s20989_s7 + $0x310] sm:$0xff]  }
 0x7ae   : > { %15792 = vmatprep.subr.bf16.mxu0 %v21321_v58  ;;  %15812 = vmatprep.subr.bf16.mxu1 %v21321_v58  ;;  %v16474_v61 = vld [vmem:[%s20989_s7 + $0x350] sm:$0xff]  }
 0x7b1   : > { %15793 = vmatpush3.bf16.msra.mxu0 %v16413_v49  ;;  %15813 = vmatpush3.bf16.msra.mxu1 %v16414_v7  ;;  %v16475_v49 = vld [vmem:[%s20989_s7 + $0x308] sm:$0xff]  }
 0x7b2   : > { %15818 = vmatprep.subr.bf16.mxu0 %v21321_v58  ;;  %15838 = vmatprep.subr.bf16.mxu1 %v21321_v58  ;;  %v16476_v7 = vld [vmem:[%s20989_s7 + $0x348] sm:$0xff]  }
 0x7b4   : > { %15795 = vmatmul.mubr.bf16.vlgmr.msra.gmra.mxu0 %v20378_v1  ;;  %15815 = vmatmul.mubr.bf16.vlgmr.msra.gmra.mxu1 %v20378_v1 }
 0x7b5   : > { %15819 = vmatpush3.bf16.msra.mxu0 %v16415_v14  ;;  %15839 = vmatpush3.bf16.msra.mxu1 %v16416_v13  ;;  %v16633_v14 = vmov 1966171168  }
 0x7b6   : > { %15820 = vmatprep.subr.bf16.mxu0 %v21321_v58  ;;  %15840 = vmatprep.subr.bf16.mxu1 %v21321_v58  ;;  %v10382_v13 = vunpack.c.l.s4 %v16633_v14 }
 0x7b7   : > { %15834 = vmatprep.mubr.msk.bf16.mxu0 %vm16632_vm3, %v21321_v58  ;;  %15854 = vmatprep.mubr.msk.bf16.mxu1 %vm16632_vm3, %v21321_v58 }
 0x7b9   : > { %15821 = vmatpush3.bf16.msra.mxu0 %v16417_v38  ;;  %15841 = vmatpush3.bf16.msra.mxu1 %v16418_v12  ;;  %v10384_v38 = vlaneseq  ;;  %v16477_v12 = vld [vmem:[%s20989_s7 + $0x300] sm:$0xff]  }
 0x7ba   : > { %15822 = vmatprep.subr.bf16.mxu0 %v21321_v58  ;;  %15842 = vmatprep.subr.bf16.mxu1 %v21321_v58 }
 0x7bd   : > { %15823 = vmatpush3.bf16.msra.mxu0 %v16419_v48  ;;  %15843 = vmatpush3.bf16.msra.mxu1 %v16420_v16  ;;  %v16478_v48 = vld [vmem:[%s20989_s7 + $0x340] sm:$0xff]   ;;  %v10383_v16 = vunpack.c.0.s8 %v10382_v13 }
 0x7be   : > { %15824 = vmatprep.subr.bf16.mxu0 %v21321_v58  ;;  %15844 = vmatprep.subr.bf16.mxu1 %v21321_v58 }
 0x7c1   : > { %15825 = vmatpush3.bf16.msra.mxu0 %v16421_v2  ;;  %15845 = vmatpush3.bf16.msra.mxu1 %v16422_v50  ;;  %v20790_v2 = vshrl.u32 %v10384_v38, 7  ;;  %v16479_v50 = vld [vmem:[%s20989_s7 + $0x3b8] sm:$0xff]  }
 0x7c2   : > { %15826 = vmatprep.subr.bf16.mxu0 %v21321_v58  ;;  %15846 = vmatprep.subr.bf16.mxu1 %v21321_v58 }
 0x7c5   : > { %15827 = vmatpush3.bf16.msra.mxu0 %v16423_v27  ;;  %15847 = vmatpush3.bf16.msra.mxu1 %v16424_v34  ;;  %v16480_v27 = vld [vmem:[%s20989_s7 + $0x3f8] sm:$0xff]   ;;  %v20801_v34 = vsub.s32 %v10383_v16, %v20790_v2 }
 0x7c6   : > { %15828 = vmatprep.subr.bf16.mxu0 %v21321_v58  ;;  %15848 = vmatprep.subr.bf16.mxu1 %v21321_v58 }
 0x7c9   : > { %15829 = vmatpush3.bf16.msra.mxu0 %v16425_v33  ;;  %15849 = vmatpush3.bf16.msra.mxu1 %v16426_v37 }
 0x7ca   : > { %15830 = vmatprep.subr.bf16.mxu0 %v21321_v58  ;;  %15850 = vmatprep.subr.bf16.mxu1 %v21321_v58 }
 0x7cd   : > { %15831 = vmatpush3.bf16.msra.mxu0 %v16427_v18  ;;  %15851 = vmatpush3.bf16.msra.mxu1 %v16428_v40  ;;  %v16481_v18 = vld [vmem:[%s20989_s7 + $0x3b0] sm:$0xff]  }
 0x7ce   : > { %15832 = vmatprep.subr.bf16.mxu0 %v21321_v58  ;;  %15852 = vmatprep.subr.bf16.mxu1 %v21321_v58  ;;  %v16482_v40 = vld [vmem:[%s20989_s7 + $0x3f0] sm:$0xff]  }
 0x7d1   : > { %15833 = vmatpush3.bf16.msra.mxu0 %v16429_v4  ;;  %15853 = vmatpush3.bf16.msra.mxu1 %v16430_v53  ;;  %v10169_v53 = vld [vmem:[%s20990_s8] sm:$0x1] }
 0x7d2   : > { %15858 = vmatprep.subr.bf16.mxu0 %v21321_v58  ;;  %15878 = vmatprep.subr.bf16.mxu1 %v21321_v58 }
 0x7d4   : > { %15835 = vmatmul.mubr.bf16.vlgmr.msra.gmra.mxu0 %v20378_v1  ;;  %15855 = vmatmul.mubr.bf16.vlgmr.msra.gmra.mxu1 %v20378_v1 }
 0x7d5   : > { %15859 = vmatpush3.bf16.msra.mxu0 %v16431_v54  ;;  %15879 = vmatpush3.bf16.msra.mxu1 %v16432_v56 }
 0x7d6   : > { %15860 = vmatprep.subr.bf16.mxu0 %v21321_v58  ;;  %15880 = vmatprep.subr.bf16.mxu1 %v21321_v58 }
 0x7d7   : > { %15874 = vmatprep.mubr.msk.bf16.mxu0 %vm16632_vm3, %v21321_v58  ;;  %15894 = vmatprep.mubr.msk.bf16.mxu1 %vm16632_vm3, %v21321_v58 }
 0x7d9   : > { %15861 = vmatpush3.bf16.msra.mxu0 %v16433_v45  ;;  %15881 = vmatpush3.bf16.msra.mxu1 %v16434_v42 }
 0x7da   : > { %15862 = vmatprep.subr.bf16.mxu0 %v21321_v58  ;;  %15882 = vmatprep.subr.bf16.mxu1 %v21321_v58 }
 0x7dd   : > { %15863 = vmatpush3.bf16.msra.mxu0 %v16435_v51  ;;  %15883 = vmatpush3.bf16.msra.mxu1 %v16436_v10  ;;  %v16483_v10 = vld [vmem:[%s20989_s7 + $0x3a8] sm:$0xff]  }
 0x7de   : > { %15864 = vmatprep.subr.bf16.mxu0 %v21321_v58  ;;  %15884 = vmatprep.subr.bf16.mxu1 %v21321_v58 }
 0x7e1   : > { %15865 = vmatpush3.bf16.msra.mxu0 %v16437_v8  ;;  %15885 = vmatpush3.bf16.msra.mxu1 %v16438_v20  ;;  %v16484_v8 = vld [vmem:[%s20989_s7 + $0x3e8] sm:$0xff]  }
 0x7e2   : > { %15866 = vmatprep.subr.bf16.mxu0 %v21321_v58  ;;  %15886 = vmatprep.subr.bf16.mxu1 %v21321_v58 }
 0x7e5   : > { %15867 = vmatpush3.bf16.msra.mxu0 %v16439_v29  ;;  %15887 = vmatpush3.bf16.msra.mxu1 %v16440_v19 }
 0x7e6   : > { %15868 = vmatprep.subr.bf16.mxu0 %v21321_v58  ;;  %15888 = vmatprep.subr.bf16.mxu1 %v21321_v58 }
 0x7e9   : > { %15869 = vmatpush3.bf16.msra.mxu0 %v16441_v52  ;;  %15889 = vmatpush3.bf16.msra.mxu1 %v16442_v25 }
 0x7ea   : > { %15870 = vmatprep.subr.bf16.mxu0 %v21321_v58  ;;  %15890 = vmatprep.subr.bf16.mxu1 %v21321_v58 }
 0x7ed   : > { %15871 = vmatpush3.bf16.msra.mxu0 %v16443_v55  ;;  %15891 = vmatpush3.bf16.msra.mxu1 %v16444_v59  ;;  %v16485_v55 = vld [vmem:[%s20989_s7 + $0x3a0] sm:$0xff]  }
 0x7ee   : > { %15872 = vmatprep.subr.bf16.mxu0 %v21321_v58  ;;  %15892 = vmatprep.subr.bf16.mxu1 %v21321_v58  ;;  %v16486_v59 = vld [vmem:[%s20989_s7 + $0x3e0] sm:$0xff]  }
 0x7f1   : > { %15873 = vmatpush3.bf16.msra.mxu0 %v16445_v15  ;;  %15893 = vmatpush3.bf16.msra.mxu1 %v16446_v35  ;;  %v16487_v15 = vld [vmem:[%s20989_s7 + $0x398] sm:$0xff]  }
 0x7f2   : > { %15898 = vmatprep.subr.bf16.mxu0 %v21321_v58  ;;  %15918 = vmatprep.subr.bf16.mxu1 %v21321_v58  ;;  %v16488_v35 = vld [vmem:[%s20989_s7 + $0x3d8] sm:$0xff]  }
 0x7f4   : > { %15875 = vmatmul.mubr.bf16.vlgmr.msra.gmra.mxu0 %v20378_v1  ;;  %15895 = vmatmul.mubr.bf16.vlgmr.msra.gmra.mxu1 %v20378_v1 }
 0x7f5   : > { %15899 = vmatpush3.bf16.msra.mxu0 %v16447_v22  ;;  %15919 = vmatpush3.bf16.msra.mxu1 %v16448_v46  ;;  %v16489_v22 = vld [vmem:[%s20989_s7 + $0x390] sm:$0xff]  }
 0x7f6   : > { %15900 = vmatprep.subr.bf16.mxu0 %v21321_v58  ;;  %15920 = vmatprep.subr.bf16.mxu1 %v21321_v58  ;;  %v16490_v46 = vld [vmem:[%s20989_s7 + $0x3d0] sm:$0xff]  }
 0x7f7   : > { %15914 = vmatprep.mubr.msk.bf16.mxu0 %vm16632_vm3, %v21321_v58  ;;  %15934 = vmatprep.mubr.msk.bf16.mxu1 %vm16632_vm3, %v21321_v58 }
 0x7f9   : > { %15901 = vmatpush3.bf16.msra.mxu0 %v16449_v44  ;;  %15921 = vmatpush3.bf16.msra.mxu1 %v16450_v43  ;;  %v16491_v44 = vld [vmem:[%s20989_s7 + $0x388] sm:$0xff]  }
 0x7fa   : > { %15902 = vmatprep.subr.bf16.mxu0 %v21321_v58  ;;  %15922 = vmatprep.subr.bf16.mxu1 %v21321_v58  ;;  %v16492_v43 = vld [vmem:[%s20989_s7 + $0x3c8] sm:$0xff]  }
 0x7fd   : > { %15903 = vmatpush3.bf16.msra.mxu0 %v16451_v21  ;;  %15923 = vmatpush3.bf16.msra.mxu1 %v16452_v6  ;;  %v16493_v21 = vld [vmem:[%s20989_s7 + $0x380] sm:$0xff]  }
 0x7fe   : > { %15904 = vmatprep.subr.bf16.mxu0 %v21321_v58  ;;  %15924 = vmatprep.subr.bf16.mxu1 %v21321_v58  ;;  %v16494_v6 = vld [vmem:[%s20989_s7 + $0x3c0] sm:$0xff]  }
 0x801   : > { %15905 = vmatpush3.bf16.msra.mxu0 %v16453_v23  ;;  %15925 = vmatpush3.bf16.msra.mxu1 %v16454_v5 }
 0x802   : > { %15906 = vmatprep.subr.bf16.mxu0 %v21321_v58  ;;  %15926 = vmatprep.subr.bf16.mxu1 %v21321_v58 }
 0x805   : > { %15907 = vmatpush3.bf16.msra.mxu0 %v16455_v32  ;;  %15927 = vmatpush3.bf16.msra.mxu1 %v16456_v28 }
 0x806   : > { %15908 = vmatprep.subr.bf16.mxu0 %v21321_v58  ;;  %15928 = vmatprep.subr.bf16.mxu1 %v21321_v58 }
 0x809   : > { %15909 = vmatpush3.bf16.msra.mxu0 %v16457_v30  ;;  %15929 = vmatpush3.bf16.msra.mxu1 %v16458_v3 }
 0x80a   : > { %15910 = vmatprep.subr.bf16.mxu0 %v21321_v58  ;;  %15930 = vmatprep.subr.bf16.mxu1 %v21321_v58 }
 0x80d   : > { %15911 = vmatpush3.bf16.msra.mxu0 %v16459_v26  ;;  %15931 = vmatpush3.bf16.msra.mxu1 %v16460_v57 }
 0x80e   : > { %15912 = vmatprep.subr.bf16.mxu0 %v21321_v58  ;;  %15932 = vmatprep.subr.bf16.mxu1 %v21321_v58 }
 0x811   : > { %15913 = vmatpush3.bf16.msra.mxu0 %v16461_v39  ;;  %15933 = vmatpush3.bf16.msra.mxu1 %v16462_v60 }
 0x812   : > { %15938 = vmatprep.subr.bf16.mxu0 %v21321_v58  ;;  %15958 = vmatprep.subr.bf16.mxu1 %v21321_v58 }
 0x814   : > { %15915 = vmatmul.mubr.bf16.vlgmr.msra.gmra.mxu0 %v20378_v1  ;;  %15935 = vmatmul.mubr.bf16.vlgmr.msra.gmra.mxu1 %v20378_v1 }
 0x815   : > { %15939 = vmatpush3.bf16.msra.mxu0 %v16463_v31  ;;  %15959 = vmatpush3.bf16.msra.mxu1 %v16464_v24 }
 0x816   : > { %15940 = vmatprep.subr.bf16.mxu0 %v21321_v58  ;;  %15960 = vmatprep.subr.bf16.mxu1 %v21321_v58 }
 0x817   : > { %15954 = vmatprep.mubr.msk.bf16.mxu0 %vm16632_vm3, %v21321_v58  ;;  %15974 = vmatprep.mubr.msk.bf16.mxu1 %vm16632_vm3, %v21321_v58 }
 0x819   : > { %15941 = vmatpush3.bf16.msra.mxu0 %v16465_v0  ;;  %15961 = vmatpush3.bf16.msra.mxu1 %v16466_v62 }
 0x81a   : > { %15942 = vmatprep.subr.bf16.mxu0 %v21321_v58  ;;  %15962 = vmatprep.subr.bf16.mxu1 %v21321_v58 }
 0x81d   : > { %15943 = vmatpush3.bf16.msra.mxu0 %v16467_v36  ;;  %15963 = vmatpush3.bf16.msra.mxu1 %v16468_v63 }
 0x81e   : > { %15944 = vmatprep.subr.bf16.mxu0 %v21321_v58  ;;  %15964 = vmatprep.subr.bf16.mxu1 %v21321_v58 }
 0x821   : > { %15945 = vmatpush3.bf16.msra.mxu0 %v16469_v9  ;;  %15965 = vmatpush3.bf16.msra.mxu1 %v16470_v11 }
 0x822   : > { %15946 = vmatprep.subr.bf16.mxu0 %v21321_v58  ;;  %15966 = vmatprep.subr.bf16.mxu1 %v21321_v58 }
 0x825   : > { %15947 = vmatpush3.bf16.msra.mxu0 %v16471_v47  ;;  %15967 = vmatpush3.bf16.msra.mxu1 %v16472_v41 }
 0x826   : > { %15948 = vmatprep.subr.bf16.mxu0 %v21321_v58  ;;  %15968 = vmatprep.subr.bf16.mxu1 %v21321_v58 }
 0x829   : > { %15949 = vmatpush3.bf16.msra.mxu0 %v16473_v17  ;;  %15969 = vmatpush3.bf16.msra.mxu1 %v16474_v61 }
 0x82a   : > { %15950 = vmatprep.subr.bf16.mxu0 %v21321_v58  ;;  %15970 = vmatprep.subr.bf16.mxu1 %v21321_v58 }
 0x82d   : > { %15951 = vmatpush3.bf16.msra.mxu0 %v16475_v49  ;;  %15971 = vmatpush3.bf16.msra.mxu1 %v16476_v7 }
 0x82e   : > { %15952 = vmatprep.subr.bf16.mxu0 %v21321_v58  ;;  %15972 = vmatprep.subr.bf16.mxu1 %v21321_v58 }
 0x831   : > { %15953 = vmatpush3.bf16.msra.mxu0 %v16477_v12  ;;  %15973 = vmatpush3.bf16.msra.mxu1 %v16478_v48 }
 0x832   : > { %15978 = vmatprep.subr.bf16.mxu0 %v21321_v58  ;;  %15998 = vmatprep.subr.bf16.mxu1 %v21321_v58 }
 0x834   : > { %15955 = vmatmul.mubr.bf16.vlgmr.msra.gmra.mxu0 %v20378_v1  ;;  %15975 = vmatmul.mubr.bf16.vlgmr.msra.gmra.mxu1 %v20378_v1  ;;  %v10268_v33 = vpop.f32.mrf.mxu0  ;;  %v10374_v37 = vpop.f32.mrf.mxu1 }
 0x835   : > { %15979 = vmatpush3.bf16.msra.mxu0 %v16479_v50  ;;  %15999 = vmatpush3.bf16.msra.mxu1 %v16480_v27  ;;  %v10387_v4 = vrot.slane %v10374_v37, %v20801_v34  ;;  %v10274_v20 = vadd.f32 %v10268_v33, %v10169_v53  ;;  %v16495_v37 = vld [vmem:[%s20991_s9 + $0x38] sm:$0xff]   ;;  %v16497_v53 = vld [vmem:[%s20991_s9 + $0x28] sm:$0xff]  }
 0x836   : > { %15980 = vmatprep.subr.bf16.mxu0 %v21321_v58  ;;  %16000 = vmatprep.subr.bf16.mxu1 %v21321_v58  ;;  %v15716_v54 = vpop.f32.mrf.mxu0  ;;  %v15736_v56 = vpop.f32.mrf.mxu1 }
 0x837   : > { %15994 = vmatprep.mubr.msk.bf16.mxu0 %vm16632_vm3, %v21321_v58  ;;  %16014 = vmatprep.mubr.msk.bf16.mxu1 %vm16632_vm3, %v21321_v58  ;;  %v10388_v45 = vcombine.high %v10387_v4, %v10387_v4 }
 0x838   : > { %v10271_v42 = vpop.f32.mrf.mxu0  ;;  %v10377_v51 = vpop.f32.mrf.mxu1 }
 0x839   : > { %15981 = vmatpush3.bf16.msra.mxu0 %v16481_v18  ;;  %16001 = vmatpush3.bf16.msra.mxu1 %v16482_v40  ;;  %v10395_v29 = vrot.slane %v10388_v45, %v20801_v34  ;;  %v16496_v18 = vld [vmem:[%s20991_s9 + $0x30] sm:$0xff]  }
 0x83a   : > { %15982 = vmatprep.subr.bf16.mxu0 %v21321_v58  ;;  %16002 = vmatprep.subr.bf16.mxu1 %v21321_v58  ;;  %v15717_v19 = vpop.f32.mrf.mxu0  ;;  %v15737_v52 = vpop.f32.mrf.mxu1 }
 0x83b   : > { %v10397_v25 = vadd.f32 %v10395_v29, %v10274_v20 }
 0x83d   : > { %15983 = vmatpush3.bf16.msra.mxu0 %v16483_v10  ;;  %16003 = vmatpush3.bf16.msra.mxu1 %v16484_v8 }
 0x83e   : > { %15984 = vmatprep.subr.bf16.mxu0 %v21321_v58  ;;  %16004 = vmatprep.subr.bf16.mxu1 %v21321_v58 }
 0x841   : > { %15985 = vmatpush3.bf16.msra.mxu0 %v16485_v55  ;;  %16005 = vmatpush3.bf16.msra.mxu1 %v16486_v59 }
 0x842   : > { %15986 = vmatprep.subr.bf16.mxu0 %v21321_v58  ;;  %16006 = vmatprep.subr.bf16.mxu1 %v21321_v58 }
 0x845   : > { %15987 = vmatpush3.bf16.msra.mxu0 %v16487_v15  ;;  %16007 = vmatpush3.bf16.msra.mxu1 %v16488_v35 }
 0x846   : > { %15988 = vmatprep.subr.bf16.mxu0 %v21321_v58  ;;  %16008 = vmatprep.subr.bf16.mxu1 %v21321_v58 }
 0x849   : > { %15989 = vmatpush3.bf16.msra.mxu0 %v16489_v22  ;;  %16009 = vmatpush3.bf16.msra.mxu1 %v16490_v46  ;;  %v16498_v46 = vld [vmem:[%s20991_s9 + $0x20] sm:$0xff]  }
 0x84a   : > { %15990 = vmatprep.subr.bf16.mxu0 %v21321_v58  ;;  %16010 = vmatprep.subr.bf16.mxu1 %v21321_v58 }
 0x84d   : > { %15991 = vmatpush3.bf16.msra.mxu0 %v16491_v44  ;;  %16011 = vmatpush3.bf16.msra.mxu1 %v16492_v43  ;;  %v16499_v44 = vld [vmem:[%s20991_s9 + $0x18] sm:$0xff]  }
 0x84e   : > { %15992 = vmatprep.subr.bf16.mxu0 %v21321_v58  ;;  %16012 = vmatprep.subr.bf16.mxu1 %v21321_v58  ;;  %v16503_v43 = vld [vmem:[%s20993_s11 + $0x38] sm:$0xff]  }
 0x851   : > { %15993 = vmatpush3.bf16.msra.mxu0 %v16493_v21  ;;  %16013 = vmatpush3.bf16.msra.mxu1 %v16494_v6  ;;  %v16504_v21 = vld [vmem:[%s20993_s11 + $0x30] sm:$0xff]  }
 0x852   : > { %16018 = vmatprep.subr.bf16.mxu0 %v21321_v58  ;;  %16038 = vmatprep.subr.bf16.mxu1 %v21321_v58  ;;  %v16500_v6 = vld [vmem:[%s20991_s9 + $0x10] sm:$0xff]  }
 0x854   : > { %15995 = vmatmul.mubr.bf16.vlgmr.msra.gmra.mxu0 %v20378_v1  ;;  %16015 = vmatmul.mubr.bf16.vlgmr.msra.gmra.mxu1 %v20378_v1  ;;  %v10497_v23 = vpop.f32.mrf.mxu0  ;;  %v10620_v5 = vpop.f32.mrf.mxu1 }
 0x855   : > { %v10510_v32 = vrot.slane %v10497_v23, %v20801_v34  ;;  %v10633_v28 = vrot.slane %v10620_v5, %v20801_v34  ;;  %16034 = vmatprep.mubr.msk.bf16.mxu0 %vm16632_vm3, %v21321_v58  ;;  %16054 = vmatprep.mubr.msk.bf16.mxu1 %vm16632_vm3, %v21321_v58  ;;  %v16505_v23 = vld [vmem:[%s20993_s11 + $0x28] sm:$0xff]  }
 0x856   : > { %v15756_v30 = vpop.f32.mrf.mxu0  ;;  %v15776_v3 = vpop.f32.mrf.mxu1  ;;  %16019 = vmatpush3.bf16.msra.mxu0 %v16495_v37  ;;  %16039 = vmatpush3.bf16.msra.mxu1 %v16503_v43  ;;  %v16501_v5 = vld [vmem:[%s20991_s9 + $0x8] sm:$0xff]  }
 0x857   : > { %v10517_v26 = vrot.slane %v10510_v32, %v20801_v34  ;;  %v10634_v57 = vcombine.high %v10633_v28, %v10633_v28  ;;  %16020 = vmatprep.subr.bf16.mxu0 %v21321_v58  ;;  %16040 = vmatprep.subr.bf16.mxu1 %v21321_v58  ;;  %v16506_v30 = vld [vmem:[%s20993_s11 + $0x20] sm:$0xff]  }
 0x858   : > { %v10500_v39 = vpop.f32.mrf.mxu0  ;;  %v10623_v60 = vpop.f32.mrf.mxu1 }
 0x859   : > { %v10518_v1 = vcombine.high %v10517_v26, %v10517_v26  ;;  %v10641_v31 = vrot.slane %v10634_v57, %v20801_v34  ;;  %v16502_v57 = vld [vmem:[%s20991_s9] sm:$0xff]  }
 0x85a   : > { %v15757_v24 = vpop.f32.mrf.mxu0  ;;  %v15777_v0 = vpop.f32.mrf.mxu1  ;;  %16021 = vmatpush3.bf16.msra.mxu0 %v16496_v18  ;;  %16041 = vmatpush3.bf16.msra.mxu1 %v16504_v21 }
 0x85b   : > { %v10520_v62 = vadd.f32 %v10518_v1, %v10397_v25  ;;  %v10642_v36 = vcombine.high %v10641_v31, %v10641_v31  ;;  %16022 = vmatprep.subr.bf16.mxu0 %v21321_v58  ;;  %16042 = vmatprep.subr.bf16.mxu1 %v21321_v58  ;;  %v16507_v24 = vld [vmem:[%s20993_s11 + $0x18] sm:$0xff]  }
 0x85d   : > { %v10644_v63 = vadd.f32 %v10642_v36, %v10520_v62 }
 0x85e   : > { %16023 = vmatpush3.bf16.msra.mxu0 %v16497_v53  ;;  %16043 = vmatpush3.bf16.msra.mxu1 %v16505_v23 }
 0x85f   : > { %16024 = vmatprep.subr.bf16.mxu0 %v21321_v58  ;;  %16044 = vmatprep.subr.bf16.mxu1 %v21321_v58 }
 0x862   : > { %16025 = vmatpush3.bf16.msra.mxu0 %v16498_v46  ;;  %16045 = vmatpush3.bf16.msra.mxu1 %v16506_v30 }
 0x863   : > { %16026 = vmatprep.subr.bf16.mxu0 %v21321_v58  ;;  %16046 = vmatprep.subr.bf16.mxu1 %v21321_v58 }
 0x866   : > { %16027 = vmatpush3.bf16.msra.mxu0 %v16499_v44  ;;  %16047 = vmatpush3.bf16.msra.mxu1 %v16507_v24 }
 0x867   : > { %16028 = vmatprep.subr.bf16.mxu0 %v21321_v58  ;;  %16048 = vmatprep.subr.bf16.mxu1 %v21321_v58 }
 0x86a   : > { %16029 = vmatpush3.bf16.msra.mxu0 %v16500_v6 }
 0x86b   : > { %16030 = vmatprep.subr.bf16.mxu0 %v21321_v58 }
 0x86e   : > { %16031 = vmatpush3.bf16.msra.mxu0 %v16501_v5 }
 0x86f   : > { %16032 = vmatprep.subr.bf16.mxu0 %v21321_v58 }
 0x872   : > { %16033 = vmatpush3.bf16.msra.mxu0 %v16502_v57 }
 0x874   : > { %v10744_v9 = vpop.f32.mrf.mxu0  ;;  %v10867_v11 = vpop.f32.mrf.mxu1 }
 0x875   : > { %v10751_v47 = vcombine.high %v10744_v9, %v10744_v9  ;;  %v10874_v41 = vcombine.high %v10867_v11, %v10867_v11  ;;  %v16508_v9 = vld [vmem:[%s20993_s11 + $0x10] sm:$0xff]  }
 0x876   : > { %v15796_v17 = vpop.f32.mrf.mxu0  ;;  %v15816_v61 = vpop.f32.mrf.mxu1  ;;  %16049 = vmatpush3.bf16.msra.mxu1 %v16508_v9 }
 0x877   : > { %v10758_v49 = vrot.slane %v10751_v47, %v20801_v34  ;;  %v10881_v7 = vrot.slane %v10874_v41, %v20801_v34  ;;  %16050 = vmatprep.subr.bf16.mxu1 %v21321_v58 }
 0x878   : > { %v10747_v14 = vpop.f32.mrf.mxu0  ;;  %v10870_v13 = vpop.f32.mrf.mxu1 }
 0x879   : > { %v10765_v38 = vrot.slane %v10758_v49, %v20801_v34  ;;  %v10882_v12 = vcombine.high %v10881_v7, %v10881_v7 }
 0x87a   : > { %v15797_v48 = vpop.f32.mrf.mxu0  ;;  %v15817_v16 = vpop.f32.mrf.mxu1 }
 0x87b   : > { %v10767_v50 = vadd.f32 %v10765_v38, %v10644_v63  ;;  %v10889_v27 = vrot.slane %v10882_v12, %v20801_v34 }
 0x87d   : > { %v10891_v33 = vadd.f32 %v10889_v27, %v10767_v50 }
 0x894   : > { %v10991_v40 = vpop.f32.mrf.mxu0  ;;  %v11115_v4 = vpop.f32.mrf.mxu1 }
 0x895   : > { %v10998_v54 = vcombine.high %v10991_v40, %v10991_v40  ;;  %v11122_v56 = vcombine.high %v11115_v4, %v11115_v4 }
 0x896   : > { %v15836_v45 = vpop.f32.mrf.mxu0  ;;  %v15856_v42 = vpop.f32.mrf.mxu1 }
 0x897   : > { %v11005_v51 = vrot.slane %v10998_v54, %v20801_v34  ;;  %v11129_v10 = vrot.slane %v11122_v56, %v20801_v34 }
 0x898   : > { %v10994_v8 = vpop.f32.mrf.mxu0  ;;  %v11118_v20 = vpop.f32.mrf.mxu1 }
 0x899   : > { %v11012_v29 = vrot.slane %v11005_v51, %v20801_v34  ;;  %v11130_v19 = vcombine.high %v11129_v10, %v11129_v10 }
 0x89a   : > { %v15837_v52 = vpop.f32.mrf.mxu0  ;;  %v15857_v25 = vpop.f32.mrf.mxu1 }
 0x89b   : > { %v11013_v55 = vcombine.high %v11012_v29, %v11012_v29  ;;  %v11137_v59 = vrot.slane %v11130_v19, %v20801_v34 }
 0x89d   : > { %v11015_v15 = vadd.f32 %v11013_v55, %v10891_v33  ;;  %v11138_v35 = vcombine.high %v11137_v59, %v11137_v59 }
 0x89f   : > { %v11140_v22 = vadd.f32 %v11138_v35, %v11015_v15 }
 0x8b4   : > { %v11240_v32 = vpop.f32.mrf.mxu0  ;;  %v11346_v28 = vpop.f32.mrf.mxu1 }
 0x8b6   : > { %v15876_v3 = vpop.f32.mrf.mxu0  ;;  %v15896_v26 = vpop.f32.mrf.mxu1 }
 0x8b8   : > { %v11242_v39 = vpop.f32.mrf.mxu0  ;;  %v11348_v60 = vpop.f32.mrf.mxu1 }
 0x8b9   : > { %v11246_v1 = vadd.f32 %v11242_v39, %v11140_v22  ;;  %v11359_v31 = vrot.slane %v11348_v60, %v20801_v34 }
 0x8ba   : > { %v15877_v0 = vpop.f32.mrf.mxu0  ;;  %v15897_v62 = vpop.f32.mrf.mxu1 }
 0x8bb   : > { %v11360_v36 = vcombine.high %v11359_v31, %v11359_v31  ;;  %v12117_v31 = vsub.s32 0, %v20790_v2  ;;  %v13646_v2 = vld [vmem:[%s20992_s10] ss:$0 sm:$0xff] }
 0x8bd   : > { %v11367_v63 = vrot.slane %v11360_v36, %v20801_v34  ;;  %v16509_v36 = vld [vmem:[%s20993_s11 + $0x8] sm:$0xff]  }
 0x8be   : > { %16051 = vmatpush3.bf16.msra.mxu1 %v16509_v36 }
 0x8bf   : > { %v11369_v11 = vadd.f32 %v11367_v63, %v11246_v1  ;;  %v16510_v63 = vld [vmem:[%s20993_s11] sm:$0xff]   ;;  %16052 = vmatprep.subr.bf16.mxu1 %v21321_v58 }
 0x8c2   : > { %16053 = vmatpush3.bf16.msra.mxu1 %v16510_v63 }
 0x8d4   : > { %v11469_v47 = vpop.f32.mrf.mxu0  ;;  %v11592_v41 = vpop.f32.mrf.mxu1 }
 0x8d6   : > { %v15916_v17 = vpop.f32.mrf.mxu0  ;;  %v15936_v61 = vpop.f32.mrf.mxu1 }
 0x8d8   : > { %v11471_v49 = vpop.f32.mrf.mxu0  ;;  %v11594_v7 = vpop.f32.mrf.mxu1 }
 0x8d9   : > { %v11482_v18 = vrot.slane %v11471_v49, %v20801_v34  ;;  %v11605_v40 = vrot.slane %v11594_v7, %v20801_v34  ;;  %v13655_v49 = vld [vmem:[%s20994_s12] ss:$0 sm:$0xff] }
 0x8da   : > { %v15917_v14 = vpop.f32.mrf.mxu0  ;;  %v15937_v13 = vpop.f32.mrf.mxu1 }
 0x8db   : > { %v11489_v4 = vrot.slane %v11482_v18, %v20801_v34  ;;  %v11606_v53 = vcombine.high %v11605_v40, %v11605_v40 }
 0x8dd   : > { %v11490_v45 = vcombine.high %v11489_v4, %v11489_v4  ;;  %v11613_v42 = vrot.slane %v11606_v53, %v20801_v34 }
 0x8df   : > { %v11492_v29 = vadd.f32 %v11490_v45, %v11369_v11  ;;  %v11614_v19 = vcombine.high %v11613_v42, %v11613_v42 }
 0x8e1   : > { %v11616_v22 = vadd.f32 %v11614_v19, %v11492_v29 }
 0x8f4   : > { %v11716_v38 = vpop.f32.mrf.mxu0  ;;  %v11839_v12 = vpop.f32.mrf.mxu1 }
 0x8f6   : > { %v15956_v48 = vpop.f32.mrf.mxu0  ;;  %v15976_v16 = vpop.f32.mrf.mxu1 }
 0x8f8   : > { %v11718_v50 = vpop.f32.mrf.mxu0  ;;  %v11841_v27 = vpop.f32.mrf.mxu1 }
 0x8f9   : > { %v11723_v54 = vcombine.high %v11718_v50, %v11718_v50  ;;  %v11846_v56 = vcombine.high %v11841_v27, %v11841_v27 }
 0x8fa   : > { %v15957_v33 = vpop.f32.mrf.mxu0  ;;  %v15977_v37 = vpop.f32.mrf.mxu1 }
 0x8fb   : > { %v11730_v51 = vrot.slane %v11723_v54, %v20801_v34  ;;  %v11853_v10 = vrot.slane %v11846_v56, %v20801_v34 }
 0x8fd   : > { %v11737_v55 = vrot.slane %v11730_v51, %v20801_v34  ;;  %v11854_v59 = vcombine.high %v11853_v10, %v11853_v10 }
 0x8ff   : > { %v11739_v6 = vadd.f32 %v11737_v55, %v11616_v22  ;;  %v11861_v23 = vrot.slane %v11854_v59, %v20801_v34 }
 0x901   : > { %v11863_v3 = vadd.f32 %v11861_v23, %v11739_v6 }
 0x914   : > { %v11963_v8 = vpop.f32.mrf.mxu0  ;;  %v12087_v20 = vpop.f32.mrf.mxu1 }
 0x916   : > { %v15996_v52 = vpop.f32.mrf.mxu0  ;;  %v16016_v25 = vpop.f32.mrf.mxu1 }
 0x918   : > { %v11965_v15 = vpop.f32.mrf.mxu0  ;;  %v12089_v35 = vpop.f32.mrf.mxu1 }
 0x919   : > { %v11970_v46 = vcombine.high %v11965_v15, %v11965_v15  ;;  %v12094_v44 = vcombine.high %v12089_v35, %v12089_v35 }
 0x91a   : > { %v15997_v43 = vpop.f32.mrf.mxu0  ;;  %v16017_v21 = vpop.f32.mrf.mxu1 }
 0x91b   : > { %v11977_v5 = vrot.slane %v11970_v46, %v20801_v34  ;;  %v12101_v32 = vrot.slane %v12094_v44, %v20801_v34 }
 0x91d   : > { %v11984_v28 = vrot.slane %v11977_v5, %v20801_v34  ;;  %v12102_v30 = vcombine.high %v12101_v32, %v12101_v32 }
 0x91f   : > { %v11985_v26 = vcombine.high %v11984_v28, %v11984_v28  ;;  %v12109_v57 = vrot.slane %v12102_v30, %v20801_v34 }
 0x921   : > { %v11987_v39 = vadd.f32 %v11985_v26, %v11863_v3  ;;  %v12110_v60 = vcombine.high %v12109_v57, %v12109_v57 }
 0x923   : > { %v12112_v1 = vadd.f32 %v12110_v60, %v11987_v39 }
 0x925   : > { %v12113_v24 = vmax.f32 %v12112_v1, 0.0 }
 0x927   : > { %v12118_v0 = vrot.slane %v12113_v24, %v12117_v31 }
 0x929   : > { %v12120_v62 = vpack.c.bf16 %v12118_v0, %v12118_v0 }
 0x92b   : > { %16035 = vmatmul.mubr.bf16.vlgmr.msra.gmra.mxu0 %v12120_v62 }
 0x9eb   : > { %v12226_v34 = vpop.f32.mrf.mxu0 }
 0x9ec   : > { %v12227_v9 = vadd.f32 %v13646_v2, %v12226_v34 }
 0x9ed   : > { %v16036_v11 = vpop.f32.mrf.mxu0 }
 0x9ee   : > { %v12232_v47 = vmax.f32 %v12227_v9, 0.0 }
 0x9ef   : > { %v12229_v41 = vpop.f32.mrf.mxu0 }
 0x9f0   : > { %v12233_v17 = vpack.c.bf16 %v12232_v47, %v12232_v47 }
 0x9f1   : > { %v16037_v61 = vpop.f32.mrf.mxu0 }
 0x9f2   : > { %16055 = vmatmul.mubr.bf16.vlgmr.msra.gmra.mxu1 %v12233_v17 }
 0xab2   : > { %v12339_v58 = vpop.f32.mrf.mxu1 }
 0xab3   : > { %v12340_v7 = vadd.f32 %v13655_v49, %v12339_v58 }
 0xab4   : > { %v16056_v14 = vpop.f32.mrf.mxu1 }
 0xab5   : > { %12345 = vst [vmem:[%s438_s24] sm:$0xff] %v12340_v7 }
 0xab6   : > { %v12342_v13 = vpop.f32.mrf.mxu1 }
 0xab8   : > { %v16057_v38 = vpop.f32.mrf.mxu1 }
 0xab9 PF: > { %s23_s25 = sadd.s32 1, %s16628_s25  }
 0xaba   : > { %p20_p4 = scmp.ge.s32.totalorder %s23_s25, 4  }
 0xabc   :  { %22 = sbr.rel (!%p20_p4) target bundleno = 1 (0x1), region = 145 }

</bundles_post_ra>
